<compile_context>
chip_gen: v7x
topology: tpu7x:2x2x1
jax: 0.10.0
libtpu: 0.0.40
codegen_flags: <defaults>
</compile_context>

<pallas_src>
import jax
import jax.numpy as jnp
import numpy as np
from jax.experimental import pallas as pl
from jax.experimental.pallas import tpu as pltpu


def _layernorm(x, gamma, beta, eps):
    mu = jnp.mean(x, axis=-1, keepdims=True)
    var = jnp.mean((x - mu) ** 2, axis=-1, keepdims=True)
    return (x - mu) * jax.lax.rsqrt(var + eps) * gamma + beta


def _gelu_exact(x):
    # nn.GELU() default (approximate='none') -> erf based
    return 0.5 * x * (1.0 + jax.lax.erf(x * jnp.float32(0.7071067811865476)))


def _choose_pairs_per_block(Bn, TN):
    """Pick P (pairs per grid block) so P*TN fills the MXU rows (~256) while
    preferring to keep >=2 grid steps for v7x megacore sharding."""
    divs = [p for p in range(1, Bn + 1) if Bn % p == 0]
    candidates = [p for p in divs if p * TN <= 512]
    if not candidates:
        return 1
    full = [p for p in candidates if p * TN >= 256 and Bn // p >= 2]
    if full:
        return min(full)
    full = [p for p in candidates if p * TN >= 256]
    if full:
        return min(full)
    return max(candidates)


def _make_fused_kernel(P, N, C, H, hd, eps):
    bf16 = jnp.bfloat16
    f32 = jnp.float32
    TN = 2 * N          # tokens per clip pair
    R = P * TN          # token rows per grid block

    def kernel(x_ref, g1_ref, b1_ref, wqkv_ref, wproj_ref, bp_ref,
               g2_ref, b2_ref, w1_ref, bm1_ref, w2_ref, bm2_ref, o_ref):
        x = x_ref[...].reshape(R, C)                          # (R, C) f32

        # ---------------- attention branch ----------------
        xn = _layernorm(x, g1_ref[0], b1_ref[0], eps)         # norm1, f32
        # ONE lane-dense fused QKV projection (scale folded into Q columns)
        qkv = jnp.dot(xn.astype(bf16), wqkv_ref[...],
                      preferred_element_type=f32)             # (R, 3C) f32
        qkv = qkv.reshape(P, TN, 3 * C)

        # f32 sublane slices (N is a multiple of 8) before any bf16 cast
        q = qkv[:, :N, 0 * C:1 * C]                           # clip-0 queries (P, N, C)
        k0 = qkv[:, :N, 1 * C:2 * C]                          # clip-0 keys
        k1 = qkv[:, N:, 1 * C:2 * C]                          # clip-1 keys
        v0 = qkv[:, :N, 2 * C:3 * C]                          # clip-0 values
        v1 = qkv[:, N:, 2 * C:3 * C]                          # clip-1 values

        def softmax(z):
            z = z - jnp.max(z, axis=-1, keepdims=True)
            e = jnp.exp(z)
            return e * pl.reciprocal(jnp.sum(e, axis=-1, keepdims=True), approx=True)

        # Per-head cross attention, batched over the P pairs (3D einsums with a
        # single leading batch dim; two separate score matmuls per head instead
        # of slicing a packed score tensor mid-vreg).
        outs0, outs1 = [], []
        for h in range(H):                                    # static unroll
            sl = slice(h * hd, (h + 1) * hd)
            qh = q[:, :, sl].astype(bf16)                     # (P, N, hd)
            s0 = jnp.einsum('pnd,pmd->pnm', qh, k0[:, :, sl].astype(bf16),
                            preferred_element_type=f32)       # (P, N, N)
            s1 = jnp.einsum('pnd,pmd->pnm', qh, k1[:, :, sl].astype(bf16),
                            preferred_element_type=f32)
            outs0.append(jnp.einsum('pnm,pmd->pnd', softmax(s0).astype(bf16),
                                    v0[:, :, sl].astype(bf16),
                                    preferred_element_type=f32))   # (P, N, hd)
            outs1.append(jnp.einsum('pnm,pmd->pnd', softmax(s1).astype(bf16),
                                    v1[:, :, sl].astype(bf16),
                                    preferred_element_type=f32))

        # Re-assemble heads into lane slots (-> (P, N, C)), then stack the two
        # clips along the 8-aligned sublane axis to form the lane-dense (R, C)
        # input of the single fused output projection.
        a0 = jnp.concatenate(outs0, axis=-1)                  # clip-0 rows (P, N, C)
        a1 = jnp.concatenate(outs1, axis=-1)                  # clip-1 rows (P, N, C)
        attn = jnp.concatenate([a0, a1], axis=1).reshape(R, C)

        # ONE lane-dense output projection against the original (C, C) weight
        proj = jnp.dot(attn.astype(bf16), wproj_ref[...],
                       preferred_element_type=f32) + bp_ref[...]
        xa = x + proj                                         # residual 1 (stays in VMEM)

        # ---------------- MLP branch ----------------
        xn2 = _layernorm(xa, g2_ref[0], b2_ref[0], eps)       # norm2, f32
        hmid = jnp.dot(xn2.astype(bf16), w1_ref[...],
                       preferred_element_type=f32) + bm1_ref[...]
        hmid = _gelu_exact(hmid)                              # exact erf-GELU, f32
        y = jnp.dot(hmid.astype(bf16), w2_ref[...],
                    preferred_element_type=f32) + bm2_ref[...]

        o_ref[...] = (xa + y).reshape(P, TN, C)               # residual 2

    return kernel


def block2_forward(x, params, num_heads):
    B, T, N, C = x.shape
    assert (B * T) % 2 == 0, "CrossAttention2 pairs clips: B*T must be even"
    assert C % num_heads == 0
    H = num_heads
    hd = C // H
    scale = float(hd) ** -0.5
    eps = 1e-5
    Bn = (B * T) // 2                     # number of clip pairs (x.view(-1, 2, N, C))
    TN = 2 * N
    Hd = params["w1"].shape[1]
    bf16 = jnp.bfloat16

    P = _choose_pairs_per_block(Bn, TN)   # pairs per grid block
    G = Bn // P

    xp = x.reshape(Bn, TN, C).astype(jnp.float32)

    # --- one-time parameter prep (outside the kernel, free) ---
    wqkv = params["wqkv"].astype(jnp.float32)                         # (C, 3C)
    wqkv_s = jnp.concatenate([wqkv[:, :C] * scale, wqkv[:, C:]],
                             axis=1).astype(bf16)                     # scale folded into Q
    wproj = params["wproj"].astype(bf16)                              # (C, C)
    w1 = params["w1"].astype(bf16)                                    # (C, Hd)
    w2 = params["w2"].astype(bf16)                                    # (Hd, C)

    g1 = params["g1"].reshape(1, C).astype(jnp.float32)
    b1 = params["b1"].reshape(1, C).astype(jnp.float32)
    g2 = params["g2"].reshape(1, C).astype(jnp.float32)
    b2 = params["b2"].reshape(1, C).astype(jnp.float32)
    bproj = params["bproj"].reshape(1, C).astype(jnp.float32)
    bm1 = params["bm1"].reshape(1, Hd).astype(jnp.float32)
    bm2 = params["bm2"].reshape(1, C).astype(jnp.float32)

    kernel = _make_fused_kernel(P, N, C, H, hd, eps)

    y = pl.pallas_call(
        kernel,
        out_shape=jax.ShapeDtypeStruct((Bn, TN, C), jnp.float32),
        grid=(G,),
        in_specs=[
            pl.BlockSpec((P, TN, C), lambda i: (i, 0, 0)),       # x (P clip pairs)
            pl.BlockSpec((1, C), lambda i: (0, 0)),              # gamma1
            pl.BlockSpec((1, C), lambda i: (0, 0)),              # beta1
            pl.BlockSpec((C, 3 * C), lambda i: (0, 0)),          # fused wqkv (Q cols scaled)
            pl.BlockSpec((C, C), lambda i: (0, 0)),              # wproj
            pl.BlockSpec((1, C), lambda i: (0, 0)),              # bproj
            pl.BlockSpec((1, C), lambda i: (0, 0)),              # gamma2
            pl.BlockSpec((1, C), lambda i: (0, 0)),              # beta2
            pl.BlockSpec((C, Hd), lambda i: (0, 0)),             # mlp w1
            pl.BlockSpec((1, Hd), lambda i: (0, 0)),             # mlp b1
            pl.BlockSpec((Hd, C), lambda i: (0, 0)),             # mlp w2
            pl.BlockSpec((1, C), lambda i: (0, 0)),              # mlp b2
        ],
        out_specs=pl.BlockSpec((P, TN, C), lambda i: (i, 0, 0)),
        compiler_params=pltpu.CompilerParams(
            dimension_semantics=("parallel",),
            vmem_limit_bytes=64 * 1024 * 1024,
        ),
    )(xp, g1, b1, wqkv_s, wproj, bproj, g2, b2, w1, bm1, w2, bm2)

    return y.reshape(B, T, N, C)


def block2_reference(x, params, num_heads):
    """Pure-JAX f32 mirror of the PyTorch forward (for verification)."""
    B, T, N, C = x.shape
    H = num_heads
    hd = C // H
    scale = float(hd) ** -0.5
    eps = 1e-5

    def ln(v, g, b):
        mu = v.mean(-1, keepdims=True)
        var = ((v - mu) ** 2).mean(-1, keepdims=True)
        return (v - mu) / jnp.sqrt(var + eps) * g + b

    xn = ln(x, params["g1"], params["b1"])
    xp = xn.reshape(-1, 2, N, C)
    Bn = xp.shape[0]
    qkv = xp @ params["wqkv"]                                          # (Bn, 2, N, 3C)
    qkv = qkv.reshape(Bn, 2, N, 3, H, hd).transpose(3, 0, 1, 4, 2, 5)  # (3,Bn,2,H,N,hd)
    q, k, v = qkv[0] * scale, qkv[1], qkv[2]
    q0 = q[:, 0]                                                       # queries from clip 0
    a1 = jax.nn.softmax(jnp.einsum('bhnd,bhmd->bhnm', q0, k[:, 0]), axis=-1)
    a2 = jax.nn.softmax(jnp.einsum('bhnd,bhmd->bhnm', q0, k[:, 1]), axis=-1)
    o1 = jnp.einsum('bhnm,bhmd->bhnd', a1, v[:, 0])
    o2 = jnp.einsum('bhnm,bhmd->bhnd', a2, v[:, 1])
    vc = jnp.stack([o1, o2], axis=1)                                   # (Bn,2,H,N,hd)
    vc = vc.transpose(0, 1, 3, 2, 4).reshape(Bn, 2, N, C)
    attn_out = vc @ params["wproj"] + params["bproj"]
    x = x + attn_out.reshape(B, T, N, C)
    xn2 = ln(x, params["g2"], params["b2"])
    h = _gelu_exact(xn2 @ params["w1"] + params["bm1"])
    return x + (h @ params["w2"] + params["bm2"])


if __name__ == "__main__":
    # small shapes consistent with the module: dim=C=128, num_heads=4, mlp_ratio=4
    # B*T = 32 clips -> 16 clip pairs; P=8 pairs/block -> 256 token rows/block, grid=(2,)
    B, T, N, C = 2, 16, 16, 128
    H = 4
    Hd = int(C * 4.0)

    key = jax.random.PRNGKey(0)
    ks = jax.random.split(key, 8)
    params = {
        "g1": jnp.ones((C,), jnp.float32),               # LayerNorm defaults
        "b1": jnp.zeros((C,), jnp.float32),
        "g2": jnp.ones((C,), jnp.float32),
        "b2": jnp.zeros((C,), jnp.float32),
        "wqkv": 0.02 * jax.random.normal(ks[0], (C, 3 * C), jnp.float32),
        "wproj": 0.02 * jax.random.normal(ks[1], (C, C), jnp.float32),
        "bproj": 0.02 * jax.random.normal(ks[2], (C,), jnp.float32),
        "w1": 0.02 * jax.random.normal(ks[3], (C, Hd), jnp.float32),
        "bm1": 0.02 * jax.random.normal(ks[4], (Hd,), jnp.float32),
        "w2": 0.02 * jax.random.normal(ks[5], (Hd, C), jnp.float32),
        "bm2": 0.02 * jax.random.normal(ks[6], (C,), jnp.float32),
    }
    x = jax.random.normal(ks[7], (B, T, N, C), jnp.float32)

    out = block2_forward(x, params, H)
    out = jax.block_until_ready(out)

    ref = jax.block_until_ready(block2_reference(x, params, H))
    # Kernel uses bf16 matmul inputs (f32 accumulation) and the EUP approximate
    # reciprocal in softmax, hence the relaxed tolerance vs the all-f32 reference.
    np.testing.assert_allclose(np.asarray(out), np.asarray(ref), rtol=1e-2, atol=1e-2)

    print("KERNEL_OK")
</pallas_src>

<mosaic_0001>
module attributes {stable_mosaic.version = 11 : i64} {
  func.func @kernel(%arg0: i32, %arg1: memref<8x32x128xf32, #tpu.memory_space<vmem>>, %arg2: memref<1x128xf32, #tpu.memory_space<vmem>>, %arg3: memref<1x128xf32, #tpu.memory_space<vmem>>, %arg4: memref<128x384xbf16, #tpu.memory_space<vmem>>, %arg5: memref<128x128xbf16, #tpu.memory_space<vmem>>, %arg6: memref<1x128xf32, #tpu.memory_space<vmem>>, %arg7: memref<1x128xf32, #tpu.memory_space<vmem>>, %arg8: memref<1x128xf32, #tpu.memory_space<vmem>>, %arg9: memref<128x512xbf16, #tpu.memory_space<vmem>>, %arg10: memref<1x512xf32, #tpu.memory_space<vmem>>, %arg11: memref<512x128xbf16, #tpu.memory_space<vmem>>, %arg12: memref<1x128xf32, #tpu.memory_space<vmem>>, %arg13: memref<8x32x128xf32, #tpu.memory_space<vmem>>) attributes {dimension_semantics = [#tpu.dimension_semantics<parallel>], iteration_bounds = array<i64: 2>, scalar_prefetch = 0 : i64, scratch_operands = 0 : i64, tpu.core_type = #tpu.core_type<tc>, window_params = [{transform_indices = @transform_0, window_bounds = array<i64: 8, 32, 128>}, {pipeline_mode = #tpu.pipeline_mode<synchronous>, transform_indices = @transform_1, window_bounds = array<i64: 1, 128>}, {pipeline_mode = #tpu.pipeline_mode<synchronous>, transform_indices = @transform_2, window_bounds = array<i64: 1, 128>}, {pipeline_mode = #tpu.pipeline_mode<synchronous>, transform_indices = @transform_3, window_bounds = array<i64: 128, 384>}, {pipeline_mode = #tpu.pipeline_mode<synchronous>, transform_indices = @transform_4, window_bounds = array<i64: 128, 128>}, {pipeline_mode = #tpu.pipeline_mode<synchronous>, transform_indices = @transform_5, window_bounds = array<i64: 1, 128>}, {pipeline_mode = #tpu.pipeline_mode<synchronous>, transform_indices = @transform_6, window_bounds = array<i64: 1, 128>}, {pipeline_mode = #tpu.pipeline_mode<synchronous>, transform_indices = @transform_7, window_bounds = array<i64: 1, 128>}, {pipeline_mode = #tpu.pipeline_mode<synchronous>, transform_indices = @transform_8, window_bounds = array<i64: 128, 512>}, {pipeline_mode = #tpu.pipeline_mode<synchronous>, transform_indices = @transform_9, window_bounds = array<i64: 1, 512>}, {pipeline_mode = #tpu.pipeline_mode<synchronous>, transform_indices = @transform_10, window_bounds = array<i64: 512, 128>}, {pipeline_mode = #tpu.pipeline_mode<synchronous>, transform_indices = @transform_11, window_bounds = array<i64: 1, 128>}, {transform_indices = @transform_12, window_bounds = array<i64: 8, 32, 128>}]} {
    %c0 = arith.constant 0 : index
    %c0_0 = arith.constant 0 : index
    %c0_1 = arith.constant 0 : index
    %0 = vector.load %arg1[%c0, %c0_0, %c0_1] : memref<8x32x128xf32, #tpu.memory_space<vmem>>, vector<8x32x128xf32>
    %1 = vector.shape_cast %0 : vector<8x32x128xf32> to vector<256x128xf32>
    %c0_2 = arith.constant 0 : index
    %c0_3 = arith.constant 0 : index
    %2 = vector.load %arg2[%c0_2, %c0_3] : memref<1x128xf32, #tpu.memory_space<vmem>>, vector<1x128xf32>
    %3 = vector.shape_cast %2 : vector<1x128xf32> to vector<128xf32>
    %c0_4 = arith.constant 0 : index
    %c0_5 = arith.constant 0 : index
    %4 = vector.load %arg3[%c0_4, %c0_5] : memref<1x128xf32, #tpu.memory_space<vmem>>, vector<1x128xf32>
    %5 = vector.shape_cast %4 : vector<1x128xf32> to vector<128xf32>
    %cst = arith.constant dense<0.000000e+00> : vector<256xf32>
    %6 = vector.multi_reduction <add>, %1, %cst [1] : vector<256x128xf32> to vector<256xf32>
    %7 = vector.shape_cast %6 : vector<256xf32> to vector<256x1xf32>
    %cst_6 = arith.constant 1.280000e+02 : f32
    %8 = vector.broadcast %cst_6 : f32 to vector<256x1xf32>
    %9 = arith.divf %7, %8 : vector<256x1xf32>
    %10 = vector.broadcast %9 : vector<256x1xf32> to vector<256x128xf32>
    %11 = arith.subf %1, %10 : vector<256x128xf32>
    %12 = arith.mulf %11, %11 : vector<256x128xf32>
    %cst_7 = arith.constant dense<0.000000e+00> : vector<256xf32>
    %13 = vector.multi_reduction <add>, %12, %cst_7 [1] : vector<256x128xf32> to vector<256xf32>
    %14 = vector.shape_cast %13 : vector<256xf32> to vector<256x1xf32>
    %cst_8 = arith.constant 1.280000e+02 : f32
    %15 = vector.broadcast %cst_8 : f32 to vector<256x1xf32>
    %16 = arith.divf %14, %15 : vector<256x1xf32>
    %17 = vector.broadcast %9 : vector<256x1xf32> to vector<256x128xf32>
    %18 = arith.subf %1, %17 : vector<256x128xf32>
    %cst_9 = arith.constant 9.99999974E-6 : f32
    %19 = vector.broadcast %cst_9 : f32 to vector<256x1xf32>
    %20 = arith.addf %16, %19 : vector<256x1xf32>
    %21 = math.rsqrt %20 : vector<256x1xf32>
    %22 = vector.broadcast %21 : vector<256x1xf32> to vector<256x128xf32>
    %23 = arith.mulf %18, %22 : vector<256x128xf32>
    %24 = vector.shape_cast %3 : vector<128xf32> to vector<1x128xf32>
    %25 = vector.broadcast %24 : vector<1x128xf32> to vector<256x128xf32>
    %26 = arith.mulf %23, %25 : vector<256x128xf32>
    %27 = vector.shape_cast %5 : vector<128xf32> to vector<1x128xf32>
    %28 = vector.broadcast %27 : vector<1x128xf32> to vector<256x128xf32>
    %29 = arith.addf %26, %28 : vector<256x128xf32>
    %30 = arith.truncf %29 : vector<256x128xf32> to vector<256x128xbf16>
    %c0_10 = arith.constant 0 : index
    %c0_11 = arith.constant 0 : index
    %31 = vector.load %arg4[%c0_10, %c0_11] : memref<128x384xbf16, #tpu.memory_space<vmem>>, vector<128x384xbf16>
    %cst_12 = arith.constant dense<0.000000e+00> : vector<256x384xf32>
    %32 = tpu.matmul %30, %31, %cst_12 {dimension_numbers = #tpu.dot_dimension_numbers<[1], [0], [0], [1], [0, 0, 1, 1], [], []>} : vector<256x128xbf16>, vector<128x384xbf16>, vector<256x384xf32> -> vector<256x384xf32>
    %33 = vector.shape_cast %32 : vector<256x384xf32> to vector<8x32x384xf32>
    %34 = vector.extract_strided_slice %33 {offsets = [0, 0, 0], sizes = [8, 16, 128], strides = [1, 1, 1]} : vector<8x32x384xf32> to vector<8x16x128xf32>
    %35 = vector.extract_strided_slice %33 {offsets = [0, 0, 128], sizes = [8, 16, 128], strides = [1, 1, 1]} : vector<8x32x384xf32> to vector<8x16x128xf32>
    %36 = vector.extract_strided_slice %33 {offsets = [0, 16, 128], sizes = [8, 16, 128], strides = [1, 1, 1]} : vector<8x32x384xf32> to vector<8x16x128xf32>
    %37 = vector.extract_strided_slice %33 {offsets = [0, 0, 256], sizes = [8, 16, 128], strides = [1, 1, 1]} : vector<8x32x384xf32> to vector<8x16x128xf32>
    %38 = vector.extract_strided_slice %33 {offsets = [0, 16, 256], sizes = [8, 16, 128], strides = [1, 1, 1]} : vector<8x32x384xf32> to vector<8x16x128xf32>
    %39 = vector.extract_strided_slice %34 {offsets = [0, 0, 0], sizes = [8, 16, 32], strides = [1, 1, 1]} : vector<8x16x128xf32> to vector<8x16x32xf32>
    %40 = arith.truncf %39 : vector<8x16x32xf32> to vector<8x16x32xbf16>
    %41 = vector.extract_strided_slice %35 {offsets = [0, 0, 0], sizes = [8, 16, 32], strides = [1, 1, 1]} : vector<8x16x128xf32> to vector<8x16x32xf32>
    %42 = arith.truncf %41 : vector<8x16x32xf32> to vector<8x16x32xbf16>
    "tpu.trace_start"() <{level = 10 : i32, message = "pnd,pmd->pnm"}> : () -> ()
    %cst_13 = arith.constant dense<0.000000e+00> : vector<8x16x16xf32>
    %43 = tpu.matmul %40, %42, %cst_13 {dimension_numbers = #tpu.dot_dimension_numbers<[2], [2], [1], [1], [0, 0, 0, 1, 1, 1], [0], [0]>} : vector<8x16x32xbf16>, vector<8x16x32xbf16>, vector<8x16x16xf32> -> vector<8x16x16xf32>
    "tpu.trace_stop"() : () -> ()
    %44 = vector.extract_strided_slice %36 {offsets = [0, 0, 0], sizes = [8, 16, 32], strides = [1, 1, 1]} : vector<8x16x128xf32> to vector<8x16x32xf32>
    %45 = arith.truncf %44 : vector<8x16x32xf32> to vector<8x16x32xbf16>
    "tpu.trace_start"() <{level = 10 : i32, message = "pnd,pmd->pnm"}> : () -> ()
    %cst_14 = arith.constant dense<0.000000e+00> : vector<8x16x16xf32>
    %46 = tpu.matmul %40, %45, %cst_14 {dimension_numbers = #tpu.dot_dimension_numbers<[2], [2], [1], [1], [0, 0, 0, 1, 1, 1], [0], [0]>} : vector<8x16x32xbf16>, vector<8x16x32xbf16>, vector<8x16x16xf32> -> vector<8x16x16xf32>
    "tpu.trace_stop"() : () -> ()
    %cst_15 = arith.constant dense<0xFF800000> : vector<8x16xf32>
    %47 = vector.multi_reduction <maximumf>, %43, %cst_15 [2] : vector<8x16x16xf32> to vector<8x16xf32>
    %48 = vector.shape_cast %47 : vector<8x16xf32> to vector<8x16x1xf32>
    %49 = vector.broadcast %48 : vector<8x16x1xf32> to vector<8x16x16xf32>
    %50 = arith.subf %43, %49 : vector<8x16x16xf32>
    %51 = math.exp %50 : vector<8x16x16xf32>
    %cst_16 = arith.constant dense<0.000000e+00> : vector<8x16xf32>
    %52 = vector.multi_reduction <add>, %51, %cst_16 [2] : vector<8x16x16xf32> to vector<8x16xf32>
    %53 = vector.shape_cast %52 : vector<8x16xf32> to vector<8x16x1xf32>
    %54 = tpu.reciprocal %53 {approx = true} : vector<8x16x1xf32> -> vector<8x16x1xf32>
    %55 = vector.broadcast %54 : vector<8x16x1xf32> to vector<8x16x16xf32>
    %56 = arith.mulf %51, %55 : vector<8x16x16xf32>
    %57 = arith.truncf %56 : vector<8x16x16xf32> to vector<8x16x16xbf16>
    %58 = vector.extract_strided_slice %37 {offsets = [0, 0, 0], sizes = [8, 16, 32], strides = [1, 1, 1]} : vector<8x16x128xf32> to vector<8x16x32xf32>
    %59 = arith.truncf %58 : vector<8x16x32xf32> to vector<8x16x32xbf16>
    "tpu.trace_start"() <{level = 10 : i32, message = "pnm,pmd->pnd"}> : () -> ()
    %cst_17 = arith.constant dense<0.000000e+00> : vector<8x16x32xf32>
    %60 = tpu.matmul %57, %59, %cst_17 {dimension_numbers = #tpu.dot_dimension_numbers<[2], [1], [1], [2], [0, 0, 0, 1, 1, 2], [0], [0]>} : vector<8x16x16xbf16>, vector<8x16x32xbf16>, vector<8x16x32xf32> -> vector<8x16x32xf32>
    "tpu.trace_stop"() : () -> ()
    %cst_18 = arith.constant dense<0xFF800000> : vector<8x16xf32>
    %61 = vector.multi_reduction <maximumf>, %46, %cst_18 [2] : vector<8x16x16xf32> to vector<8x16xf32>
    %62 = vector.shape_cast %61 : vector<8x16xf32> to vector<8x16x1xf32>
    %63 = vector.broadcast %62 : vector<8x16x1xf32> to vector<8x16x16xf32>
    %64 = arith.subf %46, %63 : vector<8x16x16xf32>
    %65 = math.exp %64 : vector<8x16x16xf32>
    %cst_19 = arith.constant dense<0.000000e+00> : vector<8x16xf32>
    %66 = vector.multi_reduction <add>, %65, %cst_19 [2] : vector<8x16x16xf32> to vector<8x16xf32>
    %67 = vector.shape_cast %66 : vector<8x16xf32> to vector<8x16x1xf32>
    %68 = tpu.reciprocal %67 {approx = true} : vector<8x16x1xf32> -> vector<8x16x1xf32>
    %69 = vector.broadcast %68 : vector<8x16x1xf32> to vector<8x16x16xf32>
    %70 = arith.mulf %65, %69 : vector<8x16x16xf32>
    %71 = arith.truncf %70 : vector<8x16x16xf32> to vector<8x16x16xbf16>
    %72 = vector.extract_strided_slice %38 {offsets = [0, 0, 0], sizes = [8, 16, 32], strides = [1, 1, 1]} : vector<8x16x128xf32> to vector<8x16x32xf32>
    %73 = arith.truncf %72 : vector<8x16x32xf32> to vector<8x16x32xbf16>
    "tpu.trace_start"() <{level = 10 : i32, message = "pnm,pmd->pnd"}> : () -> ()
    %cst_20 = arith.constant dense<0.000000e+00> : vector<8x16x32xf32>
    %74 = tpu.matmul %71, %73, %cst_20 {dimension_numbers = #tpu.dot_dimension_numbers<[2], [1], [1], [2], [0, 0, 0, 1, 1, 2], [0], [0]>} : vector<8x16x16xbf16>, vector<8x16x32xbf16>, vector<8x16x32xf32> -> vector<8x16x32xf32>
    "tpu.trace_stop"() : () -> ()
    %75 = vector.extract_strided_slice %34 {offsets = [0, 0, 32], sizes = [8, 16, 32], strides = [1, 1, 1]} : vector<8x16x128xf32> to vector<8x16x32xf32>
    %76 = arith.truncf %75 : vector<8x16x32xf32> to vector<8x16x32xbf16>
    %77 = vector.extract_strided_slice %35 {offsets = [0, 0, 32], sizes = [8, 16, 32], strides = [1, 1, 1]} : vector<8x16x128xf32> to vector<8x16x32xf32>
    %78 = arith.truncf %77 : vector<8x16x32xf32> to vector<8x16x32xbf16>
    "tpu.trace_start"() <{level = 10 : i32, message = "pnd,pmd->pnm"}> : () -> ()
    %cst_21 = arith.constant dense<0.000000e+00> : vector<8x16x16xf32>
    %79 = tpu.matmul %76, %78, %cst_21 {dimension_numbers = #tpu.dot_dimension_numbers<[2], [2], [1], [1], [0, 0, 0, 1, 1, 1], [0], [0]>} : vector<8x16x32xbf16>, vector<8x16x32xbf16>, vector<8x16x16xf32> -> vector<8x16x16xf32>
    "tpu.trace_stop"() : () -> ()
    %80 = vector.extract_strided_slice %36 {offsets = [0, 0, 32], sizes = [8, 16, 32], strides = [1, 1, 1]} : vector<8x16x128xf32> to vector<8x16x32xf32>
    %81 = arith.truncf %80 : vector<8x16x32xf32> to vector<8x16x32xbf16>
    "tpu.trace_start"() <{level = 10 : i32, message = "pnd,pmd->pnm"}> : () -> ()
    %cst_22 = arith.constant dense<0.000000e+00> : vector<8x16x16xf32>
    %82 = tpu.matmul %76, %81, %cst_22 {dimension_numbers = #tpu.dot_dimension_numbers<[2], [2], [1], [1], [0, 0, 0, 1, 1, 1], [0], [0]>} : vector<8x16x32xbf16>, vector<8x16x32xbf16>, vector<8x16x16xf32> -> vector<8x16x16xf32>
    "tpu.trace_stop"() : () -> ()
    %cst_23 = arith.constant dense<0xFF800000> : vector<8x16xf32>
    %83 = vector.multi_reduction <maximumf>, %79, %cst_23 [2] : vector<8x16x16xf32> to vector<8x16xf32>
    %84 = vector.shape_cast %83 : vector<8x16xf32> to vector<8x16x1xf32>
    %85 = vector.broadcast %84 : vector<8x16x1xf32> to vector<8x16x16xf32>
    %86 = arith.subf %79, %85 : vector<8x16x16xf32>
    %87 = math.exp %86 : vector<8x16x16xf32>
    %cst_24 = arith.constant dense<0.000000e+00> : vector<8x16xf32>
    %88 = vector.multi_reduction <add>, %87, %cst_24 [2] : vector<8x16x16xf32> to vector<8x16xf32>
    %89 = vector.shape_cast %88 : vector<8x16xf32> to vector<8x16x1xf32>
    %90 = tpu.reciprocal %89 {approx = true} : vector<8x16x1xf32> -> vector<8x16x1xf32>
    %91 = vector.broadcast %90 : vector<8x16x1xf32> to vector<8x16x16xf32>
    %92 = arith.mulf %87, %91 : vector<8x16x16xf32>
    %93 = arith.truncf %92 : vector<8x16x16xf32> to vector<8x16x16xbf16>
    %94 = vector.extract_strided_slice %37 {offsets = [0, 0, 32], sizes = [8, 16, 32], strides = [1, 1, 1]} : vector<8x16x128xf32> to vector<8x16x32xf32>
    %95 = arith.truncf %94 : vector<8x16x32xf32> to vector<8x16x32xbf16>
    "tpu.trace_start"() <{level = 10 : i32, message = "pnm,pmd->pnd"}> : () -> ()
    %cst_25 = arith.constant dense<0.000000e+00> : vector<8x16x32xf32>
    %96 = tpu.matmul %93, %95, %cst_25 {dimension_numbers = #tpu.dot_dimension_numbers<[2], [1], [1], [2], [0, 0, 0, 1, 1, 2], [0], [0]>} : vector<8x16x16xbf16>, vector<8x16x32xbf16>, vector<8x16x32xf32> -> vector<8x16x32xf32>
    "tpu.trace_stop"() : () -> ()
    %cst_26 = arith.constant dense<0xFF800000> : vector<8x16xf32>
    %97 = vector.multi_reduction <maximumf>, %82, %cst_26 [2] : vector<8x16x16xf32> to vector<8x16xf32>
    %98 = vector.shape_cast %97 : vector<8x16xf32> to vector<8x16x1xf32>
    %99 = vector.broadcast %98 : vector<8x16x1xf32> to vector<8x16x16xf32>
    %100 = arith.subf %82, %99 : vector<8x16x16xf32>
    %101 = math.exp %100 : vector<8x16x16xf32>
    %cst_27 = arith.constant dense<0.000000e+00> : vector<8x16xf32>
    %102 = vector.multi_reduction <add>, %101, %cst_27 [2] : vector<8x16x16xf32> to vector<8x16xf32>
    %103 = vector.shape_cast %102 : vector<8x16xf32> to vector<8x16x1xf32>
    %104 = tpu.reciprocal %103 {approx = true} : vector<8x16x1xf32> -> vector<8x16x1xf32>
    %105 = vector.broadcast %104 : vector<8x16x1xf32> to vector<8x16x16xf32>
    %106 = arith.mulf %101, %105 : vector<8x16x16xf32>
    %107 = arith.truncf %106 : vector<8x16x16xf32> to vector<8x16x16xbf16>
    %108 = vector.extract_strided_slice %38 {offsets = [0, 0, 32], sizes = [8, 16, 32], strides = [1, 1, 1]} : vector<8x16x128xf32> to vector<8x16x32xf32>
    %109 = arith.truncf %108 : vector<8x16x32xf32> to vector<8x16x32xbf16>
    "tpu.trace_start"() <{level = 10 : i32, message = "pnm,pmd->pnd"}> : () -> ()
    %cst_28 = arith.constant dense<0.000000e+00> : vector<8x16x32xf32>
    %110 = tpu.matmul %107, %109, %cst_28 {dimension_numbers = #tpu.dot_dimension_numbers<[2], [1], [1], [2], [0, 0, 0, 1, 1, 2], [0], [0]>} : vector<8x16x16xbf16>, vector<8x16x32xbf16>, vector<8x16x32xf32> -> vector<8x16x32xf32>
    "tpu.trace_stop"() : () -> ()
    %111 = vector.extract_strided_slice %34 {offsets = [0, 0, 64], sizes = [8, 16, 32], strides = [1, 1, 1]} : vector<8x16x128xf32> to vector<8x16x32xf32>
    %112 = arith.truncf %111 : vector<8x16x32xf32> to vector<8x16x32xbf16>
    %113 = vector.extract_strided_slice %35 {offsets = [0, 0, 64], sizes = [8, 16, 32], strides = [1, 1, 1]} : vector<8x16x128xf32> to vector<8x16x32xf32>
    %114 = arith.truncf %113 : vector<8x16x32xf32> to vector<8x16x32xbf16>
    "tpu.trace_start"() <{level = 10 : i32, message = "pnd,pmd->pnm"}> : () -> ()
    %cst_29 = arith.constant dense<0.000000e+00> : vector<8x16x16xf32>
    %115 = tpu.matmul %112, %114, %cst_29 {dimension_numbers = #tpu.dot_dimension_numbers<[2], [2], [1], [1], [0, 0, 0, 1, 1, 1], [0], [0]>} : vector<8x16x32xbf16>, vector<8x16x32xbf16>, vector<8x16x16xf32> -> vector<8x16x16xf32>
    "tpu.trace_stop"() : () -> ()
    %116 = vector.extract_strided_slice %36 {offsets = [0, 0, 64], sizes = [8, 16, 32], strides = [1, 1, 1]} : vector<8x16x128xf32> to vector<8x16x32xf32>
    %117 = arith.truncf %116 : vector<8x16x32xf32> to vector<8x16x32xbf16>
    "tpu.trace_start"() <{level = 10 : i32, message = "pnd,pmd->pnm"}> : () -> ()
    %cst_30 = arith.constant dense<0.000000e+00> : vector<8x16x16xf32>
    %118 = tpu.matmul %112, %117, %cst_30 {dimension_numbers = #tpu.dot_dimension_numbers<[2], [2], [1], [1], [0, 0, 0, 1, 1, 1], [0], [0]>} : vector<8x16x32xbf16>, vector<8x16x32xbf16>, vector<8x16x16xf32> -> vector<8x16x16xf32>
    "tpu.trace_stop"() : () -> ()
    %cst_31 = arith.constant dense<0xFF800000> : vector<8x16xf32>
    %119 = vector.multi_reduction <maximumf>, %115, %cst_31 [2] : vector<8x16x16xf32> to vector<8x16xf32>
    %120 = vector.shape_cast %119 : vector<8x16xf32> to vector<8x16x1xf32>
    %121 = vector.broadcast %120 : vector<8x16x1xf32> to vector<8x16x16xf32>
    %122 = arith.subf %115, %121 : vector<8x16x16xf32>
    %123 = math.exp %122 : vector<8x16x16xf32>
    %cst_32 = arith.constant dense<0.000000e+00> : vector<8x16xf32>
    %124 = vector.multi_reduction <add>, %123, %cst_32 [2] : vector<8x16x16xf32> to vector<8x16xf32>
    %125 = vector.shape_cast %124 : vector<8x16xf32> to vector<8x16x1xf32>
    %126 = tpu.reciprocal %125 {approx = true} : vector<8x16x1xf32> -> vector<8x16x1xf32>
    %127 = vector.broadcast %126 : vector<8x16x1xf32> to vector<8x16x16xf32>
    %128 = arith.mulf %123, %127 : vector<8x16x16xf32>
    %129 = arith.truncf %128 : vector<8x16x16xf32> to vector<8x16x16xbf16>
    %130 = vector.extract_strided_slice %37 {offsets = [0, 0, 64], sizes = [8, 16, 32], strides = [1, 1, 1]} : vector<8x16x128xf32> to vector<8x16x32xf32>
    %131 = arith.truncf %130 : vector<8x16x32xf32> to vector<8x16x32xbf16>
    "tpu.trace_start"() <{level = 10 : i32, message = "pnm,pmd->pnd"}> : () -> ()
    %cst_33 = arith.constant dense<0.000000e+00> : vector<8x16x32xf32>
    %132 = tpu.matmul %129, %131, %cst_33 {dimension_numbers = #tpu.dot_dimension_numbers<[2], [1], [1], [2], [0, 0, 0, 1, 1, 2], [0], [0]>} : vector<8x16x16xbf16>, vector<8x16x32xbf16>, vector<8x16x32xf32> -> vector<8x16x32xf32>
    "tpu.trace_stop"() : () -> ()
    %cst_34 = arith.constant dense<0xFF800000> : vector<8x16xf32>
    %133 = vector.multi_reduction <maximumf>, %118, %cst_34 [2] : vector<8x16x16xf32> to vector<8x16xf32>
    %134 = vector.shape_cast %133 : vector<8x16xf32> to vector<8x16x1xf32>
    %135 = vector.broadcast %134 : vector<8x16x1xf32> to vector<8x16x16xf32>
    %136 = arith.subf %118, %135 : vector<8x16x16xf32>
    %137 = math.exp %136 : vector<8x16x16xf32>
    %cst_35 = arith.constant dense<0.000000e+00> : vector<8x16xf32>
    %138 = vector.multi_reduction <add>, %137, %cst_35 [2] : vector<8x16x16xf32> to vector<8x16xf32>
    %139 = vector.shape_cast %138 : vector<8x16xf32> to vector<8x16x1xf32>
    %140 = tpu.reciprocal %139 {approx = true} : vector<8x16x1xf32> -> vector<8x16x1xf32>
    %141 = vector.broadcast %140 : vector<8x16x1xf32> to vector<8x16x16xf32>
    %142 = arith.mulf %137, %141 : vector<8x16x16xf32>
    %143 = arith.truncf %142 : vector<8x16x16xf32> to vector<8x16x16xbf16>
    %144 = vector.extract_strided_slice %38 {offsets = [0, 0, 64], sizes = [8, 16, 32], strides = [1, 1, 1]} : vector<8x16x128xf32> to vector<8x16x32xf32>
    %145 = arith.truncf %144 : vector<8x16x32xf32> to vector<8x16x32xbf16>
    "tpu.trace_start"() <{level = 10 : i32, message = "pnm,pmd->pnd"}> : () -> ()
    %cst_36 = arith.constant dense<0.000000e+00> : vector<8x16x32xf32>
    %146 = tpu.matmul %143, %145, %cst_36 {dimension_numbers = #tpu.dot_dimension_numbers<[2], [1], [1], [2], [0, 0, 0, 1, 1, 2], [0], [0]>} : vector<8x16x16xbf16>, vector<8x16x32xbf16>, vector<8x16x32xf32> -> vector<8x16x32xf32>
    "tpu.trace_stop"() : () -> ()
    %147 = vector.extract_strided_slice %34 {offsets = [0, 0, 96], sizes = [8, 16, 32], strides = [1, 1, 1]} : vector<8x16x128xf32> to vector<8x16x32xf32>
    %148 = arith.truncf %147 : vector<8x16x32xf32> to vector<8x16x32xbf16>
    %149 = vector.extract_strided_slice %35 {offsets = [0, 0, 96], sizes = [8, 16, 32], strides = [1, 1, 1]} : vector<8x16x128xf32> to vector<8x16x32xf32>
    %150 = arith.truncf %149 : vector<8x16x32xf32> to vector<8x16x32xbf16>
    "tpu.trace_start"() <{level = 10 : i32, message = "pnd,pmd->pnm"}> : () -> ()
    %cst_37 = arith.constant dense<0.000000e+00> : vector<8x16x16xf32>
    %151 = tpu.matmul %148, %150, %cst_37 {dimension_numbers = #tpu.dot_dimension_numbers<[2], [2], [1], [1], [0, 0, 0, 1, 1, 1], [0], [0]>} : vector<8x16x32xbf16>, vector<8x16x32xbf16>, vector<8x16x16xf32> -> vector<8x16x16xf32>
    "tpu.trace_stop"() : () -> ()
    %152 = vector.extract_strided_slice %36 {offsets = [0, 0, 96], sizes = [8, 16, 32], strides = [1, 1, 1]} : vector<8x16x128xf32> to vector<8x16x32xf32>
    %153 = arith.truncf %152 : vector<8x16x32xf32> to vector<8x16x32xbf16>
    "tpu.trace_start"() <{level = 10 : i32, message = "pnd,pmd->pnm"}> : () -> ()
    %cst_38 = arith.constant dense<0.000000e+00> : vector<8x16x16xf32>
    %154 = tpu.matmul %148, %153, %cst_38 {dimension_numbers = #tpu.dot_dimension_numbers<[2], [2], [1], [1], [0, 0, 0, 1, 1, 1], [0], [0]>} : vector<8x16x32xbf16>, vector<8x16x32xbf16>, vector<8x16x16xf32> -> vector<8x16x16xf32>
    "tpu.trace_stop"() : () -> ()
    %cst_39 = arith.constant dense<0xFF800000> : vector<8x16xf32>
    %155 = vector.multi_reduction <maximumf>, %151, %cst_39 [2] : vector<8x16x16xf32> to vector<8x16xf32>
    %156 = vector.shape_cast %155 : vector<8x16xf32> to vector<8x16x1xf32>
    %157 = vector.broadcast %156 : vector<8x16x1xf32> to vector<8x16x16xf32>
    %158 = arith.subf %151, %157 : vector<8x16x16xf32>
    %159 = math.exp %158 : vector<8x16x16xf32>
    %cst_40 = arith.constant dense<0.000000e+00> : vector<8x16xf32>
    %160 = vector.multi_reduction <add>, %159, %cst_40 [2] : vector<8x16x16xf32> to vector<8x16xf32>
    %161 = vector.shape_cast %160 : vector<8x16xf32> to vector<8x16x1xf32>
    %162 = tpu.reciprocal %161 {approx = true} : vector<8x16x1xf32> -> vector<8x16x1xf32>
    %163 = vector.broadcast %162 : vector<8x16x1xf32> to vector<8x16x16xf32>
    %164 = arith.mulf %159, %163 : vector<8x16x16xf32>
    %165 = arith.truncf %164 : vector<8x16x16xf32> to vector<8x16x16xbf16>
    %166 = vector.extract_strided_slice %37 {offsets = [0, 0, 96], sizes = [8, 16, 32], strides = [1, 1, 1]} : vector<8x16x128xf32> to vector<8x16x32xf32>
    %167 = arith.truncf %166 : vector<8x16x32xf32> to vector<8x16x32xbf16>
    "tpu.trace_start"() <{level = 10 : i32, message = "pnm,pmd->pnd"}> : () -> ()
    %cst_41 = arith.constant dense<0.000000e+00> : vector<8x16x32xf32>
    %168 = tpu.matmul %165, %167, %cst_41 {dimension_numbers = #tpu.dot_dimension_numbers<[2], [1], [1], [2], [0, 0, 0, 1, 1, 2], [0], [0]>} : vector<8x16x16xbf16>, vector<8x16x32xbf16>, vector<8x16x32xf32> -> vector<8x16x32xf32>
    "tpu.trace_stop"() : () -> ()
    %cst_42 = arith.constant dense<0xFF800000> : vector<8x16xf32>
    %169 = vector.multi_reduction <maximumf>, %154, %cst_42 [2] : vector<8x16x16xf32> to vector<8x16xf32>
    %170 = vector.shape_cast %169 : vector<8x16xf32> to vector<8x16x1xf32>
    %171 = vector.broadcast %170 : vector<8x16x1xf32> to vector<8x16x16xf32>
    %172 = arith.subf %154, %171 : vector<8x16x16xf32>
    %173 = math.exp %172 : vector<8x16x16xf32>
    %cst_43 = arith.constant dense<0.000000e+00> : vector<8x16xf32>
    %174 = vector.multi_reduction <add>, %173, %cst_43 [2] : vector<8x16x16xf32> to vector<8x16xf32>
    %175 = vector.shape_cast %174 : vector<8x16xf32> to vector<8x16x1xf32>
    %176 = tpu.reciprocal %175 {approx = true} : vector<8x16x1xf32> -> vector<8x16x1xf32>
    %177 = vector.broadcast %176 : vector<8x16x1xf32> to vector<8x16x16xf32>
    %178 = arith.mulf %173, %177 : vector<8x16x16xf32>
    %179 = arith.truncf %178 : vector<8x16x16xf32> to vector<8x16x16xbf16>
    %180 = vector.extract_strided_slice %38 {offsets = [0, 0, 96], sizes = [8, 16, 32], strides = [1, 1, 1]} : vector<8x16x128xf32> to vector<8x16x32xf32>
    %181 = arith.truncf %180 : vector<8x16x32xf32> to vector<8x16x32xbf16>
    "tpu.trace_start"() <{level = 10 : i32, message = "pnm,pmd->pnd"}> : () -> ()
    %cst_44 = arith.constant dense<0.000000e+00> : vector<8x16x32xf32>
    %182 = tpu.matmul %179, %181, %cst_44 {dimension_numbers = #tpu.dot_dimension_numbers<[2], [1], [1], [2], [0, 0, 0, 1, 1, 2], [0], [0]>} : vector<8x16x16xbf16>, vector<8x16x32xbf16>, vector<8x16x32xf32> -> vector<8x16x32xf32>
    "tpu.trace_stop"() : () -> ()
    %183 = tpu.concatenate %60, %96, %132, %168 in 2 : vector<8x16x32xf32>, vector<8x16x32xf32>, vector<8x16x32xf32>, vector<8x16x32xf32> -> vector<8x16x128xf32>
    %184 = tpu.concatenate %74, %110, %146, %182 in 2 : vector<8x16x32xf32>, vector<8x16x32xf32>, vector<8x16x32xf32>, vector<8x16x32xf32> -> vector<8x16x128xf32>
    %185 = tpu.concatenate %183, %184 in 1 : vector<8x16x128xf32>, vector<8x16x128xf32> -> vector<8x32x128xf32>
    %186 = vector.shape_cast %185 : vector<8x32x128xf32> to vector<256x128xf32>
    %187 = arith.truncf %186 : vector<256x128xf32> to vector<256x128xbf16>
    %c0_45 = arith.constant 0 : index
    %c0_46 = arith.constant 0 : index
    %188 = vector.load %arg5[%c0_45, %c0_46] : memref<128x128xbf16, #tpu.memory_space<vmem>>, vector<128x128xbf16>
    %cst_47 = arith.constant dense<0.000000e+00> : vector<256x128xf32>
    %189 = tpu.matmul %187, %188, %cst_47 {dimension_numbers = #tpu.dot_dimension_numbers<[1], [0], [0], [1], [0, 0, 1, 1], [], []>} : vector<256x128xbf16>, vector<128x128xbf16>, vector<256x128xf32> -> vector<256x128xf32>
    %c0_48 = arith.constant 0 : index
    %c0_49 = arith.constant 0 : index
    %190 = vector.load %arg6[%c0_48, %c0_49] : memref<1x128xf32, #tpu.memory_space<vmem>>, vector<1x128xf32>
    %191 = vector.broadcast %190 : vector<1x128xf32> to vector<256x128xf32>
    %192 = arith.addf %189, %191 : vector<256x128xf32>
    %193 = arith.addf %1, %192 : vector<256x128xf32>
    %c0_50 = arith.constant 0 : index
    %c0_51 = arith.constant 0 : index
    %194 = vector.load %arg7[%c0_50, %c0_51] : memref<1x128xf32, #tpu.memory_space<vmem>>, vector<1x128xf32>
    %195 = vector.shape_cast %194 : vector<1x128xf32> to vector<128xf32>
    %c0_52 = arith.constant 0 : index
    %c0_53 = arith.constant 0 : index
    %196 = vector.load %arg8[%c0_52, %c0_53] : memref<1x128xf32, #tpu.memory_space<vmem>>, vector<1x128xf32>
    %197 = vector.shape_cast %196 : vector<1x128xf32> to vector<128xf32>
    %cst_54 = arith.constant dense<0.000000e+00> : vector<256xf32>
    %198 = vector.multi_reduction <add>, %193, %cst_54 [1] : vector<256x128xf32> to vector<256xf32>
    %199 = vector.shape_cast %198 : vector<256xf32> to vector<256x1xf32>
    %cst_55 = arith.constant 1.280000e+02 : f32
    %200 = vector.broadcast %cst_55 : f32 to vector<256x1xf32>
    %201 = arith.divf %199, %200 : vector<256x1xf32>
    %202 = vector.broadcast %201 : vector<256x1xf32> to vector<256x128xf32>
    %203 = arith.subf %193, %202 : vector<256x128xf32>
    %204 = arith.mulf %203, %203 : vector<256x128xf32>
    %cst_56 = arith.constant dense<0.000000e+00> : vector<256xf32>
    %205 = vector.multi_reduction <add>, %204, %cst_56 [1] : vector<256x128xf32> to vector<256xf32>
    %206 = vector.shape_cast %205 : vector<256xf32> to vector<256x1xf32>
    %cst_57 = arith.constant 1.280000e+02 : f32
    %207 = vector.broadcast %cst_57 : f32 to vector<256x1xf32>
    %208 = arith.divf %206, %207 : vector<256x1xf32>
    %209 = vector.broadcast %201 : vector<256x1xf32> to vector<256x128xf32>
    %210 = arith.subf %193, %209 : vector<256x128xf32>
    %cst_58 = arith.constant 9.99999974E-6 : f32
    %211 = vector.broadcast %cst_58 : f32 to vector<256x1xf32>
    %212 = arith.addf %208, %211 : vector<256x1xf32>
    %213 = math.rsqrt %212 : vector<256x1xf32>
    %214 = vector.broadcast %213 : vector<256x1xf32> to vector<256x128xf32>
    %215 = arith.mulf %210, %214 : vector<256x128xf32>
    %216 = vector.shape_cast %195 : vector<128xf32> to vector<1x128xf32>
    %217 = vector.broadcast %216 : vector<1x128xf32> to vector<256x128xf32>
    %218 = arith.mulf %215, %217 : vector<256x128xf32>
    %219 = vector.shape_cast %197 : vector<128xf32> to vector<1x128xf32>
    %220 = vector.broadcast %219 : vector<1x128xf32> to vector<256x128xf32>
    %221 = arith.addf %218, %220 : vector<256x128xf32>
    %222 = arith.truncf %221 : vector<256x128xf32> to vector<256x128xbf16>
    %c0_59 = arith.constant 0 : index
    %c0_60 = arith.constant 0 : index
    %223 = vector.load %arg9[%c0_59, %c0_60] : memref<128x512xbf16, #tpu.memory_space<vmem>>, vector<128x512xbf16>
    %cst_61 = arith.constant dense<0.000000e+00> : vector<256x512xf32>
    %224 = tpu.matmul %222, %223, %cst_61 {dimension_numbers = #tpu.dot_dimension_numbers<[1], [0], [0], [1], [0, 0, 1, 1], [], []>} : vector<256x128xbf16>, vector<128x512xbf16>, vector<256x512xf32> -> vector<256x512xf32>
    %c0_62 = arith.constant 0 : index
    %c0_63 = arith.constant 0 : index
    %225 = vector.load %arg10[%c0_62, %c0_63] : memref<1x512xf32, #tpu.memory_space<vmem>>, vector<1x512xf32>
    %226 = vector.broadcast %225 : vector<1x512xf32> to vector<256x512xf32>
    %227 = arith.addf %224, %226 : vector<256x512xf32>
    %cst_64 = arith.constant 5.000000e-01 : f32
    %228 = vector.broadcast %cst_64 : f32 to vector<256x512xf32>
    %229 = arith.mulf %228, %227 : vector<256x512xf32>
    %cst_65 = arith.constant 0.707106769 : f32
    %230 = vector.broadcast %cst_65 : f32 to vector<256x512xf32>
    %231 = arith.mulf %227, %230 : vector<256x512xf32>
    %232 = math.erf %231 : vector<256x512xf32>
    %cst_66 = arith.constant 1.000000e+00 : f32
    %233 = vector.broadcast %cst_66 : f32 to vector<256x512xf32>
    %234 = arith.addf %233, %232 : vector<256x512xf32>
    %235 = arith.mulf %229, %234 : vector<256x512xf32>
    %236 = arith.truncf %235 : vector<256x512xf32> to vector<256x512xbf16>
    %c0_67 = arith.constant 0 : index
    %c0_68 = arith.constant 0 : index
    %237 = vector.load %arg11[%c0_67, %c0_68] : memref<512x128xbf16, #tpu.memory_space<vmem>>, vector<512x128xbf16>
    %cst_69 = arith.constant dense<0.000000e+00> : vector<256x128xf32>
    %238 = tpu.matmul %236, %237, %cst_69 {dimension_numbers = #tpu.dot_dimension_numbers<[1], [0], [0], [1], [0, 0, 1, 1], [], []>} : vector<256x512xbf16>, vector<512x128xbf16>, vector<256x128xf32> -> vector<256x128xf32>
    %c0_70 = arith.constant 0 : index
    %c0_71 = arith.constant 0 : index
    %239 = vector.load %arg12[%c0_70, %c0_71] : memref<1x128xf32, #tpu.memory_space<vmem>>, vector<1x128xf32>
    %240 = vector.broadcast %239 : vector<1x128xf32> to vector<256x128xf32>
    %241 = arith.addf %238, %240 : vector<256x128xf32>
    %242 = arith.addf %193, %241 : vector<256x128xf32>
    %243 = vector.shape_cast %242 : vector<256x128xf32> to vector<8x32x128xf32>
    %c0_72 = arith.constant 0 : index
    %c0_73 = arith.constant 0 : index
    %c0_74 = arith.constant 0 : index
    %244 = vector.load %arg13[%c0_72, %c0_73, %c0_74] : memref<8x32x128xf32, #tpu.memory_space<vmem>>, vector<8x32x128xf32>
    tpu.vector_store %arg13[%c0_72, %c0_73, %c0_74], %243 {strides = array<i32>} : memref<8x32x128xf32, #tpu.memory_space<vmem>>, vector<8x32x128xf32>,
    return
  }
  func.func @transform_0(%arg0: i32) -> (i32, i32, i32) {
    %c0_i32 = arith.constant 0 : i32
    %c0_i32_0 = arith.constant 0 : i32
    %c0_i32_1 = arith.constant 0 : i32
    return %arg0, %c0_i32, %c0_i32_0 : i32, i32, i32
  }
  func.func @transform_1(%arg0: i32) -> (i32, i32) {
    %c0_i32 = arith.constant 0 : i32
    %c0_i32_0 = arith.constant 0 : i32
    %c0_i32_1 = arith.constant 0 : i32
    return %c0_i32, %c0_i32_0 : i32, i32
  }
  func.func @transform_2(%arg0: i32) -> (i32, i32) {
    %c0_i32 = arith.constant 0 : i32
    %c0_i32_0 = arith.constant 0 : i32
    %c0_i32_1 = arith.constant 0 : i32
    return %c0_i32, %c0_i32_0 : i32, i32
  }
  func.func @transform_3(%arg0: i32) -> (i32, i32) {
    %c0_i32 = arith.constant 0 : i32
    %c0_i32_0 = arith.constant 0 : i32
    %c0_i32_1 = arith.constant 0 : i32
    return %c0_i32, %c0_i32_0 : i32, i32
  }
  func.func @transform_4(%arg0: i32) -> (i32, i32) {
    %c0_i32 = arith.constant 0 : i32
    %c0_i32_0 = arith.constant 0 : i32
    %c0_i32_1 = arith.constant 0 : i32
    return %c0_i32, %c0_i32_0 : i32, i32
  }
  func.func @transform_5(%arg0: i32) -> (i32, i32) {
    %c0_i32 = arith.constant 0 : i32
    %c0_i32_0 = arith.constant 0 : i32
    %c0_i32_1 = arith.constant 0 : i32
    return %c0_i32, %c0_i32_0 : i32, i32
  }
  func.func @transform_6(%arg0: i32) -> (i32, i32) {
    %c0_i32 = arith.constant 0 : i32
    %c0_i32_0 = arith.constant 0 : i32
    %c0_i32_1 = arith.constant 0 : i32
    return %c0_i32, %c0_i32_0 : i32, i32
  }
  func.func @transform_7(%arg0: i32) -> (i32, i32) {
    %c0_i32 = arith.constant 0 : i32
    %c0_i32_0 = arith.constant 0 : i32
    %c0_i32_1 = arith.constant 0 : i32
    return %c0_i32, %c0_i32_0 : i32, i32
  }
  func.func @transform_8(%arg0: i32) -> (i32, i32) {
    %c0_i32 = arith.constant 0 : i32
    %c0_i32_0 = arith.constant 0 : i32
    %c0_i32_1 = arith.constant 0 : i32
    return %c0_i32, %c0_i32_0 : i32, i32
  }
  func.func @transform_9(%arg0: i32) -> (i32, i32) {
    %c0_i32 = arith.constant 0 : i32
    %c0_i32_0 = arith.constant 0 : i32
    %c0_i32_1 = arith.constant 0 : i32
    return %c0_i32, %c0_i32_0 : i32, i32
  }
  func.func @transform_10(%arg0: i32) -> (i32, i32) {
    %c0_i32 = arith.constant 0 : i32
    %c0_i32_0 = arith.constant 0 : i32
    %c0_i32_1 = arith.constant 0 : i32
    return %c0_i32, %c0_i32_0 : i32, i32
  }
  func.func @transform_11(%arg0: i32) -> (i32, i32) {
    %c0_i32 = arith.constant 0 : i32
    %c0_i32_0 = arith.constant 0 : i32
    %c0_i32_1 = arith.constant 0 : i32
    return %c0_i32, %c0_i32_0 : i32, i32
  }
  func.func @transform_12(%arg0: i32) -> (i32, i32, i32) {
    %c0_i32 = arith.constant 0 : i32
    %c0_i32_0 = arith.constant 0 : i32
    %c0_i32_1 = arith.constant 0 : i32
    return %arg0, %c0_i32, %c0_i32_0 : i32, i32, i32
  }
}

</mosaic_0001>

<bundles_post_ra>
// kernel: tpu_custom_call.1
= control target key start
LH: loop header
LB: loop body
LE: loop exit
PB: predicated region body
PF: predicated region fallthrough
CT: control target
= control target key end

     0   :  { %s21388_s0 = inlined_call_operand.hbm [shape: f32[16,32,128], index: 0, kind: input, shape index: {}]   ;;  %s21389_s1 = inlined_call_operand.hbm [shape: f32[1,128], index: 1, kind: input, shape index: {}]   ;;  %s21390_s2 = inlined_call_operand.hbm [shape: f32[1,128], index: 2, kind: input, shape index: {}]   ;;  %s21391_s3 = inlined_call_operand.hbm [shape: bf16[128,384], index: 3, kind: input, shape index: {}]   ;;  %s21392_s4 = inlined_call_operand.hbm [shape: bf16[128,128], index: 4, kind: input, shape index: {}]   ;;  %s21393_s5 = inlined_call_operand.hbm [shape: f32[1,128], index: 5, kind: input, shape index: {}]   ;;  %s21394_s6 = inlined_call_operand.hbm [shape: f32[1,128], index: 6, kind: input, shape index: {}]   ;;  %s21395_s7 = inlined_call_operand.hbm [shape: f32[1,128], index: 7, kind: input, shape index: {}]   ;;  %s21396_s8 = inlined_call_operand.hbm [shape: bf16[128,512], index: 8, kind: input, shape index: {}]   ;;  %s21397_s9 = inlined_call_operand.hbm [shape: f32[1,512], index: 9, kind: input, shape index: {}]   ;;  %s21398_s10 = inlined_call_operand.hbm [shape: bf16[512,128], index: 10, kind: input, shape index: {}]   ;;  %s21399_s11 = inlined_call_operand.hbm [shape: f32[1,128], index: 11, kind: input, shape index: {}]   ;;  %s21400_s12 = inlined_call_operand.hbm [shape: f32[16,32,128], index: 12, kind: output, shape index: {}]  }
   0x1   :  { %21573 = sst [smem:[#allocation133_spill]] %s21389_s1 }
   0x2   :  { %21574 = sst [smem:[#allocation134_spill]] %s21390_s2 }
   0x3   :  { %21575 = sst [smem:[#allocation135_spill]] %s21391_s3 }
   0x4   :  { %21576 = sst [smem:[#allocation136_spill]] %s21393_s5 }
   0x5   :  { %21577 = sst [smem:[#allocation137_spill]] %s21400_s12 }
   0x6   :  { %17 = vsyncpa [#allocation3], 0 }
   0x7   :  { %19 = vsyncpa [#allocation3 + $0x1], 0 }
   0x8   :  { %20 = vsyncpa [#allocation6], 0 }
   0x9   :  { %21 = vsyncpa [#allocation9], 0 }
   0xa   :  { %22 = vsyncpa [#allocation12], 0 }
   0xb   :  { %23 = vsyncpa [#allocation15], 0 }
   0xc   :  { %24 = vsyncpa [#allocation18], 0 }
   0xd   :  { %25 = vsyncpa [#allocation21], 0 }
   0xe   :  { %26 = vsyncpa [#allocation4], 0 }
   0xf   :  { %28 = vsyncpa [#allocation4 + $0x1], 0  ;;  %s16148_s21 = smov 0   ;;  %s16150_s22 = smov 0  }
  0x10   :  { %s16152_s23 = smov 0   ;;  %s16154_s24 = smov 0  }
  0x11 LB: > { %s16054_s25 = smov [#allocation5]   ;;  %s16169_s27 = sadd.s32 4294967295, %s16052_s24   ;;  %s16052_s24 = sphi %s16154_s24, %s22064_s24   ;;  %s16048_s23 = sphi %s16152_s23, %s22063_s23   ;;  %s16044_s22 = sphi %s16150_s22, %s22062_s22   ;;  %s16040_s21 = sphi %s16148_s21, %s22061_s21  }
  0x12   : > { %s335_s26 = sshll.u32 %s16054_s25, 4  ;;  %p12484_p0 = scmp.ge.s32.totalorder %s16052_s24, 1  ;;  %s16174_s26 = int_to_ptr.vmem [resolvable:$true] %s335_s26 }
  0x13   : > { %p21403_p1 = scmp.eq.s32.totalorder %s16169_s27, 0  ;;  %p322_p2 = scmp.lt.s32.totalorder %s16052_s24, 3 }
  0x14   : > { %s16055_s29 = smov [#allocation8]   ;;  %s16056_s14 = smov [#allocation11]  }
  0x15   : > { %p16176_p3 = pnand %p12484_p0, %p322_p2  ;;  %s356_s30 = sshll.u32 %s16055_s29, 4  ;;  %s16183_s30 = int_to_ptr.vmem [resolvable:$true] %s356_s30 }
  0x16   : > { %s383_s15 = sshll.u32 %s16056_s14, 4  ;;  %s21581_s1 = sld [smem:[#allocation133_spill]]  ;;  %s16191_s15 = int_to_ptr.vmem [resolvable:$true] %s383_s15 }
  0x17   : > { %s21578_s28 = scalar_select %p16176_p3, 1, 0 }
  0x18   : > { %p14211_p5 = pneg %p16176_p3 }
  0x19   : > { %21579 = sst [smem:[#allocation31_spill]] %s21578_s28 }
  0x1a   : > { %p16187_p6 = pnand %p14211_p5, %p21403_p1 }
  0x1c   : > { %s15624_s18 = scalar_lea.hbm %s21581_s1, 16  ;;  %p16201_p8 = pneg %p16187_p6 }
  0x1d   : > { %p15625_p7 = scmp.ne.s32.totalorder %s21581_s1, %s15624_s18  ;;  %p15631_p11 = scmp.lt.u32.totalorder %s15624_s18, %s21581_s1 }
  0x1f   : > { %p15627_p9 = pnand %p16201_p8, %p15625_p7 }
  0x21   : > { %p15628_p10 = pneg %p15627_p9 }
  0x23   : > { %p15633_p12 = pnand %p15631_p11, %p15628_p10 }
  0x25   : > { %15636 = shalt.err (!%p15633_p12)
}
  0x26   : > { %s15637_s16 = scalar_lea.vmem %s16174_s26, 16  ;;  %s15644_s17 = scalar_lea.vmem %s16174_s26, 32 }
  0x27   : > { %p15638_p13 = scmp.ne.s32.totalorder %s16174_s26, %s15637_s16  ;;  %p15645_p5 = scmp.lt.s32.totalorder %s16174_s26, %s16174_s26 }
  0x28   : > { %p15646_p7 = scmp.lt.s32.totalorder %s15644_s17, %s15637_s16 }
  0x29   : > { %p15640_p0 = pnand %p15638_p13, %p16201_p8 }
  0x2a   : > { %p15647_p9 = por %p15646_p7, %p15645_p5 }
  0x2b   : > { %p15641_p2 = pneg %p15640_p0 }
  0x2d   : > { %p15648_p4 = pnand %p15647_p9, %p15641_p2 }
  0x2f   : > { %15651 = shalt.err (!%p15648_p4)
}
  0x30   : > { %14214 = dma.hbm_to_vmem [thread:$0]  (!%p16187_p6), %s21581_s1, 16, %s16174_s26, [#allocation6]  }
  0x31   : > { %s21583_s3 = sld [smem:[#allocation135_spill]] }
  0x37   : > { %s15652_s14 = scalar_lea.hbm %s21583_s3, 3072 }
  0x38   : > { %p15653_p10 = scmp.ne.s32.totalorder %s21583_s3, %s15652_s14  ;;  %p15659_p4 = scmp.lt.u32.totalorder %s15652_s14, %s21583_s3 }
  0x3a   : > { %p15655_p11 = pnand %p15653_p10, %p16201_p8 }
  0x3c   : > { %p15656_p12 = pneg %p15655_p11 }
  0x3e   : > { %p15661_p13 = pnand %p15659_p4, %p15656_p12 }
  0x40   : > { %15664 = shalt.err (!%p15661_p13)
}
  0x41   : > { %s15665_s26 = scalar_lea.vmem %s16183_s30, 3072  ;;  %p15673_p7 = scmp.lt.s32.totalorder %s16183_s30, %s16183_s30 }
  0x42   : > { %p15666_p0 = scmp.ne.s32.totalorder %s16183_s30, %s15665_s26  ;;  %p15674_p9 = scmp.lt.s32.totalorder %s15665_s26, %s15665_s26 }
  0x44   : > { %p15668_p2 = pnand %p15666_p0, %p16201_p8  ;;  %p15675_p10 = por %p15674_p9, %p15673_p7 }
  0x46   : > { %p15669_p5 = pneg %p15668_p2 }
  0x48   : > { %p15676_p11 = pnand %p15675_p10, %p15669_p5 }
  0x4a   : > { %15679 = shalt.err (!%p15676_p11)
}
  0x4b   : > { %s16057_s12 = smov 192   ;;  %s16058_s28 = smov 12  }
  0x4c   : > { %14220 = dma.hbm_to_vmem [thread:$0]  (!%p16187_p6), %s21583_s3, 3072, %s16183_s30, [#allocation9], %s16057_s12, %s16057_s12, %s16058_s28  }
  0x4d   : > { %s21584_s5 = sld [smem:[#allocation136_spill]] }
  0x53   : > { %s15680_s14 = scalar_lea.hbm %s21584_s5, 16 }
  0x54   : > { %p15681_p12 = scmp.ne.s32.totalorder %s21584_s5, %s15680_s14  ;;  %p15687_p0 = scmp.lt.u32.totalorder %s15680_s14, %s21584_s5 }
  0x56   : > { %p15683_p4 = pnand %p15681_p12, %p16201_p8 }
  0x58   : > { %p15684_p13 = pneg %p15683_p4 }
  0x5a   : > { %p15689_p2 = pnand %p15687_p0, %p15684_p13 }
  0x5c   : > { %15692 = shalt.err (!%p15689_p2)
}
  0x5d   : > { %s15693_s30 = scalar_lea.vmem %s16191_s15, 16  ;;  %s15700_s12 = scalar_lea.vmem %s16191_s15, 32 }
  0x5e   : > { %p15694_p5 = scmp.ne.s32.totalorder %s16191_s15, %s15693_s30  ;;  %p15701_p10 = scmp.lt.s32.totalorder %s16191_s15, %s16191_s15 }
  0x5f   : > { %p15702_p11 = scmp.lt.s32.totalorder %s15700_s12, %s15693_s30 }
  0x60   : > { %p15696_p7 = pnand %p15694_p5, %p16201_p8 }
  0x61   : > { %p15703_p12 = por %p15702_p11, %p15701_p10 }
  0x62   : > { %p15697_p9 = pneg %p15696_p7 }
  0x64   : > { %p15704_p4 = pnand %p15703_p12, %p15697_p9 }
  0x66   : > { %15707 = shalt.err (!%p15704_p4)
}
  0x67   : > { %14226 = dma.hbm_to_vmem [thread:$0]  (!%p16187_p6), %s21584_s5, 16, %s16191_s15, [#allocation12]  }
  0x68   : > { %s16059_s18 = smov [#allocation14]   ;;  %s16060_s20 = smov [#allocation17]  }
  0x69   : > { %s405_s19 = sshll.u32 %s16059_s18, 4  ;;  %s429_s29 = sshll.u32 %s16060_s20, 4  ;;  %s406_s19 = int_to_ptr.vmem [resolvable:$true] %s405_s19  ;;  %s430_s29 = int_to_ptr.vmem [resolvable:$true] %s429_s29 }
  0x6a   : > { %s15708_s17 = scalar_lea.hbm %s21395_s7, 16 }
  0x6b   : > { %p15709_p13 = scmp.ne.s32.totalorder %s21395_s7, %s15708_s17  ;;  %p15715_p5 = scmp.lt.u32.totalorder %s15708_s17, %s21395_s7 }
  0x6d   : > { %p15711_p0 = pnand %p15709_p13, %p16201_p8 }
  0x6f   : > { %p15712_p2 = pneg %p15711_p0 }
  0x71   : > { %p15717_p7 = pnand %p15715_p5, %p15712_p2 }
  0x73   : > { %15720 = shalt.err (!%p15717_p7)
}
  0x74   : > { %s15721_s15 = scalar_lea.vmem %s406_s19, 16  ;;  %s15728_s28 = scalar_lea.vmem %s406_s19, 32 }
  0x75   : > { %p15722_p9 = scmp.ne.s32.totalorder %s406_s19, %s15721_s15  ;;  %p15729_p12 = scmp.lt.s32.totalorder %s406_s19, %s406_s19 }
  0x76   : > { %p15730_p4 = scmp.lt.s32.totalorder %s15728_s28, %s15721_s15 }
  0x77   : > { %p15724_p10 = pnand %p15722_p9, %p16201_p8 }
  0x78   : > { %p15731_p1 = por %p15730_p4, %p15729_p12 }
  0x79   : > { %p15725_p11 = pneg %p15724_p10 }
  0x7b   : > { %p15732_p3 = pnand %p15731_p1, %p15725_p11 }
  0x7d   : > { %15735 = shalt.err (!%p15732_p3)
}
  0x7e   : > { %14232 = dma.hbm_to_vmem [thread:$0]  (!%p16187_p6), %s21395_s7, 16, %s406_s19, [#allocation15]  }
  0x7f   : > { %s15736_s17 = scalar_lea.hbm %s21397_s9, 64 }
  0x80   : > { %p15737_p13 = scmp.ne.s32.totalorder %s21397_s9, %s15736_s17  ;;  %p15743_p3 = scmp.lt.u32.totalorder %s15736_s17, %s21397_s9 }
  0x82   : > { %p15739_p0 = pnand %p15737_p13, %p16201_p8 }
  0x84   : > { %p15740_p1 = pneg %p15739_p0 }
  0x86   : > { %p15745_p2 = pnand %p15743_p3, %p15740_p1 }
  0x88   : > { %15748 = shalt.err (!%p15745_p2)
}
  0x89   : > { %s15749_s15 = scalar_lea.vmem %s430_s29, 64  ;;  %p15757_p10 = scmp.lt.s32.totalorder %s430_s29, %s430_s29 }
  0x8a   : > { %p15750_p5 = scmp.ne.s32.totalorder %s430_s29, %s15749_s15  ;;  %p15758_p11 = scmp.lt.s32.totalorder %s15749_s15, %s15749_s15 }
  0x8c   : > { %p15752_p7 = pnand %p15750_p5, %p16201_p8  ;;  %p15759_p12 = por %p15758_p11, %p15757_p10 }
  0x8e   : > { %p15753_p9 = pneg %p15752_p7 }
  0x90   : > { %p15760_p4 = pnand %p15759_p12, %p15753_p9 }
  0x92   : > { %15763 = shalt.err (!%p15760_p4)
}
  0x93   : > { %14238 = dma.hbm_to_vmem [thread:$0]  (!%p16187_p6), %s21397_s9, 64, %s430_s29, [#allocation18]  }
  0x94   : > { %s16061_s18 = smov [#allocation7]   ;;  %s16062_s14 = smov [#allocation10]  }
  0x95   : > { %s346_s20 = sshll.u32 %s16061_s18, 4  ;;  %s369_s16 = sshll.u32 %s16062_s14, 4  ;;  %s347_s20 = int_to_ptr.vmem [resolvable:$true] %s346_s20  ;;  %s370_s16 = int_to_ptr.vmem [resolvable:$true] %s369_s16 }
  0x96   : > { %s21585_s2 = sld [smem:[#allocation134_spill]] }
  0x9c   : > { %s15764_s30 = scalar_lea.hbm %s21585_s2, 16 }
  0x9d   : > { %p15765_p13 = scmp.ne.s32.totalorder %s21585_s2, %s15764_s30  ;;  %p15771_p3 = scmp.lt.u32.totalorder %s15764_s30, %s21585_s2 }
  0x9f   : > { %p15767_p0 = pnand %p15765_p13, %p16201_p8 }
  0xa1   : > { %p15768_p1 = pneg %p15767_p0 }
  0xa3   : > { %p15773_p2 = pnand %p15771_p3, %p15768_p1 }
  0xa5   : > { %15776 = shalt.err (!%p15773_p2)
}
  0xa6   : > { %s15777_s29 = scalar_lea.vmem %s347_s20, 16  ;;  %s15784_s28 = scalar_lea.vmem %s347_s20, 32 }
  0xa7   : > { %p15778_p5 = scmp.ne.s32.totalorder %s347_s20, %s15777_s29  ;;  %p15785_p10 = scmp.lt.s32.totalorder %s347_s20, %s347_s20 }
  0xa8   : > { %p15786_p11 = scmp.lt.s32.totalorder %s15784_s28, %s15777_s29 }
  0xa9   : > { %p15780_p7 = pnand %p15778_p5, %p16201_p8 }
  0xaa   : > { %p15787_p12 = por %p15786_p11, %p15785_p10 }
  0xab   : > { %p15781_p9 = pneg %p15780_p7 }
  0xad   : > { %p15788_p4 = pnand %p15787_p12, %p15781_p9 }
  0xaf   : > { %15791 = shalt.err (!%p15788_p4)
}
  0xb0   : > { %14217 = dma.hbm_to_vmem [thread:$0]  (!%p16187_p6), %s21585_s2, 16, %s347_s20, [#allocation6]  }
  0xb1   : > { %s15792_s30 = scalar_lea.hbm %s21392_s4, 1024 }
  0xb2   : > { %p15793_p13 = scmp.ne.s32.totalorder %s21392_s4, %s15792_s30  ;;  %p15799_p3 = scmp.lt.u32.totalorder %s15792_s30, %s21392_s4 }
  0xb4   : > { %p15795_p0 = pnand %p15793_p13, %p16201_p8 }
  0xb6   : > { %p15796_p1 = pneg %p15795_p0 }
  0xb8   : > { %p15801_p2 = pnand %p15799_p3, %p15796_p1 }
  0xba   : > { %15804 = shalt.err (!%p15801_p2)
}
  0xbb   : > { %s15805_s29 = scalar_lea.vmem %s370_s16, 1024  ;;  %p15813_p10 = scmp.lt.s32.totalorder %s370_s16, %s370_s16 }
  0xbc   : > { %p15806_p5 = scmp.ne.s32.totalorder %s370_s16, %s15805_s29  ;;  %p15814_p11 = scmp.lt.s32.totalorder %s15805_s29, %s15805_s29 }
  0xbe   : > { %p15808_p7 = pnand %p15806_p5, %p16201_p8  ;;  %p15815_p12 = por %p15814_p11, %p15813_p10 }
  0xc0   : > { %p15809_p9 = pneg %p15808_p7 }
  0xc2   : > { %p15816_p4 = pnand %p15815_p12, %p15809_p9 }
  0xc4   : > { %15819 = shalt.err (!%p15816_p4)
}
  0xc5   : > { %s21405_s20 = smov 64   ;;  %s21406_s28 = smov 4  }
  0xc6   : > { %14223 = dma.hbm_to_vmem [thread:$0]  (!%p16187_p6), %s21392_s4, 1024, %s370_s16, [#allocation9], %s21405_s20, %s21405_s20, %s21406_s28  }
  0xc7   : > { %s16065_s17 = smov [#allocation13]   ;;  %s16066_s30 = smov [#allocation16]  }
  0xc8   : > { %s394_s26 = sshll.u32 %s16065_s17, 4  ;;  %s415_s12 = sshll.u32 %s16066_s30, 4  ;;  %s395_s26 = int_to_ptr.vmem [resolvable:$true] %s394_s26  ;;  %s416_s12 = int_to_ptr.vmem [resolvable:$true] %s415_s12 }
  0xc9   : > { %s15820_s19 = scalar_lea.hbm %s21394_s6, 16 }
  0xca   : > { %p15821_p13 = scmp.ne.s32.totalorder %s21394_s6, %s15820_s19  ;;  %p15827_p3 = scmp.lt.u32.totalorder %s15820_s19, %s21394_s6 }
  0xcc   : > { %p15823_p0 = pnand %p15821_p13, %p16201_p8 }
  0xce   : > { %p15824_p1 = pneg %p15823_p0 }
  0xd0   : > { %p15829_p2 = pnand %p15827_p3, %p15824_p1 }
  0xd2   : > { %15832 = shalt.err (!%p15829_p2)
}
  0xd3   : > { %s15833_s16 = scalar_lea.vmem %s395_s26, 16  ;;  %s15840_s18 = scalar_lea.vmem %s395_s26, 32 }
  0xd4   : > { %p15834_p5 = scmp.ne.s32.totalorder %s395_s26, %s15833_s16  ;;  %p15841_p10 = scmp.lt.s32.totalorder %s395_s26, %s395_s26 }
  0xd5   : > { %p15842_p11 = scmp.lt.s32.totalorder %s15840_s18, %s15833_s16 }
  0xd6   : > { %p15836_p7 = pnand %p15834_p5, %p16201_p8 }
  0xd7   : > { %p15843_p12 = por %p15842_p11, %p15841_p10 }
  0xd8   : > { %p15837_p9 = pneg %p15836_p7 }
  0xda   : > { %p15844_p4 = pnand %p15843_p12, %p15837_p9 }
  0xdc   : > { %15847 = shalt.err (!%p15844_p4)
}
  0xdd   : > { %14229 = dma.hbm_to_vmem [thread:$0]  (!%p16187_p6), %s21394_s6, 16, %s395_s26, [#allocation12]  }
  0xde   : > { %s15848_s17 = scalar_lea.hbm %s21396_s8, 4096 }
  0xdf   : > { %p15849_p13 = scmp.ne.s32.totalorder %s21396_s8, %s15848_s17  ;;  %p15855_p3 = scmp.lt.u32.totalorder %s15848_s17, %s21396_s8 }
  0xe1   : > { %p15851_p0 = pnand %p15849_p13, %p16201_p8 }
  0xe3   : > { %p15852_p1 = pneg %p15851_p0 }
  0xe5   : > { %p15857_p2 = pnand %p15855_p3, %p15852_p1 }
  0xe7   : > { %15860 = shalt.err (!%p15857_p2)
}
  0xe8   : > { %s15861_s29 = scalar_lea.vmem %s416_s12, 4096  ;;  %p15869_p10 = scmp.lt.s32.totalorder %s416_s12, %s416_s12 }
  0xe9   : > { %p15862_p5 = scmp.ne.s32.totalorder %s416_s12, %s15861_s29  ;;  %p15870_p11 = scmp.lt.s32.totalorder %s15861_s29, %s15861_s29 }
  0xeb   : > { %p15864_p7 = pnand %p15862_p5, %p16201_p8  ;;  %p15871_p12 = por %p15870_p11, %p15869_p10 }
  0xed   : > { %p15865_p9 = pneg %p15864_p7 }
  0xef   : > { %p15872_p4 = pnand %p15871_p12, %p15865_p9 }
  0xf1   : > { %15875 = shalt.err (!%p15872_p4)
}
  0xf2   : > { %s16067_s26 = smov 256   ;;  %s16068_s16 = smov 16  }
  0xf3   : > { %14235 = dma.hbm_to_vmem [thread:$0]  (!%p16187_p6), %s21396_s8, 4096, %s416_s12, [#allocation15], %s16067_s26, %s16067_s26, %s16068_s16  }
  0xf4   : > { %s16069_s14 = smov [#allocation19]   ;;  %s16070_s5 = smov [#allocation20]  }
  0xf5   : > { %s439_s3 = sshll.u32 %s16069_s14, 4  ;;  %s453_s17 = sshll.u32 %s16070_s5, 4  ;;  %s440_s3 = int_to_ptr.vmem [resolvable:$true] %s439_s3  ;;  %s454_s17 = int_to_ptr.vmem [resolvable:$true] %s453_s17 }
  0xf6   : > { %s15876_s15 = scalar_lea.hbm %s21398_s10, 4096 }
  0xf7   : > { %p15877_p13 = scmp.ne.s32.totalorder %s21398_s10, %s15876_s15  ;;  %p15883_p3 = scmp.lt.u32.totalorder %s15876_s15, %s21398_s10 }
  0xf9   : > { %p15879_p0 = pnand %p15877_p13, %p16201_p8 }
  0xfb   : > { %p15880_p1 = pneg %p15879_p0 }
  0xfd   : > { %p15885_p2 = pnand %p15883_p3, %p15880_p1 }
  0xff   : > { %15888 = shalt.err (!%p15885_p2)
}
 0x100   : > { %s15889_s12 = scalar_lea.vmem %s440_s3, 4096  ;;  %p15897_p10 = scmp.lt.s32.totalorder %s440_s3, %s440_s3 }
 0x101   : > { %p15890_p5 = scmp.ne.s32.totalorder %s440_s3, %s15889_s12  ;;  %p15898_p11 = scmp.lt.s32.totalorder %s15889_s12, %s15889_s12 }
 0x103   : > { %p15892_p7 = pnand %p15890_p5, %p16201_p8  ;;  %p15899_p12 = por %p15898_p11, %p15897_p10 }
 0x105   : > { %p15893_p9 = pneg %p15892_p7 }
 0x107   : > { %p15900_p4 = pnand %p15899_p12, %p15893_p9 }
 0x109   : > { %15903 = shalt.err (!%p15900_p4)
}
 0x10a   : > { %s21586_s26 = smov 4   ;;  %s21587_s16 = smov 64  }
 0x10b   : > { %14241 = dma.hbm_to_vmem [thread:$0]  (!%p16187_p6), %s21398_s10, 4096, %s440_s3, [#allocation18], %s21587_s16, %s21587_s16, %s21586_s26  }
 0x10c   : > { %s15904_s14 = scalar_lea.hbm %s21399_s11, 16 }
 0x10d   : > { %p15905_p13 = scmp.ne.s32.totalorder %s21399_s11, %s15904_s14  ;;  %p15911_p3 = scmp.lt.u32.totalorder %s15904_s14, %s21399_s11 }
 0x10f   : > { %p15907_p0 = pnand %p15905_p13, %p16201_p8 }
 0x111   : > { %p15908_p1 = pneg %p15907_p0 }
 0x113   : > { %p15913_p2 = pnand %p15911_p3, %p15908_p1 }
 0x115   : > { %15916 = shalt.err (!%p15913_p2)
}
 0x116   : > { %s15917_s19 = scalar_lea.vmem %s454_s17, 16  ;;  %s15924_s3 = scalar_lea.vmem %s454_s17, 32 }
 0x117   : > { %p15918_p5 = scmp.ne.s32.totalorder %s454_s17, %s15917_s19  ;;  %p15925_p10 = scmp.lt.s32.totalorder %s454_s17, %s454_s17 }
 0x118   : > { %p15926_p11 = scmp.lt.s32.totalorder %s15924_s3, %s15917_s19 }
 0x119   : > { %p15920_p7 = pnand %p15918_p5, %p16201_p8 }
 0x11a   : > { %p15927_p12 = por %p15926_p11, %p15925_p10 }
 0x11b   : > { %p15921_p9 = pneg %p15920_p7 }
 0x11d   : > { %p15928_p4 = pnand %p15927_p12, %p15921_p9 }
 0x11f   : > { %15931 = shalt.err (!%p15928_p4)
}
 0x120   : > { %14244 = dma.hbm_to_vmem [thread:$0]  (!%p16187_p6), %s21399_s11, 16, %s454_s17, [#allocation21]  }
 0x121   : > { %s12483_s25 = sadd.s32 4294967294, %s16052_s24   ;;  %s16422_s13 = sadd.s32 1, %s16052_s24  }
 0x122   : > { %s41_s26 = sadd.s32 1, %s16048_s23  ;;  %s38_s16 = ssub.s32 %s16052_s24, %s16422_s13 }
 0x123   : > { %p48_p8 = scmp.ne.s32.totalorder %s16048_s23, %s16044_s22  ;;  %p39_p13 = scmp.eq.s32.totalorder %s38_s16, 0 }
 0x124   : > { %p49_p0 = scmp.eq.s32.totalorder %s16052_s24, 0  ;;  %p54_p1 = scmp.ne.s32.totalorder %s16044_s22, %s16040_s21 }
 0x125   : > { %p309_p3 = scmp.eq.s32.totalorder %s16169_s27, 1  ;;  %p21588_p5 = scmp.eq.s32.totalorder %s16169_s27, 0 }
 0x126   : > { %s16434_s20 = scalar_select %p39_p13, %s16048_s23, %s41_s26  }
 0x127   : > { %p50_p2 = por %p49_p0, %p48_p8  ;;  %p16438_p7 = por %p21588_p5, %p54_p1 }
 0x128   : > { %p16442_p6 = por %p309_p3, %p48_p8  ;;  %p315_p9 = scmp.eq.s32.totalorder %s12483_s25, 1 }
 0x129   : > { %p14264_p10 = scmp.lt.s32.totalorder %s16052_s24, 2  ;;  %s464_s18 = sand.u32 1, %s16048_s23  }
 0x12a   : > { %s21590_s17 = scalar_select %p16442_p6, 1, 0 }
 0x12b   : > { %p16448_p11 = por %p315_p9, %p54_p1  ;;  %s12497_s14 = sshll.u32 %s464_s18, 8 }
 0x12c   : > { %s12752_s5 = sshll.u32 %s16052_s24, 12  ;;  %s468_s19 = scalar_lea.vmem [#allocation2], %s12497_s14 }
 0x12d   : > { %s21591_s2 = scalar_select %p16448_p11, 1, 0 }
 0x12e   : > { %s16456_s15 = scalar_lea.hbm %s21388_s0, %s12752_s5  ;;  %s476_s3 = sshll.u32 %s468_s19, 4  ;;  %s16462_s3 = int_to_ptr.vmem [resolvable:$true] %s476_s3 }
 0x12f   : > { %p16458_p12 = pnand %p14264_p10, %p50_p2  ;;  %s16464_s12 = scalar_lea.sflag [#allocation3], %s464_s18 }
 0x130   : > { %s15932_s25 = scalar_lea.hbm %s16456_s15, 4096  ;;  %s15937_s14 = scalar_lea.hbm %s21388_s0, 8192 }
 0x131   : > { %p15933_p4 = scmp.ne.s32.totalorder %s16456_s15, %s15932_s25  ;;  %p15934_p8 = pneg %p16458_p12 }
 0x132   : > { %p15938_p1 = scmp.lt.u32.totalorder %s16456_s15, %s21388_s0  ;;  %p15939_p3 = scmp.lt.u32.totalorder %s15937_s14, %s15932_s25 }
 0x133   : > { %p15935_p13 = pnand %p15934_p8, %p15933_p4  ;;  %p15941_p5 = scmp.lt.u32.totalorder %s15932_s25, %s16456_s15 }
 0x134   : > { %p15940_p2 = por %p15939_p3, %p15938_p1 }
 0x135   : > { %p15936_p0 = pneg %p15935_p13 }
 0x136   : > { %p15942_p9 = por %p15941_p5, %p15940_p2 }
 0x138   : > { %p15943_p10 = pnand %p15942_p9, %p15936_p0 }
 0x13a   : > { %15946 = shalt.err (!%p15943_p10)
}
 0x13b   : > { %s15947_s18 = scalar_lea.vmem %s16462_s3, 4096  ;;  %s16071_s1 = smov [#allocation2]  }
 0x13c   : > { %p15948_p4 = scmp.ne.s32.totalorder %s16462_s3, %s15947_s18  ;;  %s15952_s19 = sshll.u32 %s16071_s1, 4  ;;  %s15953_s19 = int_to_ptr.vmem [resolvable:$false] %s15952_s19 }
 0x13d   : > { %s15954_s26 = scalar_lea.vmem %s15953_s19, 8192  ;;  %p15955_p6 = scmp.lt.s32.totalorder %s16462_s3, %s15953_s19 }
 0x13e   : > { %p15950_p13 = pnand %p15948_p4, %p15934_p8  ;;  %p15956_p1 = scmp.lt.s32.totalorder %s15954_s26, %s15947_s18 }
 0x140   : > { %p15951_p11 = pneg %p15950_p13  ;;  %p15957_p3 = por %p15956_p1, %p15955_p6 }
 0x142   : > { %p15958_p2 = pnand %p15957_p3, %p15951_p11 }
 0x144   : > { %15961 = shalt.err (!%p15958_p2)
}
 0x145   : > { %s16072_s25 = smov 128   ;;  %s16073_s16 = smov 8  }
 0x146   : > { %14248 = dma.hbm_to_vmem [thread:$0]  (!%p16458_p12), %s16456_s15, 4096, %s16462_s3, %s16464_s12, %s16072_s25, %s16072_s25, %s16073_s16  }
 0x147   : > { %s21593_s14 = sld [smem:[#allocation31_spill]] }
 0x14d   : > { %p21594_p8 = scmp.ne.s32.totalorder %s21593_s14, 0 }
 0x14f   : > { %488 = sbr.rel (%p21594_p8) target bundleno = 5172 (0x1434), region = 68 }
 0x156   : > { %s16495_s5 = sand.u32 1, %s16044_s22  }
 0x157   : > { %s12502_s30 = sshll.u32 %s16495_s5, 8  ;;  %s491_s18 = scalar_lea.sflag [#allocation3], %s16495_s5 }
 0x158   : > { %s16501_s1 = scalar_lea.vmem [#allocation2], %s12502_s30 }
 0x159   : > { %16007 = dma.done.wait (%p16438_p7), %s491_s18, 4096  }
 0x15a   : > { %16009 = vsyncadd (%p16438_p7), %s491_s18, 4294963200  ;;  %p21595_p6 = scmp.eq.s32.totalorder %s16169_s27, 0 }
 0x15c   : > { %16011 = dma.done.wait (%p21595_p6), [#allocation6], 32   ;;  %p21596_p11 = pmov %p21595_p6 }
 0x15d   : > { %p21597_p12 = pmov %p21595_p6 }
 0x15e   : > { %16013 = vsyncadd (%p21596_p11), [#allocation6], 4294967264 }
 0x15f   : > { %16015 = dma.done.wait (%p21597_p12), [#allocation9], 4096   ;;  %p21598_p0 = pmov %p21595_p6 }
 0x161   : > { %16017 = vsyncadd (%p21598_p0), [#allocation9], 4294963200  ;;  %p21599_p5 = pmov %p21598_p0 }
 0x162   : > { %p21600_p9 = pmov %p21598_p0 }
 0x163   : > { %16019 = dma.done.wait (%p21599_p5), [#allocation12], 32  }
 0x164   : > { %16021 = vsyncadd (%p21600_p9), [#allocation12], 4294967264  ;;  %p21601_p7 = pmov %p21598_p0 }
 0x165   : > { %p21602_p10 = pmov %p21598_p0 }
 0x166   : > { %16023 = dma.done.wait (%p21601_p7), [#allocation15], 4112  }
 0x167   : > { %16025 = vsyncadd (%p21602_p10), [#allocation15], 4294963184  ;;  %p21603_p4 = pmov %p21598_p0 }
 0x168   : > { %p21604_p13 = pmov %p21598_p0 }
 0x169   : > { %16027 = dma.done.wait (%p21603_p4), [#allocation18], 4160  }
 0x16a   : > { %16029 = vsyncadd (%p21604_p13), [#allocation18], 4294963136  ;;  %p21605_p1 = pmov %p21598_p0 }
 0x16b   : > { %p21606_p3 = pmov %p21598_p0 }
 0x16c   : > { %16031 = dma.done.wait (%p21605_p1), [#allocation21], 16  }
 0x16d   : > { %16033 = vsyncadd (%p21606_p3), [#allocation21], 4294967280  ;;  %v582_v0 = vld [vmem:[%s16501_s1] sm:$0xff]  ;;  %v584_v1 = vld [vmem:[%s16501_s1 + $0x10] sm:$0xff]  ;;  %vm16076_vm0 = vmmov 0   ;;  %vm1575_vm1 = vcmask 261120  }
 0x16e   : > { %616 = vadd.xlane.f32.xlu0 %v582_v0  ;;  %620 = vadd.xlane.f32.xlu1 %v584_v1  ;;  %v583_v2 = vld [vmem:[%s16501_s1 + $0x8] sm:$0xff]  ;;  %v16535_v3 = vld [vmem:[%s16501_s1 + $0x18] sm:$0xff]  ;;  %v16539_v4 = vld [vmem:[%s16501_s1 + $0x20] sm:$0xff]  ;;  %vm2312_vm2 = vcmask 130048   ;;  %s16077_s28 = smov 96   ;;  %s16078_s15 = smov 64  }
 0x16f   : > { %v16542_v5 = vld [vmem:[%s16501_s1 + $0x28] sm:$0xff]  ;;  %v16545_v6 = vld [vmem:[%s16501_s1 + $0x30] sm:$0xff]  ;;  %v16548_v7 = vld [vmem:[%s16501_s1 + $0x38] sm:$0xff]  ;;  %s16079_s3 = smov 32   ;;  %vm9337_vm3 = vcmask 523264   ;;  %vm9354_vm4 = vcmask 785408  }
 0x170   : > { %v16553_v8 = vld [vmem:[%s16501_s1 + $0x40] sm:$0xff]  ;;  %v16556_v9 = vld [vmem:[%s16501_s1 + $0x48] sm:$0xff]  ;;  %v16561_v10 = vld [vmem:[%s16501_s1 + $0x50] sm:$0xff]  ;;  %s21242_s29 = scalar_lea.vmem [#allocation22], %s12502_s30  ;;  %s12754_s12 = sshll.u32 %s16169_s27, 12 }
 0x171   : > { %v16564_v11 = vld [vmem:[%s16501_s1 + $0x58] sm:$0xff]  ;;  %v16569_v12 = vld [vmem:[%s16501_s1 + $0x60] sm:$0xff]  ;;  %v16574_v13 = vld [vmem:[%s16501_s1 + $0x68] sm:$0xff]  ;;  %s12305_s19 = sshll.u32 %s21242_s29, 4  ;;  %s22056_s16 = sld [smem:[#allocation137_spill]]  ;;  %s21341_s19 = int_to_ptr.vmem [resolvable:$true] %s12305_s19 }
 0x172   : > { %618 = vadd.xlane.f32.xlu0 %v583_v2  ;;  %622 = vadd.xlane.f32.xlu1 %v16535_v3  ;;  %v16577_v14 = vld [vmem:[%s16501_s1 + $0x70] sm:$0xff]  ;;  %v16580_v15 = vld [vmem:[%s16501_s1 + $0x78] sm:$0xff]  ;;  %v16585_v16 = vld [vmem:[%s16501_s1 + $0x80] sm:$0xff]  ;;  %s12291_s30 = scalar_lea.sflag [#allocation4], %s16495_s5  ;;  %s15962_s27 = scalar_lea.vmem %s21341_s19, 4096 }
 0x173   : > { %v16590_v17 = vld [vmem:[%s16501_s1 + $0x88] sm:$0xff]  ;;  %v16593_v18 = vld [vmem:[%s16501_s1 + $0x90] sm:$0xff]  ;;  %v16598_v19 = vld [vmem:[%s16501_s1 + $0x98] sm:$0xff]  ;;  %p15963_p2 = scmp.ne.s32.totalorder %s21341_s19, %s15962_s27  ;;  %p22058_p8 = scmp.ne.s32.totalorder %s21590_s17, 0 }
 0x174   : > { %v14576_v20 = vld [vmem:[#allocation8 + $0x4] ss:$12 sps:$4 sm:$0xff]   ;;  %v14578_v21 = vld [vmem:[#allocation8] ss:$12 sps:$4 sm:$0xff]   ;;  %v14579_v22 = vld [vmem:[#allocation8 + $0x1c] ss:$12 sps:$4 sm:$0xff]  }
 0x175   : > { %1221 = vmatprep.subr.bf16.mxu0 %v14576_v20  ;;  %14147 = vmatprep.subr.bf16.mxu1 %v14576_v20  ;;  %v16611_v35 = vld [vmem:[%s16501_s1 + $0xa0] sm:$0xff]  ;;  %v16622_v41 = vld [vmem:[%s16501_s1 + $0xa8] sm:$0xff]  ;;  %v16649_v60 = vld [vmem:[%s16501_s1 + $0xd0] sm:$0xff]  ;;  %p15964_p6 = pnand %p15963_p2, %p22058_p8  ;;  %s16080_s18 = smov [#allocation22]  }
 0x176   : > { %624 = vadd.xlane.f32.xlu0 %v16539_v4  ;;  %626 = vadd.xlane.f32.xlu1 %v16542_v5  ;;  %v16631_v46 = vld [vmem:[%s16501_s1 + $0xc0] sm:$0xff]  ;;  %v14581_v51 = vld [vmem:[#allocation8 + $0x18] ss:$12 sps:$4 sm:$0xff]  }
 0x177   : > { %1222 = vmatpush1.bf16.msra.mxu0 %v14578_v21  ;;  %14155 = vmatpush1.bf16.msra.mxu1 %v14578_v21  ;;  %v16640_v52 = vld [vmem:[%s16501_s1 + $0xc8] sm:$0xff]  ;;  %v14582_v55 = vld [vmem:[#allocation8 + $0x34] ss:$12 sps:$4 sm:$0xff]   ;;  %v14584_v59 = vld [vmem:[#allocation8 + $0x30] ss:$12 sps:$4 sm:$0xff]   ;;  %s21339_s14 = scalar_lea.hbm %s22056_s16, %s12754_s12  ;;  %p15965_p11 = pneg %p15964_p6 }
 0x178   : > { %1223 = vmatprep.subr.bf16.mxu0 %v14579_v22  ;;  %14148 = vmatprep.subr.bf16.mxu1 %v14579_v22  ;;  %v14585_v63 = vld [vmem:[#allocation8 + $0x4c] ss:$12 sps:$4 sm:$0xff]   ;;  %v14588_v20 = vld [vmem:[#allocation8 + $0x64] ss:$12 sps:$4 sm:$0xff]  }
 0x17a   : > { %628 = vadd.xlane.f32.xlu0 %v16545_v6  ;;  %630 = vadd.xlane.f32.xlu1 %v16548_v7 }
 0x17b   : > { %1224 = vmatpush1.bf16.msra.mxu0 %v14581_v51  ;;  %14156 = vmatpush1.bf16.msra.mxu1 %v14581_v51 }
 0x17c   : > { %1225 = vmatprep.subr.bf16.mxu0 %v14582_v55  ;;  %14149 = vmatprep.subr.bf16.mxu1 %v14582_v55 }
 0x17e   : > { %632 = vadd.xlane.f32.xlu0 %v16553_v8  ;;  %634 = vadd.xlane.f32.xlu1 %v16556_v9 }
 0x17f   : > { %1226 = vmatpush1.bf16.msra.mxu0 %v14584_v59  ;;  %14157 = vmatpush1.bf16.msra.mxu1 %v14584_v59 }
 0x180   : > { %1227 = vmatprep.subr.bf16.mxu0 %v14585_v63  ;;  %14150 = vmatprep.subr.bf16.mxu1 %v14585_v63 }
 0x182   : > { %636 = vadd.xlane.f32.xlu0 %v16561_v10  ;;  %638 = vadd.xlane.f32.xlu1 %v16564_v11 }
 0x186   : > { %640 = vadd.xlane.f32.xlu0 %v16569_v12  ;;  %642 = vadd.xlane.f32.xlu1 %v16574_v13 }
 0x18a   : > { %644 = vadd.xlane.f32.xlu0 %v16577_v14  ;;  %646 = vadd.xlane.f32.xlu1 %v16580_v15 }
 0x18e   : > { %648 = vadd.xlane.f32.xlu0 %v16585_v16  ;;  %650 = vadd.xlane.f32.xlu1 %v16590_v17 }
 0x192   : > { %652 = vadd.xlane.f32.xlu0 %v16593_v18  ;;  %654 = vadd.xlane.f32.xlu1 %v16598_v19 }
 0x1fb   : > { %v617_v23 = vpop.xlane.xlu0 %616  ;;  %v621_v24 = vpop.xlane.xlu1 %620 }
 0x1fc   : > { %v681_v25 = vmul.f32 0.0078125, %v617_v23  ;;  %v683_v27 = vmul.f32 0.0078125, %v621_v24  ;;  %v14590_v23 = vld [vmem:[#allocation8 + $0x60] ss:$12 sps:$4 sm:$0xff]  }
 0x1fd   : > { %v16667_v24 = vld [vmem:[%s16501_s1 + $0xe0] sm:$0xff] }
 0x1fe   : > { %v16602_v26 = vsub.f32 %v582_v0, %v681_v25  ;;  %v16608_v34 = vsub.f32 %v584_v1, %v683_v27 }
 0x1ff   : > { %v619_v28 = vpop.xlane.xlu0 %618  ;;  %v623_v29 = vpop.xlane.xlu1 %622 }
 0x200   : > { %v682_v30 = vmul.f32 0.0078125, %v619_v28  ;;  %v745_v31 = vmul.f32 %v16602_v26, %v16602_v26  ;;  %v684_v33 = vmul.f32 0.0078125, %v623_v29  ;;  %v747_v38 = vmul.f32 %v16608_v34, %v16608_v34  ;;  %v14591_v28 = vld [vmem:[#allocation8 + $0x7c] ss:$12 sps:$4 sm:$0xff]  }
 0x202   : > { %777 = vadd.xlane.f32.xlu0 %v745_v31  ;;  %v16606_v32 = vsub.f32 %v583_v2, %v682_v30  ;;  %v16619_v40 = vsub.f32 %v16535_v3, %v684_v33  ;;  %v14587_v3 = vld [vmem:[#allocation8 + $0x48] ss:$12 sps:$4 sm:$0xff]   ;;  %v14593_v33 = vld [vmem:[#allocation8 + $0x78] ss:$12 sps:$4 sm:$0xff]  }
 0x203   : > { %v625_v36 = vpop.xlane.xlu0 %624  ;;  %v627_v42 = vpop.xlane.xlu1 %626  ;;  %1228 = vmatpush1.bf16.msra.mxu0 %v14587_v3  ;;  %14158 = vmatpush1.bf16.msra.mxu1 %v14587_v3 }
 0x204   : > { %v746_v37 = vmul.f32 %v16606_v32, %v16606_v32  ;;  %v685_v39 = vmul.f32 0.0078125, %v625_v36  ;;  %v748_v43 = vmul.f32 %v16619_v40, %v16619_v40  ;;  %v686_v44 = vmul.f32 0.0078125, %v627_v42  ;;  %1229 = vmatprep.subr.bf16.mxu0 %v14588_v20  ;;  %14151 = vmatprep.subr.bf16.mxu1 %v14588_v20  ;;  %v16679_v36 = vld [vmem:[%s16501_s1 + $0xe8] sm:$0xff] }
 0x206   : > { %656 = vadd.xlane.f32.xlu0 %v16611_v35  ;;  %779 = vadd.xlane.f32.xlu1 %v746_v37  ;;  %v16628_v45 = vsub.f32 %v16539_v4, %v685_v39  ;;  %v16637_v50 = vsub.f32 %v16542_v5, %v686_v44  ;;  %v16658_v4 = vld [vmem:[%s16501_s1 + $0xd8] sm:$0xff]  ;;  %v14596_v44 = vld [vmem:[#allocation8 + $0x90] ss:$12 sps:$4 sm:$0xff]  }
 0x207   : > { %v629_v47 = vpop.xlane.xlu0 %628  ;;  %v631_v53 = vpop.xlane.xlu1 %630  ;;  %1230 = vmatpush1.bf16.msra.mxu0 %v14590_v23  ;;  %14159 = vmatpush1.bf16.msra.mxu1 %v14590_v23 }
 0x208   : > { %v749_v48 = vmul.f32 %v16628_v45, %v16628_v45  ;;  %v687_v49 = vmul.f32 0.0078125, %v629_v47  ;;  %v750_v56 = vmul.f32 %v16637_v50, %v16637_v50  ;;  %v688_v57 = vmul.f32 0.0078125, %v631_v53  ;;  %1231 = vmatprep.subr.bf16.mxu0 %v14591_v28  ;;  %14152 = vmatprep.subr.bf16.mxu1 %v14591_v28  ;;  %v14599_v53 = vld [vmem:[#allocation8 + $0xa8] ss:$12 sps:$4 sm:$0xff]  }
 0x20a   : > { %781 = vadd.xlane.f32.xlu0 %v747_v38  ;;  %658 = vadd.xlane.f32.xlu1 %v16622_v41  ;;  %v16646_v58 = vsub.f32 %v16545_v6, %v687_v49  ;;  %v16655_v2 = vsub.f32 %v16548_v7, %v688_v57  ;;  %v14594_v38 = vld [vmem:[#allocation8 + $0x94] ss:$12 sps:$4 sm:$0xff]  }
 0x20b   : > { %v633_v54 = vpop.xlane.xlu0 %632  ;;  %v635_v61 = vpop.xlane.xlu1 %634  ;;  %1232 = vmatpush1.bf16.msra.mxu0 %v14593_v33  ;;  %14160 = vmatpush1.bf16.msra.mxu1 %v14593_v33 }
 0x20c   : > { %v751_v0 = vmul.f32 %v16646_v58, %v16646_v58  ;;  %v689_v1 = vmul.f32 0.0078125, %v633_v54  ;;  %v690_v5 = vmul.f32 0.0078125, %v635_v61  ;;  %v752_v21 = vmul.f32 %v16655_v2, %v16655_v2  ;;  %1233 = vmatprep.subr.bf16.mxu0 %v14594_v38  ;;  %14153 = vmatprep.subr.bf16.mxu1 %v14594_v38  ;;  %v16705_v61 = vld [vmem:[%s16501_s1 + $0xb0] sm:$0xff] }
 0x20e   : > { %664 = vadd.xlane.f32.xlu0 %v16631_v46  ;;  %783 = vadd.xlane.f32.xlu1 %v748_v43  ;;  %v16664_v7 = vsub.f32 %v16553_v8, %v689_v1  ;;  %v16670_v27 = vsub.f32 %v16556_v9, %v690_v5 }
 0x20f   : > { %v637_v62 = vpop.xlane.xlu0 %636  ;;  %v639_v6 = vpop.xlane.xlu1 %638  ;;  %1234 = vmatpush1.bf16.msra.mxu0 %v14596_v44  ;;  %14161 = vmatpush1.bf16.msra.mxu1 %v14596_v44 }
 0x210   : > { %v691_v22 = vmul.f32 0.0078125, %v637_v62  ;;  %v753_v8 = vmul.f32 %v16664_v7, %v16664_v7  ;;  %v692_v29 = vmul.f32 0.0078125, %v639_v6  ;;  %v754_v9 = vmul.f32 %v16670_v27, %v16670_v27 }
 0x212   : > { %666 = vadd.xlane.f32.xlu1 %v16640_v52  ;;  %785 = vadd.xlane.f32.xlu0 %v749_v48  ;;  %v16676_v31 = vsub.f32 %v16561_v10, %v691_v22  ;;  %v16687_v42 = vsub.f32 %v16564_v11, %v692_v29  ;;  %v14597_v48 = vld [vmem:[#allocation8 + $0xac] ss:$12 sps:$4 sm:$0xff]  }
 0x213   : > { %v641_v25 = vpop.xlane.xlu0 %640  ;;  %v643_v37 = vpop.xlane.xlu1 %642  ;;  %1235 = vmatprep.subr.bf16.mxu0 %v14597_v48  ;;  %14154 = vmatprep.subr.bf16.mxu1 %v14597_v48  ;;  %v16725_v22 = vld [vmem:[%s16501_s1 + $0xf0] sm:$0xff]  ;;  %v16737_v29 = vld [vmem:[%s16501_s1 + $0xf8] sm:$0xff] }
 0x214   : > { %v693_v30 = vmul.f32 0.0078125, %v641_v25  ;;  %v755_v39 = vmul.f32 %v16676_v31, %v16676_v31  ;;  %v694_v10 = vmul.f32 0.0078125, %v643_v37  ;;  %v756_v49 = vmul.f32 %v16687_v42, %v16687_v42  ;;  %1236 = vmatpush1.bf16.msra.mxu0 %v14599_v53  ;;  %14162 = vmatpush1.bf16.msra.mxu1 %v14599_v53 }
 0x216   : > { %787 = vadd.xlane.f32.xlu1 %v750_v56  ;;  %668 = vadd.xlane.f32.xlu0 %v16649_v60  ;;  %v16690_v43 = vsub.f32 %v16569_v12, %v693_v30  ;;  %v16697_v12 = vsub.f32 %v16574_v13, %v694_v10  ;;  %v21408_v13 = vmov 0  }
 0x217   : > { %v645_v47 = vpop.xlane.xlu0 %644  ;;  %v647_v54 = vpop.xlane.xlu1 %646  ;;  %1253 = vmatprep.mubr.bf16.mxu0 %v21408_v13  ;;  %1361 = vmatprep.mubr.bf16.mxu1 %v21408_v13 }
 0x218   : > { %v757_v11 = vmul.f32 %v16690_v43, %v16690_v43  ;;  %v695_v51 = vmul.f32 0.0078125, %v645_v47  ;;  %v758_v56 = vmul.f32 %v16697_v12, %v16697_v12  ;;  %v696_v57 = vmul.f32 0.0078125, %v647_v54 }
 0x21a   : > { %670 = vadd.xlane.f32.xlu1 %v16658_v4  ;;  %789 = vadd.xlane.f32.xlu0 %v751_v0  ;;  %v16702_v59 = vsub.f32 %v16577_v14, %v695_v51  ;;  %v16713_v1 = vsub.f32 %v16580_v15, %v696_v57  ;;  %v16716_v14 = vld [vmem:[%s16501_s1 + $0xb8] sm:$0xff] }
 0x21b   : > { %v649_v55 = vpop.xlane.xlu0 %648  ;;  %v651_v62 = vpop.xlane.xlu1 %650 }
 0x21c   : > { %v759_v63 = vmul.f32 %v16702_v59, %v16702_v59  ;;  %v697_v0 = vmul.f32 0.0078125, %v649_v55  ;;  %v760_v5 = vmul.f32 %v16713_v1, %v16713_v1  ;;  %v698_v6 = vmul.f32 0.0078125, %v651_v62 }
 0x21e   : > { %791 = vadd.xlane.f32.xlu1 %v752_v21  ;;  %672 = vadd.xlane.f32.xlu0 %v16667_v24  ;;  %v16722_v21 = vsub.f32 %v16585_v16, %v697_v0  ;;  %v16731_v28 = vsub.f32 %v16590_v17, %v698_v6 }
 0x21f   : > { %v653_v3 = vpop.xlane.xlu0 %652  ;;  %v655_v23 = vpop.xlane.xlu1 %654 }
 0x220   : > { %v699_v20 = vmul.f32 0.0078125, %v653_v3  ;;  %v761_v15 = vmul.f32 %v16722_v21, %v16722_v21  ;;  %v700_v25 = vmul.f32 0.0078125, %v655_v23  ;;  %v762_v16 = vmul.f32 %v16731_v28, %v16731_v28 }
 0x222   : > { %674 = vadd.xlane.f32.xlu1 %v16679_v36  ;;  %793 = vadd.xlane.f32.xlu0 %v753_v8  ;;  %v16734_v8 = vsub.f32 %v16593_v18, %v699_v20  ;;  %v16745_v33 = vsub.f32 %v16598_v19, %v700_v25 }
 0x224   : > { %v763_v30 = vmul.f32 %v16734_v8, %v16734_v8  ;;  %v764_v17 = vmul.f32 %v16745_v33, %v16745_v33 }
 0x226   : > { %795 = vadd.xlane.f32.xlu1 %v754_v9  ;;  %797 = vadd.xlane.f32.xlu0 %v755_v39 }
 0x22a   : > { %799 = vadd.xlane.f32.xlu1 %v756_v49  ;;  %801 = vadd.xlane.f32.xlu0 %v757_v11 }
 0x22e   : > { %803 = vadd.xlane.f32.xlu1 %v758_v56  ;;  %660 = vadd.xlane.f32.xlu0 %v16705_v61 }
 0x232   : > { %662 = vadd.xlane.f32.xlu1 %v16716_v14  ;;  %805 = vadd.xlane.f32.xlu0 %v759_v63 }
 0x236   : > { %807 = vadd.xlane.f32.xlu1 %v760_v5  ;;  %676 = vadd.xlane.f32.xlu0 %v16725_v22 }
 0x23a   : > { %678 = vadd.xlane.f32.xlu1 %v16737_v29  ;;  %809 = vadd.xlane.f32.xlu0 %v761_v15 }
 0x23e   : > { %811 = vadd.xlane.f32.xlu1 %v762_v16  ;;  %813 = vadd.xlane.f32.xlu0 %v763_v30  ;;  %v16765_v16 = vld [vmem:[#allocation5] ss:$0 sm:$0xff] }
 0x242   : > { %815 = vadd.xlane.f32.xlu1 %v764_v17 }
 0x28f   : > { %v778_v18 = vpop.xlane.xlu0 %777 }
 0x290   : > { %v841_v37 = vmul.f32 0.0078125, %v778_v18 }
 0x292   : > { %v873_v9 = vadd.f32 1e-05, %v841_v37 }
 0x293   : > { %v780_v38 = vpop.xlane.xlu1 %779  ;;  %v657_v39 = vpop.xlane.xlu0 %656 }
 0x294   : > { %14696 = vrsqrt.f32 %v873_v9  ;;  %v842_v10 = vmul.f32 0.0078125, %v780_v38  ;;  %v701_v44 = vmul.f32 0.0078125, %v657_v39 }
 0x296   : > { %v874_v47 = vadd.f32 1e-05, %v842_v10  ;;  %v16750_v48 = vsub.f32 %v16611_v35, %v701_v44  ;;  %v16774_v44 = vld [vmem:[#allocation7] ss:$0 sm:$0xff] }
 0x297   : > { %v659_v19 = vpop.xlane.xlu1 %658  ;;  %v782_v49 = vpop.xlane.xlu0 %781 }
 0x298   : > { %14698 = vrsqrt.f32 %v874_v47  ;;  %v702_v11 = vmul.f32 0.0078125, %v659_v19  ;;  %v843_v51 = vmul.f32 0.0078125, %v782_v49  ;;  %v765_v53 = vmul.f32 %v16750_v48, %v16750_v48 }
 0x29a   : > { %v875_v54 = vadd.f32 1e-05, %v843_v51  ;;  %817 = vadd.xlane.f32.xlu0 %v765_v53  ;;  %v16755_v55 = vsub.f32 %v16622_v41, %v702_v11 }
 0x29b   : > { %v784_v56 = vpop.xlane.xlu1 %783  ;;  %v665_v57 = vpop.xlane.xlu0 %664 }
 0x29c   : > { %14700 = vrsqrt.f32 %v875_v54  ;;  %v844_v62 = vmul.f32 0.0078125, %v784_v56  ;;  %v705_v63 = vmul.f32 0.0078125, %v665_v57  ;;  %v766_v35 = vmul.f32 %v16755_v55, %v16755_v55 }
 0x29e   : > { %v14697_v0 = vpop.eup %14696  ;;  %v876_v3 = vadd.f32 1e-05, %v844_v62  ;;  %819 = vadd.xlane.f32.xlu1 %v766_v35  ;;  %v16760_v5 = vsub.f32 %v16631_v46, %v705_v63 }
 0x29f   : > { %v667_v6 = vpop.xlane.xlu1 %666  ;;  %v786_v20 = vpop.xlane.xlu0 %785  ;;  %v937_v23 = vmul.f32 %v14697_v0, %v16602_v26 }
 0x2a0   : > { %14702 = vrsqrt.f32 %v876_v3  ;;  %v706_v41 = vmul.f32 0.0078125, %v667_v6  ;;  %v845_v15 = vmul.f32 0.0078125, %v786_v20  ;;  %v769_v25 = vmul.f32 %v16760_v5, %v16760_v5 }
 0x2a1   : > { %v975_v26 = vmul.f32 %v16765_v16, %v937_v23 }
 0x2a2   : > { %v14699_v30 = vpop.eup %14698  ;;  %v877_v17 = vadd.f32 1e-05, %v845_v15  ;;  %825 = vadd.xlane.f32.xlu0 %v769_v25  ;;  %v16768_v18 = vsub.f32 %v16640_v52, %v706_v41 }
 0x2a3   : > { %v788_v46 = vpop.xlane.xlu1 %787  ;;  %v669_v37 = vpop.xlane.xlu0 %668  ;;  %v938_v9 = vmul.f32 %v14699_v30, %v16606_v32  ;;  %v1013_v51 = vadd.f32 %v16774_v44, %v975_v26 }
 0x2a4   : > { %14704 = vrsqrt.f32 %v877_v17  ;;  %v846_v38 = vmul.f32 0.0078125, %v788_v46  ;;  %v707_v39 = vmul.f32 0.0078125, %v669_v37  ;;  %v770_v10 = vmul.f32 %v16768_v18, %v16768_v18 }
 0x2a5   : > { %v976_v47 = vmul.f32 %v16765_v16, %v938_v9 }
 0x2a6   : > { %v14701_v19 = vpop.eup %14700  ;;  %v878_v49 = vadd.f32 1e-05, %v846_v38  ;;  %827 = vadd.xlane.f32.xlu1 %v770_v10  ;;  %v16778_v52 = vsub.f32 %v16649_v60, %v707_v39 }
 0x2a7   : > { %v671_v11 = vpop.xlane.xlu1 %670  ;;  %v790_v32 = vpop.xlane.xlu0 %789  ;;  %v1014_v53 = vadd.f32 %v16774_v44, %v976_v47  ;;  %v939_v54 = vmul.f32 %v14701_v19, %v16608_v34 }
 0x2a8   : > { %14706 = vrsqrt.f32 %v878_v49  ;;  %v708_v56 = vmul.f32 0.0078125, %v671_v11  ;;  %v847_v57 = vmul.f32 0.0078125, %v790_v32  ;;  %v771_v62 = vmul.f32 %v16778_v52, %v16778_v52 }
 0x2a9   : > { %v16785_v63 = vpack.c.bf16 %v1014_v53, %v1013_v51  ;;  %v977_v20 = vmul.f32 %v16765_v16, %v939_v54 }
 0x2aa   : > { %v14703_v35 = vpop.eup %14702  ;;  %v879_v0 = vadd.f32 1e-05, %v847_v57  ;;  %829 = vadd.xlane.f32.xlu0 %v771_v62  ;;  %v16788_v60 = vsub.f32 %v16658_v4, %v708_v56 }
 0x2ab   : > { %v792_v3 = vpop.xlane.xlu1 %791  ;;  %1254 = vmatmul.mubr.bf16.vlgmr.msra.gmra.mrb[0].mxu0 %v16785_v63  ;;  %v673_v6 = vpop.xlane.xlu0 %672  ;;  %v940_v34 = vmul.f32 %v14703_v35, %v16619_v40  ;;  %v1015_v37 = vadd.f32 %v16774_v44, %v977_v20 }
 0x2ac   : > { %14708 = vrsqrt.f32 %v879_v0  ;;  %v848_v23 = vmul.f32 0.0078125, %v792_v3  ;;  %v709_v41 = vmul.f32 0.0078125, %v673_v6  ;;  %v772_v15 = vmul.f32 %v16788_v60, %v16788_v60  ;;  %1263 = vmatprep.mubr.bf16.mxu0 %v21408_v13 }
 0x2ad   : > { %v978_v25 = vmul.f32 %v16765_v16, %v940_v34 }
 0x2ae   : > { %v14705_v4 = vpop.eup %14704  ;;  %v880_v30 = vadd.f32 1e-05, %v848_v23  ;;  %831 = vadd.xlane.f32.xlu1 %v772_v15  ;;  %v16798_v17 = vsub.f32 %v16667_v24, %v709_v41 }
 0x2af   : > { %v675_v46 = vpop.xlane.xlu1 %674  ;;  %v794_v40 = vpop.xlane.xlu0 %793  ;;  %v1016_v9 = vadd.f32 %v16774_v44, %v978_v25  ;;  %v941_v26 = vmul.f32 %v14705_v4, %v16628_v45 }
 0x2b0   : > { %14710 = vrsqrt.f32 %v880_v30  ;;  %v710_v38 = vmul.f32 0.0078125, %v675_v46  ;;  %v849_v39 = vmul.f32 0.0078125, %v794_v40  ;;  %v773_v10 = vmul.f32 %v16798_v17, %v16798_v17 }
 0x2b1   : > { %v16805_v47 = vpack.c.bf16 %v1016_v9, %v1015_v37  ;;  %v979_v51 = vmul.f32 %v16765_v16, %v941_v26 }
 0x2b2   : > { %v14707_v19 = vpop.eup %14706  ;;  %v881_v49 = vadd.f32 1e-05, %v849_v39  ;;  %833 = vadd.xlane.f32.xlu0 %v773_v10  ;;  %v16808_v24 = vsub.f32 %v16679_v36, %v710_v38 }
 0x2b3   : > { %v796_v11 = vpop.xlane.xlu1 %795  ;;  %1264 = vmatmul.mubr.bf16.gmra.mrb[4].mxu0 %v16805_v47  ;;  %v798_v32 = vpop.xlane.xlu0 %797  ;;  %v942_v45 = vmul.f32 %v14707_v19, %v16637_v50  ;;  %v1017_v50 = vadd.f32 %v16774_v44, %v979_v51 }
 0x2b4   : > { %14712 = vrsqrt.f32 %v881_v49  ;;  %v850_v53 = vmul.f32 0.0078125, %v796_v11  ;;  %v851_v54 = vmul.f32 0.0078125, %v798_v32  ;;  %v774_v56 = vmul.f32 %v16808_v24, %v16808_v24  ;;  %1271 = vmatprep.mubr.bf16.mxu0 %v21408_v13 }
 0x2b5   : > { %v980_v57 = vmul.f32 %v16765_v16, %v942_v45 }
 0x2b6   : > { %v14709_v36 = vpop.eup %14708  ;;  %v882_v62 = vadd.f32 1e-05, %v850_v53  ;;  %v883_v35 = vadd.f32 1e-05, %v851_v54  ;;  %835 = vadd.xlane.f32.xlu1 %v774_v56 }
 0x2b7   : > { %v800_v0 = vpop.xlane.xlu1 %799  ;;  %v802_v3 = vpop.xlane.xlu0 %801  ;;  %v1018_v6 = vadd.f32 %v16774_v44, %v980_v57  ;;  %v943_v34 = vmul.f32 %v14709_v36, %v16646_v58 }
 0x2b8   : > { %14714 = vrsqrt.f32 %v882_v62  ;;  %v852_v20 = vmul.f32 0.0078125, %v800_v0  ;;  %v853_v25 = vmul.f32 0.0078125, %v802_v3 }
 0x2b9   : > { %v16820_v23 = vpack.c.bf16 %v1018_v6, %v1017_v50  ;;  %14716 = vrsqrt.f32 %v883_v35  ;;  %v981_v40 = vmul.f32 %v16765_v16, %v943_v34 }
 0x2ba   : > { %v14711_v41 = vpop.eup %14710  ;;  %v884_v15 = vadd.f32 1e-05, %v852_v20  ;;  %v885_v38 = vadd.f32 1e-05, %v853_v25 }
 0x2bb   : > { %v804_v4 = vpop.xlane.xlu1 %803  ;;  %1272 = vmatmul.mubr.bf16.gmra.mrb[8].mxu0 %v16820_v23  ;;  %v661_v30 = vpop.xlane.xlu0 %660  ;;  %v944_v46 = vmul.f32 %v14711_v41, %v16655_v2  ;;  %v1019_v11 = vadd.f32 %v16774_v44, %v981_v40 }
 0x2bc   : > { %14718 = vrsqrt.f32 %v884_v15  ;;  %v854_v37 = vmul.f32 0.0078125, %v804_v4  ;;  %v703_v9 = vmul.f32 0.0078125, %v661_v30  ;;  %1281 = vmatprep.mubr.bf16.mxu0 %v21408_v13 }
 0x2bd   : > { %v982_v58 = vmul.f32 %v16765_v16, %v944_v46 }
 0x2be   : > { %v14713_v26 = vpop.eup %14712  ;;  %v886_v39 = vadd.f32 1e-05, %v854_v37  ;;  %v16828_v10 = vsub.f32 %v16705_v61, %v703_v9 }
 0x2bf   : > { %v663_v19 = vpop.xlane.xlu1 %662  ;;  %v806_v49 = vpop.xlane.xlu0 %805  ;;  %v1020_v2 = vadd.f32 %v16774_v44, %v982_v58  ;;  %v945_v32 = vmul.f32 %v14713_v26, %v16664_v7 }
 0x2c0   : > { %14720 = vrsqrt.f32 %v886_v39  ;;  %v704_v45 = vmul.f32 0.0078125, %v663_v19  ;;  %v767_v51 = vmul.f32 %v16828_v10, %v16828_v10  ;;  %v855_v56 = vmul.f32 0.0078125, %v806_v49 }
 0x2c1   : > { %v16835_v53 = vpack.c.bf16 %v1020_v2, %v1019_v11  ;;  %14722 = vrsqrt.f32 %v885_v38  ;;  %v983_v62 = vmul.f32 %v16765_v16, %v945_v32 }
 0x2c2   : > { %v14715_v54 = vpop.eup %14714  ;;  %821 = vadd.xlane.f32.xlu0 %v767_v51  ;;  %v16838_v61 = vsub.f32 %v16716_v14, %v704_v45  ;;  %v887_v34 = vadd.f32 1e-05, %v855_v56 }
 0x2c3   : > { %v808_v57 = vpop.xlane.xlu1 %807  ;;  %1282 = vmatmul.mubr.bf16.gmra.mrb[12].mxu0 %v16835_v53  ;;  %v677_v36 = vpop.xlane.xlu0 %676  ;;  %v946_v7 = vmul.f32 %v14715_v54, %v16670_v27  ;;  %v1021_v25 = vadd.f32 %v16774_v44, %v983_v62 }
 0x2c4   : > { %v14717_v35 = vpop.eup %14716  ;;  %v856_v0 = vmul.f32 0.0078125, %v808_v57  ;;  %v711_v3 = vmul.f32 0.0078125, %v677_v36  ;;  %v768_v50 = vmul.f32 %v16838_v61, %v16838_v61  ;;  %1289 = vmatprep.mubr.bf16.mxu0 %v21408_v13 }
 0x2c5   : > { %v984_v6 = vmul.f32 %v16765_v16, %v946_v7  ;;  %v947_v30 = vmul.f32 %v14717_v35, %v16676_v31 }
 0x2c6   : > { %v14719_v14 = vpop.eup %14718  ;;  %v888_v20 = vadd.f32 1e-05, %v856_v0  ;;  %823 = vadd.xlane.f32.xlu1 %v768_v50  ;;  %v16848_v41 = vsub.f32 %v16725_v22, %v711_v3 }
 0x2c7   : > { %v679_v27 = vpop.xlane.xlu1 %678  ;;  %v810_v15 = vpop.xlane.xlu0 %809  ;;  %v1022_v4 = vadd.f32 %v16774_v44, %v984_v6  ;;  %v948_v46 = vmul.f32 %v14719_v14, %v16687_v42  ;;  %v985_v31 = vmul.f32 %v16765_v16, %v947_v30 }
 0x2c8   : > { %14724 = vrsqrt.f32 %v888_v20  ;;  %v712_v40 = vmul.f32 0.0078125, %v679_v27  ;;  %v775_v37 = vmul.f32 %v16848_v41, %v16848_v41  ;;  %v857_v26 = vmul.f32 0.0078125, %v810_v15 }
 0x2c9   : > { %v16856_v9 = vpack.c.bf16 %v1022_v4, %v1021_v25  ;;  %v986_v22 = vmul.f32 %v16765_v16, %v948_v46  ;;  %14726 = vrsqrt.f32 %v887_v34  ;;  %v1023_v54 = vadd.f32 %v16774_v44, %v985_v31  ;;  %v16886_v4 = vld [vmem:[#allocation8 + $0x8] ss:$12 sps:$4 sm:$0xff]  }
 0x2ca   : > { %v14721_v58 = vpop.eup %14720  ;;  %837 = vadd.xlane.f32.xlu0 %v775_v37  ;;  %v16860_v38 = vsub.f32 %v16737_v29, %v712_v40  ;;  %v889_v32 = vadd.f32 1e-05, %v857_v26  ;;  %13283 = vmatprep.subr.bf16.mxu1 %v16886_v4 }
 0x2cb   : > { %v812_v39 = vpop.xlane.xlu1 %811  ;;  %1290 = vmatmul.mubr.bf16.gmra.mrb[16].mxu0 %v16856_v9  ;;  %v14723_v42 = vpop.eup %14722  ;;  %v1024_v11 = vadd.f32 %v16774_v44, %v986_v22  ;;  %v950_v2 = vmul.f32 %v14721_v58, %v16697_v12 }
 0x2cc   : > { %v858_v19 = vmul.f32 0.0078125, %v812_v39  ;;  %v776_v49 = vmul.f32 %v16860_v38, %v16860_v38  ;;  %1299 = vmatprep.mubr.bf16.mxu0 %v21408_v13  ;;  %v814_v29 = vpop.xlane.xlu0 %813  ;;  %v949_v56 = vmul.f32 %v14723_v42, %v16690_v43 }
 0x2cd   : > { %v16871_v36 = vpack.c.bf16 %v1024_v11, %v1023_v54  ;;  %v988_v7 = vmul.f32 %v16765_v16, %v950_v2  ;;  %v859_v35 = vmul.f32 0.0078125, %v814_v29 }
 0x2ce   : > { %v890_v45 = vadd.f32 1e-05, %v858_v19  ;;  %839 = vadd.xlane.f32.xlu1 %v776_v49  ;;  %v987_v12 = vmul.f32 %v16765_v16, %v949_v56 }
 0x2cf   : > { %v816_v51 = vpop.xlane.xlu1 %815  ;;  %v1026_v50 = vadd.f32 %v16774_v44, %v988_v7  ;;  %v891_v6 = vadd.f32 1e-05, %v859_v35 }
 0x2d0   : > { %14728 = vrsqrt.f32 %v890_v45  ;;  %v860_v57 = vmul.f32 0.0078125, %v816_v51  ;;  %v1025_v14 = vadd.f32 %v16774_v44, %v987_v12 }
 0x2d1   : > { %14730 = vrsqrt.f32 %v889_v32 }
 0x2d2   : > { %v14725_v62 = vpop.eup %14724  ;;  %v892_v3 = vadd.f32 1e-05, %v860_v57  ;;  %v16881_v20 = vpack.c.bf16 %v1026_v50, %v1025_v14 }
 0x2d3   : > { %1300 = vmatmul.mubr.bf16.gmra.mrb[20].mxu0 %v16871_v36  ;;  %v14727_v0 = vpop.eup %14726  ;;  %v952_v43 = vmul.f32 %v14725_v62, %v16713_v1 }
 0x2d4   : > { %1307 = vmatprep.mubr.bf16.mxu0 %v21408_v13  ;;  %v951_v34 = vmul.f32 %v14727_v0, %v16702_v59  ;;  %14732 = vrsqrt.f32 %v892_v3 }
 0x2d5   : > { %v990_v27 = vmul.f32 %v16765_v16, %v952_v43  ;;  %14734 = vrsqrt.f32 %v891_v6 }
 0x2d6   : > { %v989_v25 = vmul.f32 %v16765_v16, %v951_v34 }
 0x2d7   : > { %v1028_v1 = vadd.f32 %v16774_v44, %v990_v27 }
 0x2d8   : > { %v1027_v46 = vadd.f32 %v16774_v44, %v989_v25 }
 0x2da   : > { %v14729_v15 = vpop.eup %14728  ;;  %v16894_v37 = vpack.c.bf16 %v1028_v1, %v1027_v46 }
 0x2db   : > { %1308 = vmatmul.mubr.bf16.gmra.mrb[24].mxu0 %v16881_v20  ;;  %v14731_v30 = vpop.eup %14730  ;;  %v954_v59 = vmul.f32 %v14729_v15, %v16731_v28 }
 0x2dc   : > { %1317 = vmatprep.mubr.bf16.mxu0 %v21408_v13  ;;  %v953_v40 = vmul.f32 %v14731_v30, %v16722_v21 }
 0x2dd   : > { %v992_v22 = vmul.f32 %v16765_v16, %v954_v59 }
 0x2de   : > { %v14733_v58 = vpop.eup %14732  ;;  %v991_v26 = vmul.f32 %v16765_v16, %v953_v40 }
 0x2df   : > { %v14735_v39 = vpop.eup %14734  ;;  %v1030_v28 = vadd.f32 %v16774_v44, %v992_v22  ;;  %v956_v31 = vmul.f32 %v14733_v58, %v16745_v33 }
 0x2e0   : > { %v1029_v42 = vadd.f32 %v16774_v44, %v991_v26  ;;  %v955_v21 = vmul.f32 %v14735_v39, %v16734_v8  ;;  %v21410_v8 = vmov 0.0  }
 0x2e1   : > { %v994_v49 = vmul.f32 %v16765_v16, %v956_v31  ;;  %13379 = vmatprep.subr.bf16.mxu0 %v21410_v8 }
 0x2e2   : > { %v16904_v19 = vpack.c.bf16 %v1030_v28, %v1029_v42  ;;  %v993_v11 = vmul.f32 %v16765_v16, %v955_v21 }
 0x2e3   : > { %1318 = vmatmul.mubr.bf16.gmra.mrb[28].mxu0 %v16894_v37  ;;  %v1032_v2 = vadd.f32 %v16774_v44, %v994_v49 }
 0x2e4   : > { %1325 = vmatprep.mubr.bf16.mxu0 %v21408_v13  ;;  %v1031_v32 = vadd.f32 %v16774_v44, %v993_v11 }
 0x2e6   : > { %v16912_v45 = vpack.c.bf16 %v1032_v2, %v1031_v32 }
 0x2eb   : > { %1326 = vmatmul.mubr.bf16.gmra.mrb[32].mxu0 %v16904_v19 }
 0x2ec   : > { %1335 = vmatprep.mubr.bf16.mxu0 %v21408_v13 }
 0x2f3   : > { %1336 = vmatmul.mubr.bf16.gmra.mrb[36].mxu0 %v16912_v45 }
 0x2f4   : > { %1343 = vmatprep.mubr.bf16.mxu0 %v21408_v13 }
 0x327   : > { %v818_v33 = vpop.xlane.xlu0 %817 }
 0x328   : > { %v861_v29 = vmul.f32 0.0078125, %v818_v33 }
 0x32a   : > { %v893_v51 = vadd.f32 1e-05, %v861_v29 }
 0x32b   : > { %v820_v54 = vpop.xlane.xlu1 %819 }
 0x32c   : > { %14736 = vrsqrt.f32 %v893_v51  ;;  %v862_v56 = vmul.f32 0.0078125, %v820_v54 }
 0x32e   : > { %v894_v57 = vadd.f32 1e-05, %v862_v56 }
 0x32f   : > { %v826_v7 = vpop.xlane.xlu0 %825 }
 0x330   : > { %14738 = vrsqrt.f32 %v894_v57  ;;  %v865_v62 = vmul.f32 0.0078125, %v826_v7 }
 0x332   : > { %v897_v35 = vadd.f32 1e-05, %v865_v62 }
 0x333   : > { %v828_v12 = vpop.xlane.xlu1 %827 }
 0x334   : > { %14740 = vrsqrt.f32 %v897_v35  ;;  %v866_v0 = vmul.f32 0.0078125, %v828_v12  ;;  %v14602_v35 = vld [vmem:[#allocation8 + $0x38] ss:$12 sps:$4 sm:$0xff]  }
 0x336   : > { %v14737_v3 = vpop.eup %14736  ;;  %v898_v50 = vadd.f32 1e-05, %v866_v0 }
 0x337   : > { %v830_v43 = vpop.xlane.xlu0 %829  ;;  %v957_v6 = vmul.f32 %v14737_v3, %v16750_v48 }
 0x338   : > { %14742 = vrsqrt.f32 %v898_v50  ;;  %v867_v14 = vmul.f32 0.0078125, %v830_v43 }
 0x339   : > { %v995_v30 = vmul.f32 %v16765_v16, %v957_v6  ;;  %v14603_v6 = vld [vmem:[#allocation8 + $0x50] ss:$12 sps:$4 sm:$0xff]  }
 0x33a   : > { %v14739_v34 = vpop.eup %14738  ;;  %v899_v27 = vadd.f32 1e-05, %v867_v14 }
 0x33b   : > { %v832_v15 = vpop.xlane.xlu1 %831  ;;  %v958_v25 = vmul.f32 %v14739_v34, %v16755_v55  ;;  %v1033_v58 = vadd.f32 %v16774_v44, %v995_v30  ;;  %v14604_v30 = vld [vmem:[#allocation8 + $0x68] ss:$12 sps:$4 sm:$0xff]  }
 0x33c   : > { %14744 = vrsqrt.f32 %v899_v27  ;;  %v868_v1 = vmul.f32 0.0078125, %v832_v15 }
 0x33d   : > { %v996_v59 = vmul.f32 %v16765_v16, %v958_v25 }
 0x33e   : > { %v14741_v46 = vpop.eup %14740  ;;  %v900_v40 = vadd.f32 1e-05, %v868_v1 }
 0x33f   : > { %v834_v22 = vpop.xlane.xlu0 %833  ;;  %v1034_v48 = vadd.f32 %v16774_v44, %v996_v59  ;;  %v961_v26 = vmul.f32 %v14741_v46, %v16760_v5 }
 0x340   : > { %14746 = vrsqrt.f32 %v900_v40  ;;  %v869_v39 = vmul.f32 0.0078125, %v834_v22 }
 0x341   : > { %v16924_v28 = vpack.c.bf16 %v1034_v48, %v1033_v58  ;;  %v999_v49 = vmul.f32 %v16765_v16, %v961_v26  ;;  %v14605_v58 = vld [vmem:[#allocation8 + $0x80] ss:$12 sps:$4 sm:$0xff]  }
 0x342   : > { %v14743_v55 = vpop.eup %14742  ;;  %v901_v31 = vadd.f32 1e-05, %v869_v39 }
 0x343   : > { %v836_v42 = vpop.xlane.xlu1 %835  ;;  %1344 = vmatmul.mubr.bf16.gmra.mrb[40].mxu0 %v16924_v28  ;;  %v962_v21 = vmul.f32 %v14743_v55, %v16768_v18  ;;  %v1037_v33 = vadd.f32 %v16774_v44, %v999_v49  ;;  %v14601_v18 = vld [vmem:[#allocation8 + $0x20] ss:$12 sps:$4 sm:$0xff]   ;;  %v14606_v55 = vld [vmem:[#allocation8 + $0x98] ss:$12 sps:$4 sm:$0xff]   ;;  %v14607_v49 = vld [vmem:[#allocation8 + $0xb0] ss:$12 sps:$4 sm:$0xff]  }
 0x344   : > { %14748 = vrsqrt.f32 %v901_v31  ;;  %v870_v11 = vmul.f32 0.0078125, %v836_v42  ;;  %1353 = vmatprep.mubr.bf16.mxu0 %v21408_v13 }
 0x345   : > { %v1000_v2 = vmul.f32 %v16765_v16, %v962_v21 }
 0x346   : > { %v14745_v5 = vpop.eup %14744  ;;  %v902_v32 = vadd.f32 1e-05, %v870_v11 }
 0x347   : > { %v1038_v29 = vadd.f32 %v16774_v44, %v1000_v2  ;;  %v963_v51 = vmul.f32 %v14745_v5, %v16778_v52 }
 0x348   : > { %14750 = vrsqrt.f32 %v902_v32 }
 0x349   : > { %v16934_v54 = vpack.c.bf16 %v1038_v29, %v1037_v33  ;;  %v1001_v7 = vmul.f32 %v16765_v16, %v963_v51 }
 0x34a   : > { %v14747_v56 = vpop.eup %14746 }
 0x34b   : > { %1362 = vmatmul.mubr.bf16.vlgmr.msra.gmra.mrb[0].mxu1 %v16934_v54  ;;  %v964_v57 = vmul.f32 %v14747_v56, %v16788_v60  ;;  %v1039_v0 = vadd.f32 %v16774_v44, %v1001_v7 }
 0x34c   : > { %1371 = vmatprep.mubr.bf16.mxu1 %v21408_v13  ;;  %13284 = vmatpush3.bf16.msra.mxu1 %v16886_v4 }
 0x34d   : > { %v1002_v62 = vmul.f32 %v16765_v16, %v964_v57  ;;  %13285 = vmatprep.subr.bf16.mxu1 %v14601_v18 }
 0x34e   : > { %v14749_v52 = vpop.eup %14748 }
 0x34f   : > { %v822_v12 = vpop.xlane.xlu0 %821  ;;  %v1040_v3 = vadd.f32 %v16774_v44, %v1002_v62  ;;  %v965_v50 = vmul.f32 %v14749_v52, %v16798_v17 }
 0x350   : > { %v863_v43 = vmul.f32 0.0078125, %v822_v12  ;;  %13286 = vmatpush3.bf16.msra.mxu1 %v14601_v18 }
 0x351   : > { %v16945_v60 = vpack.c.bf16 %v1040_v3, %v1039_v0  ;;  %13287 = vmatprep.subr.bf16.mxu1 %v14602_v35  ;;  %v1003_v15 = vmul.f32 %v16765_v16, %v965_v50 }
 0x352   : > { %v14751_v14 = vpop.eup %14750  ;;  %v895_v4 = vadd.f32 1e-05, %v863_v43 }
 0x353   : > { %v824_v34 = vpop.xlane.xlu1 %823  ;;  %1372 = vmatmul.mubr.bf16.gmra.mrb[4].mxu1 %v16945_v60  ;;  %v966_v27 = vmul.f32 %v14751_v14, %v16808_v24  ;;  %v1041_v46 = vadd.f32 %v16774_v44, %v1003_v15 }
 0x354   : > { %14752 = vrsqrt.f32 %v895_v4  ;;  %v864_v25 = vmul.f32 0.0078125, %v824_v34  ;;  %1379 = vmatprep.mubr.bf16.mxu1 %v21408_v13  ;;  %13288 = vmatpush3.bf16.msra.mxu1 %v14602_v35 }
 0x355   : > { %v1004_v17 = vmul.f32 %v16765_v16, %v966_v27  ;;  %13289 = vmatprep.subr.bf16.mxu1 %v14603_v6 }
 0x356   : > { %v896_v1 = vadd.f32 1e-05, %v864_v25 }
 0x357   : > { %v838_v59 = vpop.xlane.xlu0 %837  ;;  %v1042_v40 = vadd.f32 %v16774_v44, %v1004_v17 }
 0x358   : > { %14754 = vrsqrt.f32 %v896_v1  ;;  %v871_v22 = vmul.f32 0.0078125, %v838_v59  ;;  %13290 = vmatpush3.bf16.msra.mxu1 %v14603_v6 }
 0x359   : > { %v16954_v24 = vpack.c.bf16 %v1042_v40, %v1041_v46  ;;  %13291 = vmatprep.subr.bf16.mxu1 %v14604_v30 }
 0x35a   : > { %v903_v48 = vadd.f32 1e-05, %v871_v22 }
 0x35b   : > { %v840_v26 = vpop.xlane.xlu1 %839  ;;  %1380 = vmatmul.mubr.bf16.gmra.mrb[8].mxu1 %v16954_v24 }
 0x35c   : > { %14756 = vrsqrt.f32 %v903_v48  ;;  %v872_v39 = vmul.f32 0.0078125, %v840_v26  ;;  %13292 = vmatpush3.bf16.msra.mxu1 %v14604_v30  ;;  %1389 = vmatprep.mubr.bf16.mxu1 %v21408_v13 }
 0x35d   : > { %13293 = vmatprep.subr.bf16.mxu1 %v14605_v58 }
 0x35e   : > { %v14753_v31 = vpop.eup %14752  ;;  %v904_v42 = vadd.f32 1e-05, %v872_v39 }
 0x35f   : > { %v959_v21 = vmul.f32 %v14753_v31, %v16828_v10 }
 0x360   : > { %14758 = vrsqrt.f32 %v904_v42  ;;  %13294 = vmatpush3.bf16.msra.mxu1 %v14605_v58 }
 0x361   : > { %13295 = vmatprep.subr.bf16.mxu1 %v14606_v55  ;;  %v997_v5 = vmul.f32 %v16765_v16, %v959_v21 }
 0x362   : > { %v14755_v11 = vpop.eup %14754 }
 0x363   : > { %v960_v2 = vmul.f32 %v14755_v11, %v16838_v61  ;;  %v1035_v29 = vadd.f32 %v16774_v44, %v997_v5 }
 0x364   : > { %13296 = vmatpush3.bf16.msra.mxu1 %v14606_v55 }
 0x365   : > { %v998_v32 = vmul.f32 %v16765_v16, %v960_v2  ;;  %13297 = vmatprep.subr.bf16.mxu1 %v14607_v49 }
 0x366   : > { %v14757_v33 = vpop.eup %14756 }
 0x367   : > { %v1036_v51 = vadd.f32 %v16774_v44, %v998_v32  ;;  %v967_v10 = vmul.f32 %v14757_v33, %v16848_v41 }
 0x368   : > { %13298 = vmatpush3.bf16.msra.mxu1 %v14607_v49 }
 0x369   : > { %v1056_v18 = vpack.c.bf16 %v1036_v51, %v1035_v29  ;;  %13331 = vmatprep.subr.bf16.mxu1 %v21410_v8  ;;  %v1005_v57 = vmul.f32 %v16765_v16, %v967_v10 }
 0x36a   : > { %v14759_v56 = vpop.eup %14758 }
 0x36b   : > { %1354 = vmatmul.mubr.bf16.gmra.mrb[44].mxu0 %v1056_v18  ;;  %v968_v61 = vmul.f32 %v14759_v56, %v16860_v38  ;;  %v1043_v62 = vadd.f32 %v16774_v44, %v1005_v57 }
 0x36c   : > { %13381 = vmatprep.mubr.msk.bf16.mxu0 %vm16076_vm0, %v21410_v8 }
 0x36d   : > { %v1006_v7 = vmul.f32 %v16765_v16, %v968_v61 }
 0x36f   : > { %v1044_v41 = vadd.f32 %v16774_v44, %v1006_v7 }
 0x371   : > { %v16973_v35 = vpack.c.bf16 %v1044_v41, %v1043_v62 }
 0x373   : > { %1390 = vmatmul.mubr.bf16.gmra.mrb[12].mxu1 %v16973_v35 }
 0x374   : > { %13299 = vmatprep.mubr.bf16.mxu1 %v16785_v63 }
 0x37b   : > { %13300 = vmatmul.mubr.bf16.vlgmr.msra.gmra.mrb[16].mxu1 %v16805_v47 }
 0x37c   : > { %13303 = vmatprep.mubr.bf16.mxu1 %v16820_v23 }
 0x37e   : > { %v1255_v38 = vpop.f32.mrb[0].mxu0 }
 0x37f   : > { %v1257_v52 = vpop.f32.mrb[1].mxu0 }
 0x380   : > { %v1259_v12 = vpop.f32.mrb[2].mxu0 }
 0x381   : > { %v16979_v0 = vpack.c.bf16 %v1259_v12, %v1255_v38  ;;  %v1261_v16 = vpop.f32.mrb[3].mxu0 }
 0x382   : > { %v16981_v3 = vpack.c.bf16 %v1261_v16, %v1257_v52 }
 0x383   : > { %21607 = vst [vmem:[#allocation32_spill] sm:$0xff] %v16979_v0  ;;  %13304 = vmatmul.mubr.bf16.gmra.mrb[20].mxu1 %v16835_v53 }
 0x384   : > { %21608 = vst [vmem:[#allocation33_spill] sm:$0xff] %v16981_v3  ;;  %13307 = vmatprep.mubr.bf16.mxu1 %v16856_v9  ;;  %v1580_v44 = vsel %vm1575_vm1, %v16981_v3, 0 }
 0x385   : > { %13332 = vmatpush3.bf16.xpose.msra.mxu1 %v1580_v44 }
 0x386   : > { %v1265_v63 = vpop.f32.mrb[4].mxu0  ;;  %13337 = vmatprep.subr.bf16.mxu1 %v21410_v8 }
 0x387   : > { %v1266_v47 = vpop.f32.mrb[5].mxu0 }
 0x388   : > { %v1268_v23 = vpop.f32.mrb[6].mxu0 }
 0x389   : > { %v1269_v50 = vpop.f32.mrb[7].mxu0 }
 0x38a   : > { %v16988_v43 = vpack.c.bf16 %v1269_v50, %v1266_v47 }
 0x38b   : > { %13308 = vmatmul.mubr.bf16.gmra.mrb[24].mxu1 %v16871_v36 }
 0x38c   : > { %21609 = vst [vmem:[#allocation34_spill] sm:$0xff] %v16988_v43  ;;  %13311 = vmatprep.mubr.bf16.mxu1 %v16881_v20  ;;  %v1961_v53 = vsel %vm1575_vm1, %v16988_v43, 0 }
 0x38d   : > { %13380 = vmatpush3.bf16.xpose.msra.mxu0 %v1961_v53 }
 0x38e   : > { %v1273_v9 = vpop.f32.mrb[8].mxu0  ;;  %13391 = vmatprep.subr.bf16.mxu0 %v21410_v8 }
 0x38f   : > { %v1275_v6 = vpop.f32.mrb[9].mxu0 }
 0x390   : > { %v1277_v14 = vpop.f32.mrb[10].mxu0 }
 0x391   : > { %v16995_v4 = vpack.c.bf16 %v1277_v14, %v1273_v9  ;;  %v1279_v34 = vpop.f32.mrb[11].mxu0 }
 0x392   : > { %v16997_v27 = vpack.c.bf16 %v1279_v34, %v1275_v6 }
 0x393   : > { %13312 = vmatmul.mubr.bf16.gmra.mrb[28].mxu1 %v16894_v37 }
 0x394   : > { %13315 = vmatprep.mubr.bf16.mxu1 %v16904_v19  ;;  %13382 = vmatmul.mubr.msk.bf16.vlgmr.msra.gmra.mrb[48].mxu0 %vm1575_vm1, %v16979_v0  ;;  %v1627_v2 = vsel %vm1575_vm1, %v16997_v27, 0 }
 0x395   : > { %13393 = vmatprep.mubr.msk.bf16.mxu0 %vm16076_vm0, %v21410_v8 }
 0x396   : > { %v1283_v36 = vpop.f32.mrb[12].mxu0 }
 0x397   : > { %v1284_v20 = vpop.f32.mrb[13].mxu0 }
 0x398   : > { %v1286_v15 = vpop.f32.mrb[14].mxu0 }
 0x399   : > { %v1287_v25 = vpop.f32.mrb[15].mxu0 }
 0x39a   : > { %v17005_v17 = vpack.c.bf16 %v1287_v25, %v1284_v20 }
 0x39b   : > { %13316 = vmatmul.mubr.bf16.gmra.mrb[32].mxu1 %v16912_v45 }
 0x39c   : > { %21610 = vst [vmem:[#allocation35_spill] sm:$0xff] %v17005_v17  ;;  %13319 = vmatprep.mubr.bf16.mxu1 %v16924_v28 }
 0x39e   : > { %v1291_v30 = vpop.f32.mrb[16].mxu0 }
 0x39f   : > { %v1293_v37 = vpop.f32.mrb[17].mxu0 }
 0x3a0   : > { %v1295_v1 = vpop.f32.mrb[18].mxu0 }
 0x3a1   : > { %v17009_v19 = vpack.c.bf16 %v1295_v1, %v1291_v30  ;;  %v1297_v59 = vpop.f32.mrb[19].mxu0 }
 0x3a2   : > { %v17011_v46 = vpack.c.bf16 %v1297_v59, %v1293_v37 }
 0x3a3   : > { %13320 = vmatmul.mubr.bf16.gmra.mrb[36].mxu1 %v1056_v18 }
 0x3a4   : > { %21611 = vst [vmem:[#allocation36_spill] sm:$0xff] %v17011_v46  ;;  %13323 = vmatprep.mubr.bf16.mxu1 %v16934_v54  ;;  %v1674_v18 = vsel %vm1575_vm1, %v17011_v46, 0 }
 0x3a6   : > { %v1301_v40 = vpop.f32.mrb[20].mxu0 }
 0x3a7   : > { %v1302_v22 = vpop.f32.mrb[21].mxu0 }
 0x3a8   : > { %v1304_v58 = vpop.f32.mrb[22].mxu0 }
 0x3a9   : > { %v1305_v48 = vpop.f32.mrb[23].mxu0 }
 0x3aa   : > { %v17014_v26 = vpack.c.bf16 %v1305_v48, %v1302_v22 }
 0x3ab   : > { %13324 = vmatmul.mubr.bf16.gmra.mrb[40].mxu1 %v16945_v60 }
 0x3ac   : > { %21612 = vst [vmem:[#allocation37_spill] sm:$0xff] %v17014_v26  ;;  %13327 = vmatprep.mubr.bf16.mxu1 %v16954_v24  ;;  %v2049_v45 = vsel %vm1575_vm1, %v17014_v26, 0 }
 0x3ad   : > { %13392 = vmatpush3.bf16.xpose.msra.mxu0 %v2049_v45 }
 0x3ae   : > { %v1309_v28 = vpop.f32.mrb[24].mxu0  ;;  %13403 = vmatprep.subr.bf16.mxu0 %v21410_v8 }
 0x3af   : > { %v1311_v39 = vpop.f32.mrb[25].mxu0 }
 0x3b0   : > { %v1313_v55 = vpop.f32.mrb[26].mxu0 }
 0x3b1   : > { %v17021_v54 = vpack.c.bf16 %v1313_v55, %v1309_v28  ;;  %v1315_v31 = vpop.f32.mrb[27].mxu0 }
 0x3b2   : > { %v17023_v42 = vpack.c.bf16 %v1315_v31, %v1311_v39  ;;  %v2005_v39 = vsel %vm1575_vm1, %v17005_v17, 0 }
 0x3b3   : > { %13328 = vmatmul.mubr.bf16.gmra.mrb[44].mxu1 %v16973_v35 }
 0x3b4   : > { %21613 = vst [vmem:[#allocation38_spill] sm:$0xff] %v17023_v42  ;;  %13394 = vmatmul.mubr.msk.bf16.vlgmr.msra.gmra.mrb[52].mxu0 %vm1575_vm1, %v17009_v19  ;;  %13333 = vmatprep.mubr.msk.bf16.mxu1 %vm16076_vm0, %v21410_v8  ;;  %v1721_v41 = vsel %vm1575_vm1, %v17023_v42, 0 }
 0x3b5   : > { %13405 = vmatprep.mubr.msk.bf16.mxu0 %vm16076_vm0, %v21410_v8 }
 0x3b6   : > { %v1319_v60 = vpop.f32.mrb[28].mxu0 }
 0x3b7   : > { %v1320_v24 = vpop.f32.mrb[29].mxu0 }
 0x3b8   : > { %v1322_v21 = vpop.f32.mrb[30].mxu0 }
 0x3b9   : > { %v1323_v49 = vpop.f32.mrb[31].mxu0 }
 0x3ba   : > { %v17032_v11 = vpack.c.bf16 %v1323_v49, %v1320_v24 }
 0x3bb   : > { %13334 = vmatmul.mubr.msk.bf16.vlgmr.msra.gmra.mrb[48].mxu1 %vm1575_vm1, %v16979_v0 }
 0x3bc   : > { %21614 = vst [vmem:[#allocation39_spill] sm:$0xff] %v17032_v11  ;;  %13338 = vmatpush3.bf16.xpose.msra.mxu1 %v1627_v2  ;;  %13339 = vmatprep.mubr.msk.bf16.mxu1 %vm16076_vm0, %v21410_v8  ;;  %v2093_v49 = vsel %vm1575_vm1, %v17032_v11, 0 }
 0x3bd   : > { %13343 = vmatprep.subr.bf16.mxu1 %v21410_v8 }
 0x3be   : > { %v1327_v5 = vpop.f32.mrb[32].mxu0 }
 0x3bf   : > { %v1329_v32 = vpop.f32.mrb[33].mxu0 }
 0x3c0   : > { %v1331_v33 = vpop.f32.mrb[34].mxu0 }
 0x3c1   : > { %v17041_v29 = vpack.c.bf16 %v1331_v33, %v1327_v5  ;;  %v1333_v51 = vpop.f32.mrb[35].mxu0 }
 0x3c2   : > { %v17043_v10 = vpack.c.bf16 %v1333_v51, %v1329_v32 }
 0x3c3   : > { %13340 = vmatmul.mubr.msk.bf16.vlgmr.msra.gmra.mrb[52].mxu1 %vm1575_vm1, %v16995_v4 }
 0x3c4   : > { %13344 = vmatpush3.bf16.xpose.msra.mxu1 %v1674_v18  ;;  %13345 = vmatprep.mubr.msk.bf16.mxu1 %vm16076_vm0, %v21410_v8  ;;  %v1768_v38 = vsel %vm1575_vm1, %v17043_v10, 0 }
 0x3c5   : > { %13349 = vmatprep.subr.bf16.mxu1 %v21410_v8 }
 0x3c6   : > { %v1337_v56 = vpop.f32.mrb[36].mxu0 }
 0x3c7   : > { %v1338_v61 = vpop.f32.mrb[37].mxu0 }
 0x3c8   : > { %v1340_v57 = vpop.f32.mrb[38].mxu0 }
 0x3c9   : > { %v1341_v7 = vpop.f32.mrb[39].mxu0 }
 0x3ca   : > { %v17052_v62 = vpack.c.bf16 %v1341_v7, %v1338_v61 }
 0x3cb   : > { %13346 = vmatmul.mubr.msk.bf16.vlgmr.msra.gmra.mrb[56].mxu1 %vm1575_vm1, %v17009_v19 }
 0x3cc   : > { %21615 = vst [vmem:[#allocation40_spill] sm:$0xff] %v17052_v62  ;;  %13350 = vmatpush3.bf16.xpose.msra.mxu1 %v1721_v41  ;;  %v2137_v35 = vsel %vm1575_vm1, %v17052_v62, 0  ;;  %13351 = vmatprep.mubr.msk.bf16.mxu1 %vm16076_vm0, %v21410_v8 }
 0x3cd   : > { %13404 = vmatpush3.bf16.xpose.msra.mxu0 %v2137_v35  ;;  %13355 = vmatprep.subr.bf16.mxu1 %v21410_v8 }
 0x3ce   : > { %13415 = vmatprep.subr.bf16.mxu0 %v21410_v8 }
 0x3d3   : > { %13352 = vmatmul.mubr.msk.bf16.vlgmr.msra.gmra.mrb[60].mxu1 %vm1575_vm1, %v17021_v54 }
 0x3d4   : > { %13356 = vmatpush3.bf16.xpose.msra.mxu1 %v1768_v38  ;;  %13406 = vmatmul.mubr.msk.bf16.vlgmr.msra.gmra.mrb[56].mxu0 %vm1575_vm1, %v17041_v29 }
 0x3d5   : > { %13357 = vmatprep.mubr.msk.bf16.mxu1 %vm16076_vm0, %v21410_v8  ;;  %13361 = vmatprep.subr.bf16.mxu1 %v21410_v8 }
 0x3d6   : > { %13417 = vmatprep.mubr.msk.bf16.mxu0 %vm16076_vm0, %v21410_v8 }
 0x3db   : > { %13358 = vmatmul.mubr.msk.bf16.vlgmr.msra.gmra.mrb[64].mxu1 %vm1575_vm1, %v17041_v29 }
 0x3dc   : > { %13363 = vmatprep.mubr.msk.bf16.mxu1 %vm16076_vm0, %v21410_v8 }
 0x416   : > { %v1345_v52 = vpop.f32.mrb[40].mxu0 }
 0x417   : > { %v1347_v12 = vpop.f32.mrb[41].mxu0 }
 0x418   : > { %v1349_v16 = vpop.f32.mrb[42].mxu0 }
 0x419   : > { %v17079_v44 = vpack.c.bf16 %v1349_v16, %v1345_v52  ;;  %v1351_v63 = vpop.f32.mrb[43].mxu0 }
 0x41a   : > { %v17081_v47 = vpack.c.bf16 %v1351_v63, %v1347_v12 }
 0x41c   : > { %21616 = vst [vmem:[#allocation41_spill] sm:$0xff] %v17081_v47  ;;  %v1815_v23 = vsel %vm1575_vm1, %v17081_v47, 0 }
 0x41d   : > { %13362 = vmatpush3.bf16.xpose.msra.mxu1 %v1815_v23 }
 0x41e   : > { %v1363_v50 = vpop.f32.mrb[0].mxu1  ;;  %13367 = vmatprep.subr.bf16.mxu1 %v21410_v8 }
 0x41f   : > { %v1365_v53 = vpop.f32.mrb[1].mxu1 }
 0x420   : > { %v1367_v9 = vpop.f32.mrb[2].mxu1 }
 0x421   : > { %v17086_v6 = vpack.c.bf16 %v1367_v9, %v1363_v50  ;;  %v1369_v14 = vpop.f32.mrb[3].mxu1 }
 0x422   : > { %v17088_v34 = vpack.c.bf16 %v1369_v14, %v1365_v53 }
 0x424   : > { %21617 = vst [vmem:[#allocation42_spill] sm:$0xff] %v17088_v34  ;;  %13364 = vmatmul.mubr.msk.bf16.vlgmr.msra.gmra.mrb[68].mxu1 %vm1575_vm1, %v17079_v44  ;;  %v1862_v36 = vsel %vm1575_vm1, %v17088_v34, 0 }
 0x425   : > { %13368 = vmatpush3.bf16.xpose.msra.mxu1 %v1862_v36  ;;  %13369 = vmatprep.mubr.msk.bf16.mxu1 %vm16076_vm0, %v21410_v8 }
 0x426   : > { %v1373_v20 = vpop.f32.mrb[4].mxu1  ;;  %13373 = vmatprep.subr.bf16.mxu1 %v21410_v8 }
 0x427   : > { %v1374_v15 = vpop.f32.mrb[5].mxu1 }
 0x428   : > { %v1376_v25 = vpop.f32.mrb[6].mxu1 }
 0x429   : > { %v1377_v30 = vpop.f32.mrb[7].mxu1 }
 0x42a   : > { %v17097_v37 = vpack.c.bf16 %v1377_v30, %v1374_v15 }
 0x42c   : > { %21618 = vst [vmem:[#allocation43_spill] sm:$0xff] %v17097_v37  ;;  %13370 = vmatmul.mubr.msk.bf16.vlgmr.msra.gmra.mrb[72].mxu1 %vm1575_vm1, %v17086_v6  ;;  %v2225_v1 = vsel %vm1575_vm1, %v17097_v37, 0 }
 0x42d   : > { %13416 = vmatpush3.bf16.xpose.msra.mxu0 %v2225_v1  ;;  %13375 = vmatprep.mubr.msk.bf16.mxu1 %vm16076_vm0, %v21410_v8 }
 0x42e   : > { %v1381_v59 = vpop.f32.mrb[8].mxu1  ;;  %13427 = vmatprep.subr.bf16.mxu0 %v21410_v8 }
 0x42f   : > { %v1383_v40 = vpop.f32.mrb[9].mxu1 }
 0x430   : > { %v1385_v22 = vpop.f32.mrb[10].mxu1 }
 0x431   : > { %v17106_v58 = vpack.c.bf16 %v1385_v22, %v1381_v59  ;;  %v1387_v48 = vpop.f32.mrb[11].mxu1 }
 0x432   : > { %v17108_v45 = vpack.c.bf16 %v1387_v48, %v1383_v40 }
 0x433   : > { %21619 = vst [vmem:[#allocation44_spill] sm:$0xff] %v17106_v58 }
 0x434   : > { %21620 = vst [vmem:[#allocation45_spill] sm:$0xff] %v17108_v45  ;;  %13418 = vmatmul.mubr.msk.bf16.vlgmr.msra.gmra.mrb[60].mxu0 %vm1575_vm1, %v17086_v6  ;;  %v1909_v28 = vsel %vm1575_vm1, %v17108_v45, 0 }
 0x435   : > { %13374 = vmatpush3.bf16.xpose.msra.mxu1 %v1909_v28  ;;  %13429 = vmatprep.mubr.msk.bf16.mxu0 %vm16076_vm0, %v21410_v8 }
 0x436   : > { %13385 = vmatprep.subr.bf16.mxu1 %v21410_v8 }
 0x43c   : > { %13376 = vmatmul.mubr.msk.bf16.vlgmr.msra.gmra.mrb[76].mxu1 %vm1575_vm1, %v17106_v58 }
 0x43d   : > { %13386 = vmatpush3.bf16.xpose.msra.mxu1 %v2005_v39  ;;  %13387 = vmatprep.mubr.msk.bf16.mxu1 %vm16076_vm0, %v21410_v8 }
 0x43e   : > { %v1355_v55 = vpop.f32.mrb[44].mxu0  ;;  %13397 = vmatprep.subr.bf16.mxu1 %v21410_v8 }
 0x43f   : > { %v1356_v31 = vpop.f32.mrb[45].mxu0 }
 0x440   : > { %v1358_v60 = vpop.f32.mrb[46].mxu0 }
 0x441   : > { %v1359_v24 = vpop.f32.mrb[47].mxu0 }
 0x442   : > { %v17124_v21 = vpack.c.bf16 %v1359_v24, %v1356_v31 }
 0x444   : > { %21621 = vst [vmem:[#allocation46_spill] sm:$0xff] %v17124_v21  ;;  %13388 = vmatmul.mubr.msk.bf16.vlgmr.msra.gmra.mrb[80].mxu1 %vm1575_vm1, %v16995_v4  ;;  %v2181_v18 = vsel %vm1575_vm1, %v17124_v21, 0 }
 0x445   : > { %13398 = vmatpush3.bf16.xpose.msra.mxu1 %v2093_v49  ;;  %13399 = vmatprep.mubr.msk.bf16.mxu1 %vm16076_vm0, %v21410_v8 }
 0x446   : > { %v1391_v2 = vpop.f32.mrb[12].mxu1  ;;  %13409 = vmatprep.subr.bf16.mxu1 %v21410_v8 }
 0x447   : > { %v1392_v5 = vpop.f32.mrb[13].mxu1 }
 0x448   : > { %v1394_v32 = vpop.f32.mrb[14].mxu1 }
 0x449   : > { %v1395_v33 = vpop.f32.mrb[15].mxu1 }
 0x44a   : > { %v17133_v51 = vpack.c.bf16 %v1395_v33, %v1392_v5 }
 0x44c   : > { %21622 = vst [vmem:[#allocation47_spill] sm:$0xff] %v17133_v51  ;;  %13400 = vmatmul.mubr.msk.bf16.vlgmr.msra.gmra.mrb[84].mxu1 %vm1575_vm1, %v17021_v54  ;;  %v2269_v38 = vsel %vm1575_vm1, %v17133_v51, 0 }
 0x44d   : > { %13410 = vmatpush3.bf16.xpose.msra.mxu1 %v2181_v18  ;;  %13411 = vmatprep.mubr.msk.bf16.mxu1 %vm16076_vm0, %v21410_v8 }
 0x44e   : > { %v13301_v56 = vpop.f32.mrb[16].mxu1  ;;  %13421 = vmatprep.subr.bf16.mxu1 %v21410_v8 }
 0x44f   : > { %v1432_v61 = vpop.f32.mrb[17].mxu1 }
 0x450   : > { %v13302_v57 = vpop.f32.mrb[18].mxu1 }
 0x451   : > { %v17142_v7 = vpack.c.bf16 %v13302_v57, %v13301_v56  ;;  %v1435_v41 = vpop.f32.mrb[19].mxu1 }
 0x452   : > { %v17144_v35 = vpack.c.bf16 %v1435_v41, %v1432_v61 }
 0x453   : > { %21623 = vst [vmem:[#allocation48_spill] sm:$0xff] %v17142_v7 }
 0x454   : > { %21624 = vst [vmem:[#allocation49_spill] sm:$0xff] %v17144_v35  ;;  %13412 = vmatmul.mubr.msk.bf16.vlgmr.msra.gmra.mrb[88].mxu1 %vm1575_vm1, %v17079_v44  ;;  %13428 = vmatpush3.bf16.msra.mxu0 %v17144_v35 }
 0x455   : > { %13422 = vmatpush3.bf16.xpose.msra.mxu1 %v2269_v38  ;;  %13423 = vmatprep.mubr.msk.bf16.mxu1 %vm16076_vm0, %v21410_v8 }
 0x456   : > { %v13305_v52 = vpop.f32.mrb[20].mxu1  ;;  %13433 = vmatprep.subr.bf16.mxu1 %v21410_v8  ;;  %13439 = vmatprep.subr.bf16.mxu0 %v21410_v8 }
 0x457   : > { %v1448_v12 = vpop.f32.mrb[21].mxu1 }
 0x458   : > { %v13306_v16 = vpop.f32.mrb[22].mxu1 }
 0x459   : > { %v17155_v63 = vpack.c.bf16 %v13306_v16, %v13305_v52  ;;  %v1451_v23 = vpop.f32.mrb[23].mxu1 }
 0x45a   : > { %v17157_v50 = vpack.c.bf16 %v1451_v23, %v1448_v12 }
 0x45b   : > { %21625 = vst [vmem:[#allocation50_spill] sm:$0xff] %v17155_v63 }
 0x45c   : > { %21626 = vst [vmem:[#allocation51_spill] sm:$0xff] %v17157_v50  ;;  %13424 = vmatmul.mubr.msk.bf16.vlgmr.msra.gmra.mrb[92].mxu1 %vm1575_vm1, %v17106_v58 }
 0x45d   : > { %13434 = vmatpush3.bf16.msra.mxu1 %v17157_v50  ;;  %13435 = vmatprep.mubr.msk.bf16.mxu1 %vm16076_vm0, %v21410_v8 }
 0x45e   : > { %v13309_v53 = vpop.f32.mrb[24].mxu1  ;;  %13445 = vmatprep.subr.bf16.mxu1 %v21410_v8 }
 0x45f   : > { %v1464_v9 = vpop.f32.mrb[25].mxu1 }
 0x460   : > { %v13310_v14 = vpop.f32.mrb[26].mxu1 }
 0x461   : > { %v17165_v36 = vpack.c.bf16 %v13310_v14, %v13309_v53  ;;  %v1467_v20 = vpop.f32.mrb[27].mxu1 }
 0x462   : > { %v17167_v15 = vpack.c.bf16 %v1467_v20, %v1464_v9 }
 0x463   : > { %21627 = vst [vmem:[#allocation52_spill] sm:$0xff] %v17165_v36 }
 0x464   : > { %21628 = vst [vmem:[#allocation53_spill] sm:$0xff] %v17167_v15 }
 0x466   : > { %v13313_v25 = vpop.f32.mrb[28].mxu1 }
 0x467   : > { %v1480_v30 = vpop.f32.mrb[29].mxu1  ;;  %v17169_v1 = vpop.f32.mrb[48].mxu0 }
 0x468   : > { %v13314_v59 = vpop.f32.mrb[30].mxu1  ;;  %v13383_v40 = vpop.f32.mrb[49].mxu0 }
 0x469   : > { %v17171_v22 = vpack.c.bf16 %v13314_v59, %v13313_v25  ;;  %v1483_v48 = vpop.f32.mrb[31].mxu1  ;;  %v17173_v28 = vpop.f32.mrb[50].mxu0 }
 0x46a   : > { %v17175_v39 = vpack.c.bf16 %v1483_v48, %v1480_v30  ;;  %v13384_v55 = vpop.f32.mrb[51].mxu0 }
 0x46b   : > { %21629 = vst [vmem:[#allocation54_spill] sm:$0xff] %v17171_v22 }
 0x46c   : > { %21630 = vst [vmem:[#allocation55_spill] sm:$0xff] %v17175_v39 }
 0x46e   : > { %v13317_v31 = vpop.f32.mrb[32].mxu1 }
 0x46f   : > { %v1496_v60 = vpop.f32.mrb[33].mxu1 }
 0x470   : > { %v13318_v24 = vpop.f32.mrb[34].mxu1 }
 0x471   : > { %v17177_v49 = vpack.c.bf16 %v13318_v24, %v13317_v31  ;;  %v1499_v2 = vpop.f32.mrb[35].mxu1 }
 0x472   : > { %v17179_v5 = vpack.c.bf16 %v1499_v2, %v1496_v60 }
 0x473   : > { %21631 = vst [vmem:[#allocation56_spill] sm:$0xff] %v17177_v49 }
 0x474   : > { %21632 = vst [vmem:[#allocation57_spill] sm:$0xff] %v17179_v5 }
 0x476   : > { %v13321_v32 = vpop.f32.mrb[36].mxu1 }
 0x477   : > { %v1512_v33 = vpop.f32.mrb[37].mxu1 }
 0x478   : > { %v13322_v18 = vpop.f32.mrb[38].mxu1 }
 0x479   : > { %v17181_v56 = vpack.c.bf16 %v13322_v18, %v13321_v32  ;;  %v1515_v61 = vpop.f32.mrb[39].mxu1  ;;  %v2857_v18 = vsel %vm2312_vm2, %v17169_v1, -inf }
 0x47a   : > { %v17183_v57 = vpack.c.bf16 %v1515_v61, %v1512_v33  ;;  %v2860_v61 = vsel %vm2312_vm2, %v17173_v28, -inf }
 0x47b   : > { %21633 = vst [vmem:[#allocation58_spill] sm:$0xff] %v17181_v56 }
 0x47c   : > { %21634 = vst [vmem:[#allocation59_spill] sm:$0xff] %v17183_v57 }
 0x47e   : > { %v13325_v41 = vpop.f32.mrb[40].mxu1 }
 0x47f   : > { %v1528_v38 = vpop.f32.mrb[41].mxu1 }
 0x480   : > { %v13326_v52 = vpop.f32.mrb[42].mxu1 }
 0x481   : > { %v17185_v12 = vpack.c.bf16 %v13326_v52, %v13325_v41  ;;  %v1531_v16 = vpop.f32.mrb[43].mxu1 }
 0x482   : > { %v17187_v23 = vpack.c.bf16 %v1531_v16, %v1528_v38 }
 0x483   : > { %21635 = vst [vmem:[#allocation60_spill] sm:$0xff] %v17185_v12 }
 0x484   : > { %21636 = vst [vmem:[#allocation61_spill] sm:$0xff] %v17187_v23 }
 0x486   : > { %v13329_v53 = vpop.f32.mrb[44].mxu1 }
 0x487   : > { %v1544_v9 = vpop.f32.mrb[45].mxu1  ;;  %v17189_v14 = vpop.f32.mrb[52].mxu0 }
 0x488   : > { %v13330_v20 = vpop.f32.mrb[46].mxu1  ;;  %v13395_v25 = vpop.f32.mrb[53].mxu0 }
 0x489   : > { %v17191_v30 = vpack.c.bf16 %v13330_v20, %v13329_v53  ;;  %v1547_v59 = vpop.f32.mrb[47].mxu1  ;;  %v17193_v40 = vpop.f32.mrb[54].mxu0 }
 0x48a   : > { %v17195_v48 = vpack.c.bf16 %v1547_v59, %v1544_v9  ;;  %v13396_v55 = vpop.f32.mrb[55].mxu0 }
 0x48b   : > { %21637 = vst [vmem:[#allocation62_spill] sm:$0xff] %v17191_v30 }
 0x48c   : > { %21638 = vst [vmem:[#allocation63_spill] sm:$0xff] %v17195_v48 }
 0x48e   : > { %v17197_v31 = vpop.f32.mrb[48].mxu1 }
 0x48f   : > { %v13335_v60 = vpop.f32.mrb[49].mxu1  ;;  %v2313_v24 = vsel %vm2312_vm2, %v17197_v31, -inf }
 0x490   : > { %2314 = vmax.xlane.f32.xlu0 %v2313_v24  ;;  %v17201_v2 = vpop.f32.mrb[50].mxu1 }
 0x491   : > { %v13336_v32 = vpop.f32.mrb[51].mxu1  ;;  %v2316_v33 = vsel %vm2312_vm2, %v17201_v2, -inf }
 0x492   : > { %2317 = vmax.xlane.f32.xlu1 %v2316_v33  ;;  %v2869_v32 = vsel %vm2312_vm2, %v17189_v14, -inf  ;;  %v2872_v33 = vsel %vm2312_vm2, %v17193_v40, -inf }
 0x494   : > { %2858 = vmax.xlane.f32.xlu0 %v2857_v18 }
 0x496   : > { %2861 = vmax.xlane.f32.xlu1 %v2860_v61  ;;  %v17209_v41 = vpop.f32.mrb[52].mxu1 }
 0x497   : > { %v13341_v38 = vpop.f32.mrb[53].mxu1  ;;  %v2319_v52 = vsel %vm2312_vm2, %v17209_v41, -inf }
 0x498   : > { %2320 = vmax.xlane.f32.xlu0 %v2319_v52  ;;  %v17213_v16 = vpop.f32.mrb[54].mxu1 }
 0x499   : > { %v13342_v53 = vpop.f32.mrb[55].mxu1  ;;  %v2322_v9 = vsel %vm2312_vm2, %v17213_v16, -inf }
 0x49a   : > { %2323 = vmax.xlane.f32.xlu1 %v2322_v9 }
 0x49e   : > { %v17217_v20 = vpop.f32.mrb[56].mxu1 }
 0x49f   : > { %v13347_v25 = vpop.f32.mrb[57].mxu1  ;;  %v2325_v59 = vsel %vm2312_vm2, %v17217_v20, -inf }
 0x4a0   : > { %2326 = vmax.xlane.f32.xlu0 %v2325_v59  ;;  %v17221_v55 = vpop.f32.mrb[58].mxu1 }
 0x4a1   : > { %v13348_v60 = vpop.f32.mrb[59].mxu1  ;;  %v2328_v24 = vsel %vm2312_vm2, %v17221_v55, -inf }
 0x4a2   : > { %2329 = vmax.xlane.f32.xlu1 %v2328_v24 }
 0x4a4   : > { %2870 = vmax.xlane.f32.xlu0 %v2869_v32 }
 0x4a6   : > { %2873 = vmax.xlane.f32.xlu1 %v2872_v33  ;;  %v17229_v18 = vpop.f32.mrb[60].mxu1 }
 0x4a7   : > { %v13353_v61 = vpop.f32.mrb[61].mxu1  ;;  %v17231_v38 = vpop.f32.mrb[56].mxu0  ;;  %v2331_v52 = vsel %vm2312_vm2, %v17229_v18, -inf }
 0x4a8   : > { %v13407_v53 = vpop.f32.mrb[57].mxu0  ;;  %2332 = vmax.xlane.f32.xlu0 %v2331_v52  ;;  %v17235_v9 = vpop.f32.mrb[62].mxu1 }
 0x4a9   : > { %v13354_v25 = vpop.f32.mrb[63].mxu1  ;;  %v17237_v59 = vpop.f32.mrb[58].mxu0  ;;  %v2334_v60 = vsel %vm2312_vm2, %v17235_v9, -inf }
 0x4aa   : > { %v13408_v24 = vpop.f32.mrb[59].mxu0  ;;  %2335 = vmax.xlane.f32.xlu1 %v2334_v60  ;;  %v2881_v25 = vsel %vm2312_vm2, %v17231_v38, -inf  ;;  %v2884_v60 = vsel %vm2312_vm2, %v17237_v59, -inf }
 0x4ae   : > { %v17241_v32 = vpop.f32.mrb[64].mxu1 }
 0x4af   : > { %v13359_v33 = vpop.f32.mrb[65].mxu1  ;;  %v2337_v61 = vsel %vm2312_vm2, %v17241_v32, -inf }
 0x4b0   : > { %2338 = vmax.xlane.f32.xlu0 %v2337_v61  ;;  %v17245_v13 = vpop.f32.mrb[66].mxu1 }
 0x4b1   : > { %v13360_v52 = vpop.f32.mrb[67].mxu1  ;;  %v2340_v53 = vsel %vm2312_vm2, %v17245_v13, -inf }
 0x4b2   : > { %2341 = vmax.xlane.f32.xlu1 %v2340_v53 }
 0x4b4   : > { %2882 = vmax.xlane.f32.xlu0 %v2881_v25 }
 0x4b6   : > { %2885 = vmax.xlane.f32.xlu1 %v2884_v60 }
 0x4f7   : > { %v17253_v24 = vpop.f32.mrb[68].mxu1 }
 0x4f8   : > { %v13365_v33 = vpop.f32.mrb[69].mxu1  ;;  %v2343_v61 = vsel %vm2312_vm2, %v17253_v24, -inf }
 0x4f9   : > { %2344 = vmax.xlane.f32.xlu0 %v2343_v61  ;;  %v17257_v52 = vpop.f32.mrb[70].mxu1 }
 0x4fa   : > { %v13366_v8 = vpop.f32.mrb[71].mxu1  ;;  %v2346_v53 = vsel %vm2312_vm2, %v17257_v52, -inf }
 0x4fb   : > { %2347 = vmax.xlane.f32.xlu1 %v2346_v53 }
 0x4ff   : > { %v17261_v51 = vpop.f32.mrb[72].mxu1 }
 0x500   : > { %v13371_v25 = vpop.f32.mrb[73].mxu1  ;;  %v2349_v60 = vsel %vm2312_vm2, %v17261_v51, -inf }
 0x501   : > { %2350 = vmax.xlane.f32.xlu0 %v2349_v60  ;;  %v17265_v12 = vpop.f32.mrb[74].mxu1 }
 0x502   : > { %v13372_v33 = vpop.f32.mrb[75].mxu1  ;;  %v2352_v60 = vsel %vm2312_vm2, %v17265_v12, -inf }
 0x507   : > { %v17267_v37 = vpop.f32.mrb[60].mxu0 }
 0x508   : > { %v13419_v61 = vpop.f32.mrb[61].mxu0  ;;  %v2893_v8 = vsel %vm2312_vm2, %v17267_v37, -inf }
 0x509   : > { %v17271_v56 = vpop.f32.mrb[62].mxu0  ;;  %2894 = vmax.xlane.f32.xlu0 %v2893_v8 }
 0x50a   : > { %v13420_v53 = vpop.f32.mrb[63].mxu0  ;;  %v2896_v25 = vsel %vm2312_vm2, %v17271_v56, -inf }
 0x50b   : > { %2897 = vmax.xlane.f32.xlu1 %v2896_v25 }
 0x50f   : > { %2353 = vmax.xlane.f32.xlu1 %v2352_v60  ;;  %v17277_v62 = vpop.f32.mrb[76].mxu1 }
 0x510   : > { %v13377_v33 = vpop.f32.mrb[77].mxu1  ;;  %v2355_v61 = vsel %vm2312_vm2, %v17277_v62, -inf }
 0x511   : > { %2356 = vmax.xlane.f32.xlu0 %v2355_v61  ;;  %v17281_v58 = vpop.f32.mrb[78].mxu1 }
 0x512   : > { %v13378_v22 = vpop.f32.mrb[79].mxu1  ;;  %v2358_v8 = vsel %vm2312_vm2, %v17281_v58, -inf }
 0x513   : > { %2359 = vmax.xlane.f32.xlu1 %v2358_v8 }
 0x517   : > { %v17285_v53 = vpop.f32.mrb[80].mxu1 }
 0x518   : > { %v13389_v25 = vpop.f32.mrb[81].mxu1  ;;  %v2863_v60 = vsel %vm2312_vm2, %v17285_v53, -inf }
 0x519   : > { %2864 = vmax.xlane.f32.xlu0 %v2863_v60  ;;  %v17289_v30 = vpop.f32.mrb[82].mxu1 }
 0x51a   : > { %v13390_v33 = vpop.f32.mrb[83].mxu1  ;;  %v2866_v61 = vsel %vm2312_vm2, %v17289_v30, -inf }
 0x51b   : > { %2867 = vmax.xlane.f32.xlu1 %v2866_v61 }
 0x51d   : > { %v2315_v45 = vpop.xlane.xlu0 %2314 }
 0x51e   : > { %v2361_v22 = vsub.f32 %v17197_v31, %v2315_v45 }
 0x51f   : > { %v2318_v36 = vpop.xlane.xlu1 %2317  ;;  %v17294_v43 = vpop.f32.mrb[84].mxu1 }
 0x520   : > { %v13401_v8 = vpop.f32.mrb[85].mxu1  ;;  %v2875_v25 = vsel %vm2312_vm2, %v17294_v43, -inf  ;;  %v2362_v63 = vsub.f32 %v17201_v2, %v2318_v36  ;;  %v2377_v47 = vmul.f32 1.442695, %v2361_v22 }
 0x521   : > { %v2859_v60 = vpop.xlane.xlu0 %2858  ;;  %2876 = vmax.xlane.f32.xlu0 %v2875_v25  ;;  %v17299_v49 = vpop.f32.mrb[86].mxu1 }
 0x522   : > { %v13402_v33 = vpop.f32.mrb[87].mxu1  ;;  %v2878_v61 = vsel %vm2312_vm2, %v17299_v49, -inf  ;;  %v2905_v45 = vsub.f32 %v17169_v1, %v2859_v60  ;;  %v2379_v7 = vmul.f32 1.442695, %v2362_v63  ;;  %14760 = vpow2.f32 %v2377_v47 }
 0x523   : > { %v2862_v31 = vpop.xlane.xlu1 %2861  ;;  %2879 = vmax.xlane.f32.xlu1 %v2878_v61 }
 0x524   : > { %v2906_v8 = vsub.f32 %v17173_v28, %v2862_v31  ;;  %v2921_v42 = vmul.f32 1.442695, %v2905_v45  ;;  %14762 = vpow2.f32 %v2379_v7 }
 0x525   : > { %v2321_v34 = vpop.xlane.xlu0 %2320 }
 0x526   : > { %v2363_v36 = vsub.f32 %v17209_v41, %v2321_v34  ;;  %v2923_v22 = vmul.f32 1.442695, %v2906_v8  ;;  %14764 = vpow2.f32 %v2921_v42 }
 0x527   : > { %v2324_v2 = vpop.xlane.xlu1 %2323  ;;  %v17306_v25 = vpop.f32.mrb[88].mxu1 }
 0x528   : > { %v13413_v33 = vpop.f32.mrb[89].mxu1  ;;  %v2887_v50 = vsel %vm2312_vm2, %v17306_v25, -inf  ;;  %v2364_v1 = vsub.f32 %v17213_v16, %v2324_v2  ;;  %v2381_v34 = vmul.f32 1.442695, %v2363_v36  ;;  %14766 = vpow2.f32 %v2923_v22 }
 0x529   : > { %2888 = vmax.xlane.f32.xlu0 %v2887_v50  ;;  %v17311_v63 = vpop.f32.mrb[90].mxu1 }
 0x52a   : > { %v13414_v28 = vpop.f32.mrb[91].mxu1  ;;  %v2890_v47 = vsel %vm2312_vm2, %v17311_v63, -inf  ;;  %v2383_v41 = vmul.f32 1.442695, %v2364_v1  ;;  %14768 = vpow2.f32 %v2381_v34 }
 0x52b   : > { %2891 = vmax.xlane.f32.xlu1 %v2890_v47 }
 0x52c   : > { %v17321_v2 = vpop.eup %14760  ;;  %14770 = vpow2.f32 %v2383_v41 }
 0x52d   : > { %v2327_v60 = vpop.xlane.xlu0 %2326  ;;  %v2409_v41 = vsel %vm2312_vm2, %v17321_v2, 0.0 }
 0x52e   : > { %v2365_v61 = vsub.f32 %v17217_v20, %v2327_v60  ;;  %v17328_v28 = vpop.eup %14762 }
 0x52f   : > { %v2330_v7 = vpop.xlane.xlu1 %2329  ;;  %v17316_v45 = vpop.f32.mrb[92].mxu1 }
 0x530   : > { %v2385_v16 = vmul.f32 1.442695, %v2365_v61  ;;  %v2366_v50 = vsub.f32 %v17221_v55, %v2330_v7  ;;  %v13425_v31 = vpop.f32.mrb[93].mxu1  ;;  %v2899_v8 = vsel %vm2312_vm2, %v17316_v45, -inf  ;;  %v17333_v60 = vpop.eup %14764 }
 0x531   : > { %v2871_v42 = vpop.xlane.xlu0 %2870  ;;  %2900 = vmax.xlane.f32.xlu0 %v2899_v8  ;;  %v17323_v36 = vpop.f32.mrb[94].mxu1 }
 0x532   : > { %v2387_v33 = vmul.f32 1.442695, %v2366_v50  ;;  %v2909_v20 = vsub.f32 %v17189_v14, %v2871_v42  ;;  %v13426_v22 = vpop.f32.mrb[95].mxu1  ;;  %v2902_v1 = vsel %vm2312_vm2, %v17323_v36, -inf  ;;  %14772 = vpow2.f32 %v2385_v16  ;;  %v17338_v16 = vpop.eup %14766 }
 0x533   : > { %v2874_v55 = vpop.xlane.xlu1 %2873  ;;  %2903 = vmax.xlane.f32.xlu1 %v2902_v1  ;;  %v2412_v50 = vsel %vm2312_vm2, %v17328_v28, 0.0  ;;  %v2953_v42 = vsel %vm2312_vm2, %v17333_v60, 0.0 }
 0x534   : > { %v2929_v47 = vmul.f32 1.442695, %v2909_v20  ;;  %v2910_v34 = vsub.f32 %v17193_v40, %v2874_v55  ;;  %14774 = vpow2.f32 %v2387_v33  ;;  %v17343_v33 = vpop.eup %14768 }
 0x535   : > { %v2333_v61 = vpop.xlane.xlu0 %2332  ;;  %2410 = vadd.xlane.f32.xlu0 %v2409_v41  ;;  %v2415_v1 = vsel %vm2312_vm2, %v17343_v33, 0.0 }
 0x536   : > { %v2931_v14 = vmul.f32 1.442695, %v2910_v34  ;;  %v2367_v7 = vsub.f32 %v17229_v18, %v2333_v61  ;;  %14776 = vpow2.f32 %v2929_v47  ;;  %v2956_v18 = vsel %vm2312_vm2, %v17338_v16, 0.0  ;;  %v17347_v22 = vpop.eup %14770 }
 0x537   : > { %v2336_v31 = vpop.xlane.xlu1 %2335  ;;  %2413 = vadd.xlane.f32.xlu1 %v2412_v50  ;;  %v2418_v34 = vsel %vm2312_vm2, %v17347_v22, 0.0 }
 0x538   : > { %v2389_v40 = vmul.f32 1.442695, %v2367_v7  ;;  %v2368_v8 = vsub.f32 %v17235_v9, %v2336_v31  ;;  %14778 = vpow2.f32 %v2931_v14 }
 0x539   : > { %2954 = vadd.xlane.f32.xlu0 %v2953_v42 }
 0x53a   : > { %v2391_v20 = vmul.f32 1.442695, %v2368_v8  ;;  %14780 = vpow2.f32 %v2389_v40 }
 0x53b   : > { %2957 = vadd.xlane.f32.xlu1 %v2956_v18 }
 0x53c   : > { %v17351_v55 = vpop.eup %14772  ;;  %14782 = vpow2.f32 %v2391_v20 }
 0x53d   : > { %v2339_v9 = vpop.xlane.xlu0 %2338  ;;  %2416 = vadd.xlane.f32.xlu0 %v2415_v1  ;;  %v2421_v50 = vsel %vm2312_vm2, %v17351_v55, 0.0 }
 0x53e   : > { %v2369_v47 = vsub.f32 %v17241_v32, %v2339_v9  ;;  %v17356_v41 = vpop.eup %14774 }
 0x53f   : > { %v2342_v61 = vpop.xlane.xlu1 %2341  ;;  %2419 = vadd.xlane.f32.xlu1 %v2418_v34  ;;  %v2424_v42 = vsel %vm2312_vm2, %v17356_v41, 0.0 }
 0x540   : > { %v2393_v14 = vmul.f32 1.442695, %v2369_v47  ;;  %v2370_v7 = vsub.f32 %v17245_v13, %v2342_v61  ;;  %v17361_v31 = vpop.eup %14776 }
 0x541   : > { %21639 = vst [vmem:[#allocation64_spill] sm:$0xff] %v17361_v31  ;;  %v2883_v40 = vpop.xlane.xlu0 %2882  ;;  %2422 = vadd.xlane.f32.xlu0 %v2421_v50  ;;  %v2965_v9 = vsel %vm2312_vm2, %v17361_v31, 0.0 }
 0x542   : > { %14784 = vpow2.f32 %v2393_v14  ;;  %v2395_v8 = vmul.f32 1.442695, %v2370_v7  ;;  %v2913_v32 = vsub.f32 %v17231_v38, %v2883_v40  ;;  %v17366_v20 = vpop.eup %14778 }
 0x543   : > { %v2886_v18 = vpop.xlane.xlu1 %2885  ;;  %2425 = vadd.xlane.f32.xlu1 %v2424_v42  ;;  %v2968_v38 = vsel %vm2312_vm2, %v17366_v20, 0.0 }
 0x544   : > { %14786 = vpow2.f32 %v2395_v8  ;;  %v2937_v13 = vmul.f32 1.442695, %v2913_v32  ;;  %v2914_v1 = vsub.f32 %v17237_v59, %v2886_v18  ;;  %v17371_v47 = vpop.eup %14780 }
 0x545   : > { %2966 = vadd.xlane.f32.xlu0 %v2965_v9  ;;  %v2427_v14 = vsel %vm2312_vm2, %v17371_v47, 0.0 }
 0x546   : > { %14788 = vpow2.f32 %v2937_v13  ;;  %v2939_v34 = vmul.f32 1.442695, %v2914_v1  ;;  %v17375_v61 = vpop.eup %14782 }
 0x547   : > { %2969 = vadd.xlane.f32.xlu1 %v2968_v38  ;;  %v2430_v59 = vsel %vm2312_vm2, %v17375_v61, 0.0 }
 0x548   : > { %14790 = vpow2.f32 %v2939_v34 }
 0x549   : > { %2428 = vadd.xlane.f32.xlu0 %v2427_v14 }
 0x54b   : > { %2431 = vadd.xlane.f32.xlu1 %v2430_v59 }
 0x54c   : > { %v17381_v7 = vpop.eup %14784 }
 0x54d   : > { %v2433_v50 = vsel %vm2312_vm2, %v17381_v7, 0.0 }
 0x54e   : > { %v17385_v40 = vpop.eup %14786  ;;  %2434 = vadd.xlane.f32.xlu0 %v2433_v50 }
 0x54f   : > { %v2436_v8 = vsel %vm2312_vm2, %v17385_v40, 0.0 }
 0x550   : > { %v17389_v32 = vpop.eup %14788  ;;  %2437 = vadd.xlane.f32.xlu1 %v2436_v8 }
 0x551   : > { %21640 = vst [vmem:[#allocation65_spill] sm:$0xff] %v17389_v32  ;;  %v2977_v42 = vsel %vm2312_vm2, %v17389_v32, 0.0 }
 0x552   : > { %v17393_v18 = vpop.eup %14790  ;;  %2978 = vadd.xlane.f32.xlu0 %v2977_v42 }
 0x553   : > { %21641 = vst [vmem:[#allocation66_spill] sm:$0xff] %v17393_v18  ;;  %v2980_v13 = vsel %vm2312_vm2, %v17393_v18, 0.0 }
 0x554   : > { %2981 = vadd.xlane.f32.xlu1 %v2980_v13 }
 0x586   : > { %v2345_v1 = vpop.xlane.xlu0 %2344 }
 0x587   : > { %v2371_v9 = vsub.f32 %v17253_v24, %v2345_v1 }
 0x588   : > { %v2348_v34 = vpop.xlane.xlu1 %2347 }
 0x589   : > { %v2397_v38 = vmul.f32 1.442695, %v2371_v9  ;;  %v2372_v14 = vsub.f32 %v17257_v52, %v2348_v34 }
 0x58b   : > { %14792 = vpow2.f32 %v2397_v38  ;;  %v2399_v59 = vmul.f32 1.442695, %v2372_v14 }
 0x58d   : > { %14794 = vpow2.f32 %v2399_v59 }
 0x58e   : > { %v2351_v50 = vpop.xlane.xlu0 %2350 }
 0x58f   : > { %v2373_v8 = vsub.f32 %v17261_v51, %v2351_v50 }
 0x591   : > { %v2401_v1 = vmul.f32 1.442695, %v2373_v8 }
 0x595   : > { %v17400_v32 = vpop.eup %14792 }
 0x596   : > { %v2895_v42 = vpop.xlane.xlu0 %2894  ;;  %v2439_v18 = vsel %vm2312_vm2, %v17400_v32, 0.0 }
 0x597   : > { %v17404_v13 = vpop.eup %14794  ;;  %v2917_v24 = vsub.f32 %v17267_v37, %v2895_v42  ;;  %2440 = vadd.xlane.f32.xlu0 %v2439_v18 }
 0x598   : > { %v2898_v9 = vpop.xlane.xlu1 %2897  ;;  %v2442_v52 = vsel %vm2312_vm2, %v17404_v13, 0.0 }
 0x599   : > { %v2945_v34 = vmul.f32 1.442695, %v2917_v24  ;;  %v2918_v38 = vsub.f32 %v17271_v56, %v2898_v9  ;;  %2443 = vadd.xlane.f32.xlu1 %v2442_v52 }
 0x59b   : > { %14796 = vpow2.f32 %v2945_v34  ;;  %v2947_v51 = vmul.f32 1.442695, %v2918_v38 }
 0x59c   : > { %14798 = vpow2.f32 %v2401_v1  ;;  %v2354_v14 = vpop.xlane.xlu1 %2353 }
 0x59d   : > { %14800 = vpow2.f32 %v2947_v51  ;;  %v2374_v59 = vsub.f32 %v17265_v12, %v2354_v14 }
 0x59e   : > { %v2357_v50 = vpop.xlane.xlu0 %2356 }
 0x59f   : > { %v2403_v31 = vmul.f32 1.442695, %v2374_v59  ;;  %v2375_v37 = vsub.f32 %v17277_v62, %v2357_v50 }
 0x5a0   : > { %v2360_v18 = vpop.xlane.xlu1 %2359 }
 0x5a1   : > { %14802 = vpow2.f32 %v2403_v31  ;;  %v2405_v8 = vmul.f32 1.442695, %v2375_v37  ;;  %v2376_v42 = vsub.f32 %v17281_v58, %v2360_v18 }
 0x5a3   : > { %14804 = vpow2.f32 %v2405_v8  ;;  %v2407_v24 = vmul.f32 1.442695, %v2376_v42 }
 0x5a5   : > { %v17413_v56 = vpop.eup %14796  ;;  %14806 = vpow2.f32 %v2407_v24 }
 0x5a6   : > { %21642 = vst [vmem:[#allocation67_spill] sm:$0xff] %v17413_v56  ;;  %v17415_v9 = vpop.eup %14798  ;;  %v2865_v1 = vpop.xlane.xlu0 %2864  ;;  %v2989_v12 = vsel %vm2312_vm2, %v17413_v56, 0.0 }
 0x5a7   : > { %v17419_v52 = vpop.eup %14800  ;;  %v2907_v62 = vsub.f32 %v17285_v53, %v2865_v1  ;;  %2990 = vadd.xlane.f32.xlu0 %v2989_v12  ;;  %v2445_v51 = vsel %vm2312_vm2, %v17415_v9, 0.0 }
 0x5a8   : > { %21643 = vst [vmem:[#allocation68_spill] sm:$0xff] %v17419_v52  ;;  %v2868_v31 = vpop.xlane.xlu1 %2867  ;;  %v2992_v58 = vsel %vm2312_vm2, %v17419_v52, 0.0 }
 0x5a9   : > { %v2925_v34 = vmul.f32 1.442695, %v2907_v62  ;;  %v2908_v38 = vsub.f32 %v17289_v30, %v2868_v31  ;;  %2993 = vadd.xlane.f32.xlu1 %v2992_v58 }
 0x5ab   : > { %v17427_v14 = vpop.eup %14802  ;;  %14808 = vpow2.f32 %v2925_v34  ;;  %v2927_v59 = vmul.f32 1.442695, %v2908_v38  ;;  %2446 = vadd.xlane.f32.xlu0 %v2445_v51 }
 0x5ac   : > { %v2448_v53 = vsel %vm2312_vm2, %v17427_v14, 0.0 }
 0x5ad   : > { %v17431_v50 = vpop.eup %14804  ;;  %14810 = vpow2.f32 %v2927_v59  ;;  %2449 = vadd.xlane.f32.xlu1 %v2448_v53 }
 0x5ae   : > { %v2877_v37 = vpop.xlane.xlu0 %2876  ;;  %v2451_v30 = vsel %vm2312_vm2, %v17431_v50, 0.0 }
 0x5af   : > { %v17435_v18 = vpop.eup %14806  ;;  %v2911_v8 = vsub.f32 %v17294_v43, %v2877_v37  ;;  %2452 = vadd.xlane.f32.xlu0 %v2451_v30 }
 0x5b0   : > { %v2880_v42 = vpop.xlane.xlu1 %2879  ;;  %v2454_v24 = vsel %vm2312_vm2, %v17435_v18, 0.0 }
 0x5b1   : > { %v2933_v1 = vmul.f32 1.442695, %v2911_v8  ;;  %v2912_v12 = vsub.f32 %v17299_v49, %v2880_v42  ;;  %2455 = vadd.xlane.f32.xlu1 %v2454_v24 }
 0x5b3   : > { %14812 = vpow2.f32 %v2933_v1  ;;  %v2935_v62 = vmul.f32 1.442695, %v2912_v12 }
 0x5b5   : > { %v17441_v31 = vpop.eup %14808  ;;  %14814 = vpow2.f32 %v2935_v62 }
 0x5b6   : > { %v2889_v58 = vpop.xlane.xlu0 %2888  ;;  %v2959_v34 = vsel %vm2312_vm2, %v17441_v31, 0.0 }
 0x5b7   : > { %v17445_v38 = vpop.eup %14810  ;;  %v2915_v43 = vsub.f32 %v17306_v25, %v2889_v58  ;;  %2960 = vadd.xlane.f32.xlu0 %v2959_v34 }
 0x5b8   : > { %v2962_v51 = vsel %vm2312_vm2, %v17445_v38, 0.0  ;;  %v17450_v49 = vpop.xlane.xlu1 %2891 }
 0x5b9   : > { %v2941_v59 = vmul.f32 1.442695, %v2915_v43  ;;  %2963 = vadd.xlane.f32.xlu1 %v2962_v51 }
 0x5bb   : > { %14816 = vpow2.f32 %v2941_v59 }
 0x5bd   : > { %v17452_v53 = vpop.eup %14812 }
 0x5be   : > { %v17454_v37 = vpop.xlane.xlu0 %2900  ;;  %v2971_v30 = vsel %vm2312_vm2, %v17452_v53, 0.0 }
 0x5bf   : > { %v17458_v8 = vpop.eup %14814  ;;  %2972 = vadd.xlane.f32.xlu0 %v2971_v30 }
 0x5c0   : > { %v17460_v25 = vpop.xlane.xlu1 %2903  ;;  %v2974_v42 = vsel %vm2312_vm2, %v17458_v8, 0.0 }
 0x5c1   : > { %2975 = vadd.xlane.f32.xlu1 %v2974_v42 }
 0x5c2   : > { %v2411_v24 = vpop.xlane.xlu0 %2410 }
 0x5c3   : > { %14818 = vrcp.f32 %v2411_v24 }
 0x5c4   : > { %v2414_v1 = vpop.xlane.xlu1 %2413 }
 0x5c5   : > { %v17464_v12 = vpop.eup %14816  ;;  %14820 = vrcp.f32 %v2414_v1 }
 0x5c6   : > { %21644 = vst [vmem:[#allocation69_spill] sm:$0xff] %v17464_v12  ;;  %v17466_v62 = vpop.xlane.xlu0 %2954  ;;  %v2983_v58 = vsel %vm2312_vm2, %v17464_v12, 0.0 }
 0x5c7   : > { %2984 = vadd.xlane.f32.xlu0 %v2983_v58 }
 0x5c8   : > { %v17470_v34 = vpop.xlane.xlu1 %2957 }
 0x5ca   : > { %v2417_v43 = vpop.xlane.xlu0 %2416 }
 0x5cb   : > { %14822 = vrcp.f32 %v2417_v43 }
 0x5cc   : > { %v2420_v51 = vpop.xlane.xlu1 %2419 }
 0x5cd   : > { %14824 = vrcp.f32 %v2420_v51  ;;  %v14819_v59 = vpop.eup %14818 }
 0x5ce   : > { %v2423_v30 = vpop.xlane.xlu0 %2422  ;;  %v2473_v56 = vmul.f32 %v14819_v59, %v17321_v2 }
 0x5cf   : > { %14826 = vrcp.f32 %v2423_v30  ;;  %v14821_v42 = vpop.eup %14820 }
 0x5d0   : > { %v2426_v24 = vpop.xlane.xlu1 %2425  ;;  %v2474_v1 = vmul.f32 %v14821_v42, %v17328_v28  ;;  %v21645_v28 = vmov 0.0  }
 0x5d1   : > { %14828 = vrcp.f32 %v2426_v24 }
 0x5d2   : > { %v17474_v52 = vpop.xlane.xlu0 %2966  ;;  %3402 = vrot.lane.b32.xlu1 %v16979_v0, %s16077_s28  ;;  %v2489_v58 = vpack.c.bf16 %v2474_v1, %v2473_v56 }
 0x5d4   : > { %v17478_v43 = vpop.xlane.xlu1 %2969  ;;  %13430 = vmatmul.mubr.msk.bf16.vlgmr.msra.gmra.mrb[64].mxu0 %vm2312_vm2, %v2489_v58 }
 0x5d5   : > { %v14823_v51 = vpop.eup %14822  ;;  %13440 = vmatpush3.bf16.msra.mxu0 %v17167_v15  ;;  %13441 = vmatprep.mubr.msk.bf16.mxu0 %vm16076_vm0, %v21645_v28 }
 0x5d6   : > { %v2429_v30 = vpop.xlane.xlu0 %2428  ;;  %3511 = vrot.lane.b32.xlu1 %v17011_v46, %s16077_s28  ;;  %13451 = vmatprep.subr.bf16.mxu0 %v21645_v28  ;;  %v2475_v56 = vmul.f32 %v14823_v51, %v17343_v33 }
 0x5d7   : > { %v14825_v2 = vpop.eup %14824  ;;  %14830 = vrcp.f32 %v2429_v30 }
 0x5d8   : > { %v2476_v59 = vmul.f32 %v14825_v2, %v17347_v22  ;;  %v2432_v42 = vpop.xlane.xlu1 %2431  ;;  %v2919_v2 = vsub.f32 %v17316_v45, %v17454_v37  ;;  %v2920_v37 = vsub.f32 %v17323_v36, %v17460_v25 }
 0x5d9   : > { %v14827_v24 = vpop.eup %14826  ;;  %14832 = vrcp.f32 %v2432_v42  ;;  %v2916_v42 = vsub.f32 %v17311_v63, %v17450_v49 }
 0x5da   : > { %3458 = vrot.lane.b32.xlu1 %v16997_v27, %s16077_s28  ;;  %v2490_v1 = vpack.c.bf16 %v2476_v59, %v2475_v56  ;;  %v2477_v30 = vmul.f32 %v14827_v24, %v17351_v55 }
 0x5db   : > { %v14829_v58 = vpop.eup %14828  ;;  %v2435_v46 = vpop.xlane.xlu0 %2434 }
 0x5dc   : > { %v2478_v12 = vmul.f32 %v14829_v58, %v17356_v41  ;;  %14834 = vrcp.f32 %v2435_v46  ;;  %13436 = vmatmul.mubr.msk.bf16.vlgmr.msra.gmra.mrb[96].mxu1 %vm2312_vm2, %v2490_v1  ;;  %v2951_v58 = vmul.f32 1.442695, %v2920_v37 }
 0x5dd   : > { %13446 = vmatpush3.bf16.msra.mxu1 %v17175_v39  ;;  %3405 = vrot.lane.b32.xlu0 %v16981_v3, %s16077_s28  ;;  %v2438_v33 = vpop.xlane.xlu1 %2437 }
 0x5de   : > { %14836 = vrcp.f32 %v2438_v33  ;;  %v2491_v22 = vpack.c.bf16 %v2478_v12, %v2477_v30  ;;  %13447 = vmatprep.mubr.msk.bf16.mxu1 %vm16076_vm0, %v21645_v28  ;;  %13457 = vmatprep.subr.bf16.mxu1 %v21645_v28 }
 0x5df   : > { %v17543_v30 = vpop.xlane.xlu0 %2978 }
 0x5e0   : > { %13442 = vmatmul.mubr.msk.bf16.vlgmr.msra.gmra.mrb[68].mxu0 %vm2312_vm2, %v2491_v22 }
 0x5e1   : > { %v14831_v55 = vpop.eup %14830  ;;  %13452 = vmatpush3.bf16.msra.mxu0 %v17179_v5  ;;  %13453 = vmatprep.mubr.msk.bf16.mxu0 %vm16076_vm0, %v21645_v28  ;;  %v17545_v33 = vpop.xlane.xlu1 %2981 }
 0x5e2   : > { %13463 = vmatprep.subr.bf16.mxu0 %v21645_v28  ;;  %v2479_v41 = vmul.f32 %v14831_v55, %v17371_v47  ;;  %v2949_v47 = vmul.f32 1.442695, %v2919_v2 }
 0x5e3   : > { %v14833_v46 = vpop.eup %14832 }
 0x5e4   : > { %v2480_v12 = vmul.f32 %v14833_v46, %v17375_v61  ;;  %v2943_v61 = vmul.f32 1.442695, %v2916_v42  ;;  %14838 = vpow2.f32 %v2949_v47 }
 0x5e6   : > { %v14835_v51 = vpop.eup %14834  ;;  %v2492_v56 = vpack.c.bf16 %v2480_v12, %v2479_v41  ;;  %14840 = vpow2.f32 %v2943_v61  ;;  %v21647_v61 = vld [vmem:[#allocation38_spill] sm:$0xff] }
 0x5e7   : > { %v2481_v24 = vmul.f32 %v14835_v51, %v17381_v7  ;;  %14842 = vpow2.f32 %v2951_v58 }
 0x5e8   : > { %v14837_v59 = vpop.eup %14836  ;;  %13448 = vmatmul.mubr.msk.bf16.vlgmr.msra.gmra.mrb[100].mxu1 %vm2312_vm2, %v2492_v56 }
 0x5e9   : > { %v2482_v1 = vmul.f32 %v14837_v59, %v17385_v40  ;;  %13458 = vmatpush3.bf16.msra.mxu1 %v17183_v57  ;;  %13459 = vmatprep.mubr.msk.bf16.mxu1 %vm16076_vm0, %v21645_v28 }
 0x5ea   : > { %13469 = vmatprep.subr.bf16.mxu1 %v21645_v28 }
 0x5eb   : > { %v2493_v45 = vpack.c.bf16 %v2482_v1, %v2481_v24  ;;  %v21646_v24 = vld [vmem:[#allocation51_spill] sm:$0xff] }
 0x5ed   : > { %13454 = vmatmul.mubr.msk.bf16.vlgmr.msra.gmra.mrb[72].mxu0 %vm2312_vm2, %v2493_v45 }
 0x5ee   : > { %13464 = vmatpush3.bf16.msra.mxu0 %v17187_v23  ;;  %13465 = vmatprep.mubr.msk.bf16.mxu0 %vm16076_vm0, %v21645_v28  ;;  %v17523_v63 = vpop.eup %14838 }
 0x5ef   : > { %13475 = vmatprep.subr.bf16.mxu0 %v21645_v28  ;;  %v2995_v40 = vsel %vm2312_vm2, %v17523_v63, 0.0 }
 0x5f0   : > { %v17525_v7 = vpop.eup %14840 }
 0x5f1   : > { %v2986_v49 = vsel %vm2312_vm2, %v17525_v7, 0.0  ;;  %v17553_v36 = vpop.eup %14842 }
 0x5f2   : > { %v2998_v51 = vsel %vm2312_vm2, %v17553_v36, 0.0 }
 0x5fc   : > { %2996 = vadd.xlane.f32.xlu0 %v2995_v40 }
 0x5fe   : > { %2987 = vadd.xlane.f32.xlu1 %v2986_v49 }
 0x60f   : > { %3617 = vrot.lane.b32.xlu1 %v17043_v10, %s16077_s28 }
 0x612   : > { %3508 = vrot.lane.b32.xlu0 %v17009_v19, %s16077_s28 }
 0x616   : > { %3455 = vrot.lane.b32.xlu0 %v16995_v4, %s16077_s28 }
 0x61a   : > { %3614 = vrot.lane.b32.xlu0 %v17041_v29, %s16077_s28 }
 0x61e   : > { %3561 = vrot.lane.b32.xlu0 %v17021_v54, %s16077_s28 }
 0x622   : > { %3720 = vrot.lane.b32.xlu0 %v17086_v6, %s16077_s28 }
 0x624   : > { %v2441_v22 = vpop.xlane.xlu0 %2440 }
 0x625   : > { %14844 = vrcp.f32 %v2441_v22  ;;  %v21648_v22 = vld [vmem:[#allocation42_spill] sm:$0xff] }
 0x626   : > { %3667 = vrot.lane.b32.xlu0 %v17079_v44, %s16077_s28  ;;  %v2444_v55 = vpop.xlane.xlu1 %2443 }
 0x627   : > { %14846 = vrcp.f32 %v2444_v55 }
 0x62a   : > { %3920 = vrot.lane.b32.xlu0 %v17014_v26, %s16077_s28 }
 0x62e   : > { %3873 = vrot.lane.b32.xlu0 %v17005_v17, %s16077_s28 }
 0x62f   : > { %v14845_v25 = vpop.eup %14844 }
 0x630   : > { %v2483_v41 = vmul.f32 %v14845_v25, %v17400_v32 }
 0x631   : > { %v14847_v46 = vpop.eup %14846 }
 0x632   : > { %v2484_v12 = vmul.f32 %v14847_v46, %v17404_v13  ;;  %3967 = vrot.lane.b32.xlu0 %v17032_v11, %s16077_s28  ;;  %v21649_v46 = vld [vmem:[#allocation48_spill] sm:$0xff] }
 0x633   : > { %2999 = vadd.xlane.f32.xlu1 %v2998_v51  ;;  %v21651_v51 = vld [vmem:[#allocation56_spill] sm:$0xff] }
 0x634   : > { %v17563_v2 = vpop.xlane.xlu0 %2990  ;;  %v2494_v56 = vpack.c.bf16 %v2484_v12, %v2483_v41 }
 0x636   : > { %4061 = vrot.lane.b32.xlu0 %v17124_v21, %s16077_s28  ;;  %13460 = vmatmul.mubr.msk.bf16.vlgmr.msra.gmra.mrb[104].mxu1 %vm2312_vm2, %v2494_v56  ;;  %v17568_v59 = vpop.xlane.xlu1 %2993 }
 0x637   : > { %13470 = vmatpush3.bf16.msra.mxu1 %v17195_v48  ;;  %13471 = vmatprep.mubr.msk.bf16.mxu1 %vm16076_vm0, %v21645_v28 }
 0x638   : > { %v2447_v32 = vpop.xlane.xlu0 %2446  ;;  %13481 = vmatprep.subr.bf16.mxu1 %v21645_v28 }
 0x639   : > { %14848 = vrcp.f32 %v2447_v32 }
 0x63a   : > { %4386 = vrot.lane.b32.xlu0 %v17144_v35, %s16077_s28  ;;  %v2450_v13 = vpop.xlane.xlu1 %2449 }
 0x63b   : > { %14850 = vrcp.f32 %v2450_v13 }
 0x63c   : > { %v2453_v42 = vpop.xlane.xlu0 %2452 }
 0x63d   : > { %14852 = vrcp.f32 %v2453_v42  ;;  %v21653_v42 = vld [vmem:[#allocation34_spill] sm:$0xff] }
 0x63e   : > { %14854 = vrcp.f32 %v17470_v34  ;;  %4434 = vrot.lane.b32.xlu0 %v21646_v24, %s16077_s28  ;;  %v2456_v1 = vpop.xlane.xlu1 %2455 }
 0x63f   : > { %14856 = vrcp.f32 %v2456_v1 }
 0x640   : > { %14858 = vrcp.f32 %v17466_v62 }
 0x642   : > { %4530 = vrot.lane.b32.xlu0 %v17175_v39, %s16077_s28 }
 0x643   : > { %v14849_v47 = vpop.eup %14848 }
 0x644   : > { %v2961_v45 = vpop.xlane.xlu0 %2960  ;;  %3564 = vrot.lane.b32.xlu1 %v21647_v61, %s16077_s28  ;;  %v2485_v34 = vmul.f32 %v14849_v47, %v17415_v9 }
 0x645   : > { %v14851_v40 = vpop.eup %14850  ;;  %14860 = vrcp.f32 %v2961_v45 }
 0x646   : > { %14862 = vrcp.f32 %v17478_v43  ;;  %v2486_v49 = vmul.f32 %v14851_v40, %v17427_v14  ;;  %4626 = vrot.lane.b32.xlu0 %v17183_v57, %s16077_s28  ;;  %v2964_v62 = vpop.xlane.xlu1 %2963  ;;  %v21654_v40 = vld [vmem:[#allocation52_spill] sm:$0xff] }
 0x647   : > { %v14853_v37 = vpop.eup %14852  ;;  %14864 = vrcp.f32 %v2964_v62  ;;  %v21657_v62 = vld [vmem:[#allocation62_spill] sm:$0xff] }
 0x648   : > { %v14855_v58 = vpop.eup %14854  ;;  %3723 = vrot.lane.b32.xlu1 %v21648_v22, %s16077_s28  ;;  %v2495_v55 = vpack.c.bf16 %v2486_v49, %v2485_v34  ;;  %14866 = vrcp.f32 %v17474_v52  ;;  %v2487_v43 = vmul.f32 %v14853_v37, %v17431_v50  ;;  %v21650_v52 = vld [vmem:[#allocation41_spill] sm:$0xff] }
 0x649   : > { %v14857_v25 = vpop.eup %14856  ;;  %v3018_v41 = vmul.f32 %v14855_v58, %v17338_v16  ;;  %v21652_v16 = vld [vmem:[#allocation50_spill] sm:$0xff] }
 0x64a   : > { %v2488_v9 = vmul.f32 %v14857_v25, %v17435_v18  ;;  %4722 = vrot.lane.b32.xlu0 %v17195_v48, %s16077_s28  ;;  %13466 = vmatmul.mubr.msk.bf16.vlgmr.msra.gmra.mrb[76].mxu0 %vm2312_vm2, %v2495_v55  ;;  %v14859_v14 = vpop.eup %14858  ;;  %v21658_v58 = vld [vmem:[#allocation54_spill] sm:$0xff]  ;;  %v21659_v55 = vld [vmem:[#allocation44_spill] sm:$0xff] }
 0x64b   : > { %13476 = vmatpush3.bf16.msra.mxu0 %v21649_v46  ;;  %13477 = vmatprep.mubr.msk.bf16.mxu0 %vm16076_vm0, %v21645_v28  ;;  %v3017_v18 = vmul.f32 %v14859_v14, %v17333_v60 }
 0x64c   : > { %v2973_v12 = vpop.xlane.xlu0 %2972  ;;  %3670 = vrot.lane.b32.xlu1 %v21650_v52, %s16077_s28  ;;  %v2496_v50 = vpack.c.bf16 %v2488_v9, %v2487_v43  ;;  %13487 = vmatprep.subr.bf16.mxu0 %v21645_v28 }
 0x64d   : > { %14868 = vrcp.f32 %v2973_v12  ;;  %v3033_v60 = vpack.c.bf16 %v3018_v41, %v3017_v18  ;;  %v21660_v41 = vld [vmem:[#allocation66_spill] sm:$0xff] }
 0x64e   : > { %14870 = vrcp.f32 %v17545_v33  ;;  %5146 = vrot.lane.b32.xlu0 %v21651_v51, %s16077_s28  ;;  %13472 = vmatmul.mubr.msk.bf16.vlgmr.msra.gmra.mrb[108].mxu1 %vm2312_vm2, %v2496_v50  ;;  %v2976_v56 = vpop.xlane.xlu1 %2975  ;;  %v21661_v50 = vld [vmem:[#allocation40_spill] sm:$0xff] }
 0x64f   : > { %v14861_v32 = vpop.eup %14860  ;;  %13482 = vmatpush3.bf16.msra.mxu1 %v21652_v16  ;;  %14872 = vrcp.f32 %v2976_v56  ;;  %13483 = vmatprep.mubr.msk.bf16.mxu1 %vm16076_vm0, %v21645_v28  ;;  %v21664_v56 = vld [vmem:[#allocation43_spill] sm:$0xff] }
 0x650   : > { %v14863_v13 = vpop.eup %14862  ;;  %3826 = vrot.lane.b32.xlu1 %v21653_v42, %s16077_s28  ;;  %13493 = vmatprep.subr.bf16.mxu1 %v21645_v28  ;;  %14874 = vrcp.f32 %v17543_v30  ;;  %v3019_v1 = vmul.f32 %v14861_v32, %v17441_v31  ;;  %v21655_v30 = vld [vmem:[#allocation45_spill] sm:$0xff] }
 0x651   : > { %v14865_v33 = vpop.eup %14864  ;;  %v3022_v34 = vmul.f32 %v14863_v13, %v17366_v20  ;;  %14876 = vrcp.f32 %v17568_v59 }
 0x652   : > { %v3020_v47 = vmul.f32 %v14865_v33, %v17445_v38  ;;  %5339 = vrot.lane.b32.xlu0 %v16981_v3, %s16078_s15  ;;  %13478 = vmatmul.mubr.msk.bf16.vlgmr.msra.gmra.mrb[80].mxu0 %vm2312_vm2, %v3033_v60  ;;  %v14867_v45 = vpop.eup %14866  ;;  %v21656_v38 = vld [vmem:[#allocation64_spill] sm:$0xff]  ;;  %14878 = vrcp.f32 %v17563_v2  ;;  %v21662_v2 = vld [vmem:[#allocation65_spill] sm:$0xff] }
 0x653   : > { %13488 = vmatpush3.bf16.msra.mxu0 %v21654_v40  ;;  %13489 = vmatprep.mubr.msk.bf16.mxu0 %vm16076_vm0, %v21645_v28  ;;  %v3021_v49 = vmul.f32 %v14867_v45, %v21656_v38 }
 0x654   : > { %3776 = vrot.lane.b32.xlu1 %v21655_v30, %s16077_s28  ;;  %v3034_v31 = vpack.c.bf16 %v3020_v47, %v3019_v1  ;;  %13499 = vmatprep.subr.bf16.mxu0 %v21645_v28  ;;  %v2985_v60 = vpop.xlane.xlu0 %2984  ;;  %v21665_v1 = vld [vmem:[#allocation60_spill] sm:$0xff] }
 0x655   : > { %v3035_v25 = vpack.c.bf16 %v3022_v34, %v3021_v49  ;;  %v21666_v47 = vld [vmem:[#allocation68_spill] sm:$0xff]  ;;  %v21667_v34 = vld [vmem:[#allocation47_spill] sm:$0xff]  ;;  %14880 = vrcp.f32 %v2985_v60  ;;  %v21669_v60 = vld [vmem:[#allocation69_spill] sm:$0xff] }
 0x656   : > { %5290 = vrot.lane.b32.xlu0 %v21657_v62, %s16077_s28  ;;  %13484 = vmatmul.mubr.msk.bf16.vlgmr.msra.gmra.mrb[112].mxu1 %vm2312_vm2, %v3034_v31  ;;  %v21668_v31 = vld [vmem:[#allocation67_spill] sm:$0xff] }
 0x657   : > { %v14869_v37 = vpop.eup %14868  ;;  %13494 = vmatpush3.bf16.msra.mxu1 %v21658_v58  ;;  %13495 = vmatprep.mubr.msk.bf16.mxu1 %vm16076_vm0, %v21645_v28 }
 0x658   : > { %v14871_v20 = vpop.eup %14870  ;;  %3773 = vrot.lane.b32.xlu1 %v21659_v55, %s16077_s28  ;;  %13505 = vmatprep.subr.bf16.mxu1 %v21645_v28  ;;  %v3023_v9 = vmul.f32 %v14869_v37, %v17452_v53  ;;  %v3406_v49 = vpop.permute.xlu0 %3405 }
 0x659   : > { %v14873_v43 = vpop.eup %14872  ;;  %v3026_v12 = vmul.f32 %v14871_v20, %v21660_v41  ;;  %v17669_v20 = vpop.permute.xlu1 %3402 }
 0x65a   : > { %v3024_v14 = vmul.f32 %v14873_v43, %v17458_v8  ;;  %13490 = vmatmul.mubr.msk.bf16.vlgmr.msra.gmra.mrb[84].mxu0 %vm2312_vm2, %v3035_v25  ;;  %v14875_v59 = vpop.eup %14874  ;;  %v21663_v8 = vld [vmem:[#allocation58_spill] sm:$0xff]  ;;  %v3411_v25 = vsel %vm1575_vm1, %v3406_v49, 0 }
 0x65b   : > { %13500 = vmatpush3.bf16.msra.mxu0 %v21651_v51  ;;  %13501 = vmatprep.mubr.msk.bf16.mxu0 %vm16076_vm0, %v21645_v28  ;;  %v3025_v53 = vmul.f32 %v14875_v59, %v21662_v2  ;;  %v14877_v13 = vpop.eup %14876 }
 0x65c   : > { %4014 = vrot.lane.b32.xlu1 %v21661_v50, %s16077_s28  ;;  %v3036_v18 = vpack.c.bf16 %v3024_v14, %v3023_v9  ;;  %13511 = vmatprep.subr.bf16.mxu0 %v21645_v28  ;;  %v14879_v33 = vpop.eup %14878  ;;  %v3030_v45 = vmul.f32 %v14877_v13, %v21666_v47 }
 0x65d   : > { %v3037_v32 = vpack.c.bf16 %v3026_v12, %v3025_v53  ;;  %v3029_v38 = vmul.f32 %v14879_v33, %v21668_v31  ;;  %v3512_v43 = vpop.permute.xlu1 %3511 }
 0x65e   : > { %13496 = vmatmul.mubr.msk.bf16.vlgmr.msra.gmra.mrb[116].mxu1 %vm2312_vm2, %v3036_v18  ;;  %v3517_v9 = vsel %vm1575_vm1, %v3512_v43, 0 }
 0x65f   : > { %13506 = vmatpush3.bf16.msra.mxu1 %v21663_v8  ;;  %13507 = vmatprep.mubr.msk.bf16.mxu1 %vm16076_vm0, %v21645_v28  ;;  %v3039_v37 = vpack.c.bf16 %v3030_v45, %v3029_v38 }
 0x660   : > { %4108 = vrot.lane.b32.xlu1 %v21664_v56, %s16077_s28  ;;  %13517 = vmatprep.subr.bf16.mxu1 %v21645_v28 }
 0x661   : > { %v17696_v14 = vpop.permute.xlu1 %3458 }
 0x662   : > { %13502 = vmatmul.mubr.msk.bf16.vlgmr.msra.gmra.mrb[88].mxu0 %vm2312_vm2, %v3037_v32  ;;  %v14881_v32 = vpop.eup %14880 }
 0x663   : > { %13512 = vmatpush3.bf16.msra.mxu0 %v21665_v1  ;;  %13513 = vmatprep.mubr.msk.bf16.mxu0 %vm16076_vm0, %v21645_v28  ;;  %v3027_v33 = vmul.f32 %v14881_v32, %v21669_v60 }
 0x664   : > { %4155 = vrot.lane.b32.xlu1 %v21667_v34, %s16077_s28  ;;  %13523 = vmatprep.subr.bf16.mxu0 %v21645_v28 }
 0x668   : > { %4482 = vrot.lane.b32.xlu1 %v17167_v15, %s16077_s28 }
 0x66a   : > { %13514 = vmatmul.mubr.msk.bf16.vlgmr.msra.gmra.mrb[92].mxu0 %vm2312_vm2, %v3039_v37 }
 0x66b   : > { %13525 = vmatprep.mubr.msk.bf16.mxu0 %vm16076_vm0, %v21645_v28 }
 0x66c   : > { %13524 = vmatpush3.bf16.xpose.msra.mxu0 %v3411_v25  ;;  %4578 = vrot.lane.b32.xlu1 %v17179_v5, %s16077_s28 }
 0x66d   : > { %13535 = vmatprep.subr.bf16.mxu0 %v21645_v28 }
 0x670   : > { %4674 = vrot.lane.b32.xlu1 %v17187_v23, %s16077_s28 }
 0x673   : > { %13526 = vmatmul.mubr.msk.bf16.vlgmr.msra.gmra.mrb[96].mxu0 %vm1575_vm1, %v17669_v20 }
 0x674   : > { %13536 = vmatpush3.bf16.xpose.msra.mxu0 %v3517_v9  ;;  %4954 = vrot.lane.b32.xlu1 %v21649_v46, %s16077_s28 }
 0x675   : > { %13537 = vmatprep.mubr.msk.bf16.mxu0 %vm16076_vm0, %v21645_v28  ;;  %13547 = vmatprep.subr.bf16.mxu0 %v21645_v28 }
 0x678   : > { %5050 = vrot.lane.b32.xlu1 %v21654_v40, %s16077_s28 }
 0x67c   : > { %5002 = vrot.lane.b32.xlu1 %v21652_v16, %s16077_s28 }
 0x680   : > { %5242 = vrot.lane.b32.xlu1 %v21665_v1, %s16077_s28 }
 0x684   : > { %5098 = vrot.lane.b32.xlu1 %v21658_v58, %s16077_s28 }
 0x688   : > { %5194 = vrot.lane.b32.xlu1 %v21663_v8, %s16077_s28 }
 0x689   : > { %v2997_v59 = vpop.xlane.xlu0 %2996 }
 0x68b   : > { %v2988_v41 = vpop.xlane.xlu1 %2987 }
 0x68c   : > { %14882 = vrcp.f32 %v2988_v41  ;;  %5337 = vrot.lane.b32.xlu1 %v16979_v0, %s16078_s15 }
 0x68d   : > { %v17702_v12 = vpop.permute.xlu0 %3508  ;;  %14884 = vrcp.f32 %v2997_v59 }
 0x68e   : > { %13538 = vmatmul.mubr.msk.bf16.vlgmr.msra.gmra.mrb[100].mxu0 %vm1575_vm1, %v17702_v12 }
 0x68f   : > { %v3618_v18 = vpop.permute.xlu1 %3617  ;;  %13549 = vmatprep.mubr.msk.bf16.mxu0 %vm16076_vm0, %v21645_v28 }
 0x690   : > { %v3623_v2 = vsel %vm1575_vm1, %v3618_v18, 0 }
 0x691   : > { %v17709_v53 = vpop.permute.xlu0 %3455  ;;  %13548 = vmatpush3.bf16.xpose.msra.mxu0 %v3623_v2 }
 0x692   : > { %13559 = vmatprep.subr.bf16.mxu0 %v21645_v28 }
 0x695   : > { %v17714_v45 = vpop.permute.xlu0 %3614 }
 0x696   : > { %v14883_v13 = vpop.eup %14882 }
 0x697   : > { %v3028_v47 = vmul.f32 %v14883_v13, %v17525_v7 }
 0x698   : > { %13550 = vmatmul.mubr.msk.bf16.vlgmr.msra.gmra.mrb[104].mxu0 %vm1575_vm1, %v17714_v45 }
 0x699   : > { %v3038_v31 = vpack.c.bf16 %v3028_v47, %v3027_v33  ;;  %13561 = vmatprep.mubr.msk.bf16.mxu0 %vm16076_vm0, %v21645_v28 }
 0x69b   : > { %13508 = vmatmul.mubr.msk.bf16.vlgmr.msra.gmra.mrb[120].mxu1 %vm2312_vm2, %v3038_v31 }
 0x69c   : > { %13518 = vmatpush3.bf16.msra.mxu1 %v21657_v62  ;;  %13519 = vmatprep.mubr.msk.bf16.mxu1 %vm16076_vm0, %v21645_v28 }
 0x69d   : > { %13529 = vmatprep.subr.bf16.mxu1 %v21645_v28 }
 0x6a7   : > { %v17725_v38 = vpop.f32.mrb[64].mxu0 }
 0x6a8   : > { %21670 = vst [vmem:[#allocation38_spill] sm:$0xff] %v17725_v38  ;;  %v13431_v7 = vpop.f32.mrb[65].mxu0 }
 0x6a9   : > { %v17727_v49 = vpop.f32.mrb[66].mxu0 }
 0x6aa   : > { %21671 = vst [vmem:[#allocation42_spill] sm:$0xff] %v17727_v49  ;;  %v13432_v37 = vpop.f32.mrb[67].mxu0 }
 0x6af   : > { %v17729_v25 = vpop.f32.mrb[96].mxu1 }
 0x6b0   : > { %21672 = vst [vmem:[#allocation41_spill] sm:$0xff] %v17729_v25  ;;  %v13437_v43 = vpop.f32.mrb[97].mxu1 }
 0x6b1   : > { %v17731_v9 = vpop.f32.mrb[98].mxu1 }
 0x6b2   : > { %21673 = vst [vmem:[#allocation34_spill] sm:$0xff] %v17731_v9  ;;  %v13438_v41 = vpop.f32.mrb[99].mxu1 }
 0x6b3   : > { %v17733_v18 = vpop.f32.mrb[68].mxu0 }
 0x6b4   : > { %21674 = vst [vmem:[#allocation45_spill] sm:$0xff] %v17733_v18  ;;  %v13443_v2 = vpop.f32.mrb[69].mxu0  ;;  %v17745_v18 = vpop.permute.xlu0 %3561 }
 0x6b5   : > { %v17735_v32 = vpop.f32.mrb[70].mxu0 }
 0x6b6   : > { %21675 = vst [vmem:[#allocation64_spill] sm:$0xff] %v17735_v32  ;;  %v13444_v13 = vpop.f32.mrb[71].mxu0 }
 0x6b7   : > { %v14885_v13 = vpop.eup %14884 }
 0x6b8   : > { %v3031_v59 = vmul.f32 %v14885_v13, %v17523_v63 }
 0x6bb   : > { %v17737_v60 = vpop.f32.mrb[100].mxu1 }
 0x6bc   : > { %21676 = vst [vmem:[#allocation66_spill] sm:$0xff] %v17737_v60  ;;  %v13449_v33 = vpop.f32.mrb[101].mxu1 }
 0x6bd   : > { %v17739_v47 = vpop.f32.mrb[102].mxu1  ;;  %v3721_v33 = vpop.permute.xlu0 %3720 }
 0x6be   : > { %21677 = vst [vmem:[#allocation65_spill] sm:$0xff] %v17739_v47  ;;  %v13450_v31 = vpop.f32.mrb[103].mxu1 }
 0x6c0   : > { %v17741_v7 = vpop.f32.mrb[72].mxu0  ;;  %v3000_v37 = vpop.xlane.xlu1 %2999 }
 0x6c1   : > { %21678 = vst [vmem:[#allocation68_spill] sm:$0xff] %v17741_v7  ;;  %14886 = vrcp.f32 %v3000_v37  ;;  %v13455_v43 = vpop.f32.mrb[73].mxu0  ;;  %v17753_v7 = vpop.permute.xlu0 %3667 }
 0x6c2   : > { %v17743_v25 = vpop.f32.mrb[74].mxu0 }
 0x6c3   : > { %21679 = vst [vmem:[#allocation67_spill] sm:$0xff] %v17743_v25  ;;  %v13456_v41 = vpop.f32.mrb[75].mxu0 }
 0x6c4   : > { %v3565_v2 = vpop.permute.xlu1 %3564  ;;  %v3464_v41 = vsel %vm1575_vm1, %v17696_v14, 0 }
 0x6c5   : > { %v3570_v14 = vsel %vm1575_vm1, %v3565_v2, 0 }
 0x6c8   : > { %v3724_v32 = vpop.permute.xlu1 %3723 }
 0x6c9   : > { %v3729_v60 = vsel %vm1575_vm1, %v3724_v32, 0 }
 0x6ca   : > { %13560 = vmatpush3.bf16.xpose.msra.mxu0 %v3729_v60 }
 0x6cb   : > { %v14887_v47 = vpop.eup %14886  ;;  %13571 = vmatprep.subr.bf16.mxu0 %v21645_v28 }
 0x6cc   : > { %v3032_v31 = vmul.f32 %v14887_v47, %v17553_v36  ;;  %v3671_v37 = vpop.permute.xlu1 %3670  ;;  %v3921_v36 = vpop.permute.xlu0 %3920 }
 0x6cd   : > { %v3923_v60 = vsel %vm1575_vm1, %v3921_v36, 0  ;;  %v3676_v13 = vsel %vm1575_vm1, %v3671_v37, 0 }
 0x6ce   : > { %v3040_v43 = vpack.c.bf16 %v3032_v31, %v3031_v59 }
 0x6d0   : > { %13520 = vmatmul.mubr.msk.bf16.vlgmr.msra.gmra.mrb[124].mxu1 %vm2312_vm2, %v3040_v43  ;;  %v3827_v25 = vpop.permute.xlu1 %3826  ;;  %v3874_v2 = vpop.permute.xlu0 %3873 }
 0x6d1   : > { %13530 = vmatpush3.bf16.xpose.msra.mxu1 %v3464_v41  ;;  %v3829_v32 = vsel %vm1575_vm1, %v3827_v25, 0  ;;  %13562 = vmatmul.mubr.msk.bf16.vlgmr.msra.gmra.mrb[108].mxu0 %vm1575_vm1, %v3721_v33  ;;  %v3876_v41 = vsel %vm1575_vm1, %v3874_v2, 0 }
 0x6d2   : > { %13572 = vmatpush3.bf16.xpose.msra.mxu0 %v3829_v32  ;;  %13531 = vmatprep.mubr.msk.bf16.mxu1 %vm16076_vm0, %v21645_v28 }
 0x6d3   : > { %13541 = vmatprep.subr.bf16.mxu1 %v21645_v28  ;;  %13573 = vmatprep.mubr.msk.bf16.mxu0 %vm16076_vm0, %v21645_v28 }
 0x6d4   : > { %v3777_v63 = vpop.permute.xlu1 %3776  ;;  %13583 = vmatprep.subr.bf16.mxu0 %v21645_v28  ;;  %v3968_v59 = vpop.permute.xlu0 %3967 }
 0x6d5   : > { %v3782_v37 = vsel %vm1575_vm1, %v3777_v63, 0 }
 0x6d8   : > { %13532 = vmatmul.mubr.msk.bf16.vlgmr.msra.gmra.mrb[128].mxu1 %vm1575_vm1, %v17709_v53  ;;  %v17767_v25 = vpop.permute.xlu1 %3773  ;;  %v4062_v43 = vpop.permute.xlu0 %4061 }
 0x6d9   : > { %13542 = vmatpush3.bf16.xpose.msra.mxu1 %v3570_v14  ;;  %13574 = vmatmul.mubr.msk.bf16.vlgmr.msra.gmra.mrb[112].mxu0 %vm1575_vm1, %v17669_v20 }
 0x6da   : > { %13584 = vmatpush3.bf16.xpose.msra.mxu0 %v3923_v60  ;;  %13543 = vmatprep.mubr.msk.bf16.mxu1 %vm16076_vm0, %v21645_v28 }
 0x6db   : > { %13553 = vmatprep.subr.bf16.mxu1 %v21645_v28  ;;  %13585 = vmatprep.mubr.msk.bf16.mxu0 %vm16076_vm0, %v21645_v28 }
 0x6dc   : > { %13595 = vmatprep.subr.bf16.mxu0 %v21645_v28  ;;  %v4015_v47 = vpop.permute.xlu1 %4014  ;;  %v4387_v32 = vpop.permute.xlu0 %4386 }
 0x6dd   : > { %v4017_v20 = vsel %vm1575_vm1, %v4015_v47, 0 }
 0x6e0   : > { %13544 = vmatmul.mubr.msk.bf16.vlgmr.msra.gmra.mrb[132].mxu1 %vm1575_vm1, %v17745_v18  ;;  %v4109_v31 = vpop.permute.xlu1 %4108  ;;  %v4435_v47 = vpop.permute.xlu0 %4434 }
 0x6e1   : > { %13554 = vmatpush3.bf16.xpose.msra.mxu1 %v3676_v13  ;;  %13586 = vmatmul.mubr.msk.bf16.vlgmr.msra.gmra.mrb[116].mxu0 %vm1575_vm1, %v17702_v12  ;;  %v4111_v12 = vsel %vm1575_vm1, %v4109_v31, 0 }
 0x6e2   : > { %13596 = vmatpush3.bf16.xpose.msra.mxu0 %v4017_v20  ;;  %13555 = vmatprep.mubr.msk.bf16.mxu1 %vm16076_vm0, %v21645_v28 }
 0x6e3   : > { %13565 = vmatprep.subr.bf16.mxu1 %v21645_v28  ;;  %13597 = vmatprep.mubr.msk.bf16.mxu0 %vm16076_vm0, %v21645_v28 }
 0x6e4   : > { %13607 = vmatprep.subr.bf16.mxu0 %v21645_v28  ;;  %v4156_v63 = vpop.permute.xlu1 %4155 }
 0x6e8   : > { %13556 = vmatmul.mubr.msk.bf16.vlgmr.msra.gmra.mrb[136].mxu1 %vm1575_vm1, %v17753_v7 }
 0x6e9   : > { %13566 = vmatpush3.bf16.xpose.msra.mxu1 %v3782_v37  ;;  %13598 = vmatmul.mubr.msk.bf16.vlgmr.msra.gmra.mrb[120].mxu0 %vm1575_vm1, %v17714_v45  ;;  %v3970_v45 = vsel %vm1575_vm1, %v3968_v59, 0 }
 0x6ea   : > { %13608 = vmatpush3.bf16.xpose.msra.mxu0 %v4111_v12  ;;  %13567 = vmatprep.mubr.msk.bf16.mxu1 %vm16076_vm0, %v21645_v28 }
 0x6eb   : > { %13577 = vmatprep.subr.bf16.mxu1 %v21645_v28  ;;  %13609 = vmatprep.mubr.msk.bf16.mxu0 %vm16076_vm0, %v21645_v28 }
 0x6ec   : > { %13619 = vmatprep.subr.bf16.mxu0 %v21645_v28 }
 0x6f0   : > { %13568 = vmatmul.mubr.msk.bf16.vlgmr.msra.gmra.mrb[140].mxu1 %vm1575_vm1, %v17767_v25 }
 0x6f1   : > { %13578 = vmatpush3.bf16.xpose.msra.mxu1 %v3876_v41  ;;  %13610 = vmatmul.mubr.msk.bf16.vlgmr.msra.gmra.mrb[124].mxu0 %vm1575_vm1, %v3721_v33  ;;  %v4064_v33 = vsel %vm1575_vm1, %v4062_v43, 0 }
 0x6f2   : > { %13620 = vmatpush3.bf16.msra.mxu0 %v4387_v32  ;;  %13579 = vmatprep.mubr.msk.bf16.mxu1 %vm16076_vm0, %v21645_v28 }
 0x6f3   : > { %13589 = vmatprep.subr.bf16.mxu1 %v21645_v28  ;;  %13621 = vmatprep.mubr.msk.bf16.mxu0 %vm16076_vm0, %v21645_v28 }
 0x6f4   : > { %13631 = vmatprep.subr.bf16.mxu0 %v21645_v28 }
 0x6f8   : > { %13580 = vmatmul.mubr.msk.bf16.vlgmr.msra.gmra.mrb[144].mxu1 %vm1575_vm1, %v17709_v53  ;;  %v4158_v53 = vsel %vm1575_vm1, %v4156_v63, 0 }
 0x6f9   : > { %13590 = vmatpush3.bf16.xpose.msra.mxu1 %v3970_v45  ;;  %13591 = vmatprep.mubr.msk.bf16.mxu1 %vm16076_vm0, %v21645_v28 }
 0x6fa   : > { %13601 = vmatprep.subr.bf16.mxu1 %v21645_v28 }
 0x700   : > { %13592 = vmatmul.mubr.msk.bf16.vlgmr.msra.gmra.mrb[148].mxu1 %vm1575_vm1, %v17745_v18 }
 0x701   : > { %13602 = vmatpush3.bf16.xpose.msra.mxu1 %v4064_v33  ;;  %13603 = vmatprep.mubr.msk.bf16.mxu1 %vm16076_vm0, %v21645_v28 }
 0x702   : > { %13613 = vmatprep.subr.bf16.mxu1 %v21645_v28 }
 0x708   : > { %13604 = vmatmul.mubr.msk.bf16.vlgmr.msra.gmra.mrb[152].mxu1 %vm1575_vm1, %v17753_v7 }
 0x709   : > { %13614 = vmatpush3.bf16.xpose.msra.mxu1 %v4158_v53  ;;  %v17827_v36 = vpop.f32.mrb[104].mxu1  ;;  %13615 = vmatprep.mubr.msk.bf16.mxu1 %vm16076_vm0, %v21645_v28 }
 0x70a   : > { %21680 = vst [vmem:[#allocation69_spill] sm:$0xff] %v17827_v36  ;;  %v13461_v14 = vpop.f32.mrb[105].mxu1  ;;  %13625 = vmatprep.subr.bf16.mxu1 %v21645_v28 }
 0x70b   : > { %v17832_v18 = vpop.f32.mrb[106].mxu1 }
 0x70c   : > { %21681 = vst [vmem:[#allocation70_spill] sm:$0xff] %v17832_v18  ;;  %v13462_v60 = vpop.f32.mrb[107].mxu1 }
 0x710   : > { %13616 = vmatmul.mubr.msk.bf16.vlgmr.msra.gmra.mrb[156].mxu1 %vm1575_vm1, %v17767_v25 }
 0x711   : > { %13626 = vmatpush3.bf16.msra.mxu1 %v4435_v47  ;;  %13627 = vmatprep.mubr.msk.bf16.mxu1 %vm16076_vm0, %v21645_v28 }
 0x712   : > { %13637 = vmatprep.subr.bf16.mxu1 %v21645_v28 }
 0x71d   : > { %v17839_v7 = vpop.f32.mrb[76].mxu0 }
 0x71e   : > { %21682 = vst [vmem:[#allocation71_spill] sm:$0xff] %v17839_v7  ;;  %v13467_v2 = vpop.f32.mrb[77].mxu0 }
 0x71f   : > { %v17841_v13 = vpop.f32.mrb[78].mxu0 }
 0x720   : > { %21683 = vst [vmem:[#allocation72_spill] sm:$0xff] %v17841_v13  ;;  %v13468_v20 = vpop.f32.mrb[79].mxu0 }
 0x721   : > { %v17843_v59 = vpop.f32.mrb[108].mxu1 }
 0x722   : > { %21684 = vst [vmem:[#allocation73_spill] sm:$0xff] %v17843_v59  ;;  %v13473_v31 = vpop.f32.mrb[109].mxu1 }
 0x723   : > { %v17845_v37 = vpop.f32.mrb[110].mxu1 }
 0x724   : > { %21685 = vst [vmem:[#allocation74_spill] sm:$0xff] %v17845_v37  ;;  %v13474_v12 = vpop.f32.mrb[111].mxu1 }
 0x725   : > { %v17847_v43 = vpop.f32.mrb[80].mxu0 }
 0x726   : > { %21686 = vst [vmem:[#allocation75_spill] sm:$0xff] %v17847_v43  ;;  %v13479_v25 = vpop.f32.mrb[81].mxu0 }
 0x727   : > { %v17849_v41 = vpop.f32.mrb[82].mxu0 }
 0x728   : > { %21687 = vst [vmem:[#allocation76_spill] sm:$0xff] %v17849_v41  ;;  %v13480_v32 = vpop.f32.mrb[83].mxu0 }
 0x729   : > { %v17851_v45 = vpop.f32.mrb[112].mxu1 }
 0x72a   : > { %21688 = vst [vmem:[#allocation77_spill] sm:$0xff] %v17851_v45  ;;  %v13485_v33 = vpop.f32.mrb[113].mxu1 }
 0x72b   : > { %v17853_v63 = vpop.f32.mrb[114].mxu1 }
 0x72c   : > { %21689 = vst [vmem:[#allocation78_spill] sm:$0xff] %v17853_v63  ;;  %v13486_v53 = vpop.f32.mrb[115].mxu1 }
 0x72d   : > { %v17855_v14 = vpop.f32.mrb[84].mxu0 }
 0x72e   : > { %21690 = vst [vmem:[#allocation79_spill] sm:$0xff] %v17855_v14  ;;  %v13491_v60 = vpop.f32.mrb[85].mxu0 }
 0x72f   : > { %v17857_v47 = vpop.f32.mrb[86].mxu0 }
 0x730   : > { %21691 = vst [vmem:[#allocation80_spill] sm:$0xff] %v17857_v47  ;;  %v13492_v2 = vpop.f32.mrb[87].mxu0 }
 0x731   : > { %v17859_v20 = vpop.f32.mrb[116].mxu1 }
 0x732   : > { %21692 = vst [vmem:[#allocation81_spill] sm:$0xff] %v17859_v20  ;;  %v13497_v31 = vpop.f32.mrb[117].mxu1 }
 0x733   : > { %v17861_v12 = vpop.f32.mrb[118].mxu1 }
 0x734   : > { %21693 = vst [vmem:[#allocation82_spill] sm:$0xff] %v17861_v12  ;;  %v13498_v25 = vpop.f32.mrb[119].mxu1 }
 0x735   : > { %v17863_v59 = vpop.f32.mrb[88].mxu0 }
 0x736   : > { %21694 = vst [vmem:[#allocation83_spill] sm:$0xff] %v17863_v59  ;;  %v13503_v32 = vpop.f32.mrb[89].mxu0 }
 0x737   : > { %v17865_v37 = vpop.f32.mrb[90].mxu0 }
 0x738   : > { %21695 = vst [vmem:[#allocation84_spill] sm:$0xff] %v17865_v37  ;;  %v13504_v33 = vpop.f32.mrb[91].mxu0 }
 0x73d   : > { %v17867_v7 = vpop.f32.mrb[92].mxu0 }
 0x73e   : > { %21696 = vst [vmem:[#allocation85_spill] sm:$0xff] %v17867_v7  ;;  %v13515_v53 = vpop.f32.mrb[93].mxu0 }
 0x73f   : > { %v17869_v13 = vpop.f32.mrb[94].mxu0 }
 0x740   : > { %21697 = vst [vmem:[#allocation86_spill] sm:$0xff] %v17869_v13  ;;  %v13516_v60 = vpop.f32.mrb[95].mxu0 }
 0x746   : > { %v17871_v36 = vpop.f32.mrb[96].mxu0 }
 0x747   : > { %v13527_v2 = vpop.f32.mrb[97].mxu0  ;;  %v4201_v31 = vsel %vm2312_vm2, %v17871_v36, -inf }
 0x748   : > { %4202 = vmax.xlane.f32.xlu0 %v4201_v31  ;;  %v17875_v25 = vpop.f32.mrb[98].mxu0 }
 0x749   : > { %v13528_v18 = vpop.f32.mrb[99].mxu0  ;;  %v4204_v32 = vsel %vm2312_vm2, %v17875_v25, -inf }
 0x74a   : > { %4205 = vmax.xlane.f32.xlu1 %v4204_v32 }
 0x761   : > { %v17879_v33 = vpop.f32.mrb[100].mxu0 }
 0x762   : > { %v13539_v53 = vpop.f32.mrb[101].mxu0  ;;  %v4213_v60 = vsel %vm2312_vm2, %v17879_v33, -inf }
 0x763   : > { %4214 = vmax.xlane.f32.xlu0 %v4213_v60  ;;  %v17883_v7 = vpop.f32.mrb[102].mxu0  ;;  %v17893_v53 = vpop.permute.xlu1 %4482 }
 0x764   : > { %v13540_v2 = vpop.f32.mrb[103].mxu0 }
 0x767   : > { %v17895_v14 = vpop.permute.xlu1 %4578 }
 0x768   : > { %21700 = vst [vmem:[#allocation89_spill] sm:$0xff] %v17895_v14 }
 0x76b   : > { %v17885_v13 = vpop.f32.mrb[104].mxu0  ;;  %v17897_v60 = vpop.permute.xlu1 %4674 }
 0x76c   : > { %v13551_v31 = vpop.f32.mrb[105].mxu0  ;;  %21701 = vst [vmem:[#allocation90_spill] sm:$0xff] %v17897_v60 }
 0x76d   : > { %v17887_v59 = vpop.f32.mrb[106].mxu0 }
 0x76e   : > { %v17889_v18 = vpop.f32.mrb[120].mxu1  ;;  %v13552_v37 = vpop.f32.mrb[107].mxu0 }
 0x76f   : > { %21698 = vst [vmem:[#allocation87_spill] sm:$0xff] %v17889_v18  ;;  %v13509_v20 = vpop.f32.mrb[121].mxu1 }
 0x770   : > { %v17891_v32 = vpop.f32.mrb[122].mxu1 }
 0x771   : > { %21699 = vst [vmem:[#allocation88_spill] sm:$0xff] %v17891_v32  ;;  %v13510_v12 = vpop.f32.mrb[123].mxu1  ;;  %v17907_v32 = vpop.permute.xlu0 %4530 }
 0x772   : > { %21704 = vst [vmem:[#allocation93_spill] sm:$0xff] %v17907_v32  ;;  %v17909_v12 = vpop.permute.xlu1 %4954 }
 0x773   : > { %21705 = vst [vmem:[#allocation94_spill] sm:$0xff] %v17909_v12 }
 0x775   : > { %v17925_v49 = vpop.permute.xlu0 %4626 }
 0x776   : > { %21706 = vst [vmem:[#allocation95_spill] sm:$0xff] %v17925_v49 }
 0x7a3   : > { %v17899_v47 = vpop.f32.mrb[124].mxu1 }
 0x7a4   : > { %21702 = vst [vmem:[#allocation91_spill] sm:$0xff] %v17899_v47  ;;  %v13521_v2 = vpop.f32.mrb[125].mxu1  ;;  %v17901_v45 = vpop.f32.mrb[108].mxu0 }
 0x7a5   : > { %v17903_v31 = vpop.f32.mrb[126].mxu1  ;;  %v13563_v63 = vpop.f32.mrb[109].mxu0 }
 0x7a6   : > { %21703 = vst [vmem:[#allocation92_spill] sm:$0xff] %v17903_v31  ;;  %v13522_v18 = vpop.f32.mrb[127].mxu1  ;;  %v17905_v37 = vpop.f32.mrb[110].mxu0 }
 0x7a7   : > { %v13564_v20 = vpop.f32.mrb[111].mxu0 }
 0x7ab   : > { %v17911_v9 = vpop.f32.mrb[128].mxu1 }
 0x7ac   : > { %v13533_v43 = vpop.f32.mrb[129].mxu1  ;;  %v17913_v41 = vpop.f32.mrb[112].mxu0  ;;  %v4207_v2 = vsel %vm2312_vm2, %v17911_v9, -inf }
 0x7ad   : > { %v13575_v47 = vpop.f32.mrb[113].mxu0  ;;  %4208 = vmax.xlane.f32.xlu0 %v4207_v2  ;;  %v17917_v31 = vpop.f32.mrb[130].mxu1  ;;  %v4216_v43 = vsel %vm2312_vm2, %v17883_v7, -inf }
 0x7ae   : > { %v13534_v63 = vpop.f32.mrb[131].mxu1  ;;  %v17919_v18 = vpop.f32.mrb[114].mxu0  ;;  %v4210_v20 = vsel %vm2312_vm2, %v17917_v31, -inf  ;;  %v4228_v47 = vsel %vm2312_vm2, %v17887_v59, -inf }
 0x7af   : > { %v13576_v38 = vpop.f32.mrb[115].mxu0  ;;  %4211 = vmax.xlane.f32.xlu1 %v4210_v20  ;;  %v17929_v2 = vpop.permute.xlu1 %5050 }
 0x7b0   : > { %21707 = vst [vmem:[#allocation96_spill] sm:$0xff] %v17929_v2  ;;  %v4225_v38 = vsel %vm2312_vm2, %v17885_v13, -inf }
 0x7b1   : > { %4217 = vmax.xlane.f32.xlu0 %v4216_v43 }
 0x7b3   : > { %4229 = vmax.xlane.f32.xlu1 %v4228_v47  ;;  %v17931_v63 = vpop.f32.mrb[132].mxu1  ;;  %v17945_v47 = vpop.permute.xlu0 %4722 }
 0x7b4   : > { %v13545_v62 = vpop.f32.mrb[133].mxu1  ;;  %v17933_v0 = vpop.f32.mrb[116].mxu0  ;;  %21708 = vst [vmem:[#allocation97_spill] sm:$0xff] %v17945_v47 }
 0x7b5   : > { %v13587_v20 = vpop.f32.mrb[117].mxu0  ;;  %4226 = vmax.xlane.f32.xlu0 %v4225_v38  ;;  %v17937_v3 = vpop.f32.mrb[134].mxu1  ;;  %v4219_v62 = vsel %vm2312_vm2, %v17931_v63, -inf  ;;  %v4781_v46 = vsel %vm2312_vm2, %v17933_v0, -inf }
 0x7b6   : > { %v13546_v43 = vpop.f32.mrb[135].mxu1  ;;  %v17939_v8 = vpop.f32.mrb[118].mxu0  ;;  %v4222_v51 = vsel %vm2312_vm2, %v17937_v3, -inf  ;;  %v4240_v20 = vsel %vm2312_vm2, %v17905_v37, -inf }
 0x7b7   : > { %v13588_v2 = vpop.f32.mrb[119].mxu0  ;;  %4223 = vmax.xlane.f32.xlu1 %v4222_v51  ;;  %v17949_v38 = vpop.permute.xlu1 %5002  ;;  %v4237_v51 = vsel %vm2312_vm2, %v17901_v45, -inf }
 0x7b8   : > { %21709 = vst [vmem:[#allocation98_spill] sm:$0xff] %v17949_v38 }
 0x7b9   : > { %4220 = vmax.xlane.f32.xlu0 %v4219_v62 }
 0x7bb   : > { %4241 = vmax.xlane.f32.xlu1 %v4240_v20  ;;  %v17951_v43 = vpop.f32.mrb[136].mxu1  ;;  %v17965_v20 = vpop.permute.xlu1 %5242 }
 0x7bc   : > { %v13557_v58 = vpop.f32.mrb[137].mxu1  ;;  %v17953_v48 = vpop.f32.mrb[120].mxu0  ;;  %21710 = vst [vmem:[#allocation99_spill] sm:$0xff] %v17965_v20 }
 0x7bd   : > { %v13599_v2 = vpop.f32.mrb[121].mxu0  ;;  %4238 = vmax.xlane.f32.xlu0 %v4237_v51  ;;  %v17957_v1 = vpop.f32.mrb[138].mxu1  ;;  %v4231_v58 = vsel %vm2312_vm2, %v17951_v43, -inf }
 0x7be   : > { %v13558_v62 = vpop.f32.mrb[139].mxu1  ;;  %v17959_v57 = vpop.f32.mrb[122].mxu0  ;;  %v4234_v47 = vsel %vm2312_vm2, %v17957_v1, -inf  ;;  %v4772_v2 = vsel %vm2312_vm2, %v17919_v18, -inf }
 0x7bf   : > { %v13600_v38 = vpop.f32.mrb[123].mxu0  ;;  %4235 = vmax.xlane.f32.xlu1 %v4234_v47  ;;  %v17969_v51 = vpop.permute.xlu0 %5146  ;;  %v4769_v47 = vsel %vm2312_vm2, %v17913_v41, -inf }
 0x7c0   : > { %21711 = vst [vmem:[#allocation100_spill] sm:$0xff] %v17969_v51  ;;  %v17983_v51 = vpop.permute.xlu1 %5098 }
 0x7c1   : > { %4232 = vmax.xlane.f32.xlu0 %v4231_v58  ;;  %21712 = vst [vmem:[#allocation101_spill] sm:$0xff] %v17983_v51 }
 0x7c3   : > { %4773 = vmax.xlane.f32.xlu1 %v4772_v2  ;;  %v17971_v62 = vpop.f32.mrb[140].mxu1 }
 0x7c4   : > { %v13569_v16 = vpop.f32.mrb[141].mxu1  ;;  %v17973_v39 = vpop.f32.mrb[124].mxu0 }
 0x7c5   : > { %v13611_v38 = vpop.f32.mrb[125].mxu0  ;;  %4770 = vmax.xlane.f32.xlu0 %v4769_v47  ;;  %v17977_v40 = vpop.f32.mrb[142].mxu1  ;;  %v4243_v16 = vsel %vm2312_vm2, %v17971_v62, -inf }
 0x7c6   : > { %v13570_v20 = vpop.f32.mrb[143].mxu1  ;;  %v17979_v58 = vpop.f32.mrb[126].mxu0  ;;  %v4246_v12 = vsel %vm2312_vm2, %v17977_v40, -inf  ;;  %v4784_v38 = vsel %vm2312_vm2, %v17939_v8, -inf }
 0x7c7   : > { %v13612_v2 = vpop.f32.mrb[127].mxu0  ;;  %4247 = vmax.xlane.f32.xlu1 %v4246_v12  ;;  %v17989_v47 = vpop.permute.xlu0 %5339 }
 0x7c8   : > { %21713 = vst [vmem:[#allocation102_spill] sm:$0xff] %v17989_v47  ;;  %v17995_v35 = vpop.permute.xlu1 %5194 }
 0x7c9   : > { %4244 = vmax.xlane.f32.xlu0 %v4243_v16  ;;  %21714 = vst [vmem:[#allocation103_spill] sm:$0xff] %v17995_v35 }
 0x7cb   : > { %4785 = vmax.xlane.f32.xlu1 %v4784_v38  ;;  %v17991_v20 = vpop.f32.mrb[144].mxu1  ;;  %v18003_v38 = vpop.permute.xlu0 %5290 }
 0x7cc   : > { %v13581_v24 = vpop.f32.mrb[145].mxu1  ;;  %v4775_v47 = vsel %vm2312_vm2, %v17991_v20, -inf  ;;  %21715 = vst [vmem:[#allocation104_spill] sm:$0xff] %v18003_v38  ;;  %v18007_v51 = vpop.permute.xlu1 %5337 }
 0x7cd   : > { %4782 = vmax.xlane.f32.xlu0 %v4781_v46  ;;  %v17997_v12 = vpop.f32.mrb[146].mxu1  ;;  %v4796_v24 = vsel %vm2312_vm2, %v17959_v57, -inf  ;;  %21716 = vst [vmem:[#allocation105_spill] sm:$0xff] %v18007_v51 }
 0x7ce   : > { %v13582_v2 = vpop.f32.mrb[147].mxu1  ;;  %v4778_v16 = vsel %vm2312_vm2, %v17997_v12, -inf }
 0x7cf   : > { %4779 = vmax.xlane.f32.xlu1 %v4778_v16  ;;  %v4793_v2 = vsel %vm2312_vm2, %v17953_v48, -inf }
 0x7d1   : > { %4776 = vmax.xlane.f32.xlu0 %v4775_v47 }
 0x7d3   : > { %4797 = vmax.xlane.f32.xlu1 %v4796_v24  ;;  %v18009_v46 = vpop.f32.mrb[148].mxu1 }
 0x7d4   : > { %v13593_v35 = vpop.f32.mrb[149].mxu1 }
 0x7d5   : > { %v4203_v49 = vpop.xlane.xlu0 %4202  ;;  %4794 = vmax.xlane.f32.xlu0 %v4793_v2  ;;  %v18013_v16 = vpop.f32.mrb[150].mxu1  ;;  %v4787_v35 = vsel %vm2312_vm2, %v18009_v46, -inf  ;;  %v4808_v2 = vsel %vm2312_vm2, %v17979_v58, -inf }
 0x7d6   : > { %v4249_v23 = vsub.f32 %v17871_v36, %v4203_v49  ;;  %v13594_v38 = vpop.f32.mrb[151].mxu1  ;;  %v4790_v47 = vsel %vm2312_vm2, %v18013_v16, -inf }
 0x7d7   : > { %v4206_v21 = vpop.xlane.xlu1 %4205  ;;  %4791 = vmax.xlane.f32.xlu1 %v4790_v47  ;;  %v4805_v38 = vsel %vm2312_vm2, %v17973_v39, -inf }
 0x7d8   : > { %v4265_v51 = vmul.f32 1.442695, %v4249_v23  ;;  %v4250_v24 = vsub.f32 %v17875_v25, %v4206_v21 }
 0x7d9   : > { %4788 = vmax.xlane.f32.xlu0 %v4787_v35 }
 0x7da   : > { %v4267_v60 = vmul.f32 1.442695, %v4250_v24  ;;  %14888 = vpow2.f32 %v4265_v51 }
 0x7db   : > { %4809 = vmax.xlane.f32.xlu1 %v4808_v2  ;;  %v18023_v49 = vpop.f32.mrb[152].mxu1 }
 0x7dc   : > { %v13605_v36 = vpop.f32.mrb[153].mxu1  ;;  %14890 = vpow2.f32 %v4267_v60  ;;  %v4799_v47 = vsel %vm2312_vm2, %v18023_v49, -inf }
 0x7dd   : > { %4806 = vmax.xlane.f32.xlu0 %v4805_v38  ;;  %v18027_v23 = vpop.f32.mrb[154].mxu1 }
 0x7de   : > { %v13606_v21 = vpop.f32.mrb[155].mxu1  ;;  %v4802_v25 = vsel %vm2312_vm2, %v18027_v23, -inf }
 0x7df   : > { %4803 = vmax.xlane.f32.xlu1 %v4802_v25 }
 0x7e1   : > { %4800 = vmax.xlane.f32.xlu0 %v4799_v47 }
 0x7e3   : > { %v18033_v51 = vpop.f32.mrb[156].mxu1 }
 0x7e4   : > { %v13617_v24 = vpop.f32.mrb[157].mxu1  ;;  %v4811_v35 = vsel %vm2312_vm2, %v18033_v51, -inf  ;;  %v18037_v2 = vpop.eup %14888 }
 0x7e5   : > { %4812 = vmax.xlane.f32.xlu0 %v4811_v35  ;;  %v18039_v60 = vpop.f32.mrb[158].mxu1  ;;  %v4297_v25 = vsel %vm2312_vm2, %v18037_v2, 0.0 }
 0x7e6   : > { %v13618_v36 = vpop.f32.mrb[159].mxu1  ;;  %v4814_v38 = vsel %vm2312_vm2, %v18039_v60, -inf  ;;  %v18043_v21 = vpop.eup %14890 }
 0x7e7   : > { %4815 = vmax.xlane.f32.xlu1 %v4814_v38  ;;  %v4300_v47 = vsel %vm2312_vm2, %v18043_v21, 0.0 }
 0x7e9   : > { %4298 = vadd.xlane.f32.xlu0 %v4297_v25 }
 0x7eb   : > { %4301 = vadd.xlane.f32.xlu1 %v4300_v47 }
 0x7f0   : > { %v4215_v24 = vpop.xlane.xlu0 %4214 }
 0x7f1   : > { %v4253_v35 = vsub.f32 %v17879_v33, %v4215_v24 }
 0x7f3   : > { %v4273_v5 = vmul.f32 1.442695, %v4253_v35 }
 0x7f5   : > { %14892 = vpow2.f32 %v4273_v5 }
 0x7ff   : > { %v18050_v36 = vpop.eup %14892 }
 0x800   : > { %v4309_v11 = vsel %vm2312_vm2, %v18050_v36, 0.0 }
 0x801   : > { %4310 = vadd.xlane.f32.xlu0 %v4309_v11 }
 0x83a   : > { %v4209_v38 = vpop.xlane.xlu0 %4208 }
 0x83b   : > { %v4251_v32 = vsub.f32 %v17911_v9, %v4209_v38 }
 0x83c   : > { %v4212_v15 = vpop.xlane.xlu1 %4211 }
 0x83d   : > { %v4269_v25 = vmul.f32 1.442695, %v4251_v32  ;;  %v4252_v17 = vsub.f32 %v17917_v31, %v4212_v15 }
 0x83e   : > { %v4218_v34 = vpop.xlane.xlu0 %4217 }
 0x83f   : > { %14894 = vpow2.f32 %v4269_v25  ;;  %v4254_v47 = vsub.f32 %v17883_v7, %v4218_v34  ;;  %v4271_v24 = vmul.f32 1.442695, %v4252_v17 }
 0x840   : > { %v4230_v33 = vpop.xlane.xlu1 %4229 }
 0x841   : > { %v4275_v5 = vmul.f32 1.442695, %v4254_v47  ;;  %v4258_v35 = vsub.f32 %v17887_v59, %v4230_v33 }
 0x842   : > { %v4227_v14 = vpop.xlane.xlu0 %4226 }
 0x843   : > { %14896 = vpow2.f32 %v4275_v5  ;;  %v4257_v11 = vsub.f32 %v17885_v13, %v4227_v14  ;;  %v4283_v9 = vmul.f32 1.442695, %v4258_v35 }
 0x844   : > { %v4224_v26 = vpop.xlane.xlu1 %4223  ;;  %14898 = vpow2.f32 %v4271_v24 }
 0x845   : > { %v4281_v38 = vmul.f32 1.442695, %v4257_v11  ;;  %v4256_v32 = vsub.f32 %v17937_v3, %v4224_v26 }
 0x846   : > { %v4221_v15 = vpop.xlane.xlu0 %4220 }
 0x847   : > { %14900 = vpow2.f32 %v4281_v38  ;;  %v4255_v31 = vsub.f32 %v17931_v63, %v4221_v15  ;;  %v4279_v17 = vmul.f32 1.442695, %v4256_v32 }
 0x848   : > { %v4242_v34 = vpop.xlane.xlu1 %4241  ;;  %14902 = vpow2.f32 %v4283_v9 }
 0x849   : > { %v18061_v7 = vpop.eup %14894  ;;  %v4277_v59 = vmul.f32 1.442695, %v4255_v31  ;;  %v4262_v26 = vsub.f32 %v17905_v37, %v4242_v34 }
 0x84a   : > { %v4239_v25 = vpop.xlane.xlu0 %4238  ;;  %v4303_v13 = vsel %vm2312_vm2, %v18061_v7, 0.0 }
 0x84b   : > { %14904 = vpow2.f32 %v4277_v59  ;;  %v4261_v14 = vsub.f32 %v17901_v45, %v4239_v25  ;;  %4304 = vadd.xlane.f32.xlu0 %v4303_v13  ;;  %v4291_v9 = vmul.f32 1.442695, %v4262_v26 }
 0x84c   : > { %v4236_v47 = vpop.xlane.xlu1 %4235  ;;  %14906 = vpow2.f32 %v4279_v17 }
 0x84d   : > { %v18066_v3 = vpop.eup %14896  ;;  %v4289_v63 = vmul.f32 1.442695, %v4261_v14  ;;  %v4260_v38 = vsub.f32 %v17957_v1, %v4236_v47 }
 0x84e   : > { %v4233_v33 = vpop.xlane.xlu0 %4232  ;;  %v4312_v24 = vsel %vm2312_vm2, %v18066_v3, 0.0  ;;  %v18071_v5 = vpop.eup %14898 }
 0x84f   : > { %14908 = vpow2.f32 %v4289_v63  ;;  %v4259_v35 = vsub.f32 %v17951_v43, %v4233_v33  ;;  %4313 = vadd.xlane.f32.xlu1 %v4312_v24  ;;  %v4306_v31 = vsel %vm2312_vm2, %v18071_v5, 0.0  ;;  %v4287_v59 = vmul.f32 1.442695, %v4260_v38 }
 0x850   : > { %v4774_v11 = vpop.xlane.xlu1 %4773 }
 0x851   : > { %v18074_v45 = vpop.eup %14900  ;;  %v4285_v32 = vmul.f32 1.442695, %v4259_v35  ;;  %v4818_v24 = vsub.f32 %v17919_v18, %v4774_v11 }
 0x852   : > { %v4771_v15 = vpop.xlane.xlu0 %4770  ;;  %v4321_v37 = vsel %vm2312_vm2, %v18074_v45, 0.0  ;;  %v18081_v34 = vpop.eup %14902 }
 0x853   : > { %14910 = vpow2.f32 %v4285_v32  ;;  %4322 = vadd.xlane.f32.xlu0 %v4321_v37  ;;  %4307 = vadd.xlane.f32.xlu1 %v4306_v31  ;;  %v4817_v1 = vsub.f32 %v17913_v41, %v4771_v15  ;;  %v4324_v14 = vsel %vm2312_vm2, %v18081_v34, 0.0  ;;  %v4835_v18 = vmul.f32 1.442695, %v4818_v24 }
 0x854   : > { %v4248_v43 = vpop.xlane.xlu1 %4247  ;;  %14912 = vpow2.f32 %v4291_v9 }
 0x855   : > { %v18083_v17 = vpop.eup %14904  ;;  %14914 = vpow2.f32 %v4287_v59  ;;  %v4833_v41 = vmul.f32 1.442695, %v4817_v1  ;;  %v4264_v15 = vsub.f32 %v17977_v40, %v4248_v43 }
 0x856   : > { %v4245_v25 = vpop.xlane.xlu0 %4244  ;;  %v4315_v13 = vsel %vm2312_vm2, %v18083_v17, 0.0  ;;  %v18090_v47 = vpop.eup %14906 }
 0x857   : > { %v4263_v26 = vsub.f32 %v17971_v62, %v4245_v25  ;;  %4316 = vadd.xlane.f32.xlu0 %v4315_v13  ;;  %4325 = vadd.xlane.f32.xlu1 %v4324_v14  ;;  %v4318_v32 = vsel %vm2312_vm2, %v18090_v47, 0.0  ;;  %v4295_v14 = vmul.f32 1.442695, %v4264_v15 }
 0x858   : > { %v4786_v63 = vpop.xlane.xlu1 %4785 }
 0x859   : > { %v18093_v33 = vpop.eup %14908  ;;  %v4293_v35 = vmul.f32 1.442695, %v4263_v26  ;;  %v4822_v11 = vsub.f32 %v17939_v8, %v4786_v63 }
 0x85a   : > { %v4783_v9 = vpop.xlane.xlu0 %4782  ;;  %v4333_v38 = vsel %vm2312_vm2, %v18093_v33, 0.0 }
 0x85b   : > { %14916 = vpow2.f32 %v4293_v35  ;;  %v4821_v62 = vsub.f32 %v17933_v0, %v4783_v9  ;;  %4334 = vadd.xlane.f32.xlu0 %v4333_v38  ;;  %4319 = vadd.xlane.f32.xlu1 %v4318_v32  ;;  %v4843_v26 = vmul.f32 1.442695, %v4822_v11 }
 0x85c   : > { %v4780_v37 = vpop.xlane.xlu1 %4779  ;;  %14918 = vpow2.f32 %v4833_v41 }
 0x85d   : > { %v18102_v31 = vpop.eup %14910  ;;  %v4841_v59 = vmul.f32 1.442695, %v4821_v62  ;;  %v4820_v40 = vsub.f32 %v17997_v12, %v4780_v37 }
 0x85e   : > { %v4777_v1 = vpop.xlane.xlu0 %4776  ;;  %v4327_v25 = vsel %vm2312_vm2, %v18102_v31, 0.0  ;;  %v18107_v13 = vpop.eup %14912 }
 0x85f   : > { %14920 = vpow2.f32 %v4841_v59  ;;  %v4819_v0 = vsub.f32 %v17991_v20, %v4777_v1  ;;  %4328 = vadd.xlane.f32.xlu1 %v4327_v25  ;;  %v4336_v8 = vsel %vm2312_vm2, %v18107_v13, 0.0  ;;  %v18113_v63 = vpop.eup %14914  ;;  %v4839_v20 = vmul.f32 1.442695, %v4820_v40 }
 0x860   : > { %v4798_v43 = vpop.xlane.xlu1 %4797  ;;  %14922 = vpow2.f32 %v4835_v18  ;;  %v4330_v37 = vsel %vm2312_vm2, %v18113_v63, 0.0 }
 0x861   : > { %v4837_v24 = vmul.f32 1.442695, %v4819_v0  ;;  %v4826_v9 = vsub.f32 %v17959_v57, %v4798_v43 }
 0x862   : > { %v4795_v41 = vpop.xlane.xlu0 %4794 }
 0x863   : > { %14924 = vpow2.f32 %v4837_v24  ;;  %v4825_v35 = vsub.f32 %v17953_v48, %v4795_v41  ;;  %4337 = vadd.xlane.f32.xlu1 %v4336_v8  ;;  %v4851_v57 = vmul.f32 1.442695, %v4826_v9 }
 0x864   : > { %14926 = vpow2.f32 %v4295_v14  ;;  %v4792_v38 = vpop.xlane.xlu1 %4791 }
 0x865   : > { %v18117_v12 = vpop.eup %14916  ;;  %14928 = vpow2.f32 %v4843_v26  ;;  %v4849_v32 = vmul.f32 1.442695, %v4825_v35  ;;  %v4824_v1 = vsub.f32 %v18013_v16, %v4792_v38 }
 0x866   : > { %v4789_v62 = vpop.xlane.xlu0 %4788  ;;  %v4339_v15 = vsel %vm2312_vm2, %v18117_v12, 0.0  ;;  %v18123_v18 = vpop.eup %14918  ;;  %14930 = vpow2.f32 %v4839_v20 }
 0x867   : > { %v4823_v48 = vsub.f32 %v18009_v46, %v4789_v62  ;;  %4340 = vadd.xlane.f32.xlu0 %v4339_v15  ;;  %4331 = vadd.xlane.f32.xlu1 %v4330_v37  ;;  %14932 = vpow2.f32 %v4849_v32  ;;  %v4865_v40 = vsel %vm2312_vm2, %v18123_v18, 0.0  ;;  %v4847_v24 = vmul.f32 1.442695, %v4824_v1 }
 0x868   : > { %v4810_v11 = vpop.xlane.xlu1 %4809  ;;  %14934 = vpow2.f32 %v4851_v57 }
 0x869   : > { %v18126_v59 = vpop.eup %14920  ;;  %v4845_v25 = vmul.f32 1.442695, %v4823_v48  ;;  %v4830_v46 = vsub.f32 %v17979_v58, %v4810_v11 }
 0x86a   : > { %v4807_v0 = vpop.xlane.xlu0 %4806  ;;  %v4877_v14 = vsel %vm2312_vm2, %v18126_v59, 0.0  ;;  %v18133_v43 = vpop.eup %14922 }
 0x86b   : > { %4878 = vadd.xlane.f32.xlu0 %v4877_v14  ;;  %4866 = vadd.xlane.f32.xlu1 %v4865_v40  ;;  %14936 = vpow2.f32 %v4845_v25  ;;  %v4829_v16 = vsub.f32 %v17973_v39, %v4807_v0  ;;  %v4868_v9 = vsel %vm2312_vm2, %v18133_v43, 0.0  ;;  %v4859_v32 = vmul.f32 1.442695, %v4830_v46 }
 0x86c   : > { %v4804_v8 = vpop.xlane.xlu1 %4803  ;;  %14938 = vpow2.f32 %v4847_v24 }
 0x86d   : > { %v18136_v26 = vpop.eup %14924  ;;  %v4857_v62 = vmul.f32 1.442695, %v4829_v16  ;;  %v4828_v39 = vsub.f32 %v18027_v23, %v4804_v8 }
 0x86e   : > { %v18139_v41 = vpop.eup %14926  ;;  %v4801_v35 = vpop.xlane.xlu0 %4800  ;;  %v4871_v20 = vsel %vm2312_vm2, %v18136_v26, 0.0 }
 0x86f   : > { %v18145_v38 = vpop.eup %14928  ;;  %v4827_v58 = vsub.f32 %v18023_v49, %v4801_v35  ;;  %4872 = vadd.xlane.f32.xlu0 %v4871_v20  ;;  %4869 = vadd.xlane.f32.xlu1 %v4868_v9  ;;  %v4342_v11 = vsel %vm2312_vm2, %v18139_v41, 0.0  ;;  %v4855_v25 = vmul.f32 1.442695, %v4828_v39 }
 0x870   : > { %v18149_v37 = vpop.eup %14930  ;;  %v4880_v57 = vsel %vm2312_vm2, %v18145_v38, 0.0 }
 0x871   : > { %v4853_v15 = vmul.f32 1.442695, %v4827_v58  ;;  %v18155_v1 = vpop.eup %14932  ;;  %v4874_v40 = vsel %vm2312_vm2, %v18149_v37, 0.0 }
 0x872   : > { %v4813_v48 = vpop.xlane.xlu0 %4812  ;;  %v18157_v23 = vpop.eup %14934  ;;  %v4889_v14 = vsel %vm2312_vm2, %v18155_v1, 0.0 }
 0x873   : > { %14940 = vpow2.f32 %v4853_v15  ;;  %4881 = vadd.xlane.f32.xlu0 %v4880_v57  ;;  %4343 = vadd.xlane.f32.xlu1 %v4342_v11  ;;  %v4892_v16 = vsel %vm2312_vm2, %v18157_v23, 0.0 }
 0x874   : > { %14942 = vpow2.f32 %v4859_v32  ;;  %v4816_v49 = vpop.xlane.xlu1 %4815 }
 0x875   : > { %14944 = vpow2.f32 %v4857_v62  ;;  %v18163_v46 = vpop.eup %14936 }
 0x876   : > { %v4299_v0 = vpop.xlane.xlu0 %4298  ;;  %v4883_v8 = vsel %vm2312_vm2, %v18163_v46, 0.0  ;;  %v18169_v35 = vpop.eup %14938 }
 0x877   : > { %4890 = vadd.xlane.f32.xlu0 %v4889_v14  ;;  %4875 = vadd.xlane.f32.xlu1 %v4874_v40  ;;  %14946 = vrcp.f32 %v4299_v0  ;;  %v4886_v58 = vsel %vm2312_vm2, %v18169_v35, 0.0 }
 0x878   : > { %v4302_v24 = vpop.xlane.xlu1 %4301  ;;  %14948 = vpow2.f32 %v4855_v25 }
 0x879   : > { %14950 = vrcp.f32 %v4302_v24 }
 0x87b   : > { %4893 = vadd.xlane.f32.xlu0 %v4892_v16  ;;  %4884 = vadd.xlane.f32.xlu1 %v4883_v8  ;;  %v4832_v8 = vsub.f32 %v18039_v60, %v4816_v49 }
 0x87d   : > { %v18171_v20 = vpop.eup %14940 }
 0x87e   : > { %v18173_v9 = vpop.eup %14942  ;;  %v4895_v32 = vsel %vm2312_vm2, %v18171_v20, 0.0 }
 0x87f   : > { %v18179_v62 = vpop.eup %14944  ;;  %4887 = vadd.xlane.f32.xlu0 %v4886_v58  ;;  %4896 = vadd.xlane.f32.xlu1 %v4895_v32  ;;  %v4904_v57 = vsel %vm2312_vm2, %v18173_v9, 0.0  ;;  %v4863_v58 = vmul.f32 1.442695, %v4832_v8 }
 0x880   : > { %v4901_v15 = vsel %vm2312_vm2, %v18179_v62, 0.0 }
 0x881   : > { %v14947_v39 = vpop.eup %14946 }
 0x882   : > { %v18185_v11 = vpop.eup %14948  ;;  %v4361_v0 = vmul.f32 %v14947_v39, %v18037_v2  ;;  %v21717_v2 = vld [vmem:[#allocation36_spill] sm:$0xff] }
 0x883   : > { %4902 = vadd.xlane.f32.xlu0 %v4901_v15  ;;  %4905 = vadd.xlane.f32.xlu1 %v4904_v57  ;;  %v14951_v25 = vpop.eup %14950  ;;  %v4898_v40 = vsel %vm2312_vm2, %v18185_v11, 0.0 }
 0x884   : > { %v4362_v14 = vmul.f32 %v14951_v25, %v18043_v21  ;;  %v4831_v21 = vsub.f32 %v18033_v51, %v4813_v48 }
 0x886   : > { %v4377_v24 = vpack.c.bf16 %v4362_v14, %v4361_v0  ;;  %v4861_v16 = vmul.f32 1.442695, %v4831_v21 }
 0x887   : > { %4899 = vadd.xlane.f32.xlu0 %v4898_v40 }
 0x888   : > { %13622 = vmatmul.mubr.msk.bf16.vlgmr.msra.gmra.mrb[128].mxu0 %vm2312_vm2, %v4377_v24  ;;  %14952 = vpow2.f32 %v4861_v16 }
 0x889   : > { %13632 = vmatpush3.bf16.msra.mxu0 %v17893_v53  ;;  %13633 = vmatprep.mubr.msk.bf16.mxu0 %vm16076_vm0, %v21645_v28  ;;  %14954 = vpow2.f32 %v4863_v58  ;;  %v21718_v58 = vld [vmem:[#allocation37_spill] sm:$0xff] }
 0x88a   : > { %13643 = vmatprep.subr.bf16.mxu0 %v21645_v28 }
 0x88e   : > { %v4311_v51 = vpop.xlane.xlu0 %4310 }
 0x88f   : > { %14956 = vrcp.f32 %v4311_v51 }
 0x892   : > { %v18202_v53 = vpop.eup %14952 }
 0x893   : > { %v4907_v32 = vsel %vm2312_vm2, %v18202_v53, 0.0  ;;  %v18206_v39 = vpop.eup %14954 }
 0x894   : > { %5390 = vrot.lane.b32.xlu1 %v16997_v27, %s16078_s15  ;;  %v4910_v15 = vsel %vm2312_vm2, %v18206_v39, 0.0 }
 0x899   : > { %v14957_v0 = vpop.eup %14956 }
 0x89a   : > { %v4365_v24 = vmul.f32 %v14957_v0, %v18050_v36 }
 0x89d   : > { %5441 = vrot.lane.b32.xlu0 %v21717_v2, %s16078_s15 }
 0x8b8   : > { %4908 = vadd.xlane.f32.xlu1 %v4907_v32 }
 0x8bc   : > { %4911 = vadd.xlane.f32.xlu0 %v4910_v15 }
 0x8c9   : > { %5543 = vrot.lane.b32.xlu1 %v17043_v10, %s16078_s15 }
 0x8cd   : > { %5492 = vrot.lane.b32.xlu1 %v21647_v61, %s16078_s15 }
 0x8d1   : > { %5645 = vrot.lane.b32.xlu1 %v21648_v22, %s16078_s15 }
 0x8d2   : > { %5439 = vrot.lane.b32.xlu0 %v17009_v19, %s16078_s15 }
 0x8d5   : > { %5594 = vrot.lane.b32.xlu1 %v21650_v52, %s16078_s15 }
 0x8d6   : > { %5388 = vrot.lane.b32.xlu0 %v16995_v4, %s16078_s15 }
 0x8d8   : > { %v4305_v60 = vpop.xlane.xlu0 %4304 }
 0x8d9   : > { %5745 = vrot.lane.b32.xlu1 %v21653_v42, %s16078_s15 }
 0x8da   : > { %5541 = vrot.lane.b32.xlu0 %v17041_v29, %s16078_s15 }
 0x8dc   : > { %v4314_v48 = vpop.xlane.xlu1 %4313 }
 0x8dd   : > { %14958 = vrcp.f32 %v4314_v48  ;;  %5696 = vrot.lane.b32.xlu1 %v21655_v30, %s16078_s15  ;;  %v21719_v48 = vld [vmem:[#allocation89_spill] sm:$0xff] }
 0x8de   : > { %5490 = vrot.lane.b32.xlu0 %v17021_v54, %s16078_s15  ;;  %14960 = vrcp.f32 %v4305_v60 }
 0x8e0   : > { %v4323_v49 = vpop.xlane.xlu0 %4322  ;;  %v4308_v57 = vpop.xlane.xlu1 %4307 }
 0x8e1   : > { %5694 = vrot.lane.b32.xlu1 %v21659_v55, %s16078_s15  ;;  %14962 = vrcp.f32 %v4308_v57 }
 0x8e2   : > { %5643 = vrot.lane.b32.xlu0 %v17086_v6, %s16078_s15  ;;  %14964 = vrcp.f32 %v4323_v49  ;;  %v21720_v49 = vld [vmem:[#allocation47_spill] sm:$0xff] }
 0x8e4   : > { %v4326_v25 = vpop.xlane.xlu1 %4325  ;;  %v4317_v14 = vpop.xlane.xlu0 %4316 }
 0x8e5   : > { %5929 = vrot.lane.b32.xlu1 %v21661_v50, %s16078_s15  ;;  %14966 = vrcp.f32 %v4326_v25  ;;  %v21721_v25 = vld [vmem:[#allocation35_spill] sm:$0xff] }
 0x8e6   : > { %5592 = vrot.lane.b32.xlu0 %v17079_v44, %s16078_s15  ;;  %14968 = vrcp.f32 %v4317_v14 }
 0x8e7   : > { %v14959_v40 = vpop.eup %14958 }
 0x8e8   : > { %v4366_v21 = vmul.f32 %v14959_v40, %v18066_v3  ;;  %v4320_v16 = vpop.xlane.xlu1 %4319  ;;  %v14961_v8 = vpop.eup %14960 }
 0x8e9   : > { %6021 = vrot.lane.b32.xlu1 %v21664_v56, %s16078_s15  ;;  %14970 = vrcp.f32 %v4320_v16  ;;  %v4335_v51 = vpop.xlane.xlu0 %4334  ;;  %v4363_v36 = vmul.f32 %v14961_v8, %v18061_v7  ;;  %v21723_v16 = vld [vmem:[#allocation93_spill] sm:$0xff]  ;;  %v21724_v8 = vld [vmem:[#allocation39_spill] sm:$0xff] }
 0x8ea   : > { %5837 = vrot.lane.b32.xlu0 %v21718_v58, %s16078_s15  ;;  %v4379_v32 = vpack.c.bf16 %v4366_v21, %v4365_v24  ;;  %14972 = vrcp.f32 %v4335_v51  ;;  %v21722_v24 = vld [vmem:[#allocation53_spill] sm:$0xff] }
 0x8eb   : > { %v14963_v15 = vpop.eup %14962 }
 0x8ec   : > { %13634 = vmatmul.mubr.msk.bf16.vlgmr.msra.gmra.mrb[132].mxu0 %vm2312_vm2, %v4379_v32  ;;  %v4329_v60 = vpop.xlane.xlu1 %4328  ;;  %v4364_v3 = vmul.f32 %v14963_v15, %v18071_v5  ;;  %v14965_v57 = vpop.eup %14964 }
 0x8ed   : > { %13644 = vmatpush3.bf16.msra.mxu0 %v21719_v48  ;;  %6067 = vrot.lane.b32.xlu1 %v21720_v49, %s16078_s15  ;;  %v4369_v5 = vmul.f32 %v14965_v57, %v18074_v45  ;;  %v21726_v48 = vld [vmem:[#allocation90_spill] sm:$0xff] }
 0x8ee   : > { %5791 = vrot.lane.b32.xlu0 %v21721_v25, %s16078_s15  ;;  %13645 = vmatprep.mubr.msk.bf16.mxu0 %vm16076_vm0, %v21645_v28  ;;  %v4378_v0 = vpack.c.bf16 %v4364_v3, %v4363_v36  ;;  %v21725_v3 = vld [vmem:[#allocation57_spill] sm:$0xff]  ;;  %v21727_v57 = vld [vmem:[#allocation46_spill] sm:$0xff] }
 0x8ef   : > { %13655 = vmatprep.subr.bf16.mxu0 %v21645_v28  ;;  %v14967_v14 = vpop.eup %14966 }
 0x8f0   : > { %v4338_v7 = vpop.xlane.xlu1 %4337  ;;  %v4370_v40 = vmul.f32 %v14967_v14, %v18081_v34  ;;  %13628 = vmatmul.mubr.msk.bf16.vlgmr.msra.gmra.mrb[160].mxu1 %vm2312_vm2, %v4378_v0  ;;  %v14969_v21 = vpop.eup %14968  ;;  %v21728_v14 = vld [vmem:[#allocation61_spill] sm:$0xff] }
 0x8f1   : > { %14974 = vrcp.f32 %v4338_v7  ;;  %6391 = vrot.lane.b32.xlu1 %v21722_v24, %s16078_s15  ;;  %13638 = vmatpush3.bf16.msra.mxu1 %v21723_v16  ;;  %v4367_v51 = vmul.f32 %v14969_v21, %v18083_v17  ;;  %v21729_v7 = vld [vmem:[#allocation95_spill] sm:$0xff] }
 0x8f2   : > { %5883 = vrot.lane.b32.xlu0 %v21724_v8, %s16078_s15  ;;  %v4381_v32 = vpack.c.bf16 %v4370_v40, %v4369_v5  ;;  %13639 = vmatprep.mubr.msk.bf16.mxu1 %vm16076_vm0, %v21645_v28  ;;  %14976 = vrcp.f32 %v4329_v60  ;;  %v21730_v5 = vld [vmem:[#allocation49_spill] sm:$0xff] }
 0x8f3   : > { %13649 = vmatprep.subr.bf16.mxu1 %v21645_v28  ;;  %v14971_v45 = vpop.eup %14970 }
 0x8f4   : > { %v4341_v34 = vpop.xlane.xlu0 %4340  ;;  %v4332_v15 = vpop.xlane.xlu1 %4331  ;;  %v4368_v36 = vmul.f32 %v14971_v45, %v18090_v47  ;;  %13646 = vmatmul.mubr.msk.bf16.vlgmr.msra.gmra.mrb[136].mxu0 %vm2312_vm2, %v4381_v32 }
 0x8f5   : > { %6485 = vrot.lane.b32.xlu1 %v21725_v3, %s16078_s15  ;;  %13656 = vmatpush3.bf16.msra.mxu0 %v21726_v48  ;;  %14978 = vrcp.f32 %v4332_v15  ;;  %v14973_v47 = vpop.eup %14972  ;;  %v21731_v15 = vld [vmem:[#allocation48_spill] sm:$0xff] }
 0x8f6   : > { %5975 = vrot.lane.b32.xlu0 %v21727_v57, %s16078_s15  ;;  %v4380_v0 = vpack.c.bf16 %v4368_v36, %v4367_v51  ;;  %13657 = vmatprep.mubr.msk.bf16.mxu0 %vm16076_vm0, %v21645_v28  ;;  %v4373_v21 = vmul.f32 %v14973_v47, %v18093_v33  ;;  %v21732_v36 = vld [vmem:[#allocation51_spill] sm:$0xff]  ;;  %v21733_v47 = vld [vmem:[#allocation94_spill] sm:$0xff] }
 0x8f7   : > { %13667 = vmatprep.subr.bf16.mxu0 %v21645_v28 }
 0x8f8   : > { %v4879_v17 = vpop.xlane.xlu0 %4878  ;;  %v4867_v60 = vpop.xlane.xlu1 %4866  ;;  %13640 = vmatmul.mubr.msk.bf16.vlgmr.msra.gmra.mrb[164].mxu1 %vm2312_vm2, %v4380_v0 }
 0x8f9   : > { %6579 = vrot.lane.b32.xlu1 %v21728_v14, %s16078_s15  ;;  %13650 = vmatpush3.bf16.msra.mxu1 %v21729_v7  ;;  %14980 = vrcp.f32 %v4867_v60 }
 0x8fa   : > { %6297 = vrot.lane.b32.xlu0 %v21730_v5, %s16078_s15  ;;  %13651 = vmatprep.mubr.msk.bf16.mxu1 %vm16076_vm0, %v21645_v28 }
 0x8fb   : > { %v14975_v40 = vpop.eup %14974  ;;  %13661 = vmatprep.subr.bf16.mxu1 %v21645_v28 }
 0x8fc   : > { %v4374_v16 = vmul.f32 %v14975_v40, %v18107_v13  ;;  %v4873_v32 = vpop.xlane.xlu0 %4872  ;;  %v4870_v45 = vpop.xlane.xlu1 %4869  ;;  %v21734_v40 = vld [vmem:[#allocation52_spill] sm:$0xff] }
 0x8fd   : > { %6857 = vrot.lane.b32.xlu1 %v21731_v15, %s16078_s15  ;;  %v14977_v51 = vpop.eup %14976  ;;  %14982 = vrcp.f32 %v4870_v45  ;;  %v21735_v45 = vld [vmem:[#allocation55_spill] sm:$0xff] }
 0x8fe   : > { %6344 = vrot.lane.b32.xlu0 %v21732_v36, %s16078_s15  ;;  %v4383_v48 = vpack.c.bf16 %v4374_v16, %v4373_v21  ;;  %14984 = vrcp.f32 %v4341_v34  ;;  %v4371_v13 = vmul.f32 %v14977_v51, %v18102_v31  ;;  %v21737_v51 = vld [vmem:[#allocation97_spill] sm:$0xff] }
 0x8ff   : > { %v14979_v0 = vpop.eup %14978 }
 0x900   : > { %v4882_v7 = vpop.xlane.xlu0 %4881  ;;  %13658 = vmatmul.mubr.msk.bf16.vlgmr.msra.gmra.mrb[140].mxu0 %vm2312_vm2, %v4383_v48  ;;  %v4344_v33 = vpop.xlane.xlu1 %4343  ;;  %v4372_v60 = vmul.f32 %v14979_v0, %v18113_v63  ;;  %v21736_v63 = vld [vmem:[#allocation50_spill] sm:$0xff]  ;;  %v21738_v48 = vld [vmem:[#allocation59_spill] sm:$0xff] }
 0x901   : > { %14986 = vrcp.f32 %v4882_v7  ;;  %13668 = vmatpush3.bf16.msra.mxu0 %v21733_v47  ;;  %6951 = vrot.lane.b32.xlu1 %v21734_v40, %s16078_s15 }
 0x902   : > { %14988 = vrcp.f32 %v4344_v33  ;;  %6438 = vrot.lane.b32.xlu0 %v21735_v45, %s16078_s15  ;;  %13669 = vmatprep.mubr.msk.bf16.mxu0 %vm16076_vm0, %v21645_v28  ;;  %v4382_v34 = vpack.c.bf16 %v4372_v60, %v4371_v13  ;;  %v21739_v60 = vld [vmem:[#allocation60_spill] sm:$0xff] }
 0x903   : > { %13679 = vmatprep.subr.bf16.mxu0 %v21645_v28  ;;  %14990 = vrcp.f32 %v4879_v17  ;;  %v14981_v16 = vpop.eup %14980 }
 0x904   : > { %v4891_v31 = vpop.xlane.xlu0 %4890  ;;  %v4876_v21 = vpop.xlane.xlu1 %4875  ;;  %13652 = vmatmul.mubr.msk.bf16.vlgmr.msra.gmra.mrb[168].mxu1 %vm2312_vm2, %v4382_v34  ;;  %v4929_v33 = vmul.f32 %v14981_v16, %v18123_v18  ;;  %v21740_v34 = vld [vmem:[#allocation63_spill] sm:$0xff] }
 0x905   : > { %6904 = vrot.lane.b32.xlu1 %v21736_v63, %s16078_s15  ;;  %13662 = vmatpush3.bf16.msra.mxu1 %v21737_v51  ;;  %14992 = vrcp.f32 %v4876_v21 }
 0x906   : > { %6532 = vrot.lane.b32.xlu0 %v21738_v48, %s16078_s15  ;;  %13663 = vmatprep.mubr.msk.bf16.mxu1 %vm16076_vm0, %v21645_v28  ;;  %14994 = vrcp.f32 %v4873_v32 }
 0x907   : > { %13673 = vmatprep.subr.bf16.mxu1 %v21645_v28  ;;  %v14983_v17 = vpop.eup %14982 }
 0x908   : > { %v4894_v0 = vpop.xlane.xlu0 %4893  ;;  %v4885_v7 = vpop.xlane.xlu1 %4884  ;;  %v4930_v13 = vmul.f32 %v14983_v17, %v18133_v43  ;;  %v21741_v43 = vld [vmem:[#allocation54_spill] sm:$0xff]  ;;  %v21742_v17 = vld [vmem:[#allocation96_spill] sm:$0xff] }
 0x909   : > { %7139 = vrot.lane.b32.xlu1 %v21739_v60, %s16078_s15  ;;  %v14985_v47 = vpop.eup %14984  ;;  %14996 = vrcp.f32 %v4894_v0  ;;  %v21743_v0 = vld [vmem:[#allocation56_spill] sm:$0xff] }
 0x90a   : > { %6626 = vrot.lane.b32.xlu0 %v21740_v34, %s16078_s15  ;;  %v4945_v51 = vpack.c.bf16 %v4930_v13, %v4929_v33  ;;  %14998 = vrcp.f32 %v4891_v31  ;;  %v4375_v48 = vmul.f32 %v14985_v47, %v18117_v12 }
 0x90b   : > { %v14987_v21 = vpop.eup %14986 }
 0x90c   : > { %v14989_v40 = vpop.eup %14988  ;;  %v4888_v63 = vpop.xlane.xlu0 %4887  ;;  %13670 = vmatmul.mubr.msk.bf16.vlgmr.msra.gmra.mrb[144].mxu0 %vm2312_vm2, %v4945_v51  ;;  %v4934_v31 = vmul.f32 %v14987_v21, %v18145_v38  ;;  %v21745_v38 = vld [vmem:[#allocation98_spill] sm:$0xff] }
 0x90d   : > { %v4897_v32 = vpop.xlane.xlu1 %4896  ;;  %v4376_v18 = vmul.f32 %v14989_v40, %v18139_v41  ;;  %6998 = vrot.lane.b32.xlu1 %v21741_v43, %s16078_s15  ;;  %v14991_v16 = vpop.eup %14990  ;;  %15000 = vrcp.f32 %v4888_v63  ;;  %13680 = vmatpush3.bf16.msra.mxu0 %v21742_v17  ;;  %v21744_v63 = vld [vmem:[#allocation58_spill] sm:$0xff] }
 0x90e   : > { %7045 = vrot.lane.b32.xlu0 %v21743_v0, %s16078_s15  ;;  %13681 = vmatprep.mubr.msk.bf16.mxu0 %vm16076_vm0, %v21645_v28  ;;  %15002 = vrcp.f32 %v4885_v7  ;;  %v4933_v13 = vmul.f32 %v14991_v16, %v18126_v59  ;;  %v21747_v16 = vld [vmem:[#allocation32_spill] sm:$0xff] }
 0x90f   : > { %v4384_v33 = vpack.c.bf16 %v4376_v18, %v4375_v48  ;;  %13691 = vmatprep.subr.bf16.mxu0 %v21645_v28  ;;  %v14993_v12 = vpop.eup %14992  ;;  %v21746_v48 = vld [vmem:[#allocation33_spill] sm:$0xff] }
 0x910   : > { %v4903_v41 = vpop.xlane.xlu0 %4902  ;;  %v14995_v47 = vpop.eup %14994  ;;  %v4932_v7 = vmul.f32 %v14993_v12, %v18149_v37  ;;  %v4947_v21 = vpack.c.bf16 %v4934_v31, %v4933_v13  ;;  %v21749_v37 = vld [vmem:[#allocation62_spill] sm:$0xff]  ;;  %v21750_v13 = vld [vmem:[#allocation101_spill] sm:$0xff] }
 0x911   : > { %v4906_v40 = vpop.xlane.xlu1 %4905  ;;  %15004 = vrcp.f32 %v4903_v41  ;;  %13664 = vmatmul.mubr.msk.bf16.vlgmr.msra.gmra.mrb[172].mxu1 %vm2312_vm2, %v4384_v33  ;;  %7092 = vrot.lane.b32.xlu1 %v21744_v63, %s16078_s15  ;;  %v4931_v18 = vmul.f32 %v14995_v47, %v18136_v26  ;;  %v21748_v33 = vld [vmem:[#allocation100_spill] sm:$0xff] }
 0x912   : > { %13674 = vmatpush3.bf16.msra.mxu1 %v21745_v38  ;;  %15006 = vrcp.f32 %v4906_v40  ;;  %7235 = vrot.lane.b32.xlu0 %v21746_v48, %s16079_s3 }
 0x913   : > { %13675 = vmatprep.mubr.msk.bf16.mxu1 %vm16076_vm0, %v21645_v28  ;;  %13685 = vmatprep.subr.bf16.mxu1 %v21645_v28  ;;  %v14997_v59 = vpop.eup %14996  ;;  %v4946_v12 = vpack.c.bf16 %v4932_v7, %v4931_v18  ;;  %v21752_v18 = vld [vmem:[#allocation103_spill] sm:$0xff] }
 0x914   : > { %v4900_v51 = vpop.xlane.xlu0 %4899  ;;  %13682 = vmatmul.mubr.msk.bf16.vlgmr.msra.gmra.mrb[148].mxu0 %vm2312_vm2, %v4947_v21  ;;  %v14999_v17 = vpop.eup %14998  ;;  %v4938_v31 = vmul.f32 %v14997_v59, %v18157_v23 }
 0x915   : > { %7233 = vrot.lane.b32.xlu1 %v21747_v16, %s16079_s3  ;;  %15008 = vrcp.f32 %v4900_v51  ;;  %13692 = vmatpush3.bf16.msra.mxu0 %v21748_v33  ;;  %v4937_v41 = vmul.f32 %v14999_v17, %v18155_v1  ;;  %v21751_v1 = vld [vmem:[#allocation99_spill] sm:$0xff] }
 0x916   : > { %7186 = vrot.lane.b32.xlu0 %v21749_v37, %s16078_s15  ;;  %13693 = vmatprep.mubr.msk.bf16.mxu0 %vm16076_vm0, %v21645_v28  ;;  %15010 = vrcp.f32 %v4897_v32 }
 0x917   : > { %13703 = vmatprep.subr.bf16.mxu0 %v21645_v28  ;;  %v15001_v26 = vpop.eup %15000  ;;  %v4949_v38 = vpack.c.bf16 %v4938_v31, %v4937_v41 }
 0x918   : > { %v15003_v40 = vpop.eup %15002  ;;  %v4936_v23 = vmul.f32 %v15001_v26, %v18169_v35  ;;  %v5391_v26 = vpop.permute.xlu1 %5390 }
 0x919   : > { %13676 = vmatmul.mubr.msk.bf16.vlgmr.msra.gmra.mrb[176].mxu1 %vm2312_vm2, %v4946_v12  ;;  %v4935_v7 = vmul.f32 %v15003_v40, %v18163_v46  ;;  %v21755_v12 = vld [vmem:[#allocation105_spill] sm:$0xff] }
 0x91a   : > { %13686 = vmatpush3.bf16.msra.mxu1 %v21750_v13  ;;  %13687 = vmatprep.mubr.msk.bf16.mxu1 %vm16076_vm0, %v21645_v28 }
 0x91b   : > { %v15005_v47 = vpop.eup %15004  ;;  %13697 = vmatprep.subr.bf16.mxu1 %v21645_v28  ;;  %v4948_v59 = vpack.c.bf16 %v4936_v23, %v4935_v7 }
 0x91c   : > { %v15007_v48 = vpop.eup %15006  ;;  %13694 = vmatmul.mubr.msk.bf16.vlgmr.msra.gmra.mrb[152].mxu0 %vm2312_vm2, %v4949_v38  ;;  %v4941_v32 = vmul.f32 %v15005_v47, %v18179_v62 }
 0x91d   : > { %13704 = vmatpush3.bf16.msra.mxu0 %v21751_v1  ;;  %13705 = vmatprep.mubr.msk.bf16.mxu0 %vm16076_vm0, %v21645_v28  ;;  %v4942_v21 = vmul.f32 %v15007_v48, %v18173_v9  ;;  %v21753_v9 = vld [vmem:[#allocation102_spill] sm:$0xff] }
 0x91e   : > { %13715 = vmatprep.subr.bf16.mxu0 %v21645_v28  ;;  %v5345_v17 = vsel %vm1575_vm1, %v21753_v9, 0 }
 0x91f   : > { %v15009_v35 = vpop.eup %15008  ;;  %v4951_v16 = vpack.c.bf16 %v4942_v21, %v4941_v32 }
 0x920   : > { %v15011_v51 = vpop.eup %15010  ;;  %v4940_v46 = vmul.f32 %v15009_v35, %v18185_v11  ;;  %v21754_v11 = vld [vmem:[#allocation104_spill] sm:$0xff] }
 0x921   : > { %13688 = vmatmul.mubr.msk.bf16.vlgmr.msra.gmra.mrb[180].mxu1 %vm2312_vm2, %v4948_v59  ;;  %v4939_v62 = vmul.f32 %v15011_v51, %v18171_v20  ;;  %v5442_v20 = vpop.permute.xlu0 %5441 }
 0x922   : > { %13698 = vmatpush3.bf16.msra.mxu1 %v21752_v18  ;;  %13699 = vmatprep.mubr.msk.bf16.mxu1 %vm16076_vm0, %v21645_v28  ;;  %v5447_v31 = vsel %vm1575_vm1, %v5442_v20, 0 }
 0x923   : > { %13709 = vmatprep.subr.bf16.mxu1 %v21645_v28  ;;  %v4950_v33 = vpack.c.bf16 %v4940_v46, %v4939_v62 }
 0x924   : > { %13706 = vmatmul.mubr.msk.bf16.vlgmr.msra.gmra.mrb[156].mxu0 %vm2312_vm2, %v4951_v16  ;;  %v5396_v16 = vsel %vm1575_vm1, %v5391_v26, 0 }
 0x925   : > { %13717 = vmatprep.mubr.msk.bf16.mxu0 %vm16076_vm0, %v21645_v28 }
 0x926   : > { %13716 = vmatpush3.bf16.xpose.msra.mxu0 %v5345_v17 }
 0x927   : > { %13727 = vmatprep.subr.bf16.mxu0 %v21645_v28 }
 0x929   : > { %13700 = vmatmul.mubr.msk.bf16.vlgmr.msra.gmra.mrb[184].mxu1 %vm2312_vm2, %v4950_v33 }
 0x92a   : > { %13710 = vmatpush3.bf16.msra.mxu1 %v21754_v11  ;;  %13711 = vmatprep.mubr.msk.bf16.mxu1 %vm16076_vm0, %v21645_v28 }
 0x92b   : > { %13721 = vmatprep.subr.bf16.mxu1 %v21645_v28 }
 0x92d   : > { %13718 = vmatmul.mubr.msk.bf16.vlgmr.msra.gmra.mrb[160].mxu0 %vm1575_vm1, %v21755_v12 }
 0x92e   : > { %13728 = vmatpush3.bf16.xpose.msra.mxu0 %v5447_v31  ;;  %13729 = vmatprep.mubr.msk.bf16.mxu0 %vm16076_vm0, %v21645_v28 }
 0x92f   : > { %13739 = vmatprep.subr.bf16.mxu0 %v21645_v28 }
 0x945   : > { %v4909_v41 = vpop.xlane.xlu1 %4908 }
 0x946   : > { %15012 = vrcp.f32 %v4909_v41 }
 0x949   : > { %v4912_v40 = vpop.xlane.xlu0 %4911  ;;  %v5544_v13 = vpop.permute.xlu1 %5543 }
 0x94a   : > { %15014 = vrcp.f32 %v4912_v40  ;;  %v5549_v38 = vsel %vm1575_vm1, %v5544_v13, 0 }
 0x94d   : > { %v5440_v47 = vpop.permute.xlu0 %5439  ;;  %v5493_v23 = vpop.permute.xlu1 %5492 }
 0x94e   : > { %13730 = vmatmul.mubr.msk.bf16.vlgmr.msra.gmra.mrb[164].mxu0 %vm1575_vm1, %v5440_v47  ;;  %v5498_v41 = vsel %vm1575_vm1, %v5493_v23, 0 }
 0x94f   : > { %13740 = vmatpush3.bf16.xpose.msra.mxu0 %v5549_v38  ;;  %13741 = vmatprep.mubr.msk.bf16.mxu0 %vm16076_vm0, %v21645_v28 }
 0x950   : > { %13751 = vmatprep.subr.bf16.mxu0 %v21645_v28  ;;  %v15013_v1 = vpop.eup %15012 }
 0x951   : > { %v18396_v48 = vpop.permute.xlu0 %5388  ;;  %v5646_v7 = vpop.permute.xlu1 %5645  ;;  %v4943_v21 = vmul.f32 %v15013_v1, %v18202_v53 }
 0x952   : > { %v5651_v18 = vsel %vm1575_vm1, %v5646_v7, 0 }
 0x954   : > { %v15015_v32 = vpop.eup %15014 }
 0x955   : > { %v4944_v59 = vmul.f32 %v15015_v32, %v18206_v39  ;;  %v5542_v35 = vpop.permute.xlu0 %5541  ;;  %v5595_v51 = vpop.permute.xlu1 %5594 }
 0x956   : > { %13742 = vmatmul.mubr.msk.bf16.vlgmr.msra.gmra.mrb[168].mxu0 %vm1575_vm1, %v5542_v35  ;;  %v5600_v23 = vsel %vm1575_vm1, %v5595_v51, 0 }
 0x957   : > { %13752 = vmatpush3.bf16.xpose.msra.mxu0 %v5651_v18  ;;  %v4952_v46 = vpack.c.bf16 %v4944_v59, %v4943_v21  ;;  %13753 = vmatprep.mubr.msk.bf16.mxu0 %vm16076_vm0, %v21645_v28 }
 0x958   : > { %13763 = vmatprep.subr.bf16.mxu0 %v21645_v28 }
 0x959   : > { %v18406_v62 = vpop.permute.xlu0 %5490  ;;  %13712 = vmatmul.mubr.msk.bf16.vlgmr.msra.gmra.mrb[188].mxu1 %vm2312_vm2, %v4952_v46  ;;  %v5746_v53 = vpop.permute.xlu1 %5745 }
 0x95a   : > { %13722 = vmatpush3.bf16.xpose.msra.mxu1 %v5396_v16  ;;  %13723 = vmatprep.mubr.msk.bf16.mxu1 %vm16076_vm0, %v21645_v28  ;;  %v5748_v33 = vsel %vm1575_vm1, %v5746_v53, 0 }
 0x95b   : > { %13733 = vmatprep.subr.bf16.mxu1 %v21645_v28  ;;  %v18412_v39 = vpop.f32.mrb[128].mxu0 }
 0x95c   : > { %21756 = vst [vmem:[#allocation36_spill] sm:$0xff] %v18412_v39  ;;  %v13623_v9 = vpop.f32.mrb[129].mxu0 }
 0x95d   : > { %v5644_v17 = vpop.permute.xlu0 %5643  ;;  %v18415_v11 = vpop.f32.mrb[130].mxu0 }
 0x95e   : > { %21757 = vst [vmem:[#allocation89_spill] sm:$0xff] %v18415_v11  ;;  %13754 = vmatmul.mubr.msk.bf16.vlgmr.msra.gmra.mrb[172].mxu0 %vm1575_vm1, %v5644_v17  ;;  %v5697_v31 = vpop.permute.xlu1 %5696  ;;  %v13624_v26 = vpop.f32.mrb[131].mxu0 }
 0x95f   : > { %13764 = vmatpush3.bf16.xpose.msra.mxu0 %v5748_v33  ;;  %13765 = vmatprep.mubr.msk.bf16.mxu0 %vm16076_vm0, %v21645_v28  ;;  %v5702_v21 = vsel %vm1575_vm1, %v5697_v31, 0 }
 0x960   : > { %13775 = vmatprep.subr.bf16.mxu0 %v21645_v28 }
 0x961   : > { %v5593_v40 = vpop.permute.xlu0 %5592  ;;  %13724 = vmatmul.mubr.msk.bf16.vlgmr.msra.gmra.mrb[192].mxu1 %vm1575_vm1, %v18396_v48 }
 0x962   : > { %13734 = vmatpush3.bf16.xpose.msra.mxu1 %v5498_v41  ;;  %13735 = vmatprep.mubr.msk.bf16.mxu1 %vm16076_vm0, %v21645_v28  ;;  %v5695_v13 = vpop.permute.xlu1 %5694 }
 0x963   : > { %13745 = vmatprep.subr.bf16.mxu1 %v21645_v28 }
 0x965   : > { %v5838_v38 = vpop.permute.xlu0 %5837 }
 0x966   : > { %v5840_v7 = vsel %vm1575_vm1, %v5838_v38, 0  ;;  %13766 = vmatmul.mubr.msk.bf16.vlgmr.msra.gmra.mrb[176].mxu0 %vm1575_vm1, %v21755_v12  ;;  %v5930_v1 = vpop.permute.xlu1 %5929 }
 0x967   : > { %13776 = vmatpush3.bf16.xpose.msra.mxu0 %v5840_v7  ;;  %13777 = vmatprep.mubr.msk.bf16.mxu0 %vm16076_vm0, %v21645_v28  ;;  %v5932_v12 = vsel %vm1575_vm1, %v5930_v1, 0 }
 0x968   : > { %13787 = vmatprep.subr.bf16.mxu0 %v21645_v28 }
 0x969   : > { %13736 = vmatmul.mubr.msk.bf16.vlgmr.msra.gmra.mrb[196].mxu1 %vm1575_vm1, %v18406_v62  ;;  %v5792_v32 = vpop.permute.xlu0 %5791 }
 0x96a   : > { %13746 = vmatpush3.bf16.xpose.msra.mxu1 %v5600_v23  ;;  %13747 = vmatprep.mubr.msk.bf16.mxu1 %vm16076_vm0, %v21645_v28  ;;  %v6022_v51 = vpop.permute.xlu1 %6021  ;;  %v5794_v46 = vsel %vm1575_vm1, %v5792_v32, 0 }
 0x96b   : > { %13757 = vmatprep.subr.bf16.mxu1 %v21645_v28 }
 0x96d   : > { %v5884_v59 = vpop.permute.xlu0 %5883 }
 0x96e   : > { %13778 = vmatmul.mubr.msk.bf16.vlgmr.msra.gmra.mrb[180].mxu0 %vm1575_vm1, %v5440_v47  ;;  %v6024_v47 = vsel %vm1575_vm1, %v6022_v51, 0  ;;  %v6068_v9 = vpop.permute.xlu1 %6067 }
 0x96f   : > { %13788 = vmatpush3.bf16.xpose.msra.mxu0 %v5932_v12  ;;  %13789 = vmatprep.mubr.msk.bf16.mxu0 %vm16076_vm0, %v21645_v28 }
 0x970   : > { %13799 = vmatprep.subr.bf16.mxu0 %v21645_v28 }
 0x971   : > { %13748 = vmatmul.mubr.msk.bf16.vlgmr.msra.gmra.mrb[200].mxu1 %vm1575_vm1, %v5593_v40  ;;  %v5976_v18 = vpop.permute.xlu0 %5975 }
 0x972   : > { %13758 = vmatpush3.bf16.xpose.msra.mxu1 %v5702_v21  ;;  %13759 = vmatprep.mubr.msk.bf16.mxu1 %vm16076_vm0, %v21645_v28  ;;  %v5978_v53 = vsel %vm1575_vm1, %v5976_v18, 0 }
 0x973   : > { %13769 = vmatprep.subr.bf16.mxu1 %v21645_v28 }
 0x975   : > { %v6298_v16 = vpop.permute.xlu0 %6297 }
 0x976   : > { %13790 = vmatmul.mubr.msk.bf16.vlgmr.msra.gmra.mrb[184].mxu0 %vm1575_vm1, %v5542_v35  ;;  %v5886_v35 = vsel %vm1575_vm1, %v5884_v59, 0 }
 0x977   : > { %13800 = vmatpush3.bf16.xpose.msra.mxu0 %v6024_v47  ;;  %13801 = vmatprep.mubr.msk.bf16.mxu0 %vm16076_vm0, %v21645_v28 }
 0x978   : > { %13811 = vmatprep.subr.bf16.mxu0 %v21645_v28 }
 0x979   : > { %13760 = vmatmul.mubr.msk.bf16.vlgmr.msra.gmra.mrb[204].mxu1 %vm1575_vm1, %v5695_v13 }
 0x97a   : > { %13770 = vmatpush3.bf16.xpose.msra.mxu1 %v5794_v46  ;;  %13771 = vmatprep.mubr.msk.bf16.mxu1 %vm16076_vm0, %v21645_v28 }
 0x97b   : > { %13781 = vmatprep.subr.bf16.mxu1 %v21645_v28 }
 0x97e   : > { %13802 = vmatmul.mubr.msk.bf16.vlgmr.msra.gmra.mrb[188].mxu0 %vm1575_vm1, %v5644_v17  ;;  %v6345_v17 = vpop.permute.xlu0 %6344 }
 0x97f   : > { %13812 = vmatpush3.bf16.msra.mxu0 %v6298_v16  ;;  %13813 = vmatprep.mubr.msk.bf16.mxu0 %vm16076_vm0, %v21645_v28 }
 0x980   : > { %13823 = vmatprep.subr.bf16.mxu0 %v21645_v28 }
 0x981   : > { %13772 = vmatmul.mubr.msk.bf16.vlgmr.msra.gmra.mrb[208].mxu1 %vm1575_vm1, %v18396_v48  ;;  %v6070_v48 = vsel %vm1575_vm1, %v6068_v9, 0 }
 0x982   : > { %13782 = vmatpush3.bf16.xpose.msra.mxu1 %v5886_v35  ;;  %13783 = vmatprep.mubr.msk.bf16.mxu1 %vm16076_vm0, %v21645_v28 }
 0x983   : > { %13793 = vmatprep.subr.bf16.mxu1 %v21645_v28 }
 0x989   : > { %13784 = vmatmul.mubr.msk.bf16.vlgmr.msra.gmra.mrb[212].mxu1 %vm1575_vm1, %v18406_v62 }
 0x98a   : > { %13794 = vmatpush3.bf16.xpose.msra.mxu1 %v5978_v53  ;;  %13795 = vmatprep.mubr.msk.bf16.mxu1 %vm16076_vm0, %v21645_v28 }
 0x98b   : > { %13805 = vmatprep.subr.bf16.mxu1 %v21645_v28 }
 0x991   : > { %13796 = vmatmul.mubr.msk.bf16.vlgmr.msra.gmra.mrb[216].mxu1 %vm1575_vm1, %v5593_v40 }
 0x992   : > { %13806 = vmatpush3.bf16.xpose.msra.mxu1 %v6070_v48  ;;  %13807 = vmatprep.mubr.msk.bf16.mxu1 %vm16076_vm0, %v21645_v28 }
 0x993   : > { %13817 = vmatprep.subr.bf16.mxu1 %v21645_v28 }
 0x999   : > { %13808 = vmatmul.mubr.msk.bf16.vlgmr.msra.gmra.mrb[220].mxu1 %vm1575_vm1, %v5695_v13 }
 0x99a   : > { %13818 = vmatpush3.bf16.msra.mxu1 %v6345_v17  ;;  %13819 = vmatprep.mubr.msk.bf16.mxu1 %vm16076_vm0, %v21645_v28 }
 0x99b   : > { %13829 = vmatprep.subr.bf16.mxu1 %v21645_v28 }
 0x9bf   : > { %v18486_v62 = vpop.f32.mrb[132].mxu0 }
 0x9c0   : > { %21758 = vst [vmem:[#allocation35_spill] sm:$0xff] %v18486_v62  ;;  %v13635_v33 = vpop.f32.mrb[133].mxu0 }
 0x9c1   : > { %v18488_v31 = vpop.f32.mrb[134].mxu0 }
 0x9c2   : > { %21759 = vst [vmem:[#allocation93_spill] sm:$0xff] %v18488_v31  ;;  %v13636_v41 = vpop.f32.mrb[135].mxu0 }
 0x9c3   : > { %v18492_v40 = vpop.f32.mrb[160].mxu1 }
 0x9c4   : > { %21760 = vst [vmem:[#allocation39_spill] sm:$0xff] %v18492_v40  ;;  %v13629_v38 = vpop.f32.mrb[161].mxu1 }
 0x9c5   : > { %v18494_v7 = vpop.f32.mrb[162].mxu1 }
 0x9c6   : > { %21761 = vst [vmem:[#allocation90_spill] sm:$0xff] %v18494_v7  ;;  %v13630_v23 = vpop.f32.mrb[163].mxu1 }
 0x9c7   : > { %v18498_v1 = vpop.f32.mrb[136].mxu0 }
 0x9c8   : > { %21762 = vst [vmem:[#allocation95_spill] sm:$0xff] %v18498_v1  ;;  %v13647_v32 = vpop.f32.mrb[137].mxu0 }
 0x9c9   : > { %v18500_v12 = vpop.f32.mrb[138].mxu0 }
 0x9ca   : > { %21763 = vst [vmem:[#allocation94_spill] sm:$0xff] %v18500_v12  ;;  %v13648_v59 = vpop.f32.mrb[139].mxu0 }
 0x9cb   : > { %v18504_v51 = vpop.f32.mrb[164].mxu1 }
 0x9cc   : > { %21764 = vst [vmem:[#allocation97_spill] sm:$0xff] %v18504_v51  ;;  %v13641_v47 = vpop.f32.mrb[165].mxu1 }
 0x9cd   : > { %v18506_v18 = vpop.f32.mrb[166].mxu1 }
 0x9ce   : > { %21765 = vst [vmem:[#allocation96_spill] sm:$0xff] %v18506_v18  ;;  %v13642_v16 = vpop.f32.mrb[167].mxu1 }
 0x9d3   : > { %v18510_v35 = vpop.f32.mrb[140].mxu0 }
 0x9d4   : > { %21766 = vst [vmem:[#allocation98_spill] sm:$0xff] %v18510_v35  ;;  %v13659_v53 = vpop.f32.mrb[141].mxu0 }
 0x9d5   : > { %v18512_v9 = vpop.f32.mrb[142].mxu0 }
 0x9d6   : > { %21767 = vst [vmem:[#allocation33_spill] sm:$0xff] %v18512_v9  ;;  %v13660_v17 = vpop.f32.mrb[143].mxu0 }
 0x9d7   : > { %v18516_v33 = vpop.f32.mrb[168].mxu1 }
 0x9d8   : > { %21768 = vst [vmem:[#allocation32_spill] sm:$0xff] %v18516_v33  ;;  %v13653_v41 = vpop.f32.mrb[169].mxu1 }
 0x9d9   : > { %v18518_v38 = vpop.f32.mrb[170].mxu1 }
 0x9da   : > { %21769 = vst [vmem:[#allocation100_spill] sm:$0xff] %v18518_v38  ;;  %v13654_v32 = vpop.f32.mrb[171].mxu1 }
 0x9df   : > { %v18522_v59 = vpop.f32.mrb[144].mxu0 }
 0x9e0   : > { %21770 = vst [vmem:[#allocation101_spill] sm:$0xff] %v18522_v59  ;;  %v13671_v47 = vpop.f32.mrb[145].mxu0 }
 0x9e1   : > { %v18524_v16 = vpop.f32.mrb[146].mxu0 }
 0x9e2   : > { %21771 = vst [vmem:[#allocation99_spill] sm:$0xff] %v18524_v16  ;;  %v13672_v21 = vpop.f32.mrb[147].mxu0 }
 0x9e4   : > { %v18528_v48 = vpop.f32.mrb[172].mxu1 }
 0x9e5   : > { %21772 = vst [vmem:[#allocation103_spill] sm:$0xff] %v18528_v48  ;;  %v13665_v17 = vpop.f32.mrb[173].mxu1 }
 0x9e6   : > { %v18530_v46 = vpop.f32.mrb[174].mxu1 }
 0x9e7   : > { %21773 = vst [vmem:[#allocation102_spill] sm:$0xff] %v18530_v46  ;;  %v13666_v26 = vpop.f32.mrb[175].mxu1  ;;  %v18534_v23 = vpop.f32.mrb[148].mxu0 }
 0x9e8   : > { %21774 = vst [vmem:[#allocation104_spill] sm:$0xff] %v18534_v23  ;;  %v13683_v32 = vpop.f32.mrb[149].mxu0 }
 0x9e9   : > { %v18536_v13 = vpop.f32.mrb[150].mxu0 }
 0x9ea   : > { %21775 = vst [vmem:[#allocation105_spill] sm:$0xff] %v18536_v13  ;;  %v13684_v20 = vpop.f32.mrb[151].mxu0 }
 0x9ec   : > { %v18540_v53 = vpop.f32.mrb[176].mxu1 }
 0x9ed   : > { %21776 = vst [vmem:[#allocation106_spill] sm:$0xff] %v18540_v53  ;;  %v13677_v21 = vpop.f32.mrb[177].mxu1 }
 0x9ee   : > { %v18542_v35 = vpop.f32.mrb[178].mxu1 }
 0x9ef   : > { %21777 = vst [vmem:[#allocation107_spill] sm:$0xff] %v18542_v35  ;;  %v13678_v9 = vpop.f32.mrb[179].mxu1  ;;  %v18546_v41 = vpop.f32.mrb[152].mxu0 }
 0x9f0   : > { %21778 = vst [vmem:[#allocation108_spill] sm:$0xff] %v18546_v41  ;;  %v13695_v26 = vpop.f32.mrb[153].mxu0 }
 0x9f1   : > { %v18548_v48 = vpop.f32.mrb[154].mxu0 }
 0x9f2   : > { %21779 = vst [vmem:[#allocation109_spill] sm:$0xff] %v18548_v48  ;;  %v13696_v46 = vpop.f32.mrb[155].mxu0 }
 0x9f4   : > { %v18552_v47 = vpop.f32.mrb[180].mxu1 }
 0x9f5   : > { %21780 = vst [vmem:[#allocation110_spill] sm:$0xff] %v18552_v47  ;;  %v13689_v20 = vpop.f32.mrb[181].mxu1 }
 0x9f6   : > { %v18554_v33 = vpop.f32.mrb[182].mxu1 }
 0x9f7   : > { %21781 = vst [vmem:[#allocation111_spill] sm:$0xff] %v18554_v33  ;;  %v13690_v38 = vpop.f32.mrb[183].mxu1  ;;  %v18558_v17 = vpop.f32.mrb[156].mxu0 }
 0x9f8   : > { %21782 = vst [vmem:[#allocation112_spill] sm:$0xff] %v18558_v17  ;;  %v13707_v9 = vpop.f32.mrb[157].mxu0 }
 0x9f9   : > { %v18560_v1 = vpop.f32.mrb[158].mxu0 }
 0x9fa   : > { %21783 = vst [vmem:[#allocation113_spill] sm:$0xff] %v18560_v1  ;;  %v13708_v12 = vpop.f32.mrb[159].mxu0 }
 0x9fc   : > { %v18564_v32 = vpop.f32.mrb[184].mxu1 }
 0x9fd   : > { %21784 = vst [vmem:[#allocation114_spill] sm:$0xff] %v18564_v32  ;;  %v13701_v46 = vpop.f32.mrb[185].mxu1 }
 0x9fe   : > { %v18566_v41 = vpop.f32.mrb[186].mxu1 }
 0x9ff   : > { %21785 = vst [vmem:[#allocation115_spill] sm:$0xff] %v18566_v41  ;;  %v13702_v48 = vpop.f32.mrb[187].mxu1 }
 0xa00   : > { %v18570_v21 = vpop.f32.mrb[160].mxu0 }
 0xa01   : > { %v13719_v38 = vpop.f32.mrb[161].mxu0  ;;  %v6113_v9 = vsel %vm2312_vm2, %v18570_v21, -inf }
 0xa02   : > { %6114 = vmax.xlane.f32.xlu0 %v6113_v9  ;;  %v18574_v47 = vpop.f32.mrb[162].mxu0 }
 0xa03   : > { %v13720_v26 = vpop.f32.mrb[163].mxu0  ;;  %v6116_v12 = vsel %vm2312_vm2, %v18574_v47, -inf }
 0xa04   : > { %6117 = vmax.xlane.f32.xlu1 %v6116_v12 }
 0xa21   : > { %v18578_v46 = vpop.f32.mrb[164].mxu0 }
 0xa22   : > { %v13731_v17 = vpop.f32.mrb[165].mxu0  ;;  %v6125_v48 = vsel %vm2312_vm2, %v18578_v46, -inf }
 0xa23   : > { %6126 = vmax.xlane.f32.xlu0 %v6125_v48  ;;  %v18582_v20 = vpop.f32.mrb[166].mxu0 }
 0xa24   : > { %v13732_v38 = vpop.f32.mrb[167].mxu0 }
 0xa29   : > { %v18584_v1 = vpop.f32.mrb[168].mxu0 }
 0xa2a   : > { %v13743_v9 = vpop.f32.mrb[169].mxu0 }
 0xa2b   : > { %v18586_v32 = vpop.f32.mrb[170].mxu0 }
 0xa2c   : > { %v18588_v26 = vpop.f32.mrb[188].mxu1  ;;  %v13744_v41 = vpop.f32.mrb[171].mxu0 }
 0xa2d   : > { %21786 = vst [vmem:[#allocation116_spill] sm:$0xff] %v18588_v26  ;;  %v13713_v33 = vpop.f32.mrb[189].mxu1 }
 0xa2e   : > { %v18590_v12 = vpop.f32.mrb[190].mxu1 }
 0xa2f   : > { %21787 = vst [vmem:[#allocation117_spill] sm:$0xff] %v18590_v12  ;;  %v13714_v51 = vpop.f32.mrb[191].mxu1 }
 0xa31   : > { %v18594_v18 = vpop.f32.mrb[172].mxu0 }
 0xa32   : > { %v13755_v48 = vpop.f32.mrb[173].mxu0 }
 0xa33   : > { %v18596_v23 = vpop.f32.mrb[174].mxu0  ;;  %v6128_v48 = vsel %vm2312_vm2, %v18582_v20, -inf }
 0xa34   : > { %v18598_v38 = vpop.f32.mrb[192].mxu1  ;;  %v13756_v9 = vpop.f32.mrb[175].mxu0 }
 0xa35   : > { %v13725_v13 = vpop.f32.mrb[193].mxu1  ;;  %v6119_v62 = vsel %vm2312_vm2, %v18598_v38, -inf }
 0xa36   : > { %6120 = vmax.xlane.f32.xlu0 %v6119_v62  ;;  %v18602_v33 = vpop.f32.mrb[194].mxu1  ;;  %v6140_v13 = vsel %vm2312_vm2, %v18586_v32, -inf }
 0xa37   : > { %v13726_v41 = vpop.f32.mrb[195].mxu1  ;;  %v6122_v17 = vsel %vm2312_vm2, %v18602_v33, -inf }
 0xa38   : > { %6123 = vmax.xlane.f32.xlu1 %v6122_v17  ;;  %v6137_v17 = vsel %vm2312_vm2, %v18584_v1, -inf }
 0xa39   : > { %v18606_v51 = vpop.f32.mrb[176].mxu0 }
 0xa3a   : > { %v13767_v26 = vpop.f32.mrb[177].mxu0  ;;  %6129 = vmax.xlane.f32.xlu0 %v6128_v48 }
 0xa3b   : > { %v18610_v9 = vpop.f32.mrb[178].mxu0 }
 0xa3c   : > { %v13768_v62 = vpop.f32.mrb[179].mxu0  ;;  %6141 = vmax.xlane.f32.xlu1 %v6140_v13  ;;  %v18614_v12 = vpop.f32.mrb[196].mxu1 }
 0xa3d   : > { %v13737_v41 = vpop.f32.mrb[197].mxu1  ;;  %v6131_v62 = vsel %vm2312_vm2, %v18614_v12, -inf }
 0xa3e   : > { %6138 = vmax.xlane.f32.xlu0 %v6137_v17  ;;  %v18618_v31 = vpop.f32.mrb[198].mxu1  ;;  %v6152_v41 = vsel %vm2312_vm2, %v18596_v23, -inf }
 0xa3f   : > { %v13738_v53 = vpop.f32.mrb[199].mxu1  ;;  %v6134_v26 = vsel %vm2312_vm2, %v18618_v31, -inf }
 0xa40   : > { %6135 = vmax.xlane.f32.xlu1 %v6134_v26  ;;  %v6149_v26 = vsel %vm2312_vm2, %v18594_v18, -inf }
 0xa41   : > { %v18622_v48 = vpop.f32.mrb[180].mxu0 }
 0xa42   : > { %v13779_v13 = vpop.f32.mrb[181].mxu0  ;;  %6132 = vmax.xlane.f32.xlu0 %v6131_v62 }
 0xa43   : > { %v18626_v35 = vpop.f32.mrb[182].mxu0 }
 0xa44   : > { %v13780_v17 = vpop.f32.mrb[183].mxu0  ;;  %6153 = vmax.xlane.f32.xlu1 %v6152_v41  ;;  %v18630_v40 = vpop.f32.mrb[200].mxu1 }
 0xa45   : > { %v13749_v53 = vpop.f32.mrb[201].mxu1  ;;  %v6143_v17 = vsel %vm2312_vm2, %v18630_v40, -inf }
 0xa46   : > { %6150 = vmax.xlane.f32.xlu0 %v6149_v26  ;;  %v18634_v7 = vpop.f32.mrb[202].mxu1  ;;  %v6676_v53 = vsel %vm2312_vm2, %v18610_v9, -inf }
 0xa47   : > { %v13750_v39 = vpop.f32.mrb[203].mxu1  ;;  %v6146_v62 = vsel %vm2312_vm2, %v18634_v7, -inf }
 0xa48   : > { %6147 = vmax.xlane.f32.xlu1 %v6146_v62  ;;  %v6673_v62 = vsel %vm2312_vm2, %v18606_v51, -inf }
 0xa49   : > { %v18638_v13 = vpop.f32.mrb[184].mxu0 }
 0xa4a   : > { %v13791_v41 = vpop.f32.mrb[185].mxu0  ;;  %6144 = vmax.xlane.f32.xlu0 %v6143_v17 }
 0xa4b   : > { %v18642_v11 = vpop.f32.mrb[186].mxu0 }
 0xa4c   : > { %v13792_v26 = vpop.f32.mrb[187].mxu0  ;;  %6677 = vmax.xlane.f32.xlu1 %v6676_v53  ;;  %v18646_v37 = vpop.f32.mrb[204].mxu1 }
 0xa4d   : > { %v13761_v39 = vpop.f32.mrb[205].mxu1  ;;  %v6155_v26 = vsel %vm2312_vm2, %v18646_v37, -inf }
 0xa4e   : > { %6674 = vmax.xlane.f32.xlu0 %v6673_v62  ;;  %v18650_v60 = vpop.f32.mrb[206].mxu1  ;;  %v6688_v39 = vsel %vm2312_vm2, %v18626_v35, -inf }
 0xa4f   : > { %v13762_v59 = vpop.f32.mrb[207].mxu1  ;;  %v6158_v17 = vsel %vm2312_vm2, %v18650_v60, -inf }
 0xa50   : > { %6159 = vmax.xlane.f32.xlu1 %v6158_v17  ;;  %v6685_v17 = vsel %vm2312_vm2, %v18622_v48, -inf }
 0xa51   : > { %v18654_v41 = vpop.f32.mrb[188].mxu0 }
 0xa52   : > { %v13803_v53 = vpop.f32.mrb[189].mxu0  ;;  %6156 = vmax.xlane.f32.xlu0 %v6155_v26 }
 0xa53   : > { %v18658_v16 = vpop.f32.mrb[190].mxu0  ;;  %v18670_v53 = vpop.permute.xlu1 %6391 }
 0xa54   : > { %v13804_v62 = vpop.f32.mrb[191].mxu0  ;;  %6689 = vmax.xlane.f32.xlu1 %v6688_v39  ;;  %v18662_v43 = vpop.f32.mrb[208].mxu1  ;;  %v6700_v39 = vsel %vm2312_vm2, %v18642_v11, -inf }
 0xa55   : > { %v13773_v59 = vpop.f32.mrb[209].mxu1  ;;  %v6679_v62 = vsel %vm2312_vm2, %v18662_v43, -inf }
 0xa56   : > { %6686 = vmax.xlane.f32.xlu0 %v6685_v17  ;;  %v18666_v63 = vpop.f32.mrb[210].mxu1 }
 0xa57   : > { %v13774_v0 = vpop.f32.mrb[211].mxu1  ;;  %v6682_v26 = vsel %vm2312_vm2, %v18666_v63, -inf  ;;  %v18680_v34 = vpop.permute.xlu1 %6485 }
 0xa58   : > { %6683 = vmax.xlane.f32.xlu1 %v6682_v26  ;;  %v6697_v0 = vsel %vm2312_vm2, %v18638_v13, -inf  ;;  %21788 = vst [vmem:[#allocation118_spill] sm:$0xff] %v18680_v34 }
 0xa5a   : > { %6680 = vmax.xlane.f32.xlu0 %v6679_v62 }
 0xa5c   : > { %6701 = vmax.xlane.f32.xlu1 %v6700_v39  ;;  %v18676_v59 = vpop.f32.mrb[212].mxu1  ;;  %v6712_v39 = vsel %vm2312_vm2, %v18658_v16, -inf }
 0xa5d   : > { %v13785_v17 = vpop.f32.mrb[213].mxu1  ;;  %v6691_v62 = vsel %vm2312_vm2, %v18676_v59, -inf }
 0xa5e   : > { %6698 = vmax.xlane.f32.xlu0 %v6697_v0  ;;  %v18682_v45 = vpop.f32.mrb[214].mxu1  ;;  %v18690_v17 = vpop.permute.xlu1 %6579 }
 0xa5f   : > { %v13786_v26 = vpop.f32.mrb[215].mxu1  ;;  %v6694_v36 = vsel %vm2312_vm2, %v18682_v45, -inf  ;;  %21789 = vst [vmem:[#allocation119_spill] sm:$0xff] %v18690_v17 }
 0xa60   : > { %6695 = vmax.xlane.f32.xlu1 %v6694_v36  ;;  %v6709_v26 = vsel %vm2312_vm2, %v18654_v41, -inf }
 0xa62   : > { %6692 = vmax.xlane.f32.xlu0 %v6691_v62  ;;  %v18702_v56 = vpop.permute.xlu1 %6857 }
 0xa63   : > { %21790 = vst [vmem:[#allocation120_spill] sm:$0xff] %v18702_v56 }
 0xa64   : > { %6713 = vmax.xlane.f32.xlu1 %v6712_v39  ;;  %v18692_v15 = vpop.f32.mrb[216].mxu1 }
 0xa65   : > { %v13797_v0 = vpop.f32.mrb[217].mxu1  ;;  %v6703_v62 = vsel %vm2312_vm2, %v18692_v15, -inf }
 0xa66   : > { %6710 = vmax.xlane.f32.xlu0 %v6709_v26  ;;  %v18696_v5 = vpop.f32.mrb[218].mxu1  ;;  %v18708_v26 = vpop.permute.xlu0 %6438 }
 0xa67   : > { %v13798_v36 = vpop.f32.mrb[219].mxu1  ;;  %v6706_v14 = vsel %vm2312_vm2, %v18696_v5, -inf  ;;  %21791 = vst [vmem:[#allocation121_spill] sm:$0xff] %v18708_v26  ;;  %v18714_v50 = vpop.permute.xlu1 %6951 }
 0xa68   : > { %6707 = vmax.xlane.f32.xlu1 %v6706_v14  ;;  %21792 = vst [vmem:[#allocation122_spill] sm:$0xff] %v18714_v50 }
 0xa6a   : > { %6704 = vmax.xlane.f32.xlu0 %v6703_v62  ;;  %v18716_v56 = vpop.permute.xlu0 %6532 }
 0xa6b   : > { %21793 = vst [vmem:[#allocation123_spill] sm:$0xff] %v18716_v56  ;;  %v18718_v62 = vpop.permute.xlu1 %6904 }
 0xa6c   : > { %v18704_v39 = vpop.f32.mrb[220].mxu1  ;;  %21794 = vst [vmem:[#allocation124_spill] sm:$0xff] %v18718_v62 }
 0xa6d   : > { %v13809_v0 = vpop.f32.mrb[221].mxu1  ;;  %v6715_v17 = vsel %vm2312_vm2, %v18704_v39, -inf }
 0xa6e   : > { %6716 = vmax.xlane.f32.xlu0 %v6715_v17  ;;  %v18710_v36 = vpop.f32.mrb[222].mxu1  ;;  %v18720_v0 = vpop.permute.xlu0 %6626 }
 0xa6f   : > { %v13810_v3 = vpop.f32.mrb[223].mxu1  ;;  %v6718_v14 = vsel %vm2312_vm2, %v18710_v36, -inf  ;;  %21795 = vst [vmem:[#allocation125_spill] sm:$0xff] %v18720_v0  ;;  %v18722_v24 = vpop.permute.xlu1 %7139 }
 0xa70   : > { %6719 = vmax.xlane.f32.xlu1 %v6718_v14  ;;  %21796 = vst [vmem:[#allocation126_spill] sm:$0xff] %v18722_v24 }
 0xa72   : > { %v18724_v58 = vpop.permute.xlu0 %7045 }
 0xa73   : > { %21797 = vst [vmem:[#allocation127_spill] sm:$0xff] %v18724_v58  ;;  %v18726_v17 = vpop.permute.xlu1 %6998 }
 0xa74   : > { %21798 = vst [vmem:[#allocation128_spill] sm:$0xff] %v18726_v17 }
 0xa76   : > { %v18728_v26 = vpop.permute.xlu0 %7235 }
 0xa77   : > { %21799 = vst [vmem:[#allocation129_spill] sm:$0xff] %v18728_v26  ;;  %v18730_v3 = vpop.permute.xlu1 %7092 }
 0xa78   : > { %21800 = vst [vmem:[#allocation130_spill] sm:$0xff] %v18730_v3 }
 0xa7a   : > { %v18732_v49 = vpop.permute.xlu0 %7186 }
 0xa7b   : > { %21801 = vst [vmem:[#allocation131_spill] sm:$0xff] %v18732_v49  ;;  %v18734_v50 = vpop.permute.xlu1 %7233 }
 0xa7c   : > { %21802 = vst [vmem:[#allocation132_spill] sm:$0xff] %v18734_v50 }
 0xa8f   : > { %v6115_v14 = vpop.xlane.xlu0 %6114 }
 0xa90   : > { %v6161_v56 = vsub.f32 %v18570_v21, %v6115_v14 }
 0xa91   : > { %v6118_v62 = vpop.xlane.xlu1 %6117 }
 0xa92   : > { %v6177_v34 = vmul.f32 1.442695, %v6161_v56  ;;  %v6162_v0 = vsub.f32 %v18574_v47, %v6118_v62 }
 0xa94   : > { %15016 = vpow2.f32 %v6177_v34  ;;  %v6179_v24 = vmul.f32 1.442695, %v6162_v0 }
 0xa96   : > { %15018 = vpow2.f32 %v6179_v24 }
 0xa9e   : > { %v18738_v58 = vpop.eup %15016 }
 0xa9f   : > { %v6209_v26 = vsel %vm2312_vm2, %v18738_v58, 0.0 }
 0xaa0   : > { %v18742_v3 = vpop.eup %15018  ;;  %6210 = vadd.xlane.f32.xlu0 %v6209_v26 }
 0xaa1   : > { %v6212_v50 = vsel %vm2312_vm2, %v18742_v3, 0.0 }
 0xaa2   : > { %6213 = vadd.xlane.f32.xlu1 %v6212_v50 }
 0xab0   : > { %v6127_v21 = vpop.xlane.xlu0 %6126 }
 0xab1   : > { %v6165_v56 = vsub.f32 %v18578_v46, %v6127_v21 }
 0xab3   : > { %v6185_v14 = vmul.f32 1.442695, %v6165_v56 }
 0xab5   : > { %15020 = vpow2.f32 %v6185_v14 }
 0xabf   : > { %v18747_v34 = vpop.eup %15020 }
 0xac0   : > { %v6221_v24 = vsel %vm2312_vm2, %v18747_v34, 0.0 }
 0xac1   : > { %6222 = vadd.xlane.f32.xlu0 %v6221_v24 }
 0xac3   : > { %v6121_v47 = vpop.xlane.xlu0 %6120 }
 0xac4   : > { %v6163_v62 = vsub.f32 %v18598_v38, %v6121_v47 }
 0xac5   : > { %v6124_v0 = vpop.xlane.xlu1 %6123 }
 0xac6   : > { %v6181_v26 = vmul.f32 1.442695, %v6163_v62  ;;  %v6164_v49 = vsub.f32 %v18602_v33, %v6124_v0 }
 0xac7   : > { %v6130_v17 = vpop.xlane.xlu0 %6129 }
 0xac8   : > { %15022 = vpow2.f32 %v6181_v26  ;;  %v6166_v50 = vsub.f32 %v18582_v20, %v6130_v17  ;;  %v6183_v21 = vmul.f32 1.442695, %v6164_v49 }
 0xac9   : > { %v6142_v46 = vpop.xlane.xlu1 %6141 }
 0xaca   : > { %v6187_v56 = vmul.f32 1.442695, %v6166_v50  ;;  %v6170_v14 = vsub.f32 %v18586_v32, %v6142_v46 }
 0xacb   : > { %v6139_v55 = vpop.xlane.xlu0 %6138 }
 0xacc   : > { %15024 = vpow2.f32 %v6187_v56  ;;  %v6169_v24 = vsub.f32 %v18584_v1, %v6139_v55  ;;  %v6195_v38 = vmul.f32 1.442695, %v6170_v14 }
 0xacd   : > { %v6136_v57 = vpop.xlane.xlu1 %6135  ;;  %15026 = vpow2.f32 %v6183_v21 }
 0xace   : > { %v6193_v47 = vmul.f32 1.442695, %v6169_v24  ;;  %v6168_v62 = vsub.f32 %v18618_v31, %v6136_v57 }
 0xacf   : > { %v6133_v33 = vpop.xlane.xlu0 %6132 }
 0xad0   : > { %15028 = vpow2.f32 %v6193_v47  ;;  %v6167_v0 = vsub.f32 %v18614_v12, %v6133_v33  ;;  %v6191_v49 = vmul.f32 1.442695, %v6168_v62 }
 0xad1   : > { %v6154_v20 = vpop.xlane.xlu1 %6153  ;;  %15030 = vpow2.f32 %v6195_v38 }
 0xad2   : > { %v18758_v17 = vpop.eup %15022  ;;  %v6189_v32 = vmul.f32 1.442695, %v6167_v0  ;;  %v6174_v31 = vsub.f32 %v18596_v23, %v6154_v20 }
 0xad3   : > { %v6151_v26 = vpop.xlane.xlu0 %6150  ;;  %v6215_v55 = vsel %vm2312_vm2, %v18758_v17, 0.0 }
 0xad4   : > { %15032 = vpow2.f32 %v6189_v32  ;;  %v6173_v1 = vsub.f32 %v18594_v18, %v6151_v26  ;;  %6216 = vadd.xlane.f32.xlu0 %v6215_v55  ;;  %v6203_v38 = vmul.f32 1.442695, %v6174_v31 }
 0xad5   : > { %v6148_v50 = vpop.xlane.xlu1 %6147  ;;  %15034 = vpow2.f32 %v6191_v49 }
 0xad6   : > { %v18763_v57 = vpop.eup %15024  ;;  %v6201_v12 = vmul.f32 1.442695, %v6173_v1  ;;  %v6172_v47 = vsub.f32 %v18634_v7, %v6148_v50 }
 0xad7   : > { %v6145_v46 = vpop.xlane.xlu0 %6144  ;;  %v6224_v21 = vsel %vm2312_vm2, %v18763_v57, 0.0  ;;  %v18768_v56 = vpop.eup %15026 }
 0xad8   : > { %15036 = vpow2.f32 %v6201_v12  ;;  %v6171_v14 = vsub.f32 %v18630_v40, %v6145_v46  ;;  %6225 = vadd.xlane.f32.xlu1 %v6224_v21  ;;  %v6218_v0 = vsel %vm2312_vm2, %v18768_v56, 0.0  ;;  %v6199_v32 = vmul.f32 1.442695, %v6172_v47 }
 0xad9   : > { %v6678_v24 = vpop.xlane.xlu1 %6677 }
 0xada   : > { %v18771_v18 = vpop.eup %15028  ;;  %v6197_v62 = vmul.f32 1.442695, %v6171_v14  ;;  %v6722_v21 = vsub.f32 %v18610_v9, %v6678_v24 }
 0xadb   : > { %v6675_v33 = vpop.xlane.xlu0 %6674  ;;  %v6233_v23 = vsel %vm2312_vm2, %v18771_v18, 0.0  ;;  %v18778_v20 = vpop.eup %15030 }
 0xadc   : > { %15038 = vpow2.f32 %v6197_v62  ;;  %6234 = vadd.xlane.f32.xlu0 %v6233_v23  ;;  %6219 = vadd.xlane.f32.xlu1 %v6218_v0  ;;  %v6721_v7 = vsub.f32 %v18606_v51, %v6675_v33  ;;  %v6236_v1 = vsel %vm2312_vm2, %v18778_v20, 0.0  ;;  %v6739_v9 = vmul.f32 1.442695, %v6722_v21 }
 0xadd   : > { %v6160_v40 = vpop.xlane.xlu1 %6159  ;;  %15040 = vpow2.f32 %v6203_v38 }
 0xade   : > { %v18780_v49 = vpop.eup %15032  ;;  %15042 = vpow2.f32 %v6199_v32  ;;  %v6737_v51 = vmul.f32 1.442695, %v6721_v7  ;;  %v6176_v33 = vsub.f32 %v18650_v60, %v6160_v40 }
 0xadf   : > { %v6157_v26 = vpop.xlane.xlu0 %6156  ;;  %v6227_v55 = vsel %vm2312_vm2, %v18780_v49, 0.0  ;;  %v18787_v50 = vpop.eup %15034 }
 0xae0   : > { %v6175_v31 = vsub.f32 %v18646_v37, %v6157_v26  ;;  %6228 = vadd.xlane.f32.xlu0 %v6227_v55  ;;  %6237 = vadd.xlane.f32.xlu1 %v6236_v1  ;;  %v6230_v62 = vsel %vm2312_vm2, %v18787_v50, 0.0  ;;  %v6207_v1 = vmul.f32 1.442695, %v6176_v33 }
 0xae1   : > { %v6690_v12 = vpop.xlane.xlu1 %6689 }
 0xae2   : > { %v18790_v46 = vpop.eup %15036  ;;  %v6205_v14 = vmul.f32 1.442695, %v6175_v31  ;;  %v6726_v24 = vsub.f32 %v18626_v35, %v6690_v12 }
 0xae3   : > { %v6687_v38 = vpop.xlane.xlu0 %6686  ;;  %v6245_v47 = vsel %vm2312_vm2, %v18790_v46, 0.0 }
 0xae4   : > { %15044 = vpow2.f32 %v6205_v14  ;;  %v6725_v37 = vsub.f32 %v18622_v48, %v6687_v38  ;;  %6246 = vadd.xlane.f32.xlu0 %v6245_v47  ;;  %6231 = vadd.xlane.f32.xlu1 %v6230_v62  ;;  %v6747_v31 = vmul.f32 1.442695, %v6726_v24 }
 0xae5   : > { %v6684_v23 = vpop.xlane.xlu1 %6683  ;;  %15046 = vpow2.f32 %v6737_v51 }
 0xae6   : > { %v18799_v0 = vpop.eup %15038  ;;  %v6745_v32 = vmul.f32 1.442695, %v6725_v37  ;;  %v6724_v60 = vsub.f32 %v18666_v63, %v6684_v23 }
 0xae7   : > { %v6681_v7 = vpop.xlane.xlu0 %6680  ;;  %v6239_v26 = vsel %vm2312_vm2, %v18799_v0, 0.0  ;;  %v18804_v55 = vpop.eup %15040 }
 0xae8   : > { %15048 = vpow2.f32 %v6745_v32  ;;  %v6723_v48 = vsub.f32 %v18662_v43, %v6681_v7  ;;  %6240 = vadd.xlane.f32.xlu1 %v6239_v26  ;;  %v6248_v35 = vsel %vm2312_vm2, %v18804_v55, 0.0  ;;  %v18810_v12 = vpop.eup %15042  ;;  %v6743_v43 = vmul.f32 1.442695, %v6724_v60 }
 0xae9   : > { %v6702_v40 = vpop.xlane.xlu1 %6701  ;;  %15050 = vpow2.f32 %v6739_v9  ;;  %v6242_v23 = vsel %vm2312_vm2, %v18810_v12, 0.0 }
 0xaea   : > { %v6741_v21 = vmul.f32 1.442695, %v6723_v48  ;;  %v6730_v38 = vsub.f32 %v18642_v11, %v6702_v40 }
 0xaeb   : > { %v6699_v51 = vpop.xlane.xlu0 %6698 }
 0xaec   : > { %15052 = vpow2.f32 %v6741_v21  ;;  %v6729_v14 = vsub.f32 %v18638_v13, %v6699_v51  ;;  %6249 = vadd.xlane.f32.xlu1 %v6248_v35  ;;  %v6755_v11 = vmul.f32 1.442695, %v6730_v38 }
 0xaed   : > { %15054 = vpow2.f32 %v6207_v1  ;;  %v6696_v47 = vpop.xlane.xlu1 %6695 }
 0xaee   : > { %v18814_v63 = vpop.eup %15044  ;;  %15056 = vpow2.f32 %v6747_v31  ;;  %v6753_v62 = vmul.f32 1.442695, %v6729_v14  ;;  %v6728_v7 = vsub.f32 %v18682_v45, %v6696_v47 }
 0xaef   : > { %v6693_v37 = vpop.xlane.xlu0 %6692  ;;  %v6251_v33 = vsel %vm2312_vm2, %v18814_v63, 0.0  ;;  %v18820_v9 = vpop.eup %15046  ;;  %15058 = vpow2.f32 %v6743_v43 }
 0xaf0   : > { %v6727_v13 = vsub.f32 %v18676_v59, %v6693_v37  ;;  %6252 = vadd.xlane.f32.xlu0 %v6251_v33  ;;  %6243 = vadd.xlane.f32.xlu1 %v6242_v23  ;;  %15060 = vpow2.f32 %v6753_v62  ;;  %v6769_v60 = vsel %vm2312_vm2, %v18820_v9, 0.0  ;;  %v6751_v21 = vmul.f32 1.442695, %v6728_v7 }
 0xaf1   : > { %v6714_v24 = vpop.xlane.xlu1 %6713  ;;  %15062 = vpow2.f32 %v6755_v11 }
 0xaf2   : > { %v18823_v32 = vpop.eup %15048  ;;  %v6749_v26 = vmul.f32 1.442695, %v6727_v13  ;;  %v6734_v59 = vsub.f32 %v18658_v16, %v6714_v24 }
 0xaf3   : > { %v6711_v48 = vpop.xlane.xlu0 %6710  ;;  %v6781_v1 = vsel %vm2312_vm2, %v18823_v32, 0.0  ;;  %v18830_v40 = vpop.eup %15050 }
 0xaf4   : > { %6782 = vadd.xlane.f32.xlu0 %v6781_v1  ;;  %6770 = vadd.xlane.f32.xlu1 %v6769_v60  ;;  %15064 = vpow2.f32 %v6749_v26  ;;  %v6733_v45 = vsub.f32 %v18654_v41, %v6711_v48  ;;  %v6772_v38 = vsel %vm2312_vm2, %v18830_v40, 0.0  ;;  %v6763_v62 = vmul.f32 1.442695, %v6734_v59 }
 0xaf5   : > { %v6708_v35 = vpop.xlane.xlu1 %6707  ;;  %15066 = vpow2.f32 %v6751_v21 }
 0xaf6   : > { %v18833_v31 = vpop.eup %15052  ;;  %v6761_v37 = vmul.f32 1.442695, %v6733_v45  ;;  %v6732_v41 = vsub.f32 %v18696_v5, %v6708_v35 }
 0xaf7   : > { %v18836_v51 = vpop.eup %15054  ;;  %v6705_v14 = vpop.xlane.xlu0 %6704  ;;  %v6775_v43 = vsel %vm2312_vm2, %v18833_v31, 0.0 }
 0xaf8   : > { %v18842_v47 = vpop.eup %15056  ;;  %v6731_v16 = vsub.f32 %v18692_v15, %v6705_v14  ;;  %6776 = vadd.xlane.f32.xlu0 %v6775_v43  ;;  %6773 = vadd.xlane.f32.xlu1 %v6772_v38  ;;  %v6254_v11 = vsel %vm2312_vm2, %v18836_v51, 0.0  ;;  %v6759_v15 = vmul.f32 1.442695, %v6732_v41 }
 0xaf9   : > { %v18846_v23 = vpop.eup %15058  ;;  %v6784_v13 = vsel %vm2312_vm2, %v18842_v47, 0.0 }
 0xafa   : > { %v6757_v33 = vmul.f32 1.442695, %v6731_v16  ;;  %v18852_v24 = vpop.eup %15060  ;;  %v6778_v26 = vsel %vm2312_vm2, %v18846_v23, 0.0 }
 0xafb   : > { %v18854_v7 = vpop.eup %15062  ;;  %v6793_v5 = vsel %vm2312_vm2, %v18852_v24, 0.0  ;;  %v6717_v41 = vpop.xlane.xlu0 %6716 }
 0xafc   : > { %15068 = vpow2.f32 %v6757_v33  ;;  %6785 = vadd.xlane.f32.xlu0 %v6784_v13  ;;  %6255 = vadd.xlane.f32.xlu1 %v6254_v11  ;;  %v6796_v1 = vsel %vm2312_vm2, %v18854_v7, 0.0  ;;  %v6735_v33 = vsub.f32 %v18704_v39, %v6717_v41 }
 0xafd   : > { %15070 = vpow2.f32 %v6763_v62  ;;  %v6720_v13 = vpop.xlane.xlu1 %6719 }
 0xafe   : > { %15072 = vpow2.f32 %v6761_v37  ;;  %v18860_v48 = vpop.eup %15064 }
 0xaff   : > { %15074 = vpow2.f32 %v6759_v15  ;;  %v6787_v60 = vsel %vm2312_vm2, %v18860_v48, 0.0  ;;  %v18866_v59 = vpop.eup %15066  ;;  %v6765_v15 = vmul.f32 1.442695, %v6735_v33  ;;  %v21805_v33 = vld [vmem:[#allocation118_spill] sm:$0xff] }
 0xb00   : > { %6794 = vadd.xlane.f32.xlu0 %v6793_v5  ;;  %6779 = vadd.xlane.f32.xlu1 %v6778_v26  ;;  %v6790_v35 = vsel %vm2312_vm2, %v18866_v59, 0.0  ;;  %v6736_v5 = vsub.f32 %v18710_v36, %v6720_v13  ;;  %v21806_v13 = vld [vmem:[#allocation47_spill] sm:$0xff] }
 0xb04   : > { %6797 = vadd.xlane.f32.xlu0 %v6796_v1  ;;  %6788 = vadd.xlane.f32.xlu1 %v6787_v60  ;;  %v6767_v1 = vmul.f32 1.442695, %v6736_v5 }
 0xb06   : > { %v18868_v21 = vpop.eup %15068 }
 0xb07   : > { %v18870_v45 = vpop.eup %15070  ;;  %v6799_v14 = vsel %vm2312_vm2, %v18868_v21, 0.0 }
 0xb08   : > { %v18876_v43 = vpop.eup %15072  ;;  %6791 = vadd.xlane.f32.xlu0 %v6790_v35  ;;  %6800 = vadd.xlane.f32.xlu1 %v6799_v14  ;;  %v6808_v16 = vsel %vm2312_vm2, %v18870_v45, 0.0 }
 0xb09   : > { %v6805_v38 = vsel %vm2312_vm2, %v18876_v43, 0.0  ;;  %v18882_v62 = vpop.eup %15074 }
 0xb0a   : > { %v6802_v37 = vsel %vm2312_vm2, %v18882_v62, 0.0 }
 0xb0c   : > { %6806 = vadd.xlane.f32.xlu0 %v6805_v38  ;;  %6809 = vadd.xlane.f32.xlu1 %v6808_v16  ;;  %v21804_v16 = vld [vmem:[#allocation44_spill] sm:$0xff] }
 0xb10   : > { %6803 = vadd.xlane.f32.xlu0 %v6802_v37 }
 0xb1d   : > { %7286 = vrot.lane.b32.xlu1 %v16997_v27, %s16079_s3 }
 0xb26   : > { %7337 = vrot.lane.b32.xlu0 %v21717_v2, %s16079_s3 }
 0xb2d   : > { %v6211_v11 = vpop.xlane.xlu0 %6210 }
 0xb2e   : > { %15076 = vrcp.f32 %v6211_v11 }
 0xb2f   : > { %v6214_v26 = vpop.xlane.xlu1 %6213 }
 0xb30   : > { %15078 = vrcp.f32 %v6214_v26 }
 0xb31   : > { %15080 = vpow2.f32 %v6765_v15  ;;  %v21807_v15 = vld [vmem:[#allocation37_spill] sm:$0xff] }
 0xb32   : > { %15082 = vpow2.f32 %v6767_v1 }
 0xb38   : > { %v15077_v60 = vpop.eup %15076 }
 0xb39   : > { %v6273_v27 = vmul.f32 %v15077_v60, %v18738_v58  ;;  %v21808_v60 = vld [vmem:[#allocation53_spill] sm:$0xff] }
 0xb3a   : > { %v15079_v35 = vpop.eup %15078 }
 0xb3b   : > { %v6274_v2 = vmul.f32 %v15079_v35, %v18742_v3  ;;  %v18894_v14 = vpop.eup %15080 }
 0xb3c   : > { %v6811_v36 = vsel %vm2312_vm2, %v18894_v14, 0.0  ;;  %v18899_v38 = vpop.eup %15082 }
 0xb3d   : > { %v6289_v39 = vpack.c.bf16 %v6274_v2, %v6273_v27  ;;  %v6814_v58 = vsel %vm2312_vm2, %v18899_v38, 0.0  ;;  %v21809_v27 = vld [vmem:[#allocation121_spill] sm:$0xff]  ;;  %v21810_v2 = vld [vmem:[#allocation40_spill] sm:$0xff] }
 0xb3f   : > { %13814 = vmatmul.mubr.msk.bf16.vlgmr.msra.gmra.mrb[192].mxu0 %vm2312_vm2, %v6289_v39 }
 0xb40   : > { %13824 = vmatpush3.bf16.msra.mxu0 %v18670_v53  ;;  %13825 = vmatprep.mubr.msk.bf16.mxu0 %vm16076_vm0, %v21645_v28 }
 0xb41   : > { %6812 = vadd.xlane.f32.xlu1 %v6811_v36  ;;  %13835 = vmatprep.subr.bf16.mxu0 %v21645_v28 }
 0xb45   : > { %6815 = vadd.xlane.f32.xlu0 %v6814_v58 }
 0xb4e   : > { %v6223_v53 = vpop.xlane.xlu0 %6222 }
 0xb4f   : > { %15084 = vrcp.f32 %v6223_v53 }
 0xb52   : > { %7439 = vrot.lane.b32.xlu1 %v17043_v10, %s16079_s3 }
 0xb56   : > { %7388 = vrot.lane.b32.xlu1 %v21647_v61, %s16079_s3 }
 0xb5a   : > { %7541 = vrot.lane.b32.xlu1 %v21648_v22, %s16079_s3  ;;  %v15085_v22 = vpop.eup %15084 }
 0xb5b   : > { %7335 = vrot.lane.b32.xlu0 %v17009_v19, %s16079_s3 }
 0xb5e   : > { %7490 = vrot.lane.b32.xlu1 %v21650_v52, %s16079_s3 }
 0xb5f   : > { %7284 = vrot.lane.b32.xlu0 %v16995_v4, %s16079_s3 }
 0xb61   : > { %v6217_v10 = vpop.xlane.xlu0 %6216 }
 0xb62   : > { %7641 = vrot.lane.b32.xlu1 %v21653_v42, %s16079_s3  ;;  %v6277_v42 = vmul.f32 %v15085_v22, %v18747_v34  ;;  %v21814_v22 = vld [vmem:[#allocation61_spill] sm:$0xff] }
 0xb63   : > { %7437 = vrot.lane.b32.xlu0 %v17041_v29, %s16079_s3 }
 0xb65   : > { %v6226_v61 = vpop.xlane.xlu1 %6225 }
 0xb66   : > { %15086 = vrcp.f32 %v6226_v61  ;;  %7592 = vrot.lane.b32.xlu1 %v21655_v30, %s16079_s3  ;;  %v21812_v61 = vld [vmem:[#allocation119_spill] sm:$0xff] }
 0xb67   : > { %7386 = vrot.lane.b32.xlu0 %v17021_v54, %s16079_s3  ;;  %15088 = vrcp.f32 %v6217_v10  ;;  %v21811_v10 = vld [vmem:[#allocation57_spill] sm:$0xff] }
 0xb69   : > { %v6235_v19 = vpop.xlane.xlu0 %6234  ;;  %v6220_v4 = vpop.xlane.xlu1 %6219 }
 0xb6a   : > { %7687 = vrot.lane.b32.xlu1 %v21721_v25, %s16079_s3  ;;  %15090 = vrcp.f32 %v6220_v4 }
 0xb6b   : > { %7539 = vrot.lane.b32.xlu0 %v17086_v6, %s16079_s3  ;;  %15092 = vrcp.f32 %v6235_v19  ;;  %v21803_v6 = vld [vmem:[#allocation46_spill] sm:$0xff]  ;;  %v21813_v19 = vld [vmem:[#allocation43_spill] sm:$0xff] }
 0xb6d   : > { %v6238_v29 = vpop.xlane.xlu1 %6237  ;;  %v6229_v52 = vpop.xlane.xlu0 %6228 }
 0xb6e   : > { %7779 = vrot.lane.b32.xlu1 %v21724_v8, %s16079_s3  ;;  %15094 = vrcp.f32 %v6238_v29 }
 0xb6f   : > { %7488 = vrot.lane.b32.xlu0 %v17079_v44, %s16079_s3  ;;  %15096 = vrcp.f32 %v6229_v52  ;;  %v21815_v52 = vld [vmem:[#allocation123_spill] sm:$0xff] }
 0xb70   : > { %v15087_v54 = vpop.eup %15086 }
 0xb71   : > { %v6278_v30 = vmul.f32 %v15087_v54, %v18763_v57  ;;  %v6232_v25 = vpop.xlane.xlu1 %6231  ;;  %v15089_v3 = vpop.eup %15088  ;;  %v21816_v54 = vld [vmem:[#allocation49_spill] sm:$0xff] }
 0xb72   : > { %7871 = vrot.lane.b32.xlu1 %v21803_v6, %s16079_s3  ;;  %15098 = vrcp.f32 %v6232_v25  ;;  %v6247_v41 = vpop.xlane.xlu0 %6246  ;;  %v6275_v34 = vmul.f32 %v15089_v3, %v18758_v17 }
 0xb73   : > { %7590 = vrot.lane.b32.xlu0 %v21804_v16, %s16079_s3  ;;  %v6291_v8 = vpack.c.bf16 %v6278_v30, %v6277_v42  ;;  %15100 = vrcp.f32 %v6247_v41  ;;  %v21817_v16 = vld [vmem:[#allocation48_spill] sm:$0xff] }
 0xb74   : > { %v15091_v37 = vpop.eup %15090 }
 0xb75   : > { %13826 = vmatmul.mubr.msk.bf16.vlgmr.msra.gmra.mrb[196].mxu0 %vm2312_vm2, %v6291_v8  ;;  %v6241_v44 = vpop.xlane.xlu1 %6240  ;;  %v6276_v57 = vmul.f32 %v15091_v37, %v18768_v56  ;;  %v15093_v11 = vpop.eup %15092  ;;  %v21818_v37 = vld [vmem:[#allocation51_spill] sm:$0xff] }
 0xb76   : > { %13836 = vmatpush3.bf16.msra.mxu0 %v21805_v33  ;;  %7963 = vrot.lane.b32.xlu1 %v21806_v13, %s16079_s3  ;;  %v6281_v56 = vmul.f32 %v15093_v11, %v18771_v18  ;;  %v21819_v33 = vld [vmem:[#allocation120_spill] sm:$0xff]  ;;  %v21820_v13 = vld [vmem:[#allocation55_spill] sm:$0xff] }
 0xb77   : > { %7733 = vrot.lane.b32.xlu0 %v21807_v15, %s16079_s3  ;;  %13837 = vmatprep.mubr.msk.bf16.mxu0 %vm16076_vm0, %v21645_v28  ;;  %v6290_v5 = vpack.c.bf16 %v6276_v57, %v6275_v34 }
 0xb78   : > { %13847 = vmatprep.subr.bf16.mxu0 %v21645_v28  ;;  %v15095_v26 = vpop.eup %15094 }
 0xb79   : > { %v6250_v17 = vpop.xlane.xlu1 %6249  ;;  %v6282_v1 = vmul.f32 %v15095_v26, %v18778_v20  ;;  %13820 = vmatmul.mubr.msk.bf16.vlgmr.msra.gmra.mrb[224].mxu1 %vm2312_vm2, %v6290_v5  ;;  %v15097_v35 = vpop.eup %15096  ;;  %v21822_v26 = vld [vmem:[#allocation59_spill] sm:$0xff] }
 0xb7a   : > { %15102 = vrcp.f32 %v6250_v17  ;;  %8287 = vrot.lane.b32.xlu1 %v21808_v60, %s16079_s3  ;;  %13830 = vmatpush3.bf16.msra.mxu1 %v21809_v27  ;;  %v6279_v58 = vmul.f32 %v15097_v35, %v18780_v49 }
 0xb7b   : > { %7825 = vrot.lane.b32.xlu0 %v21810_v2, %s16079_s3  ;;  %v6293_v39 = vpack.c.bf16 %v6282_v1, %v6281_v56  ;;  %13831 = vmatprep.mubr.msk.bf16.mxu1 %vm16076_vm0, %v21645_v28  ;;  %15104 = vrcp.f32 %v6241_v44  ;;  %v21823_v2 = vld [vmem:[#allocation63_spill] sm:$0xff] }
 0xb7c   : > { %13841 = vmatprep.subr.bf16.mxu1 %v21645_v28  ;;  %v15099_v18 = vpop.eup %15098 }
 0xb7d   : > { %v6253_v20 = vpop.xlane.xlu0 %6252  ;;  %v6244_v36 = vpop.xlane.xlu1 %6243  ;;  %v6280_v53 = vmul.f32 %v15099_v18, %v18787_v50  ;;  %13838 = vmatmul.mubr.msk.bf16.vlgmr.msra.gmra.mrb[200].mxu0 %vm2312_vm2, %v6293_v39 }
 0xb7e   : > { %8381 = vrot.lane.b32.xlu1 %v21811_v10, %s16079_s3  ;;  %13848 = vmatpush3.bf16.msra.mxu0 %v21812_v61  ;;  %15106 = vrcp.f32 %v6244_v36  ;;  %v15101_v50 = vpop.eup %15100 }
 0xb7f   : > { %7917 = vrot.lane.b32.xlu0 %v21813_v19, %s16079_s3  ;;  %v6292_v4 = vpack.c.bf16 %v6280_v53, %v6279_v58  ;;  %13849 = vmatprep.mubr.msk.bf16.mxu0 %vm16076_vm0, %v21645_v28  ;;  %v6285_v30 = vmul.f32 %v15101_v50, %v18790_v46  ;;  %v21825_v50 = vld [vmem:[#allocation124_spill] sm:$0xff] }
 0xb80   : > { %13859 = vmatprep.subr.bf16.mxu0 %v21645_v28 }
 0xb81   : > { %v6783_v49 = vpop.xlane.xlu0 %6782  ;;  %v6771_v29 = vpop.xlane.xlu1 %6770  ;;  %13832 = vmatmul.mubr.msk.bf16.vlgmr.msra.gmra.mrb[228].mxu1 %vm2312_vm2, %v6292_v4 }
 0xb82   : > { %8475 = vrot.lane.b32.xlu1 %v21814_v22, %s16079_s3  ;;  %13842 = vmatpush3.bf16.msra.mxu1 %v21815_v52  ;;  %15108 = vrcp.f32 %v6771_v29 }
 0xb83   : > { %8193 = vrot.lane.b32.xlu0 %v21816_v54, %s16079_s3  ;;  %13843 = vmatprep.mubr.msk.bf16.mxu1 %vm16076_vm0, %v21645_v28 }
 0xb84   : > { %v15103_v42 = vpop.eup %15102  ;;  %13853 = vmatprep.subr.bf16.mxu1 %v21645_v28 }
 0xb85   : > { %v6286_v25 = vmul.f32 %v15103_v42, %v18804_v55  ;;  %v6777_v6 = vpop.xlane.xlu0 %6776  ;;  %v6774_v3 = vpop.xlane.xlu1 %6773 }
 0xb86   : > { %8753 = vrot.lane.b32.xlu1 %v21817_v16, %s16079_s3  ;;  %v15105_v8 = vpop.eup %15104  ;;  %15110 = vrcp.f32 %v6774_v3  ;;  %v21827_v16 = vld [vmem:[#allocation128_spill] sm:$0xff] }
 0xb87   : > { %8240 = vrot.lane.b32.xlu0 %v21818_v37, %s16079_s3  ;;  %v6295_v41 = vpack.c.bf16 %v6286_v25, %v6285_v30  ;;  %15112 = vrcp.f32 %v6253_v20  ;;  %v6283_v55 = vmul.f32 %v15105_v8, %v18799_v0  ;;  %v21826_v30 = vld [vmem:[#allocation127_spill] sm:$0xff] }
 0xb88   : > { %v15107_v44 = vpop.eup %15106 }
 0xb89   : > { %v6786_v34 = vpop.xlane.xlu0 %6785  ;;  %13850 = vmatmul.mubr.msk.bf16.vlgmr.msra.gmra.mrb[204].mxu0 %vm2312_vm2, %v6295_v41  ;;  %v6256_v46 = vpop.xlane.xlu1 %6255  ;;  %v6284_v57 = vmul.f32 %v15107_v44, %v18810_v12  ;;  %v21821_v12 = vld [vmem:[#allocation125_spill] sm:$0xff] }
 0xb8a   : > { %15114 = vrcp.f32 %v6786_v34  ;;  %13860 = vmatpush3.bf16.msra.mxu0 %v21819_v33  ;;  %13861 = vmatprep.mubr.msk.bf16.mxu0 %vm16076_vm0, %v21645_v28  ;;  %v21829_v33 = vld [vmem:[#allocation130_spill] sm:$0xff] }
 0xb8b   : > { %15116 = vrcp.f32 %v6256_v46  ;;  %8334 = vrot.lane.b32.xlu0 %v21820_v13, %s16079_s3  ;;  %13871 = vmatprep.subr.bf16.mxu0 %v21645_v28  ;;  %v6294_v11 = vpack.c.bf16 %v6284_v57, %v6283_v55 }
 0xb8c   : > { %15118 = vrcp.f32 %v6783_v49  ;;  %v15109_v0 = vpop.eup %15108 }
 0xb8d   : > { %v6795_v15 = vpop.xlane.xlu0 %6794  ;;  %v6780_v5 = vpop.xlane.xlu1 %6779  ;;  %13844 = vmatmul.mubr.msk.bf16.vlgmr.msra.gmra.mrb[232].mxu1 %vm2312_vm2, %v6294_v11  ;;  %v6833_v60 = vmul.f32 %v15109_v0, %v18820_v9  ;;  %v21832_v0 = vld [vmem:[#allocation132_spill] sm:$0xff] }
 0xb8e   : > { %13854 = vmatpush3.bf16.msra.mxu1 %v21821_v12  ;;  %15120 = vrcp.f32 %v6780_v5  ;;  %13855 = vmatprep.mubr.msk.bf16.mxu1 %vm16076_vm0, %v21645_v28 }
 0xb8f   : > { %8428 = vrot.lane.b32.xlu0 %v21822_v26, %s16079_s3  ;;  %13865 = vmatprep.subr.bf16.mxu1 %v21645_v28  ;;  %15122 = vrcp.f32 %v6777_v6 }
 0xb90   : > { %v15111_v17 = vpop.eup %15110 }
 0xb91   : > { %v6798_v56 = vpop.xlane.xlu0 %6797  ;;  %v6789_v1 = vpop.xlane.xlu1 %6788  ;;  %v6834_v35 = vmul.f32 %v15111_v17, %v18830_v40  ;;  %v21824_v40 = vld [vmem:[#allocation122_spill] sm:$0xff] }
 0xb92   : > { %v15113_v27 = vpop.eup %15112  ;;  %15124 = vrcp.f32 %v6798_v56 }
 0xb93   : > { %8522 = vrot.lane.b32.xlu0 %v21823_v2, %s16079_s3  ;;  %v6849_v18 = vpack.c.bf16 %v6834_v35, %v6833_v60  ;;  %15126 = vrcp.f32 %v6795_v15  ;;  %v6287_v53 = vmul.f32 %v15113_v27, %v18814_v63 }
 0xb94   : > { %v15115_v39 = vpop.eup %15114 }
 0xb95   : > { %v15117_v20 = vpop.eup %15116  ;;  %v6792_v36 = vpop.xlane.xlu0 %6791  ;;  %13862 = vmatmul.mubr.msk.bf16.vlgmr.msra.gmra.mrb[208].mxu0 %vm2312_vm2, %v6849_v18  ;;  %v6838_v61 = vmul.f32 %v15115_v39, %v18842_v47 }
 0xb96   : > { %v6801_v58 = vpop.xlane.xlu1 %6800  ;;  %v6288_v10 = vmul.f32 %v15117_v20, %v18836_v51  ;;  %v15119_v9 = vpop.eup %15118  ;;  %15128 = vrcp.f32 %v6792_v36  ;;  %13872 = vmatpush3.bf16.msra.mxu0 %v21824_v40  ;;  %13873 = vmatprep.mubr.msk.bf16.mxu0 %vm16076_vm0, %v21645_v28 }
 0xb97   : > { %13883 = vmatprep.subr.bf16.mxu0 %v21645_v28  ;;  %15130 = vrcp.f32 %v6789_v1  ;;  %v6837_v51 = vmul.f32 %v15119_v9, %v18823_v32 }
 0xb98   : > { %v6296_v19 = vpack.c.bf16 %v6288_v10, %v6287_v53  ;;  %v15121_v4 = vpop.eup %15120 }
 0xb99   : > { %v6807_v49 = vpop.xlane.xlu0 %6806  ;;  %v15123_v29 = vpop.eup %15122  ;;  %v6836_v47 = vmul.f32 %v15121_v4, %v18846_v23  ;;  %v6851_v22 = vpack.c.bf16 %v6838_v61, %v6837_v51 }
 0xb9a   : > { %v6810_v63 = vpop.xlane.xlu1 %6809  ;;  %15132 = vrcp.f32 %v6807_v49  ;;  %13856 = vmatmul.mubr.msk.bf16.vlgmr.msra.gmra.mrb[236].mxu1 %vm2312_vm2, %v6296_v19  ;;  %v6835_v42 = vmul.f32 %v15123_v29, %v18833_v31 }
 0xb9b   : > { %13866 = vmatpush3.bf16.msra.mxu1 %v21825_v50  ;;  %15134 = vrcp.f32 %v6810_v63  ;;  %13867 = vmatprep.mubr.msk.bf16.mxu1 %vm16076_vm0, %v21645_v28 }
 0xb9c   : > { %13877 = vmatprep.subr.bf16.mxu1 %v21645_v28  ;;  %v15125_v52 = vpop.eup %15124  ;;  %v6850_v6 = vpack.c.bf16 %v6836_v47, %v6835_v42 }
 0xb9d   : > { %v6804_v54 = vpop.xlane.xlu0 %6803  ;;  %13874 = vmatmul.mubr.msk.bf16.vlgmr.msra.gmra.mrb[212].mxu0 %vm2312_vm2, %v6851_v22  ;;  %v15127_v32 = vpop.eup %15126  ;;  %v6842_v25 = vmul.f32 %v15125_v52, %v18854_v7 }
 0xb9e   : > { %15136 = vrcp.f32 %v6804_v54  ;;  %13884 = vmatpush3.bf16.msra.mxu0 %v21826_v30  ;;  %13885 = vmatprep.mubr.msk.bf16.mxu0 %vm16076_vm0, %v21645_v28  ;;  %v6841_v3 = vmul.f32 %v15127_v32, %v18852_v24  ;;  %v21828_v24 = vld [vmem:[#allocation126_spill] sm:$0xff]  ;;  %v7287_v12 = vpop.permute.xlu1 %7286 }
 0xb9f   : > { %13895 = vmatprep.subr.bf16.mxu0 %v21645_v28  ;;  %15138 = vrcp.f32 %v6801_v58  ;;  %v7292_v40 = vsel %vm1575_vm1, %v7287_v12, 0 }
 0xba0   : > { %v15129_v23 = vpop.eup %15128  ;;  %v6853_v41 = vpack.c.bf16 %v6842_v25, %v6841_v3 }
 0xba1   : > { %v15131_v31 = vpop.eup %15130  ;;  %v6840_v37 = vmul.f32 %v15129_v23, %v18866_v59 }
 0xba2   : > { %13868 = vmatmul.mubr.msk.bf16.vlgmr.msra.gmra.mrb[240].mxu1 %vm2312_vm2, %v6850_v6  ;;  %v6839_v44 = vmul.f32 %v15131_v31, %v18860_v48 }
 0xba3   : > { %13878 = vmatpush3.bf16.msra.mxu1 %v21827_v16  ;;  %13879 = vmatprep.mubr.msk.bf16.mxu1 %vm16076_vm0, %v21645_v28 }
 0xba4   : > { %v15133_v8 = vpop.eup %15132  ;;  %13889 = vmatprep.subr.bf16.mxu1 %v21645_v28  ;;  %v6852_v55 = vpack.c.bf16 %v6840_v37, %v6839_v44 }
 0xba5   : > { %v15135_v7 = vpop.eup %15134  ;;  %13886 = vmatmul.mubr.msk.bf16.vlgmr.msra.gmra.mrb[216].mxu0 %vm2312_vm2, %v6853_v41  ;;  %v6845_v34 = vmul.f32 %v15133_v8, %v18876_v43 }
 0xba6   : > { %13896 = vmatpush3.bf16.msra.mxu0 %v21828_v24  ;;  %13897 = vmatprep.mubr.msk.bf16.mxu0 %vm16076_vm0, %v21645_v28  ;;  %v6846_v46 = vmul.f32 %v15135_v7, %v18870_v45  ;;  %v21830_v45 = vld [vmem:[#allocation129_spill] sm:$0xff] }
 0xba7   : > { %13907 = vmatprep.subr.bf16.mxu0 %v21645_v28  ;;  %v7241_v11 = vsel %vm1575_vm1, %v21830_v45, 0 }
 0xba8   : > { %v15137_v59 = vpop.eup %15136  ;;  %v6855_v13 = vpack.c.bf16 %v6846_v46, %v6845_v34 }
 0xba9   : > { %v15139_v57 = vpop.eup %15138  ;;  %v6844_v48 = vmul.f32 %v15137_v59, %v18882_v62  ;;  %v21831_v62 = vld [vmem:[#allocation131_spill] sm:$0xff] }
 0xbaa   : > { %13880 = vmatmul.mubr.msk.bf16.vlgmr.msra.gmra.mrb[244].mxu1 %vm2312_vm2, %v6852_v55  ;;  %v6843_v43 = vmul.f32 %v15139_v57, %v18868_v21  ;;  %v7338_v21 = vpop.permute.xlu0 %7337 }
 0xbab   : > { %13890 = vmatpush3.bf16.msra.mxu1 %v21829_v33  ;;  %13891 = vmatprep.mubr.msk.bf16.mxu1 %vm16076_vm0, %v21645_v28  ;;  %v7343_v5 = vsel %vm1575_vm1, %v7338_v21, 0 }
 0xbac   : > { %13901 = vmatprep.subr.bf16.mxu1 %v21645_v28  ;;  %v6854_v15 = vpack.c.bf16 %v6844_v48, %v6843_v43 }
 0xbad   : > { %13898 = vmatmul.mubr.msk.bf16.vlgmr.msra.gmra.mrb[220].mxu0 %vm2312_vm2, %v6855_v13 }
 0xbae   : > { %13909 = vmatprep.mubr.msk.bf16.mxu0 %vm16076_vm0, %v21645_v28 }
 0xbaf   : > { %13908 = vmatpush3.bf16.xpose.msra.mxu0 %v7241_v11 }
 0xbb0   : > { %13919 = vmatprep.subr.bf16.mxu0 %v21645_v28 }
 0xbb2   : > { %13892 = vmatmul.mubr.msk.bf16.vlgmr.msra.gmra.mrb[248].mxu1 %vm2312_vm2, %v6854_v15 }
 0xbb3   : > { %13902 = vmatpush3.bf16.msra.mxu1 %v21831_v62  ;;  %13903 = vmatprep.mubr.msk.bf16.mxu1 %vm16076_vm0, %v21645_v28 }
 0xbb4   : > { %13913 = vmatprep.subr.bf16.mxu1 %v21645_v28 }
 0xbb6   : > { %13910 = vmatmul.mubr.msk.bf16.vlgmr.msra.gmra.mrb[224].mxu0 %vm1575_vm1, %v21832_v0 }
 0xbb7   : > { %13920 = vmatpush3.bf16.xpose.msra.mxu0 %v7343_v5  ;;  %13921 = vmatprep.mubr.msk.bf16.mxu0 %vm16076_vm0, %v21645_v28 }
 0xbb8   : > { %13931 = vmatprep.subr.bf16.mxu0 %v21645_v28 }
 0xbce   : > { %v6813_v26 = vpop.xlane.xlu1 %6812 }
 0xbcf   : > { %15140 = vrcp.f32 %v6813_v26 }
 0xbd2   : > { %v6816_v17 = vpop.xlane.xlu0 %6815  ;;  %v7440_v56 = vpop.permute.xlu1 %7439 }
 0xbd3   : > { %15142 = vrcp.f32 %v6816_v17  ;;  %v7445_v35 = vsel %vm1575_vm1, %v7440_v56, 0 }
 0xbd6   : > { %v7336_v1 = vpop.permute.xlu0 %7335  ;;  %v7389_v60 = vpop.permute.xlu1 %7388 }
 0xbd7   : > { %13922 = vmatmul.mubr.msk.bf16.vlgmr.msra.gmra.mrb[228].mxu0 %vm1575_vm1, %v7336_v1  ;;  %v7394_v4 = vsel %vm1575_vm1, %v7389_v60, 0 }
 0xbd8   : > { %13932 = vmatpush3.bf16.xpose.msra.mxu0 %v7445_v35  ;;  %13933 = vmatprep.mubr.msk.bf16.mxu0 %vm16076_vm0, %v21645_v28 }
 0xbd9   : > { %13943 = vmatprep.subr.bf16.mxu0 %v21645_v28  ;;  %v15141_v39 = vpop.eup %15140 }
 0xbda   : > { %v19075_v27 = vpop.permute.xlu0 %7284  ;;  %v7542_v2 = vpop.permute.xlu1 %7541  ;;  %v6847_v20 = vmul.f32 %v15141_v39, %v18894_v14 }
 0xbdb   : > { %v7547_v10 = vsel %vm1575_vm1, %v7542_v2, 0 }
 0xbdd   : > { %v15143_v18 = vpop.eup %15142 }
 0xbde   : > { %v6848_v36 = vmul.f32 %v15143_v18, %v18899_v38  ;;  %v7438_v58 = vpop.permute.xlu0 %7437  ;;  %v7491_v53 = vpop.permute.xlu1 %7490 }
 0xbdf   : > { %13934 = vmatmul.mubr.msk.bf16.vlgmr.msra.gmra.mrb[232].mxu0 %vm1575_vm1, %v7438_v58  ;;  %v7496_v51 = vsel %vm1575_vm1, %v7491_v53, 0 }
 0xbe0   : > { %13944 = vmatpush3.bf16.xpose.msra.mxu0 %v7547_v10  ;;  %v6856_v9 = vpack.c.bf16 %v6848_v36, %v6847_v20  ;;  %13945 = vmatprep.mubr.msk.bf16.mxu0 %vm16076_vm0, %v21645_v28 }
 0xbe1   : > { %13955 = vmatprep.subr.bf16.mxu0 %v21645_v28 }
 0xbe2   : > { %v19085_v61 = vpop.permute.xlu0 %7386  ;;  %13904 = vmatmul.mubr.msk.bf16.vlgmr.msra.gmra.mrb[252].mxu1 %vm2312_vm2, %v6856_v9  ;;  %v7642_v14 = vpop.permute.xlu1 %7641 }
 0xbe3   : > { %13914 = vmatpush3.bf16.xpose.msra.mxu1 %v7292_v40  ;;  %13915 = vmatprep.mubr.msk.bf16.mxu1 %vm16076_vm0, %v21645_v28  ;;  %v7644_v19 = vsel %vm1575_vm1, %v7642_v14, 0 }
 0xbe4   : > { %13925 = vmatprep.subr.bf16.mxu1 %v21645_v28 }
 0xbe6   : > { %v7540_v38 = vpop.permute.xlu0 %7539  ;;  %v7593_v47 = vpop.permute.xlu1 %7592 }
 0xbe7   : > { %13946 = vmatmul.mubr.msk.bf16.vlgmr.msra.gmra.mrb[236].mxu0 %vm1575_vm1, %v7540_v38  ;;  %v7598_v52 = vsel %vm1575_vm1, %v7593_v47, 0 }
 0xbe8   : > { %13956 = vmatpush3.bf16.xpose.msra.mxu0 %v7644_v19  ;;  %13957 = vmatprep.mubr.msk.bf16.mxu0 %vm16076_vm0, %v21645_v28 }
 0xbe9   : > { %13967 = vmatprep.subr.bf16.mxu0 %v21645_v28 }
 0xbea   : > { %v19097_v49 = vpop.permute.xlu0 %7488  ;;  %13916 = vmatmul.mubr.msk.bf16.vlgmr.msra.gmra.mrb[0].mxu1 %vm1575_vm1, %v19075_v27  ;;  %v7688_v42 = vpop.permute.xlu1 %7687 }
 0xbeb   : > { %13926 = vmatpush3.bf16.xpose.msra.mxu1 %v7394_v4  ;;  %13927 = vmatprep.mubr.msk.bf16.mxu1 %vm16076_vm0, %v21645_v28  ;;  %v7690_v30 = vsel %vm1575_vm1, %v7688_v42, 0 }
 0xbec   : > { %13937 = vmatprep.subr.bf16.mxu1 %v21645_v28 }
 0xbee   : > { %v19104_v63 = vpop.permute.xlu0 %7590  ;;  %v7780_v6 = vpop.permute.xlu1 %7779 }
 0xbef   : > { %13958 = vmatmul.mubr.msk.bf16.vlgmr.msra.gmra.mrb[240].mxu0 %vm1575_vm1, %v21832_v0  ;;  %v7782_v23 = vsel %vm1575_vm1, %v7780_v6, 0 }
 0xbf0   : > { %13969 = vmatprep.mubr.msk.bf16.mxu0 %vm16076_vm0, %v21645_v28 }
 0xbf2   : > { %v7734_v29 = vpop.permute.xlu0 %7733  ;;  %13928 = vmatmul.mubr.msk.bf16.vlgmr.msra.gmra.mrb[4].mxu1 %vm1575_vm1, %v19085_v61  ;;  %v7872_v31 = vpop.permute.xlu1 %7871 }
 0xbf3   : > { %v7736_v50 = vsel %vm1575_vm1, %v7734_v29, 0  ;;  %13938 = vmatpush3.bf16.xpose.msra.mxu1 %v7496_v51  ;;  %13939 = vmatprep.mubr.msk.bf16.mxu1 %vm16076_vm0, %v21645_v28  ;;  %v7874_v16 = vsel %vm1575_vm1, %v7872_v31, 0 }
 0xbf4   : > { %13968 = vmatpush3.bf16.xpose.msra.mxu0 %v7736_v50  ;;  %13949 = vmatprep.subr.bf16.mxu1 %v21645_v28 }
 0xbf5   : > { %13979 = vmatprep.subr.bf16.mxu0 %v21645_v28 }
 0xbf6   : > { %v7826_v22 = vpop.permute.xlu0 %7825  ;;  %v7964_v24 = vpop.permute.xlu1 %7963 }
 0xbf7   : > { %v7828_v54 = vsel %vm1575_vm1, %v7826_v22, 0  ;;  %v7966_v34 = vsel %vm1575_vm1, %v7964_v24, 0 }
 0xbfa   : > { %13940 = vmatmul.mubr.msk.bf16.vlgmr.msra.gmra.mrb[8].mxu1 %vm1575_vm1, %v19097_v49  ;;  %v7918_v32 = vpop.permute.xlu0 %7917 }
 0xbfb   : > { %13950 = vmatpush3.bf16.xpose.msra.mxu1 %v7598_v52  ;;  %13970 = vmatmul.mubr.msk.bf16.vlgmr.msra.gmra.mrb[244].mxu0 %vm1575_vm1, %v7336_v1  ;;  %v7920_v25 = vsel %vm1575_vm1, %v7918_v32, 0 }
 0xbfc   : > { %13980 = vmatpush3.bf16.xpose.msra.mxu0 %v7828_v54  ;;  %13951 = vmatprep.mubr.msk.bf16.mxu1 %vm16076_vm0, %v21645_v28 }
 0xbfd   : > { %13961 = vmatprep.subr.bf16.mxu1 %v21645_v28  ;;  %13981 = vmatprep.mubr.msk.bf16.mxu0 %vm16076_vm0, %v21645_v28 }
 0xbfe   : > { %13991 = vmatprep.subr.bf16.mxu0 %v21645_v28  ;;  %v8194_v3 = vpop.permute.xlu0 %8193 }
 0xc02   : > { %13952 = vmatmul.mubr.msk.bf16.vlgmr.msra.gmra.mrb[12].mxu1 %vm1575_vm1, %v19104_v63  ;;  %v8241_v46 = vpop.permute.xlu0 %8240 }
 0xc03   : > { %13962 = vmatpush3.bf16.xpose.msra.mxu1 %v7690_v30  ;;  %13982 = vmatmul.mubr.msk.bf16.vlgmr.msra.gmra.mrb[248].mxu0 %vm1575_vm1, %v7438_v58 }
 0xc04   : > { %13992 = vmatpush3.bf16.xpose.msra.mxu0 %v7920_v25  ;;  %13963 = vmatprep.mubr.msk.bf16.mxu1 %vm16076_vm0, %v21645_v28 }
 0xc05   : > { %13973 = vmatprep.subr.bf16.mxu1 %v21645_v28  ;;  %13993 = vmatprep.mubr.msk.bf16.mxu0 %vm16076_vm0, %v21645_v28 }
 0xc06   : > { %14003 = vmatprep.subr.bf16.mxu0 %v21645_v28 }
 0xc0a   : > { %13964 = vmatmul.mubr.msk.bf16.vlgmr.msra.gmra.mrb[16].mxu1 %vm1575_vm1, %v19075_v27 }
 0xc0b   : > { %13974 = vmatpush3.bf16.xpose.msra.mxu1 %v7782_v23  ;;  %13994 = vmatmul.mubr.msk.bf16.vlgmr.msra.gmra.mrb[252].mxu0 %vm1575_vm1, %v7540_v38 }
 0xc0c   : > { %14004 = vmatpush3.bf16.msra.mxu0 %v8194_v3  ;;  %13975 = vmatprep.mubr.msk.bf16.mxu1 %vm16076_vm0, %v21645_v28 }
 0xc0d   : > { %13985 = vmatprep.subr.bf16.mxu1 %v21645_v28  ;;  %14005 = vmatprep.mubr.msk.bf16.mxu0 %vm16076_vm0, %v21645_v28 }
 0xc0e   : > { %14015 = vmatprep.subr.bf16.mxu0 %v21645_v28 }
 0xc12   : > { %13976 = vmatmul.mubr.msk.bf16.vlgmr.msra.gmra.mrb[20].mxu1 %vm1575_vm1, %v19085_v61  ;;  %v19153_v8 = vpop.f32.mrb[192].mxu0 }
 0xc13   : > { %13986 = vmatpush3.bf16.xpose.msra.mxu1 %v7874_v16  ;;  %13987 = vmatprep.mubr.msk.bf16.mxu1 %vm16076_vm0, %v21645_v28  ;;  %v13815_v37 = vpop.f32.mrb[193].mxu0 }
 0xc14   : > { %13997 = vmatprep.subr.bf16.mxu1 %v21645_v28  ;;  %v19158_v41 = vpop.f32.mrb[194].mxu0 }
 0xc15   : > { %v13816_v44 = vpop.f32.mrb[195].mxu0 }
 0xc1a   : > { %13988 = vmatmul.mubr.msk.bf16.vlgmr.msra.gmra.mrb[24].mxu1 %vm1575_vm1, %v19097_v49 }
 0xc1b   : > { %13998 = vmatpush3.bf16.xpose.msra.mxu1 %v7966_v34  ;;  %13999 = vmatprep.mubr.msk.bf16.mxu1 %vm16076_vm0, %v21645_v28 }
 0xc1c   : > { %14009 = vmatprep.subr.bf16.mxu1 %v21645_v28 }
 0xc22   : > { %14000 = vmatmul.mubr.msk.bf16.vlgmr.msra.gmra.mrb[28].mxu1 %vm1575_vm1, %v19104_v63 }
 0xc23   : > { %14010 = vmatpush3.bf16.msra.mxu1 %v8241_v46  ;;  %14011 = vmatprep.mubr.msk.bf16.mxu1 %vm16076_vm0, %v21645_v28 }
 0xc24   : > { %14021 = vmatprep.subr.bf16.mxu1 %v21645_v28 }
 0xc48   : > { %v19173_v55 = vpop.f32.mrb[196].mxu0 }
 0xc49   : > { %21833 = vst [vmem:[#allocation46_spill] sm:$0xff] %v19173_v55  ;;  %v13827_v59 = vpop.f32.mrb[197].mxu0 }
 0xc4a   : > { %v19175_v57 = vpop.f32.mrb[198].mxu0 }
 0xc4b   : > { %21834 = vst [vmem:[#allocation44_spill] sm:$0xff] %v19175_v57  ;;  %v13828_v48 = vpop.f32.mrb[199].mxu0 }
 0xc4c   : > { %v19179_v13 = vpop.f32.mrb[224].mxu1 }
 0xc4d   : > { %v13821_v43 = vpop.f32.mrb[225].mxu1 }
 0xc4e   : > { %v19181_v45 = vpop.f32.mrb[226].mxu1 }
 0xc4f   : > { %v13822_v15 = vpop.f32.mrb[227].mxu1 }
 0xc50   : > { %v19185_v62 = vpop.f32.mrb[200].mxu0 }
 0xc51   : > { %21835 = vst [vmem:[#allocation118_spill] sm:$0xff] %v19185_v62  ;;  %v13839_v21 = vpop.f32.mrb[201].mxu0 }
 0xc52   : > { %v19187_v5 = vpop.f32.mrb[202].mxu0 }
 0xc53   : > { %21836 = vst [vmem:[#allocation47_spill] sm:$0xff] %v19187_v5  ;;  %v13840_v12 = vpop.f32.mrb[203].mxu0 }
 0xc54   : > { %v19191_v26 = vpop.f32.mrb[228].mxu1 }
 0xc55   : > { %21837 = vst [vmem:[#allocation37_spill] sm:$0xff] %v19191_v26  ;;  %v13833_v17 = vpop.f32.mrb[229].mxu1 }
 0xc56   : > { %v19193_v56 = vpop.f32.mrb[230].mxu1 }
 0xc57   : > { %21838 = vst [vmem:[#allocation53_spill] sm:$0xff] %v19193_v56  ;;  %v13834_v60 = vpop.f32.mrb[231].mxu1 }
 0xc5c   : > { %v19197_v35 = vpop.f32.mrb[204].mxu0 }
 0xc5d   : > { %21839 = vst [vmem:[#allocation121_spill] sm:$0xff] %v19197_v35  ;;  %v13851_v27 = vpop.f32.mrb[205].mxu0 }
 0xc5e   : > { %v19199_v2 = vpop.f32.mrb[206].mxu0 }
 0xc5f   : > { %21840 = vst [vmem:[#allocation40_spill] sm:$0xff] %v19199_v2  ;;  %v13852_v18 = vpop.f32.mrb[207].mxu0 }
 0xc60   : > { %v19203_v20 = vpop.f32.mrb[232].mxu1 }
 0xc61   : > { %21841 = vst [vmem:[#allocation57_spill] sm:$0xff] %v19203_v20  ;;  %v13845_v36 = vpop.f32.mrb[233].mxu1 }
 0xc62   : > { %v19205_v58 = vpop.f32.mrb[234].mxu1 }
 0xc63   : > { %21842 = vst [vmem:[#allocation119_spill] sm:$0xff] %v19205_v58  ;;  %v13846_v10 = vpop.f32.mrb[235].mxu1  ;;  %v19383_v58 = vpop.permute.xlu1 %8287 }
 0xc68   : > { %v19209_v9 = vpop.f32.mrb[208].mxu0 }
 0xc69   : > { %v13863_v40 = vpop.f32.mrb[209].mxu0 }
 0xc6a   : > { %v19211_v61 = vpop.f32.mrb[210].mxu0 }
 0xc6b   : > { %v13864_v38 = vpop.f32.mrb[211].mxu0 }
 0xc6d   : > { %v19215_v19 = vpop.f32.mrb[236].mxu1 }
 0xc6e   : > { %21843 = vst [vmem:[#allocation43_spill] sm:$0xff] %v19215_v19  ;;  %v13857_v4 = vpop.f32.mrb[237].mxu1 }
 0xc6f   : > { %v19217_v49 = vpop.f32.mrb[238].mxu1 }
 0xc70   : > { %21844 = vst [vmem:[#allocation61_spill] sm:$0xff] %v19217_v49  ;;  %v13858_v51 = vpop.f32.mrb[239].mxu1  ;;  %v19221_v29 = vpop.f32.mrb[212].mxu0 }
 0xc71   : > { %21845 = vst [vmem:[#allocation123_spill] sm:$0xff] %v19221_v29  ;;  %v13875_v50 = vpop.f32.mrb[213].mxu0 }
 0xc72   : > { %v19223_v47 = vpop.f32.mrb[214].mxu0 }
 0xc73   : > { %21846 = vst [vmem:[#allocation49_spill] sm:$0xff] %v19223_v47  ;;  %v13876_v52 = vpop.f32.mrb[215].mxu0 }
 0xc75   : > { %v19227_v54 = vpop.f32.mrb[240].mxu1 }
 0xc76   : > { %v13869_v42 = vpop.f32.mrb[241].mxu1 }
 0xc77   : > { %v19229_v32 = vpop.f32.mrb[242].mxu1 }
 0xc78   : > { %v13870_v25 = vpop.f32.mrb[243].mxu1  ;;  %v19233_v6 = vpop.f32.mrb[216].mxu0 }
 0xc79   : > { %21847 = vst [vmem:[#allocation48_spill] sm:$0xff] %v19233_v6  ;;  %v13887_v23 = vpop.f32.mrb[217].mxu0 }
 0xc7a   : > { %v19235_v3 = vpop.f32.mrb[218].mxu0 }
 0xc7b   : > { %21848 = vst [vmem:[#allocation51_spill] sm:$0xff] %v19235_v3  ;;  %v13888_v16 = vpop.f32.mrb[219].mxu0 }
 0xc7d   : > { %v19239_v37 = vpop.f32.mrb[244].mxu1 }
 0xc7e   : > { %21849 = vst [vmem:[#allocation120_spill] sm:$0xff] %v19239_v37  ;;  %v13881_v44 = vpop.f32.mrb[245].mxu1 }
 0xc7f   : > { %v19241_v24 = vpop.f32.mrb[246].mxu1 }
 0xc80   : > { %21850 = vst [vmem:[#allocation55_spill] sm:$0xff] %v19241_v24  ;;  %v13882_v46 = vpop.f32.mrb[247].mxu1  ;;  %v19245_v59 = vpop.f32.mrb[220].mxu0 }
 0xc81   : > { %21851 = vst [vmem:[#allocation125_spill] sm:$0xff] %v19245_v59  ;;  %v13899_v48 = vpop.f32.mrb[221].mxu0  ;;  %v19387_v59 = vpop.permute.xlu1 %8381 }
 0xc82   : > { %v19247_v43 = vpop.f32.mrb[222].mxu0 }
 0xc83   : > { %21852 = vst [vmem:[#allocation59_spill] sm:$0xff] %v19247_v43  ;;  %v13900_v21 = vpop.f32.mrb[223].mxu0 }
 0xc85   : > { %v19251_v12 = vpop.f32.mrb[248].mxu1 }
 0xc86   : > { %21853 = vst [vmem:[#allocation63_spill] sm:$0xff] %v19251_v12  ;;  %v13893_v17 = vpop.f32.mrb[249].mxu1 }
 0xc87   : > { %v19253_v60 = vpop.f32.mrb[250].mxu1 }
 0xc88   : > { %21854 = vst [vmem:[#allocation122_spill] sm:$0xff] %v19253_v60  ;;  %v13894_v18 = vpop.f32.mrb[251].mxu1 }
 0xc89   : > { %v19257_v36 = vpop.f32.mrb[224].mxu0 }
 0xc8a   : > { %v13911_v10 = vpop.f32.mrb[225].mxu0  ;;  %v8009_v40 = vsel %vm2312_vm2, %v19257_v36, -inf }
 0xc8b   : > { %8010 = vmax.xlane.f32.xlu0 %v8009_v40  ;;  %v19261_v38 = vpop.f32.mrb[226].mxu0 }
 0xc8c   : > { %v13912_v4 = vpop.f32.mrb[227].mxu0  ;;  %v8012_v51 = vsel %vm2312_vm2, %v19261_v38, -inf }
 0xc8d   : > { %8013 = vmax.xlane.f32.xlu1 %v8012_v51 }
 0xcaa   : > { %v19265_v50 = vpop.f32.mrb[228].mxu0 }
 0xcab   : > { %v13923_v52 = vpop.f32.mrb[229].mxu0  ;;  %v8021_v42 = vsel %vm2312_vm2, %v19265_v50, -inf }
 0xcac   : > { %8022 = vmax.xlane.f32.xlu0 %v8021_v42  ;;  %v19269_v25 = vpop.f32.mrb[230].mxu0 }
 0xcad   : > { %v13924_v23 = vpop.f32.mrb[231].mxu0 }
 0xcb2   : > { %v19271_v16 = vpop.f32.mrb[232].mxu0 }
 0xcb3   : > { %v13935_v44 = vpop.f32.mrb[233].mxu0 }
 0xcb4   : > { %v19273_v46 = vpop.f32.mrb[234].mxu0 }
 0xcb5   : > { %v19275_v48 = vpop.f32.mrb[252].mxu1  ;;  %v13936_v21 = vpop.f32.mrb[235].mxu0 }
 0xcb6   : > { %21855 = vst [vmem:[#allocation124_spill] sm:$0xff] %v19275_v48  ;;  %v13905_v17 = vpop.f32.mrb[253].mxu1 }
 0xcb7   : > { %v19277_v18 = vpop.f32.mrb[254].mxu1 }
 0xcb8   : > { %21856 = vst [vmem:[#allocation127_spill] sm:$0xff] %v19277_v18  ;;  %v13906_v40 = vpop.f32.mrb[255].mxu1  ;;  %v21857_v18 = vld [vmem:[#allocation50_spill] sm:$0xff] }
 0xcba   : > { %v19281_v4 = vpop.f32.mrb[236].mxu0 }
 0xcbb   : > { %v13947_v51 = vpop.f32.mrb[237].mxu0 }
 0xcbc   : > { %v19283_v52 = vpop.f32.mrb[238].mxu0  ;;  %v8024_v51 = vsel %vm2312_vm2, %v19269_v25, -inf }
 0xcbd   : > { %v19285_v42 = vpop.f32.mrb[0].mxu1  ;;  %v13948_v23 = vpop.f32.mrb[239].mxu0 }
 0xcbe   : > { %v13917_v44 = vpop.f32.mrb[1].mxu1  ;;  %v8015_v63 = vsel %vm2312_vm2, %v19285_v42, -inf }
 0xcbf   : > { %8016 = vmax.xlane.f32.xlu0 %v8015_v63  ;;  %v19289_v21 = vpop.f32.mrb[2].mxu1  ;;  %v8036_v44 = vsel %vm2312_vm2, %v19273_v46, -inf }
 0xcc0   : > { %v13918_v17 = vpop.f32.mrb[3].mxu1  ;;  %v8018_v39 = vsel %vm2312_vm2, %v19289_v21, -inf }
 0xcc1   : > { %8019 = vmax.xlane.f32.xlu1 %v8018_v39  ;;  %v8033_v39 = vsel %vm2312_vm2, %v19271_v16, -inf }
 0xcc2   : > { %v19293_v40 = vpop.f32.mrb[240].mxu0 }
 0xcc3   : > { %v13959_v10 = vpop.f32.mrb[241].mxu0  ;;  %8025 = vmax.xlane.f32.xlu0 %v8024_v51 }
 0xcc4   : > { %v19297_v23 = vpop.f32.mrb[242].mxu0 }
 0xcc5   : > { %v13960_v63 = vpop.f32.mrb[243].mxu0  ;;  %8037 = vmax.xlane.f32.xlu1 %v8036_v44  ;;  %v19301_v53 = vpop.f32.mrb[4].mxu1  ;;  %v8048_v44 = vsel %vm2312_vm2, %v19283_v52, -inf }
 0xcc6   : > { %v13929_v17 = vpop.f32.mrb[5].mxu1  ;;  %v8027_v51 = vsel %vm2312_vm2, %v19301_v53, -inf }
 0xcc7   : > { %8034 = vmax.xlane.f32.xlu0 %v8033_v39  ;;  %v19305_v15 = vpop.f32.mrb[6].mxu1 }
 0xcc8   : > { %v13930_v0 = vpop.f32.mrb[7].mxu1  ;;  %v8030_v10 = vsel %vm2312_vm2, %v19305_v15, -inf }
 0xcc9   : > { %8031 = vmax.xlane.f32.xlu1 %v8030_v10  ;;  %v8045_v0 = vsel %vm2312_vm2, %v19281_v4, -inf }
 0xccb   : > { %8028 = vmax.xlane.f32.xlu0 %v8027_v51 }
 0xccd   : > { %8049 = vmax.xlane.f32.xlu1 %v8048_v44  ;;  %v19313_v63 = vpop.f32.mrb[8].mxu1 }
 0xcce   : > { %v13941_v17 = vpop.f32.mrb[9].mxu1  ;;  %v19315_v27 = vpop.f32.mrb[244].mxu0  ;;  %v8039_v44 = vsel %vm2312_vm2, %v19313_v63, -inf }
 0xccf   : > { %v13971_v39 = vpop.f32.mrb[245].mxu0  ;;  %8046 = vmax.xlane.f32.xlu0 %v8045_v0  ;;  %v19319_v1 = vpop.f32.mrb[10].mxu1  ;;  %v8572_v17 = vsel %vm2312_vm2, %v19297_v23, -inf }
 0xcd0   : > { %v13942_v10 = vpop.f32.mrb[11].mxu1  ;;  %v19321_v31 = vpop.f32.mrb[246].mxu0  ;;  %v8042_v51 = vsel %vm2312_vm2, %v19319_v1, -inf }
 0xcd1   : > { %v13972_v34 = vpop.f32.mrb[247].mxu0  ;;  %8043 = vmax.xlane.f32.xlu1 %v8042_v51  ;;  %v8569_v10 = vsel %vm2312_vm2, %v19293_v40, -inf }
 0xcd3   : > { %8040 = vmax.xlane.f32.xlu0 %v8039_v44 }
 0xcd5   : > { %8573 = vmax.xlane.f32.xlu1 %v8572_v17  ;;  %v19329_v39 = vpop.f32.mrb[12].mxu1 }
 0xcd6   : > { %v13953_v0 = vpop.f32.mrb[13].mxu1  ;;  %v19331_v22 = vpop.f32.mrb[248].mxu0  ;;  %v8051_v17 = vsel %vm2312_vm2, %v19329_v39, -inf }
 0xcd7   : > { %v13983_v33 = vpop.f32.mrb[249].mxu0  ;;  %8570 = vmax.xlane.f32.xlu0 %v8569_v10  ;;  %v19335_v34 = vpop.f32.mrb[14].mxu1  ;;  %v8593_v2 = vsel %vm2312_vm2, %v19331_v22, -inf }
 0xcd8   : > { %v13954_v51 = vpop.f32.mrb[15].mxu1  ;;  %v19337_v30 = vpop.f32.mrb[250].mxu0  ;;  %v8054_v44 = vsel %vm2312_vm2, %v19335_v34, -inf }
 0xcd9   : > { %v13984_v11 = vpop.f32.mrb[251].mxu0  ;;  %8055 = vmax.xlane.f32.xlu1 %v8054_v44  ;;  %v8596_v56 = vsel %vm2312_vm2, %v19337_v30, -inf }
 0xcdb   : > { %8052 = vmax.xlane.f32.xlu0 %v8051_v17 }
 0xcdd   : > { %v19343_v0 = vpop.f32.mrb[16].mxu1 }
 0xcde   : > { %v13965_v14 = vpop.f32.mrb[17].mxu1  ;;  %v19345_v7 = vpop.f32.mrb[252].mxu0  ;;  %v8575_v33 = vsel %vm2312_vm2, %v19343_v0, -inf }
 0xcdf   : > { %v13995_v10 = vpop.f32.mrb[253].mxu0  ;;  %8576 = vmax.xlane.f32.xlu0 %v8575_v33  ;;  %v19349_v51 = vpop.f32.mrb[18].mxu1  ;;  %v8581_v14 = vsel %vm2312_vm2, %v19315_v27, -inf }
 0xce0   : > { %v13966_v19 = vpop.f32.mrb[19].mxu1  ;;  %v19351_v49 = vpop.f32.mrb[254].mxu0  ;;  %v8578_v11 = vsel %vm2312_vm2, %v19349_v51, -inf }
 0xce1   : > { %v13996_v44 = vpop.f32.mrb[255].mxu0  ;;  %8579 = vmax.xlane.f32.xlu1 %v8578_v11 }
 0xce3   : > { %8582 = vmax.xlane.f32.xlu0 %v8581_v14 }
 0xce5   : > { %v19357_v17 = vpop.f32.mrb[20].mxu1 }
 0xce6   : > { %v13977_v35 = vpop.f32.mrb[21].mxu1  ;;  %v8587_v33 = vsel %vm2312_vm2, %v19357_v17, -inf }
 0xce7   : > { %8588 = vmax.xlane.f32.xlu0 %v8587_v33  ;;  %v19361_v10 = vpop.f32.mrb[22].mxu1  ;;  %v8605_v33 = vsel %vm2312_vm2, %v19345_v7, -inf }
 0xce8   : > { %v13978_v19 = vpop.f32.mrb[23].mxu1 }
 0xceb   : > { %8594 = vmax.xlane.f32.xlu0 %v8593_v2 }
 0xced   : > { %v19365_v44 = vpop.f32.mrb[24].mxu1 }
 0xcee   : > { %v13989_v11 = vpop.f32.mrb[25].mxu1  ;;  %v8599_v14 = vsel %vm2312_vm2, %v19365_v44, -inf }
 0xcef   : > { %8600 = vmax.xlane.f32.xlu0 %v8599_v14  ;;  %v19369_v48 = vpop.f32.mrb[26].mxu1  ;;  %v8608_v11 = vsel %vm2312_vm2, %v19351_v49, -inf }
 0xcf0   : > { %v13990_v35 = vpop.f32.mrb[27].mxu1 }
 0xcf2   : > { %8800 = vrot.lane.b32.xlu1 %v21857_v18, %s16079_s3  ;;  %v19385_v18 = vpop.permute.xlu0 %8334 }
 0xcf3   : > { %8606 = vmax.xlane.f32.xlu0 %v8605_v33 }
 0xcf5   : > { %v19375_v19 = vpop.f32.mrb[28].mxu1 }
 0xcf6   : > { %v14001_v2 = vpop.f32.mrb[29].mxu1  ;;  %v8611_v35 = vsel %vm2312_vm2, %v19375_v19, -inf  ;;  %v19389_v33 = vpop.permute.xlu0 %8428 }
 0xcf7   : > { %8609 = vmax.xlane.f32.xlu0 %v8608_v11  ;;  %v19379_v20 = vpop.f32.mrb[30].mxu1  ;;  %v19391_v2 = vpop.permute.xlu1 %8475  ;;  %v8584_v11 = vsel %vm2312_vm2, %v19321_v31, -inf }
 0xcf8   : > { %v14002_v14 = vpop.f32.mrb[31].mxu1  ;;  %v8614_v3 = vsel %vm2312_vm2, %v19379_v20, -inf }
 0xcfa   : > { %v19393_v43 = vpop.permute.xlu0 %8522 }
 0xcfb   : > { %8612 = vmax.xlane.f32.xlu0 %v8611_v35  ;;  %v19397_v14 = vpop.permute.xlu1 %8753  ;;  %v8590_v35 = vsel %vm2312_vm2, %v19361_v10, -inf }
 0xd16   : > { %8585 = vmax.xlane.f32.xlu1 %v8584_v11  ;;  %v8602_v11 = vsel %vm2312_vm2, %v19369_v48, -inf }
 0xd18   : > { %v8011_v62 = vpop.xlane.xlu0 %8010 }
 0xd19   : > { %v8057_v5 = vsub.f32 %v19257_v36, %v8011_v62 }
 0xd1a   : > { %8591 = vmax.xlane.f32.xlu1 %v8590_v35  ;;  %v8014_v12 = vpop.xlane.xlu1 %8013 }
 0xd1b   : > { %v8073_v60 = vmul.f32 1.442695, %v8057_v5  ;;  %v8058_v26 = vsub.f32 %v19261_v38, %v8014_v12 }
 0xd1d   : > { %15144 = vpow2.f32 %v8073_v60  ;;  %v8075_v6 = vmul.f32 1.442695, %v8058_v26 }
 0xd1e   : > { %8597 = vmax.xlane.f32.xlu1 %v8596_v56  ;;  %v21858_v56 = vld [vmem:[#allocation52_spill] sm:$0xff] }
 0xd1f   : > { %15146 = vpow2.f32 %v8075_v6 }
 0xd22   : > { %8603 = vmax.xlane.f32.xlu1 %v8602_v11 }
 0xd26   : > { %8615 = vmax.xlane.f32.xlu1 %v8614_v3 }
 0xd27   : > { %v19409_v62 = vpop.eup %15144 }
 0xd28   : > { %v8105_v5 = vsel %vm2312_vm2, %v19409_v62, 0.0 }
 0xd29   : > { %v19413_v12 = vpop.eup %15146  ;;  %8106 = vadd.xlane.f32.xlu0 %v8105_v5 }
 0xd2a   : > { %v8108_v26 = vsel %vm2312_vm2, %v19413_v12, 0.0 }
 0xd2b   : > { %8109 = vadd.xlane.f32.xlu1 %v8108_v26 }
 0xd39   : > { %v8023_v6 = vpop.xlane.xlu0 %8022 }
 0xd3a   : > { %v8061_v60 = vsub.f32 %v19265_v50, %v8023_v6 }
 0xd3c   : > { %v8081_v3 = vmul.f32 1.442695, %v8061_v60 }
 0xd3e   : > { %15148 = vpow2.f32 %v8081_v3 }
 0xd3f   : > { %8847 = vrot.lane.b32.xlu0 %v21858_v56, %s16079_s3 }
 0xd48   : > { %v19427_v3 = vpop.eup %15148 }
 0xd4c   : > { %v8017_v36 = vpop.xlane.xlu0 %8016 }
 0xd4d   : > { %v8059_v38 = vsub.f32 %v19285_v42, %v8017_v36 }
 0xd4e   : > { %v8020_v35 = vpop.xlane.xlu1 %8019 }
 0xd4f   : > { %v8060_v11 = vsub.f32 %v19289_v21, %v8020_v35  ;;  %v8077_v37 = vmul.f32 1.442695, %v8059_v38 }
 0xd50   : > { %v8026_v24 = vpop.xlane.xlu0 %8025 }
 0xd51   : > { %v8062_v5 = vsub.f32 %v19269_v25, %v8026_v24  ;;  %v8079_v26 = vmul.f32 1.442695, %v8060_v11  ;;  %15150 = vpow2.f32 %v8077_v37 }
 0xd52   : > { %v8038_v29 = vpop.xlane.xlu1 %8037 }
 0xd53   : > { %v8083_v47 = vmul.f32 1.442695, %v8062_v5  ;;  %v8066_v56 = vsub.f32 %v19273_v46, %v8038_v29 }
 0xd54   : > { %v8035_v55 = vpop.xlane.xlu0 %8034 }
 0xd55   : > { %15152 = vpow2.f32 %v8083_v47  ;;  %v8065_v50 = vsub.f32 %v19271_v16, %v8035_v55  ;;  %v8091_v42 = vmul.f32 1.442695, %v8066_v56  ;;  %v8117_v16 = vsel %vm2312_vm2, %v19427_v3, 0.0 }
 0xd56   : > { %v8032_v6 = vpop.xlane.xlu1 %8031  ;;  %15154 = vpow2.f32 %v8079_v26 }
 0xd57   : > { %v8089_v60 = vmul.f32 1.442695, %v8065_v50  ;;  %v8064_v21 = vsub.f32 %v19305_v15, %v8032_v6 }
 0xd58   : > { %v8029_v36 = vpop.xlane.xlu0 %8028 }
 0xd59   : > { %15156 = vpow2.f32 %v8089_v60  ;;  %v8063_v24 = vsub.f32 %v19301_v53, %v8029_v36  ;;  %v8087_v29 = vmul.f32 1.442695, %v8064_v21 }
 0xd5a   : > { %v8050_v25 = vpop.xlane.xlu1 %8049  ;;  %15158 = vpow2.f32 %v8091_v42 }
 0xd5b   : > { %v8085_v37 = vmul.f32 1.442695, %v8063_v24  ;;  %v19430_v47 = vpop.eup %15150  ;;  %v8070_v53 = vsub.f32 %v19283_v52, %v8050_v25 }
 0xd5c   : > { %v8047_v46 = vpop.xlane.xlu0 %8046  ;;  %v8111_v56 = vsel %vm2312_vm2, %v19430_v47, 0.0 }
 0xd5d   : > { %15160 = vpow2.f32 %v8085_v37  ;;  %v8069_v55 = vsub.f32 %v19281_v4, %v8047_v46  ;;  %v8099_v6 = vmul.f32 1.442695, %v8070_v53 }
 0xd5e   : > { %15162 = vpow2.f32 %v8087_v29  ;;  %8118 = vadd.xlane.f32.xlu0 %v8117_v16  ;;  %v8044_v35 = vpop.xlane.xlu1 %8043 }
 0xd5f   : > { %v19434_v15 = vpop.eup %15152  ;;  %v8097_v38 = vmul.f32 1.442695, %v8069_v55  ;;  %v8068_v52 = vsub.f32 %v19319_v1, %v8044_v35 }
 0xd60   : > { %v8041_v11 = vpop.xlane.xlu0 %8040  ;;  %v8120_v5 = vsel %vm2312_vm2, %v19434_v15, 0.0  ;;  %v19439_v26 = vpop.eup %15154 }
 0xd61   : > { %15164 = vpow2.f32 %v8097_v38  ;;  %v8067_v4 = vsub.f32 %v19313_v63, %v8041_v11  ;;  %8121 = vadd.xlane.f32.xlu1 %v8120_v5  ;;  %v8114_v36 = vsel %vm2312_vm2, %v19439_v26, 0.0  ;;  %v8095_v29 = vmul.f32 1.442695, %v8068_v52 }
 0xd62   : > { %8112 = vadd.xlane.f32.xlu0 %v8111_v56  ;;  %v8574_v63 = vpop.xlane.xlu1 %8573 }
 0xd63   : > { %v19444_v50 = vpop.eup %15156  ;;  %v8093_v42 = vmul.f32 1.442695, %v8067_v4  ;;  %v8618_v35 = vsub.f32 %v19297_v23, %v8574_v63 }
 0xd64   : > { %v8571_v60 = vpop.xlane.xlu0 %8570  ;;  %v8129_v21 = vsel %vm2312_vm2, %v19444_v50, 0.0  ;;  %v19451_v24 = vpop.eup %15158 }
 0xd65   : > { %15166 = vpow2.f32 %v8093_v42  ;;  %8115 = vadd.xlane.f32.xlu1 %v8114_v36  ;;  %v8617_v1 = vsub.f32 %v19293_v40, %v8571_v60  ;;  %v8132_v55 = vsel %vm2312_vm2, %v19451_v24, 0.0  ;;  %v8635_v42 = vmul.f32 1.442695, %v8618_v35 }
 0xd66   : > { %15168 = vpow2.f32 %v8099_v6  ;;  %8130 = vadd.xlane.f32.xlu0 %v8129_v21  ;;  %v8056_v5 = vpop.xlane.xlu1 %8055 }
 0xd67   : > { %v19453_v25 = vpop.eup %15160  ;;  %15170 = vpow2.f32 %v8095_v29  ;;  %v8633_v11 = vmul.f32 1.442695, %v8617_v1  ;;  %v8072_v23 = vsub.f32 %v19335_v34, %v8056_v5 }
 0xd68   : > { %v8053_v37 = vpop.xlane.xlu0 %8052  ;;  %v8123_v46 = vsel %vm2312_vm2, %v19453_v25, 0.0  ;;  %v19460_v16 = vpop.eup %15162 }
 0xd69   : > { %v8071_v53 = vsub.f32 %v19329_v39, %v8053_v37  ;;  %8133 = vadd.xlane.f32.xlu1 %v8132_v55  ;;  %v8126_v6 = vsel %vm2312_vm2, %v19460_v16, 0.0 }
 0xd6a   : > { %8124 = vadd.xlane.f32.xlu0 %v8123_v46 }
 0xd6b   : > { %v19463_v38 = vpop.eup %15164  ;;  %v8101_v40 = vmul.f32 1.442695, %v8071_v53 }
 0xd6c   : > { %v8577_v4 = vpop.xlane.xlu0 %8576  ;;  %v8141_v56 = vsel %vm2312_vm2, %v19463_v38, 0.0 }
 0xd6d   : > { %15172 = vpow2.f32 %v8101_v40  ;;  %v8619_v39 = vsub.f32 %v19343_v0, %v8577_v4  ;;  %8127 = vadd.xlane.f32.xlu1 %v8126_v6  ;;  %v8103_v0 = vmul.f32 1.442695, %v8072_v23 }
 0xd6e   : > { %15174 = vpow2.f32 %v8633_v11  ;;  %8142 = vadd.xlane.f32.xlu0 %v8141_v56  ;;  %v8580_v21 = vpop.xlane.xlu1 %8579 }
 0xd6f   : > { %v19471_v52 = vpop.eup %15166  ;;  %v8637_v60 = vmul.f32 1.442695, %v8619_v39  ;;  %v8620_v37 = vsub.f32 %v19349_v51, %v8580_v21 }
 0xd70   : > { %v8583_v36 = vpop.xlane.xlu0 %8582  ;;  %v8135_v63 = vsel %vm2312_vm2, %v19471_v52, 0.0  ;;  %v19476_v29 = vpop.eup %15168 }
 0xd71   : > { %15176 = vpow2.f32 %v8637_v60  ;;  %v8621_v1 = vsub.f32 %v19315_v27, %v8583_v36  ;;  %8136 = vadd.xlane.f32.xlu1 %v8135_v63  ;;  %v8144_v34 = vsel %vm2312_vm2, %v19476_v29, 0.0  ;;  %v19482_v53 = vpop.eup %15170  ;;  %v8639_v27 = vmul.f32 1.442695, %v8620_v37 }
 0xd72   : > { %15178 = vpow2.f32 %v8635_v42  ;;  %v8138_v51 = vsel %vm2312_vm2, %v19482_v53, 0.0 }
 0xd73   : > { %v8641_v46 = vmul.f32 1.442695, %v8621_v1 }
 0xd74   : > { %v8589_v55 = vpop.xlane.xlu0 %8588 }
 0xd75   : > { %15180 = vpow2.f32 %v8641_v46  ;;  %v8623_v35 = vsub.f32 %v19357_v17, %v8589_v55  ;;  %8145 = vadd.xlane.f32.xlu1 %v8144_v34  ;;  %v21859_v55 = vld [vmem:[#allocation56_spill] sm:$0xff]  ;;  %v19521_v34 = vpop.permute.xlu1 %8800 }
 0xd76   : > { %15182 = vpow2.f32 %v8103_v0 }
 0xd77   : > { %v19485_v11 = vpop.eup %15172  ;;  %v8645_v40 = vmul.f32 1.442695, %v8623_v35 }
 0xd78   : > { %v8147_v5 = vsel %vm2312_vm2, %v19485_v11, 0.0  ;;  %v19491_v4 = vpop.eup %15174  ;;  %v8595_v46 = vpop.xlane.xlu0 %8594 }
 0xd79   : > { %15184 = vpow2.f32 %v8645_v40  ;;  %8148 = vadd.xlane.f32.xlu0 %v8147_v5  ;;  %8139 = vadd.xlane.f32.xlu1 %v8138_v51  ;;  %v8665_v6 = vsel %vm2312_vm2, %v19491_v4, 0.0 }
 0xd7a   : > { %15186 = vpow2.f32 %v8639_v27  ;;  %v8625_v27 = vsub.f32 %v19331_v22, %v8595_v46 }
 0xd7b   : > { %v19493_v56 = vpop.eup %15176 }
 0xd7c   : > { %v8671_v17 = vsel %vm2312_vm2, %v19493_v56, 0.0  ;;  %v19499_v39 = vpop.eup %15178  ;;  %v8601_v35 = vpop.xlane.xlu0 %8600 }
 0xd7d   : > { %8672 = vadd.xlane.f32.xlu0 %v8671_v17  ;;  %8666 = vadd.xlane.f32.xlu1 %v8665_v6  ;;  %v8668_v60 = vsel %vm2312_vm2, %v19499_v39, 0.0  ;;  %v8627_v5 = vsub.f32 %v19365_v44, %v8601_v35  ;;  %v8649_v17 = vmul.f32 1.442695, %v8625_v27 }
 0xd7f   : > { %v19501_v42 = vpop.eup %15180 }
 0xd80   : > { %v8677_v23 = vsel %vm2312_vm2, %v19501_v42, 0.0  ;;  %v19507_v21 = vpop.eup %15182 }
 0xd81   : > { %8678 = vadd.xlane.f32.xlu0 %v8677_v23  ;;  %8669 = vadd.xlane.f32.xlu1 %v8668_v60  ;;  %v8150_v1 = vsel %vm2312_vm2, %v19507_v21, 0.0  ;;  %v8607_v23 = vpop.xlane.xlu0 %8606 }
 0xd83   : > { %v19509_v36 = vpop.eup %15184 }
 0xd84   : > { %v8683_v63 = vsel %vm2312_vm2, %v19509_v36, 0.0  ;;  %v19515_v0 = vpop.eup %15186 }
 0xd85   : > { %8684 = vadd.xlane.f32.xlu0 %v8683_v63  ;;  %8151 = vadd.xlane.f32.xlu1 %v8150_v1  ;;  %v8674_v37 = vsel %vm2312_vm2, %v19515_v0, 0.0  ;;  %v8653_v63 = vmul.f32 1.442695, %v8627_v5  ;;  %v8610_v22 = vpop.xlane.xlu0 %8609 }
 0xd89   : > { %8675 = vadd.xlane.f32.xlu1 %v8674_v37 }
 0xd9b   : > { %8941 = vrot.lane.b32.xlu0 %v21859_v55, %s16079_s3 }
 0xda3   : > { %v8586_v40 = vpop.xlane.xlu1 %8585 }
 0xda4   : > { %v8622_v51 = vsub.f32 %v19321_v31, %v8586_v40  ;;  %v8613_v31 = vpop.xlane.xlu0 %8612 }
 0xda6   : > { %v8643_v6 = vmul.f32 1.442695, %v8622_v51 }
 0xda7   : > { %v8592_v60 = vpop.xlane.xlu1 %8591 }
 0xda8   : > { %15188 = vpow2.f32 %v8643_v6  ;;  %v8624_v1 = vsub.f32 %v19361_v10, %v8592_v60 }
 0xda9   : > { %15190 = vpow2.f32 %v8649_v17 }
 0xdaa   : > { %v8647_v37 = vmul.f32 1.442695, %v8624_v1  ;;  %15192 = vpow2.f32 %v8653_v63 }
 0xdab   : > { %v8598_v55 = vpop.xlane.xlu1 %8597 }
 0xdac   : > { %v8626_v57 = vsub.f32 %v19337_v30, %v8598_v55  ;;  %15194 = vpow2.f32 %v8647_v37 }
 0xdae   : > { %v8651_v46 = vmul.f32 1.442695, %v8626_v57 }
 0xdaf   : > { %v8604_v44 = vpop.xlane.xlu1 %8603 }
 0xdb0   : > { %15196 = vpow2.f32 %v8651_v46 }
 0xdb2   : > { %v19528_v35 = vpop.eup %15188 }
 0xdb3   : > { %v8616_v27 = vpop.xlane.xlu1 %8615  ;;  %v8680_v40 = vsel %vm2312_vm2, %v19528_v35, 0.0  ;;  %v19532_v5 = vpop.eup %15190 }
 0xdb4   : > { %8681 = vadd.xlane.f32.xlu1 %v8680_v40  ;;  %v19534_v10 = vpop.eup %15192  ;;  %v8689_v30 = vsel %vm2312_vm2, %v19532_v5, 0.0 }
 0xdb5   : > { %v8695_v6 = vsel %vm2312_vm2, %v19534_v10, 0.0 }
 0xdb6   : > { %v8107_v51 = vpop.xlane.xlu0 %8106  ;;  %v19538_v17 = vpop.eup %15194 }
 0xdb7   : > { %15198 = vrcp.f32 %v8107_v51  ;;  %v8686_v60 = vsel %vm2312_vm2, %v19538_v17, 0.0 }
 0xdb8   : > { %8690 = vadd.xlane.f32.xlu1 %v8689_v30  ;;  %v8110_v57 = vpop.xlane.xlu1 %8109  ;;  %v21860_v30 = vld [vmem:[#allocation58_spill] sm:$0xff] }
 0xdb9   : > { %15200 = vrcp.f32 %v8110_v57  ;;  %v21861_v57 = vld [vmem:[#allocation54_spill] sm:$0xff] }
 0xdba   : > { %8696 = vadd.xlane.f32.xlu0 %v8695_v6  ;;  %v19544_v63 = vpop.eup %15196 }
 0xdbb   : > { %v8692_v1 = vsel %vm2312_vm2, %v19544_v63, 0.0 }
 0xdbc   : > { %8687 = vadd.xlane.f32.xlu1 %v8686_v60 }
 0xdc0   : > { %8693 = vadd.xlane.f32.xlu1 %v8692_v1  ;;  %v8630_v1 = vsub.f32 %v19351_v49, %v8610_v22 }
 0xdc1   : > { %v15199_v37 = vpop.eup %15198 }
 0xdc2   : > { %v8169_v46 = vmul.f32 %v15199_v37, %v19409_v62  ;;  %v8632_v62 = vsub.f32 %v19379_v20, %v8616_v27 }
 0xdc3   : > { %v15201_v55 = vpop.eup %15200 }
 0xdc4   : > { %v8170_v40 = vmul.f32 %v15201_v55, %v19413_v12  ;;  %v8663_v6 = vmul.f32 1.442695, %v8632_v62  ;;  %v8629_v12 = vsub.f32 %v19345_v7, %v8607_v23  ;;  %v19563_v55 = vpop.permute.xlu0 %8847 }
 0xdc6   : > { %v8185_v51 = vpack.c.bf16 %v8170_v40, %v8169_v46  ;;  %15202 = vpow2.f32 %v8663_v6  ;;  %v8657_v60 = vmul.f32 1.442695, %v8629_v12  ;;  %v8659_v46 = vmul.f32 1.442695, %v8630_v1 }
 0xdc7   : > { %v8631_v40 = vsub.f32 %v19375_v19, %v8613_v31 }
 0xdc8   : > { %14006 = vmatmul.mubr.msk.bf16.vlgmr.msra.gmra.mrb[0].mxu0 %vm2312_vm2, %v8185_v51  ;;  %15204 = vpow2.f32 %v8657_v60 }
 0xdc9   : > { %14016 = vmatpush3.bf16.msra.mxu0 %v19383_v58  ;;  %14017 = vmatprep.mubr.msk.bf16.mxu0 %vm16076_vm0, %v21645_v28  ;;  %v8628_v58 = vsub.f32 %v19369_v48, %v8604_v44  ;;  %v8661_v7 = vmul.f32 1.442695, %v8631_v40 }
 0xdca   : > { %14027 = vmatprep.subr.bf16.mxu0 %v21645_v28 }
 0xdcb   : > { %v8655_v37 = vmul.f32 1.442695, %v8628_v58 }
 0xdcd   : > { %15206 = vpow2.f32 %v8655_v37 }
 0xdd0   : > { %8988 = vrot.lane.b32.xlu0 %v21860_v30, %s16079_s3  ;;  %v19566_v51 = vpop.eup %15202 }
 0xdd1   : > { %8894 = vrot.lane.b32.xlu1 %v21861_v57, %s16079_s3  ;;  %v8710_v48 = vsel %vm2312_vm2, %v19566_v51, 0.0 }
 0xdd2   : > { %v19570_v22 = vpop.eup %15204 }
 0xdd3   : > { %v8701_v31 = vsel %vm2312_vm2, %v19570_v22, 0.0 }
 0xdd7   : > { %v19574_v27 = vpop.eup %15206 }
 0xdd8   : > { %v8698_v12 = vsel %vm2312_vm2, %v19574_v27, 0.0 }
 0xdeb   : > { %v8119_v20 = vpop.xlane.xlu0 %8118 }
 0xdec   : > { %15208 = vrcp.f32 %v8119_v20 }
 0xded   : > { %15210 = vpow2.f32 %v8659_v46 }
 0xdee   : > { %v8122_v23 = vpop.xlane.xlu1 %8121 }
 0xdef   : > { %15212 = vrcp.f32 %v8122_v23  ;;  %8711 = vadd.xlane.f32.xlu0 %v8710_v48  ;;  %v8113_v49 = vpop.xlane.xlu0 %8112 }
 0xdf0   : > { %15214 = vrcp.f32 %v8113_v49 }
 0xdf1   : > { %15216 = vpow2.f32 %v8661_v7 }
 0xdf2   : > { %v8116_v44 = vpop.xlane.xlu1 %8115 }
 0xdf3   : > { %15218 = vrcp.f32 %v8116_v44  ;;  %v8131_v19 = vpop.xlane.xlu0 %8130 }
 0xdf4   : > { %15220 = vrcp.f32 %v8131_v19 }
 0xdf5   : > { %8702 = vadd.xlane.f32.xlu1 %v8701_v31 }
 0xdf6   : > { %v8134_v30 = vpop.xlane.xlu1 %8133  ;;  %v15209_v57 = vpop.eup %15208 }
 0xdf7   : > { %15222 = vrcp.f32 %v8134_v30  ;;  %v19576_v62 = vpop.eup %15210  ;;  %v8125_v6 = vpop.xlane.xlu0 %8124  ;;  %v8173_v58 = vmul.f32 %v15209_v57, %v19427_v3 }
 0xdf8   : > { %15224 = vrcp.f32 %v8125_v6  ;;  %v8704_v7 = vsel %vm2312_vm2, %v19576_v62, 0.0 }
 0xdf9   : > { %v15213_v60 = vpop.eup %15212  ;;  %8699 = vadd.xlane.f32.xlu1 %v8698_v12 }
 0xdfa   : > { %v8174_v1 = vmul.f32 %v15213_v60, %v19434_v15  ;;  %v8128_v37 = vpop.xlane.xlu1 %8127  ;;  %v15215_v46 = vpop.eup %15214  ;;  %v21862_v60 = vld [vmem:[#allocation99_spill] sm:$0xff] }
 0xdfb   : > { %15226 = vrcp.f32 %v8128_v37  ;;  %v19582_v40 = vpop.eup %15216  ;;  %v8171_v48 = vmul.f32 %v15215_v46, %v19430_v47  ;;  %v8143_v44 = vpop.xlane.xlu0 %8142 }
 0xdfc   : > { %v8187_v20 = vpack.c.bf16 %v8174_v1, %v8173_v58  ;;  %v8707_v31 = vsel %vm2312_vm2, %v19582_v40, 0.0  ;;  %15228 = vrcp.f32 %v8143_v44  ;;  %v21863_v58 = vld [vmem:[#allocation101_spill] sm:$0xff] }
 0xdfd   : > { %v15219_v23 = vpop.eup %15218  ;;  %8705 = vadd.xlane.f32.xlu1 %v8704_v7 }
 0xdfe   : > { %v8172_v49 = vmul.f32 %v15219_v23, %v19439_v26  ;;  %14018 = vmatmul.mubr.msk.bf16.vlgmr.msra.gmra.mrb[4].mxu0 %vm2312_vm2, %v8187_v20  ;;  %v8137_v3 = vpop.xlane.xlu1 %8136  ;;  %v15221_v15 = vpop.eup %15220 }
 0xdff   : > { %14028 = vmatpush3.bf16.msra.mxu0 %v19387_v59  ;;  %14029 = vmatprep.mubr.msk.bf16.mxu0 %vm16076_vm0, %v21645_v28  ;;  %v8177_v47 = vmul.f32 %v15221_v15, %v19444_v50  ;;  %v21864_v50 = vpack.i.bf16 %v21862_v60, %v21863_v58  ;;  %v21870_v60 = vpack.i.bf16 %v19158_v41, %v19153_v8 }
 0xe00   : > { %v8186_v19 = vpack.c.bf16 %v8172_v49, %v8171_v48  ;;  %14039 = vmatprep.subr.bf16.mxu0 %v21645_v28  ;;  %v21871_v8 = vpack.i.bf16 %v19211_v61, %v19209_v9 }
 0xe01   : > { %v15223_v30 = vpop.eup %15222  ;;  %8708 = vadd.xlane.f32.xlu1 %v8707_v31 }
 0xe02   : > { %v8178_v26 = vmul.f32 %v15223_v30, %v19451_v24  ;;  %14012 = vmatmul.mubr.msk.bf16.vlgmr.msra.gmra.mrb[32].mxu1 %vm2312_vm2, %v8186_v19  ;;  %v8146_v57 = vpop.xlane.xlu1 %8145  ;;  %v15225_v59 = vpop.eup %15224  ;;  %v21866_v19 = vld [vmem:[#allocation62_spill] sm:$0xff] }
 0xe03   : > { %14022 = vmatpush3.bf16.msra.mxu1 %v19385_v18  ;;  %15230 = vrcp.f32 %v8146_v57  ;;  %14023 = vmatprep.mubr.msk.bf16.mxu1 %vm16076_vm0, %v21645_v28  ;;  %v8175_v24 = vmul.f32 %v15225_v59, %v19453_v25 }
 0xe04   : > { %v8189_v6 = vpack.c.bf16 %v8178_v26, %v8177_v47  ;;  %14033 = vmatprep.subr.bf16.mxu1 %v21645_v28  ;;  %15232 = vrcp.f32 %v8137_v3 }
 0xe05   : > { %v15227_v12 = vpop.eup %15226  ;;  %14347 = vrot.lane.b32.xlu0 %v21864_v50, %s16079_s3 }
 0xe06   : > { %v8176_v1 = vmul.f32 %v15227_v12, %v19460_v16  ;;  %14030 = vmatmul.mubr.msk.bf16.vlgmr.msra.gmra.mrb[8].mxu0 %vm2312_vm2, %v8189_v6  ;;  %v8140_v18 = vpop.xlane.xlu1 %8139  ;;  %v15229_v20 = vpop.eup %15228 }
 0xe07   : > { %14040 = vmatpush3.bf16.msra.mxu0 %v19391_v2  ;;  %14041 = vmatprep.mubr.msk.bf16.mxu0 %vm16076_vm0, %v21645_v28  ;;  %15234 = vrcp.f32 %v8140_v18  ;;  %v8181_v2 = vmul.f32 %v15229_v20, %v19463_v38  ;;  %v8149_v23 = vpop.xlane.xlu0 %8148 }
 0xe08   : > { %v8188_v37 = vpack.c.bf16 %v8176_v1, %v8175_v24  ;;  %14051 = vmatprep.subr.bf16.mxu0 %v21645_v28 }
 0xe0a   : > { %14024 = vmatmul.mubr.msk.bf16.vlgmr.msra.gmra.mrb[36].mxu1 %vm2312_vm2, %v8188_v37  ;;  %v8667_v46 = vpop.xlane.xlu1 %8666 }
 0xe0b   : > { %14034 = vmatpush3.bf16.msra.mxu1 %v19389_v33  ;;  %14035 = vmatprep.mubr.msk.bf16.mxu1 %vm16076_vm0, %v21645_v28  ;;  %15236 = vrcp.f32 %v8667_v46  ;;  %v21865_v33 = vld [vmem:[#allocation60_spill] sm:$0xff]  ;;  %v8673_v30 = vpop.xlane.xlu0 %8672 }
 0xe0c   : > { %14045 = vmatprep.subr.bf16.mxu1 %v21645_v28 }
 0xe0d   : > { %v15231_v25 = vpop.eup %15230 }
 0xe0e   : > { %v8182_v16 = vmul.f32 %v15231_v25, %v19476_v29  ;;  %v8670_v7 = vpop.xlane.xlu1 %8669  ;;  %v15233_v48 = vpop.eup %15232 }
 0xe0f   : > { %15238 = vrcp.f32 %v8670_v7  ;;  %v8179_v15 = vmul.f32 %v15233_v48, %v19471_v52  ;;  %v21867_v52 = vld [vmem:[#allocation89_spill] sm:$0xff]  ;;  %v8679_v9 = vpop.xlane.xlu0 %8678 }
 0xe10   : > { %v8191_v49 = vpack.c.bf16 %v8182_v16, %v8181_v2  ;;  %15240 = vrcp.f32 %v8149_v23 }
 0xe11   : > { %v15235_v44 = vpop.eup %15234 }
 0xe12   : > { %9035 = vrot.lane.b32.xlu1 %v21865_v33, %s16079_s3  ;;  %14042 = vmatmul.mubr.msk.bf16.vlgmr.msra.gmra.mrb[12].mxu0 %vm2312_vm2, %v8191_v49  ;;  %v8152_v3 = vpop.xlane.xlu1 %8151  ;;  %v8180_v38 = vmul.f32 %v15235_v44, %v19482_v53  ;;  %v21868_v53 = vld [vmem:[#allocation36_spill] sm:$0xff] }
 0xe13   : > { %14052 = vmatpush3.bf16.msra.mxu0 %v19397_v14  ;;  %14053 = vmatprep.mubr.msk.bf16.mxu0 %vm16076_vm0, %v21645_v28  ;;  %15242 = vrcp.f32 %v8152_v3  ;;  %v21869_v26 = vpack.i.bf16 %v21867_v52, %v21868_v53 }
 0xe14   : > { %14063 = vmatprep.subr.bf16.mxu0 %v21645_v28  ;;  %v8190_v29 = vpack.c.bf16 %v8180_v38, %v8179_v15 }
 0xe15   : > { %v15237_v47 = vpop.eup %15236 }
 0xe16   : > { %9082 = vrot.lane.b32.xlu1 %v21866_v19, %s16079_s3  ;;  %v8676_v31 = vpop.xlane.xlu1 %8675  ;;  %14036 = vmatmul.mubr.msk.bf16.vlgmr.msra.gmra.mrb[40].mxu1 %vm2312_vm2, %v8190_v29  ;;  %v8729_v57 = vmul.f32 %v15237_v47, %v19491_v4 }
 0xe17   : > { %14046 = vmatpush3.bf16.msra.mxu1 %v19393_v43  ;;  %15244 = vrcp.f32 %v8676_v31  ;;  %14047 = vmatprep.mubr.msk.bf16.mxu1 %vm16076_vm0, %v21645_v28 }
 0xe18   : > { %14057 = vmatprep.subr.bf16.mxu1 %v21645_v28  ;;  %15246 = vrcp.f32 %v8673_v30 }
 0xe19   : > { %v15239_v14 = vpop.eup %15238  ;;  %15248 = vrcp.f32 %v8679_v9 }
 0xe1a   : > { %14337 = vrot.lane.b32.xlu1 %v21869_v26, %s16079_s3  ;;  %v8730_v59 = vmul.f32 %v15239_v14, %v19499_v39  ;;  %v15241_v6 = vpop.eup %15240 }
 0xe1b   : > { %v8183_v58 = vmul.f32 %v15241_v6, %v19485_v11 }
 0xe1c   : > { %v8745_v12 = vpack.c.bf16 %v8730_v59, %v8729_v57 }
 0xe1d   : > { %v15243_v43 = vpop.eup %15242 }
 0xe1e   : > { %14342 = vrot.lane.b32.xlu1 %v21870_v60, %s16078_s15  ;;  %v8184_v50 = vmul.f32 %v15243_v43, %v19507_v21  ;;  %14054 = vmatmul.mubr.msk.bf16.vlgmr.msra.gmra.mrb[16].mxu0 %vm2312_vm2, %v8745_v12 }
 0xe1f   : > { %14064 = vmatpush3.bf16.msra.mxu0 %v19563_v55  ;;  %14065 = vmatprep.mubr.msk.bf16.mxu0 %vm16076_vm0, %v21645_v28 }
 0xe20   : > { %v8192_v4 = vpack.c.bf16 %v8184_v50, %v8183_v58  ;;  %14075 = vmatprep.subr.bf16.mxu0 %v21645_v28 }
 0xe21   : > { %v15245_v39 = vpop.eup %15244 }
 0xe22   : > { %14352 = vrot.lane.b32.xlu1 %v21871_v8, %s16078_s15  ;;  %14048 = vmatmul.mubr.msk.bf16.vlgmr.msra.gmra.mrb[44].mxu1 %vm2312_vm2, %v8192_v4  ;;  %v15247_v41 = vpop.eup %15246  ;;  %v8732_v11 = vmul.f32 %v15245_v39, %v19515_v0  ;;  %v21872_v8 = vmov 0  }
 0xe23   : > { %14058 = vmatpush3.bf16.msra.mxu1 %v19521_v34  ;;  %14059 = vmatprep.mubr.msk.bf16.mxu1 %vm16076_vm0, %v21645_v28  ;;  %v8731_v21 = vmul.f32 %v15247_v41, %v19493_v56  ;;  %v8685_v34 = vpop.xlane.xlu0 %8684  ;;  %v15249_v18 = vpop.eup %15248  ;;  %v14609_v41 = vld [vmem:[#allocation10 + $0x8] sm:$0xff]  }
 0xe24   : > { %14069 = vmatprep.subr.bf16.mxu1 %v21645_v28  ;;  %v8733_v56 = vmul.f32 %v15249_v18, %v19501_v42 }
 0xe25   : > { %v8746_v55 = vpack.c.bf16 %v8732_v11, %v8731_v21  ;;  %v14610_v21 = vld [vmem:[#allocation10 + $0x10] sm:$0xff]  }
 0xe27   : > { %v8942_v20 = vpop.permute.xlu0 %8941 }
 0xe2a   : > { %14060 = vmatmul.mubr.msk.bf16.vlgmr.msra.gmra.mrb[48].mxu1 %vm2312_vm2, %v8746_v55 }
 0xe2b   : > { %14071 = vmatprep.mubr.msk.bf16.mxu1 %vm16076_vm0, %v21645_v28 }
 0xe41   : > { %v8682_v61 = vpop.xlane.xlu1 %8681 }
 0xe42   : > { %15250 = vrcp.f32 %v8682_v61 }
 0xe43   : > { %15252 = vrcp.f32 %v8685_v34 }
 0xe45   : > { %v8691_v24 = vpop.xlane.xlu1 %8690 }
 0xe47   : > { %v8697_v7 = vpop.xlane.xlu0 %8696 }
 0xe49   : > { %v8688_v1 = vpop.xlane.xlu1 %8687 }
 0xe4a   : > { %15254 = vrcp.f32 %v8688_v1  ;;  %v14611_v1 = vld [vmem:[#allocation10 + $0x18] sm:$0xff]  }
 0xe4b   : > { %15256 = vrcp.f32 %v8691_v24  ;;  %v8989_v3 = vpop.permute.xlu0 %8988 }
 0xe4c   : > { %v15251_v0 = vpop.eup %15250 }
 0xe4d   : > { %v8734_v37 = vmul.f32 %v15251_v0, %v19528_v35  ;;  %v8694_v46 = vpop.xlane.xlu1 %8693  ;;  %v15253_v16 = vpop.eup %15252 }
 0xe4e   : > { %15258 = vrcp.f32 %v8694_v46  ;;  %v8735_v42 = vmul.f32 %v15253_v16, %v19509_v36 }
 0xe4f   : > { %v8747_v25 = vpack.c.bf16 %v8734_v37, %v8733_v56  ;;  %15260 = vrcp.f32 %v8697_v7 }
 0xe51   : > { %14066 = vmatmul.mubr.msk.bf16.vlgmr.msra.gmra.mrb[20].mxu0 %vm2312_vm2, %v8747_v25  ;;  %v8895_v2 = vpop.permute.xlu1 %8894 }
 0xe52   : > { %14076 = vmatpush3.bf16.msra.mxu0 %v8942_v20  ;;  %14070 = vmatpush3.bf16.msra.mxu1 %v8895_v2  ;;  %v14612_v20 = vld [vmem:[#allocation10 + $0x20] sm:$0xff]  }
 0xe53   : > { %14081 = vmatprep.subr.bf16.mxu1 %v21645_v28  ;;  %14077 = vmatprep.mubr.msk.bf16.mxu0 %vm16076_vm0, %v21645_v28 }
 0xe54   : > { %v15255_v23 = vpop.eup %15254  ;;  %14087 = vmatprep.subr.bf16.mxu0 %v21645_v28 }
 0xe55   : > { %v8736_v35 = vmul.f32 %v15255_v23, %v19538_v17  ;;  %v15257_v48 = vpop.eup %15256 }
 0xe56   : > { %v8737_v33 = vmul.f32 %v15257_v48, %v19532_v5 }
 0xe57   : > { %v8748_v49 = vpack.c.bf16 %v8736_v35, %v8735_v42  ;;  %v14613_v42 = vld [vmem:[#allocation10 + $0x28] sm:$0xff]  }
 0xe58   : > { %v15259_v44 = vpop.eup %15258 }
 0xe59   : > { %v8738_v15 = vmul.f32 %v15259_v44, %v19544_v63  ;;  %14072 = vmatmul.mubr.msk.bf16.vlgmr.msra.gmra.mrb[52].mxu1 %vm2312_vm2, %v8748_v49  ;;  %v15261_v19 = vpop.eup %15260  ;;  %v14614_v49 = vld [vmem:[#allocation10 + $0x30] sm:$0xff]  }
 0xe5a   : > { %14082 = vmatpush3.bf16.msra.mxu1 %v8989_v3  ;;  %14083 = vmatprep.mubr.msk.bf16.mxu1 %vm16076_vm0, %v21645_v28  ;;  %v8739_v30 = vmul.f32 %v15261_v19, %v19534_v10 }
 0xe5b   : > { %v8749_v38 = vpack.c.bf16 %v8738_v15, %v8737_v33  ;;  %14093 = vmatprep.subr.bf16.mxu1 %v21645_v28 }
 0xe5d   : > { %14078 = vmatmul.mubr.msk.bf16.vlgmr.msra.gmra.mrb[24].mxu0 %vm2312_vm2, %v8749_v38 }
 0xe5e   : > { %14089 = vmatprep.mubr.msk.bf16.mxu0 %vm16076_vm0, %v21645_v28 }
 0xe7c   : > { %v8712_v17 = vpop.xlane.xlu0 %8711 }
 0xe82   : > { %v8703_v36 = vpop.xlane.xlu1 %8702 }
 0xe86   : > { %v8700_v5 = vpop.xlane.xlu1 %8699 }
 0xe87   : > { %15262 = vrcp.f32 %v8700_v5 }
 0xe88   : > { %15264 = vrcp.f32 %v8703_v36 }
 0xe8a   : > { %v8706_v63 = vpop.xlane.xlu1 %8705 }
 0xe8b   : > { %15266 = vrcp.f32 %v8706_v63 }
 0xe8c   : > { %15268 = vrcp.f32 %v8712_v17  ;;  %v14615_v17 = vld [vmem:[#allocation10 + $0x38] sm:$0xff]  }
 0xe8e   : > { %v8709_v29 = vpop.xlane.xlu1 %8708 }
 0xe8f   : > { %15270 = vrcp.f32 %v8709_v29 }
 0xe91   : > { %v15263_v31 = vpop.eup %15262 }
 0xe92   : > { %v8740_v47 = vmul.f32 %v15263_v31, %v19574_v27  ;;  %v9036_v14 = vpop.permute.xlu1 %9035  ;;  %v15265_v52 = vpop.eup %15264 }
 0xe93   : > { %14088 = vmatpush3.bf16.msra.mxu0 %v9036_v14  ;;  %v8741_v57 = vmul.f32 %v15265_v52, %v19570_v22 }
 0xe94   : > { %v8750_v53 = vpack.c.bf16 %v8740_v47, %v8739_v30 }
 0xe95   : > { %v15267_v26 = vpop.eup %15266 }
 0xe96   : > { %v8742_v59 = vmul.f32 %v15267_v26, %v19576_v62  ;;  %14084 = vmatmul.mubr.msk.bf16.vlgmr.msra.gmra.mrb[56].mxu1 %vm2312_vm2, %v8750_v53  ;;  %v9083_v6 = vpop.permute.xlu1 %9082  ;;  %v15269_v12 = vpop.eup %15268 }
 0xe97   : > { %14094 = vmatpush3.bf16.msra.mxu1 %v9083_v6  ;;  %14095 = vmatprep.mubr.msk.bf16.mxu1 %vm16076_vm0, %v21645_v28  ;;  %v8744_v27 = vmul.f32 %v15269_v12, %v19566_v51  ;;  %v14608_v28 = vld [vmem:[#allocation10] sm:$0xff]  }
 0xe98   : > { %v8751_v10 = vpack.c.bf16 %v8742_v59, %v8741_v57  ;;  %14099 = vmatprep.subr.bf16.mxu0 %v14608_v28  ;;  %v21873_v12 = vld [vmem:[#allocation90_spill] sm:$0xff] }
 0xe99   : > { %v15271_v43 = vpop.eup %15270 }
 0xe9a   : > { %v8743_v60 = vmul.f32 %v15271_v43, %v19582_v40  ;;  %14090 = vmatmul.mubr.msk.bf16.vlgmr.msra.gmra.mrb[28].mxu0 %vm2312_vm2, %v8751_v10  ;;  %v21874_v10 = vld [vmem:[#allocation39_spill] sm:$0xff] }
 0xe9b   : > { %v8233_v22 = vpop.f32.mrb[0].mxu0  ;;  %14100 = vmatpush3.bf16.msra.mxu0 %v14608_v28  ;;  %v21875_v43 = vpack.i.bf16 %v21873_v12, %v21874_v10  ;;  %v21878_v28 = vld [vmem:[#allocation106_spill] sm:$0xff] }
 0xe9c   : > { %v8752_v58 = vpack.c.bf16 %v8744_v27, %v8743_v60  ;;  %v14007_v50 = vpop.f32.mrb[1].mxu0  ;;  %14101 = vmatprep.subr.bf16.mxu0 %v14609_v41  ;;  %v21876_v60 = vpack.i.bf16 %v19181_v45, %v19179_v13  ;;  %v21881_v13 = vld [vmem:[#allocation44_spill] sm:$0xff]  ;;  %v21882_v45 = vld [vmem:[#allocation46_spill] sm:$0xff] }
 0xe9d   : > { %v8236_v62 = vpop.f32.mrb[2].mxu0  ;;  %v21899_v12 = vld [vmem:[#allocation110_spill] sm:$0xff] }
 0xe9e   : > { %14096 = vmatmul.mubr.msk.bf16.vlgmr.msra.gmra.mrb[60].mxu1 %vm2312_vm2, %v8752_v58  ;;  %v14356_v4 = vpack.i.bf16 %v8236_v62, %v8233_v22  ;;  %v14008_v39 = vpop.f32.mrb[3].mxu0 }
 0xe9f   : > { %10583 = vmatprep.mubr.bf16.mxu1 %v21872_v8  ;;  %14102 = vmatpush3.bf16.msra.mxu0 %v14609_v41  ;;  %v21877_v39 = vld [vmem:[#allocation107_spill] sm:$0xff] }
 0xea0   : > { %14357 = vrot.lane.b32.xlu1 %v14356_v4, %s16077_s28  ;;  %14103 = vmatprep.subr.bf16.mxu0 %v14610_v21  ;;  %v14338_v4 = vpop.permute.xlu1 %14337  ;;  %v21879_v41 = vpack.i.bf16 %v21877_v39, %v21878_v28  ;;  %v21907_v28 = vld [vmem:[#allocation109_spill] sm:$0xff] }
 0xea3   : > { %14104 = vmatpush3.bf16.msra.mxu0 %v14610_v21  ;;  %v21883_v21 = vpack.i.bf16 %v21881_v13, %v21882_v45 }
 0xea4   : > { %14105 = vmatprep.subr.bf16.mxu0 %v14611_v1 }
 0xea7   : > { %14106 = vmatpush3.bf16.msra.mxu0 %v14611_v1 }
 0xea8   : > { %14107 = vmatprep.subr.bf16.mxu0 %v14612_v20 }
 0xeab   : > { %14108 = vmatpush3.bf16.msra.mxu0 %v14612_v20 }
 0xeac   : > { %14109 = vmatprep.subr.bf16.mxu0 %v14613_v42 }
 0xeaf   : > { %14110 = vmatpush3.bf16.msra.mxu0 %v14613_v42  ;;  %v21890_v42 = vld [vmem:[#allocation49_spill] sm:$0xff] }
 0xeb0   : > { %14111 = vmatprep.subr.bf16.mxu0 %v14614_v49 }
 0xeb3   : > { %14112 = vmatpush3.bf16.msra.mxu0 %v14614_v49 }
 0xeb4   : > { %14113 = vmatprep.subr.bf16.mxu0 %v14615_v17 }
 0xeb7   : > { %14114 = vmatpush3.bf16.msra.mxu0 %v14615_v17 }
 0xed1   : > { %v19698_v11 = vpop.f32.mrb[4].mxu0 }
 0xed2   : > { %v14019_v51 = vpop.f32.mrb[5].mxu0 }
 0xed3   : > { %v19700_v40 = vpop.f32.mrb[6].mxu0  ;;  %v21880_v51 = vpack.i.bf16 %v19229_v32, %v19227_v54  ;;  %v21887_v54 = vld [vmem:[#allocation105_spill] sm:$0xff]  ;;  %v21888_v32 = vld [vmem:[#allocation104_spill] sm:$0xff] }
 0xed4   : > { %v14411_v55 = vpack.i.bf16 %v19700_v40, %v19698_v11  ;;  %v14020_v9 = vpop.f32.mrb[7].mxu0  ;;  %v21893_v11 = vld [vmem:[#allocation42_spill] sm:$0xff] }
 0xed5   : > { %v8280_v61 = vpop.f32.mrb[32].mxu1  ;;  %v14343_v9 = vpop.permute.xlu1 %14342 }
 0xed6   : > { %v14013_v34 = vpop.f32.mrb[33].mxu1  ;;  %v14345_v20 = vunpack.i.h.bf16 %v14343_v9 }
 0xed7   : > { %v8283_v24 = vpop.f32.mrb[34].mxu1  ;;  %v21885_v34 = vld [vmem:[#allocation35_spill] sm:$0xff] }
 0xed8   : > { %v14381_v18 = vpack.i.bf16 %v8283_v24, %v8280_v61  ;;  %v14014_v0 = vpop.f32.mrb[35].mxu1  ;;  %v21884_v61 = vld [vmem:[#allocation93_spill] sm:$0xff] }
 0xed9   : > { %v19704_v56 = vpop.f32.mrb[8].mxu0  ;;  %v21886_v24 = vpack.i.bf16 %v21884_v61, %v21885_v34  ;;  %v19765_v1 = vpop.permute.xlu1 %14352  ;;  %v14340_v0 = vunpack.i.h.bf16 %v14338_v4 }
 0xeda   : > { %v14031_v37 = vpop.f32.mrb[9].mxu0  ;;  %14382 = vrot.lane.b32.xlu0 %v14381_v18, %s16077_s28  ;;  %v21889_v18 = vpack.i.bf16 %v21887_v54, %v21888_v32  ;;  %v21914_v54 = vld [vmem:[#allocation37_spill] sm:$0xff] }
 0xedb   : > { %v19707_v46 = vpop.f32.mrb[10].mxu0  ;;  %v14339_v37 = vunpack.i.l.bf16 %v14338_v4  ;;  %v9322_v40 = vsel %vm1575_vm1, %v21893_v11, %v14340_v0 }
 0xedc   : > { %v14471_v25 = vpack.i.bf16 %v19707_v46, %v19704_v56  ;;  %v14032_v2 = vpop.f32.mrb[11].mxu0  ;;  %v21940_v56 = vld [vmem:[#allocation102_spill] sm:$0xff]  ;;  %v21941_v46 = vld [vmem:[#allocation103_spill] sm:$0xff] }
 0xedd   : > { %v19711_v16 = vpop.f32.mrb[36].mxu1  ;;  %v14344_v2 = vunpack.i.l.bf16 %v14343_v9  ;;  %v21911_v9 = vld [vmem:[#allocation48_spill] sm:$0xff] }
 0xede   : > { %v14025_v7 = vpop.f32.mrb[37].mxu1 }
 0xedf   : > { %v19713_v23 = vpop.f32.mrb[38].mxu1 }
 0xee0   : > { %v14441_v35 = vpack.i.bf16 %v19713_v23, %v19711_v16  ;;  %v14026_v48 = vpop.f32.mrb[39].mxu1  ;;  %v21928_v23 = vld [vmem:[#allocation33_spill] sm:$0xff] }
 0xee1   : > { %v21891_v48 = vld [vmem:[#allocation123_spill] sm:$0xff] }
 0xee2   : > { %v21892_v49 = vpack.i.bf16 %v21890_v42, %v21891_v48 }
 0xee5   : > { %v19717_v44 = vpop.f32.mrb[12].mxu0 }
 0xee6   : > { %v14043_v33 = vpop.f32.mrb[13].mxu0 }
 0xee7   : > { %v19719_v3 = vpop.f32.mrb[14].mxu0 }
 0xee8   : > { %v14531_v15 = vpack.i.bf16 %v19719_v3, %v19717_v44  ;;  %v14044_v38 = vpop.f32.mrb[15].mxu0 }
 0xee9   : > { %v19723_v36 = vpop.f32.mrb[40].mxu1 }
 0xeea   : > { %v14037_v5 = vpop.f32.mrb[41].mxu1 }
 0xeeb   : > { %v19725_v63 = vpop.f32.mrb[42].mxu1 }
 0xeec   : > { %v14501_v29 = vpack.i.bf16 %v19725_v63, %v19723_v36  ;;  %v14038_v19 = vpop.f32.mrb[43].mxu1  ;;  %v21949_v63 = vld [vmem:[#allocation76_spill] sm:$0xff] }
 0xeed   : > { %v9339_v19 = vsel %vm9337_vm3, %v9322_v40, %v14345_v20  ;;  %v21917_v20 = vld [vmem:[#allocation32_spill] sm:$0xff]  ;;  %v21919_v40 = vld [vmem:[#allocation115_spill] sm:$0xff] }
 0xef1   : > { %v8793_v31 = vpop.f32.mrb[16].mxu0 }
 0xef2   : > { %v14055_v30 = vpop.f32.mrb[17].mxu0 }
 0xef3   : > { %v8796_v47 = vpop.f32.mrb[18].mxu0 }
 0xef4   : > { %v14361_v14 = vpack.i.bf16 %v8796_v47, %v8793_v31  ;;  %v14056_v52 = vpop.f32.mrb[19].mxu0  ;;  %v21895_v47 = vld [vmem:[#allocation96_spill] sm:$0xff] }
 0xef5   : > { %v19729_v53 = vpop.f32.mrb[44].mxu1 }
 0xef6   : > { %14362 = vrot.lane.b32.xlu1 %v14361_v14, %s16077_s28  ;;  %v14049_v26 = vpop.f32.mrb[45].mxu1  ;;  %v21896_v14 = vld [vmem:[#allocation97_spill] sm:$0xff] }
 0xef7   : > { %v19732_v57 = vpop.f32.mrb[46].mxu1  ;;  %v21897_v52 = vpack.i.bf16 %v21895_v47, %v21896_v14  ;;  %v21926_v47 = vld [vmem:[#allocation118_spill] sm:$0xff] }
 0xef8   : > { %v14561_v59 = vpack.i.bf16 %v19732_v57, %v19729_v53  ;;  %v14050_v6 = vpop.f32.mrb[47].mxu1  ;;  %v21964_v57 = vld [vmem:[#allocation79_spill] sm:$0xff] }
 0xef9   : > { %v21898_v6 = vld [vmem:[#allocation111_spill] sm:$0xff] }
 0xefa   : > { %14367 = vrot.lane.b32.xlu1 %v21875_v43, %s16079_s3  ;;  %v21900_v10 = vpack.i.bf16 %v21898_v6, %v21899_v12  ;;  %v21901_v43 = vld [vmem:[#allocation55_spill] sm:$0xff] }
 0xefb   : > { %v21934_v12 = vld [vmem:[#allocation59_spill] sm:$0xff] }
 0xefd   : > { %v8840_v27 = vpop.f32.mrb[48].mxu1 }
 0xefe   : > { %14372 = vrot.lane.b32.xlu1 %v21876_v60, %s16078_s15  ;;  %v14061_v58 = vpop.f32.mrb[49].mxu1 }
 0xeff   : > { %v8843_v22 = vpop.f32.mrb[50].mxu1  ;;  %v21904_v58 = vld [vmem:[#allocation94_spill] sm:$0xff] }
 0xf00   : > { %v14391_v50 = vpack.i.bf16 %v8843_v22, %v8840_v27  ;;  %v14062_v62 = vpop.f32.mrb[51].mxu1  ;;  %v21902_v27 = vld [vmem:[#allocation120_spill] sm:$0xff]  ;;  %v21905_v22 = vld [vmem:[#allocation95_spill] sm:$0xff] }
 0xf01   : > { %v21903_v60 = vpack.i.bf16 %v21901_v43, %v21902_v27  ;;  %v21937_v27 = vld [vmem:[#allocation119_spill] sm:$0xff] }
 0xf02   : > { %14377 = vrot.lane.b32.xlu1 %v21879_v41, %s16079_s3  ;;  %14392 = vrot.lane.b32.xlu0 %v14391_v50, %s16077_s28  ;;  %v21906_v50 = vpack.i.bf16 %v21904_v58, %v21905_v22  ;;  %v21908_v41 = vld [vmem:[#allocation108_spill] sm:$0xff]  ;;  %v21943_v22 = vld [vmem:[#allocation117_spill] sm:$0xff] }
 0xf06   : > { %14387 = vrot.lane.b32.xlu1 %v21880_v51, %s16078_s15  ;;  %14402 = vrot.lane.b32.xlu0 %v21883_v21, %s16078_s15  ;;  %v21909_v51 = vpack.i.bf16 %v21907_v28, %v21908_v41  ;;  %v21910_v21 = vld [vmem:[#allocation51_spill] sm:$0xff]  ;;  %v14348_v41 = vpop.permute.xlu0 %14347 }
 0xf07   : > { %v21912_v61 = vpack.i.bf16 %v21910_v21, %v21911_v9  ;;  %v14354_v21 = vunpack.i.l.bf16 %v19765_v1 }
 0xf0a   : > { %14397 = vrot.lane.b32.xlu1 %v21886_v24, %s16079_s3  ;;  %14412 = vrot.lane.b32.xlu0 %v14411_v55, %s16077_s28  ;;  %v21894_v55 = vld [vmem:[#allocation38_spill] sm:$0xff]  ;;  %v21913_v24 = vld [vmem:[#allocation53_spill] sm:$0xff] }
 0xf0b   : > { %v9321_v33 = vsel %vm1575_vm1, %v21894_v55, %v14339_v37  ;;  %v21915_v32 = vpack.i.bf16 %v21913_v24, %v21914_v54  ;;  %v21916_v37 = vld [vmem:[#allocation100_spill] sm:$0xff]  ;;  %v21920_v55 = vld [vmem:[#allocation114_spill] sm:$0xff] }
 0xf0c   : > { %v9338_v17 = vsel %vm9337_vm3, %v9321_v33, %v14344_v2  ;;  %v21918_v2 = vpack.i.bf16 %v21916_v37, %v21917_v20  ;;  %v21921_v33 = vpack.i.bf16 %v21919_v40, %v21920_v55 }
 0xf0e   : > { %14407 = vrot.lane.b32.xlu1 %v21889_v18, %s16079_s3 }
 0xf12   : > { %v14358_v7 = vpop.permute.xlu1 %14357  ;;  %14417 = vrot.lane.b32.xlu1 %v21892_v49, %s16078_s15 }
 0xf13   : > { %v14360_v38 = vunpack.i.h.bf16 %v14358_v7  ;;  %v14359_v5 = vunpack.i.l.bf16 %v14358_v7 }
 0xf15   : > { %v9355_v31 = vsel %vm9354_vm4, %v9338_v17, %v14359_v5  ;;  %v9356_v30 = vsel %vm9354_vm4, %v9339_v19, %v14360_v38  ;;  %v21922_v17 = vld [vmem:[#allocation122_spill] sm:$0xff]  ;;  %v21923_v19 = vld [vmem:[#allocation63_spill] sm:$0xff] }
 0xf16   : > { %14427 = vrot.lane.b32.xlu1 %v21897_v52, %s16079_s3  ;;  %v9611_v26 = vpack.c.bf16 %v9356_v30, %v9355_v31  ;;  %v21924_v31 = vpack.i.bf16 %v21922_v17, %v21923_v19  ;;  %v21925_v30 = vld [vmem:[#allocation47_spill] sm:$0xff]  ;;  %v21931_v52 = vld [vmem:[#allocation113_spill] sm:$0xff] }
 0xf17   : > { %v21927_v16 = vpack.i.bf16 %v21925_v30, %v21926_v47 }
 0xf18   : > { %14115 = vmatprep.mubr.bf16.mxu0 %v9611_v26  ;;  %v21932_v26 = vld [vmem:[#allocation112_spill] sm:$0xff] }
 0xf19   : > { %v21933_v6 = vpack.i.bf16 %v21931_v52, %v21932_v26 }
 0xf1a   : > { %14437 = vrot.lane.b32.xlu1 %v21900_v10, %s16079_s3  ;;  %v21935_v10 = vld [vmem:[#allocation125_spill] sm:$0xff] }
 0xf1b   : > { %v21936_v43 = vpack.i.bf16 %v21934_v12, %v21935_v10  ;;  %v21955_v10 = vld [vmem:[#allocation41_spill] sm:$0xff] }
 0xf1e   : > { %14447 = vrot.lane.b32.xlu1 %v21903_v60, %s16078_s15  ;;  %v21938_v60 = vld [vmem:[#allocation57_spill] sm:$0xff] }
 0xf1f   : > { %v21939_v58 = vpack.i.bf16 %v21937_v27, %v21938_v60 }
 0xf22   : > { %14457 = vrot.lane.b32.xlu1 %v21906_v50, %s16079_s3  ;;  %v21944_v50 = vld [vmem:[#allocation116_spill] sm:$0xff] }
 0xf24   : > { %v8887_v62 = vpop.f32.mrb[20].mxu0 }
 0xf25   : > { %v14067_v4 = vpop.f32.mrb[21].mxu0 }
 0xf26   : > { %v8890_v39 = vpop.f32.mrb[22].mxu0  ;;  %14467 = vrot.lane.b32.xlu1 %v21909_v51, %s16079_s3  ;;  %v21946_v4 = vld [vmem:[#allocation127_spill] sm:$0xff]  ;;  %v14350_v51 = vunpack.i.h.bf16 %v14348_v41 }
 0xf27   : > { %v14421_v13 = vpack.i.bf16 %v8890_v39, %v8887_v62  ;;  %v14068_v45 = vpop.f32.mrb[23].mxu0  ;;  %v21945_v62 = vpack.i.bf16 %v21943_v22, %v21944_v50  ;;  %v21947_v39 = vld [vmem:[#allocation124_spill] sm:$0xff] }
 0xf28   : > { %v21948_v28 = vpack.i.bf16 %v21946_v4, %v21947_v39  ;;  %v14355_v45 = vunpack.i.h.bf16 %v19765_v1 }
 0xf29   : > { %14422 = vrot.lane.b32.xlu0 %v14421_v13, %s16077_s28  ;;  %v14349_v13 = vunpack.i.l.bf16 %v14348_v41 }
 0xf2a   : > { %14477 = vrot.lane.b32.xlu1 %v21912_v61, %s16078_s15  ;;  %v21950_v61 = vld [vmem:[#allocation75_spill] sm:$0xff] }
 0xf2c   : > { %v8934_v34 = vpop.f32.mrb[52].mxu1 }
 0xf2d   : > { %14432 = vrot.lane.b32.xlu0 %v21915_v32, %s16078_s15  ;;  %v14073_v18 = vpop.f32.mrb[53].mxu1 }
 0xf2e   : > { %v8937_v0 = vpop.f32.mrb[54].mxu1  ;;  %14487 = vrot.lane.b32.xlu1 %v21918_v2, %s16079_s3 }
 0xf2f   : > { %v14451_v7 = vpack.i.bf16 %v8937_v0, %v8934_v34  ;;  %v14074_v42 = vpop.f32.mrb[55].mxu1  ;;  %v9563_v34 = vsel %vm1575_vm1, %v21950_v61, %v14349_v13 }
 0xf30   : > { %v8981_v48 = vpop.f32.mrb[24].mxu0  ;;  %v9579_v0 = vsel %vm9337_vm3, %v9563_v34, %v14354_v21  ;;  %v21956_v21 = vld [vmem:[#allocation78_spill] sm:$0xff] }
 0xf31   : > { %v14079_v49 = vpop.f32.mrb[25].mxu0  ;;  %14442 = vrot.lane.b32.xlu0 %v14441_v35, %s16077_s28  ;;  %v21929_v35 = vld [vmem:[#allocation98_spill] sm:$0xff] }
 0xf32   : > { %v8984_v11 = vpop.f32.mrb[26].mxu0  ;;  %14497 = vrot.lane.b32.xlu1 %v21921_v33, %s16079_s3  ;;  %v21930_v14 = vpack.i.bf16 %v21928_v23, %v21929_v35  ;;  %v21952_v23 = vld [vmem:[#allocation121_spill] sm:$0xff] }
 0xf33   : > { %v14481_v38 = vpack.i.bf16 %v8984_v11, %v8981_v48  ;;  %v14080_v5 = vpop.f32.mrb[27].mxu0 }
 0xf35   : > { %14452 = vrot.lane.b32.xlu0 %v14451_v7, %s16077_s28 }
 0xf36   : > { %14507 = vrot.lane.b32.xlu1 %v21924_v31, %s16078_s15 }
 0xf39   : > { %14462 = vrot.lane.b32.xlu0 %v21927_v16, %s16078_s15  ;;  %v21951_v16 = vld [vmem:[#allocation40_spill] sm:$0xff] }
 0xf3a   : > { %14517 = vrot.lane.b32.xlu1 %v21930_v14, %s16079_s3  ;;  %v21953_v35 = vpack.i.bf16 %v21951_v16, %v21952_v23 }
 0xf3d   : > { %14472 = vrot.lane.b32.xlu0 %v14471_v25, %s16077_s28  ;;  %v21942_v25 = vpack.i.bf16 %v21940_v56, %v21941_v46 }
 0xf3e   : > { %14527 = vrot.lane.b32.xlu1 %v21933_v6, %s16079_s3  ;;  %v21954_v6 = vld [vmem:[#allocation34_spill] sm:$0xff] }
 0xf41   : > { %14482 = vrot.lane.b32.xlu0 %v14481_v38, %s16077_s28 }
 0xf42   : > { %14537 = vrot.lane.b32.xlu1 %v21936_v43, %s16078_s15 }
 0xf45   : > { %14492 = vrot.lane.b32.xlu0 %v21939_v58, %s16078_s15 }
 0xf46   : > { %14547 = vrot.lane.b32.xlu1 %v21942_v25, %s16079_s3 }
 0xf49   : > { %14502 = vrot.lane.b32.xlu0 %v14501_v29, %s16077_s28  ;;  %v9564_v29 = vsel %vm1575_vm1, %v21949_v63, %v14350_v51 }
 0xf4a   : > { %14557 = vrot.lane.b32.xlu1 %v21945_v62, %s16079_s3  ;;  %v9580_v18 = vsel %vm9337_vm3, %v9564_v29, %v14355_v45 }
 0xf4c   : > { %v14383_v38 = vpop.permute.xlu0 %14382 }
 0xf4d   : > { %v14385_v52 = vunpack.i.h.bf16 %v14383_v38  ;;  %v14384_v26 = vunpack.i.l.bf16 %v14383_v38 }
 0xf4e   : > { %14567 = vrot.lane.b32.xlu1 %v21948_v28, %s16078_s15 }
 0xf68   : > { %v14363_v9 = vpop.permute.xlu1 %14362 }
 0xf69   : > { %v9028_v36 = vpop.f32.mrb[56].mxu1  ;;  %v14365_v24 = vunpack.i.h.bf16 %v14363_v9  ;;  %v14364_v54 = vunpack.i.l.bf16 %v14363_v9 }
 0xf6a   : > { %v14085_v32 = vpop.f32.mrb[57].mxu1 }
 0xf6b   : > { %v9031_v37 = vpop.f32.mrb[58].mxu1  ;;  %v9595_v20 = vsel %vm9354_vm4, %v9579_v0, %v14364_v54  ;;  %v9596_v1 = vsel %vm9354_vm4, %v9580_v18, %v14365_v24 }
 0xf6c   : > { %v14511_v2 = vpack.i.bf16 %v9031_v37, %v9028_v36  ;;  %v14086_v7 = vpop.f32.mrb[59].mxu1  ;;  %v9612_v42 = vpack.c.bf16 %v9596_v1, %v9595_v20  ;;  %v14368_v48 = vpop.permute.xlu1 %14367  ;;  %v21957_v36 = vld [vmem:[#allocation77_spill] sm:$0xff]  ;;  %v21959_v20 = vld [vmem:[#allocation43_spill] sm:$0xff] }
 0xf6d   : > { %v9075_v49 = vpop.f32.mrb[28].mxu0  ;;  %v14370_v40 = vunpack.i.h.bf16 %v14368_v48  ;;  %v14369_v55 = vunpack.i.l.bf16 %v14368_v48  ;;  %v21958_v37 = vld [vmem:[#allocation61_spill] sm:$0xff] }
 0xf6e   : > { %v14091_v11 = vpop.f32.mrb[29].mxu0  ;;  %14512 = vrot.lane.b32.xlu0 %v14511_v2, %s16077_s28  ;;  %14116 = vmatmul.mubr.bf16.vlgmr.msra.gmra.mrb[32].mxu0 %v9612_v42  ;;  %v21960_v1 = vpack.i.bf16 %v21958_v37, %v21959_v20  ;;  %v21961_v42 = vld [vmem:[#allocation64_spill] sm:$0xff] }
 0xf6f   : > { %v9078_v33 = vpop.f32.mrb[30].mxu0  ;;  %v9324_v12 = vsel %vm1575_vm1, %v21954_v6, %v14370_v40  ;;  %v9323_v43 = vsel %vm1575_vm1, %v21955_v10, %v14369_v55  ;;  %v21963_v6 = vld [vmem:[#allocation80_spill] sm:$0xff] }
 0xf70   : > { %v14541_v5 = vpack.i.bf16 %v9078_v33, %v9075_v49  ;;  %v14092_v17 = vpop.f32.mrb[31].mxu0  ;;  %v14373_v19 = vpop.permute.xlu1 %14372  ;;  %v21962_v49 = vld [vmem:[#allocation45_spill] sm:$0xff] }
 0xf71   : > { %v9122_v31 = vpop.f32.mrb[60].mxu1  ;;  %v14375_v30 = vunpack.i.h.bf16 %v14373_v19  ;;  %v14374_v47 = vunpack.i.l.bf16 %v14373_v19 }
 0xf72   : > { %14522 = vrot.lane.b32.xlu0 %v21953_v35, %s16078_s15  ;;  %v14097_v14 = vpop.f32.mrb[61].mxu1 }
 0xf73   : > { %v9125_v27 = vpop.f32.mrb[62].mxu1  ;;  %v9340_v56 = vsel %vm9337_vm3, %v9323_v43, %v14374_v47  ;;  %v9341_v46 = vsel %vm9337_vm3, %v9324_v12, %v14375_v30 }
 0xf74   : > { %v14571_v60 = vpack.i.bf16 %v9125_v27, %v9122_v31  ;;  %v14098_v58 = vpop.f32.mrb[63].mxu1  ;;  %v14378_v25 = vpop.permute.xlu1 %14377  ;;  %v9357_v50 = vsel %vm9354_vm4, %v9340_v56, %v14384_v26  ;;  %v9358_v62 = vsel %vm9354_vm4, %v9341_v46, %v14385_v52 }
 0xf75   : > { %v14393_v22 = vpop.permute.xlu0 %14392  ;;  %v14380_v4 = vunpack.i.h.bf16 %v14378_v25  ;;  %v14379_v39 = vunpack.i.l.bf16 %v14378_v25  ;;  %v9613_v28 = vpack.c.bf16 %v9358_v62, %v9357_v50 }
 0xf76   : > { %14532 = vrot.lane.b32.xlu0 %v14531_v15, %s16077_s28  ;;  %v14395_v29 = vunpack.i.h.bf16 %v14393_v22  ;;  %v14394_v61 = vunpack.i.l.bf16 %v14393_v22 }
 0xf77   : > { %14119 = vmatprep.mubr.bf16.mxu0 %v9613_v28  ;;  %v9566_v9 = vsel %vm1575_vm1, %v21956_v21, %v14380_v4  ;;  %v9565_v63 = vsel %vm1575_vm1, %v21957_v36, %v14379_v39  ;;  %v21965_v28 = vld [vmem:[#allocation65_spill] sm:$0xff] }
 0xf78   : > { %v14388_v41 = vpop.permute.xlu1 %14387 }
 0xf79   : > { %v14403_v51 = vpop.permute.xlu0 %14402  ;;  %v14390_v13 = vunpack.i.h.bf16 %v14388_v41  ;;  %v14389_v45 = vunpack.i.l.bf16 %v14388_v41 }
 0xf7a   : > { %14542 = vrot.lane.b32.xlu0 %v14541_v5, %s16077_s28  ;;  %v14405_v2 = vunpack.i.h.bf16 %v14403_v51  ;;  %v14404_v7 = vunpack.i.l.bf16 %v14403_v51  ;;  %v21966_v51 = vld [vmem:[#allocation66_spill] sm:$0xff] }
 0xf7b   : > { %v9581_v44 = vsel %vm9337_vm3, %v9565_v63, %v14389_v45  ;;  %v9582_v3 = vsel %vm9337_vm3, %v9566_v9, %v14390_v13 }
 0xf7c   : > { %v9597_v15 = vsel %vm9354_vm4, %v9581_v44, %v14394_v61  ;;  %v9598_v34 = vsel %vm9354_vm4, %v9582_v3, %v14395_v29  ;;  %v14398_v24 = vpop.permute.xlu1 %14397 }
 0xf7d   : > { %v14413_v54 = vpop.permute.xlu0 %14412  ;;  %v9614_v32 = vpack.c.bf16 %v9598_v34, %v9597_v15  ;;  %v14400_v18 = vunpack.i.h.bf16 %v14398_v24  ;;  %v14399_v0 = vunpack.i.l.bf16 %v14398_v24 }
 0xf7e   : > { %14552 = vrot.lane.b32.xlu0 %v21960_v1, %s16078_s15  ;;  %v14415_v40 = vunpack.i.h.bf16 %v14413_v54  ;;  %v14414_v55 = vunpack.i.l.bf16 %v14413_v54 }
 0xf7f   : > { %v9326_v48 = vsel %vm1575_vm1, %v21961_v42, %v14400_v18  ;;  %v9325_v11 = vsel %vm1575_vm1, %v21962_v49, %v14399_v0  ;;  %14120 = vmatmul.mubr.bf16.gmra.mrb[36].mxu0 %v9614_v32  ;;  %v21967_v32 = vld [vmem:[#allocation82_spill] sm:$0xff]  ;;  %v21968_v0 = vld [vmem:[#allocation81_spill] sm:$0xff] }
 0xf80   : > { %v9342_v33 = vsel %vm9337_vm3, %v9325_v11, %v14404_v7  ;;  %v9343_v38 = vsel %vm9337_vm3, %v9326_v48, %v14405_v2  ;;  %v14408_v31 = vpop.permute.xlu1 %14407 }
 0xf81   : > { %v9359_v5 = vsel %vm9354_vm4, %v9342_v33, %v14414_v55  ;;  %v9360_v17 = vsel %vm9354_vm4, %v9343_v38, %v14415_v40  ;;  %v14410_v23 = vunpack.i.h.bf16 %v14408_v31  ;;  %v14409_v35 = vunpack.i.l.bf16 %v14408_v31 }
 0xf82   : > { %14562 = vrot.lane.b32.xlu0 %v14561_v59, %s16077_s28  ;;  %v9615_v19 = vpack.c.bf16 %v9360_v17, %v9359_v5 }
 0xf83   : > { %v9568_v53 = vsel %vm1575_vm1, %v21963_v6, %v14410_v23  ;;  %v9567_v59 = vsel %vm1575_vm1, %v21964_v57, %v14409_v35 }
 0xf84   : > { %14123 = vmatprep.mubr.bf16.mxu0 %v9615_v19  ;;  %v14418_v30 = vpop.permute.xlu1 %14417  ;;  %v21969_v19 = vld [vmem:[#allocation67_spill] sm:$0xff] }
 0xf85   : > { %v14420_v14 = vunpack.i.h.bf16 %v14418_v30  ;;  %v14419_v52 = vunpack.i.l.bf16 %v14418_v30  ;;  %v21970_v30 = vld [vmem:[#allocation68_spill] sm:$0xff] }
 0xf86   : > { %14572 = vrot.lane.b32.xlu0 %v14571_v60, %s16077_s28 }
 0xf87   : > { %v9583_v27 = vsel %vm9337_vm3, %v9567_v59, %v14419_v52  ;;  %v9584_v60 = vsel %vm9337_vm3, %v9568_v53, %v14420_v14 }
 0xf88   : > { %v14428_v47 = vpop.permute.xlu1 %14427 }
 0xf89   : > { %v14430_v46 = vunpack.i.h.bf16 %v14428_v47  ;;  %v14429_v25 = vunpack.i.l.bf16 %v14428_v47 }
 0xf8b   : > { %v9328_v41 = vsel %vm1575_vm1, %v21965_v28, %v14430_v46  ;;  %v9327_v13 = vsel %vm1575_vm1, %v21966_v51, %v14429_v25 }
 0xf8c   : > { %v14438_v16 = vpop.permute.xlu1 %14437 }
 0xf8d   : > { %v14440_v21 = vunpack.i.h.bf16 %v14438_v16  ;;  %v14439_v9 = vunpack.i.l.bf16 %v14438_v16 }
 0xf8f   : > { %v9570_v18 = vsel %vm1575_vm1, %v21967_v32, %v14440_v21  ;;  %v9569_v37 = vsel %vm1575_vm1, %v21968_v0, %v14439_v9 }
 0xf90   : > { %v14448_v12 = vpop.permute.xlu1 %14447 }
 0xf91   : > { %v14450_v29 = vunpack.i.h.bf16 %v14448_v12  ;;  %v14449_v61 = vunpack.i.l.bf16 %v14448_v12 }
 0xf93   : > { %v9585_v7 = vsel %vm9337_vm3, %v9569_v37, %v14449_v61  ;;  %v9586_v42 = vsel %vm9337_vm3, %v9570_v18, %v14450_v29  ;;  %v21974_v29 = vld [vmem:[#allocation69_spill] sm:$0xff] }
 0xf94   : > { %v14458_v39 = vpop.permute.xlu1 %14457 }
 0xf95   : > { %v14460_v11 = vunpack.i.h.bf16 %v14458_v39  ;;  %v14459_v40 = vunpack.i.l.bf16 %v14458_v39 }
 0xf97   : > { %v9330_v31 = vsel %vm1575_vm1, %v21969_v19, %v14460_v11  ;;  %v9329_v47 = vsel %vm1575_vm1, %v21970_v30, %v14459_v40  ;;  %v21976_v40 = vld [vmem:[#allocation87_spill] sm:$0xff] }
 0xf98   : > { %v14468_v20 = vpop.permute.xlu1 %14467 }
 0xf99   : > { %v14470_v23 = vunpack.i.h.bf16 %v14468_v20  ;;  %v14469_v35 = vunpack.i.l.bf16 %v14468_v20 }
 0xf9b   : > { %v14423_v26 = vpop.permute.xlu0 %14422 }
 0xf9c   : > { %v14425_v10 = vunpack.i.h.bf16 %v14423_v26  ;;  %v14424_v43 = vunpack.i.l.bf16 %v14423_v26  ;;  %v14478_v17 = vpop.permute.xlu1 %14477 }
 0xf9d   : > { %v14480_v26 = vunpack.i.h.bf16 %v14478_v17  ;;  %v14479_v6 = vunpack.i.l.bf16 %v14478_v17 }
 0xf9e   : > { %v9600_v58 = vsel %vm9354_vm4, %v9584_v60, %v14425_v10  ;;  %v9599_v56 = vsel %vm9354_vm4, %v9583_v27, %v14424_v43  ;;  %v21971_v27 = vld [vmem:[#allocation84_spill] sm:$0xff] }
 0xf9f   : > { %v9616_v22 = vpack.c.bf16 %v9600_v58, %v9599_v56  ;;  %v14433_v50 = vpop.permute.xlu0 %14432  ;;  %v9572_v60 = vsel %vm1575_vm1, %v21971_v27, %v14470_v23  ;;  %v21972_v58 = vld [vmem:[#allocation83_spill] sm:$0xff] }
 0xfa0   : > { %v14435_v62 = vunpack.i.h.bf16 %v14433_v50  ;;  %v14434_v4 = vunpack.i.l.bf16 %v14433_v50  ;;  %v9571_v56 = vsel %vm1575_vm1, %v21972_v58, %v14469_v35  ;;  %v9588_v50 = vsel %vm9337_vm3, %v9572_v60, %v14480_v26 }
 0xfa1   : > { %14124 = vmatmul.mubr.bf16.gmra.mrb[40].mxu0 %v9616_v22  ;;  %v9587_v22 = vsel %vm9337_vm3, %v9571_v56, %v14479_v6  ;;  %v21977_v6 = vld [vmem:[#allocation72_spill] sm:$0xff] }
 0xfa2   : > { %v9345_v44 = vsel %vm9337_vm3, %v9328_v41, %v14435_v62  ;;  %v9344_v3 = vsel %vm9337_vm3, %v9327_v13, %v14434_v4  ;;  %v14488_v62 = vpop.permute.xlu1 %14487 }
 0xfa3   : > { %v14443_v45 = vpop.permute.xlu0 %14442  ;;  %v14490_v51 = vunpack.i.h.bf16 %v14488_v62  ;;  %v14489_v13 = vunpack.i.l.bf16 %v14488_v62 }
 0xfa4   : > { %v14445_v36 = vunpack.i.h.bf16 %v14443_v45  ;;  %v14444_v63 = vunpack.i.l.bf16 %v14443_v45 }
 0xfa5   : > { %v9331_v61 = vsel %vm1575_vm1, %v21974_v29, %v14489_v13 }
 0xfa6   : > { %v9361_v15 = vsel %vm9354_vm4, %v9344_v3, %v14444_v63  ;;  %v9362_v34 = vsel %vm9354_vm4, %v9345_v44, %v14445_v36  ;;  %v21973_v36 = vld [vmem:[#allocation70_spill] sm:$0xff]  ;;  %v14498_v18 = vpop.permute.xlu1 %14497 }
 0xfa7   : > { %v14453_v24 = vpop.permute.xlu0 %14452  ;;  %v9617_v54 = vpack.c.bf16 %v9362_v34, %v9361_v15  ;;  %v9332_v63 = vsel %vm1575_vm1, %v21973_v36, %v14490_v51 }
 0xfa8   : > { %v14455_v1 = vunpack.i.h.bf16 %v14453_v24  ;;  %v14454_v2 = vunpack.i.l.bf16 %v14453_v24 }
 0xfa9   : > { %14127 = vmatprep.mubr.bf16.mxu0 %v9617_v54 }
 0xfaa   : > { %v9602_v48 = vsel %vm9354_vm4, %v9586_v42, %v14455_v1  ;;  %v9601_v49 = vsel %vm9354_vm4, %v9585_v7, %v14454_v2  ;;  %v14508_v0 = vpop.permute.xlu1 %14507  ;;  %v14500_v1 = vunpack.i.h.bf16 %v14498_v18  ;;  %v14499_v2 = vunpack.i.l.bf16 %v14498_v18 }
 0xfab   : > { %v9618_v55 = vpack.c.bf16 %v9602_v48, %v9601_v49  ;;  %v14463_v33 = vpop.permute.xlu0 %14462  ;;  %v14510_v7 = vunpack.i.h.bf16 %v14508_v0  ;;  %v14509_v42 = vunpack.i.l.bf16 %v14508_v0  ;;  %v21975_v49 = vld [vmem:[#allocation88_spill] sm:$0xff]  ;;  %v21982_v0 = vld [vmem:[#allocation73_spill] sm:$0xff] }
 0xfac   : > { %v14465_v38 = vunpack.i.h.bf16 %v14463_v33  ;;  %v14464_v5 = vunpack.i.l.bf16 %v14463_v33  ;;  %v9574_v11 = vsel %vm1575_vm1, %v21975_v49, %v14500_v1 }
 0xfad   : > { %14128 = vmatmul.mubr.bf16.gmra.mrb[44].mxu0 %v9618_v55  ;;  %v9573_v55 = vsel %vm1575_vm1, %v21976_v40, %v14499_v2  ;;  %v9590_v19 = vsel %vm9337_vm3, %v9574_v11, %v14510_v7 }
 0xfae   : > { %v9347_v53 = vsel %vm9337_vm3, %v9330_v31, %v14465_v38  ;;  %v9346_v57 = vsel %vm9337_vm3, %v9329_v47, %v14464_v5  ;;  %v14518_v37 = vpop.permute.xlu1 %14517  ;;  %v9589_v17 = vsel %vm9337_vm3, %v9573_v55, %v14509_v42 }
 0xfaf   : > { %v14473_v16 = vpop.permute.xlu0 %14472  ;;  %v14520_v47 = vunpack.i.h.bf16 %v14518_v37 }
 0xfb0   : > { %v14475_v14 = vunpack.i.h.bf16 %v14473_v16  ;;  %v14474_v52 = vunpack.i.l.bf16 %v14473_v16  ;;  %v14519_v16 = vunpack.i.l.bf16 %v14518_v37 }
 0xfb2   : > { %v9363_v59 = vsel %vm9354_vm4, %v9346_v57, %v14474_v52  ;;  %v9364_v12 = vsel %vm9354_vm4, %v9347_v53, %v14475_v14  ;;  %v14528_v20 = vpop.permute.xlu1 %14527  ;;  %v9334_v53 = vsel %vm1575_vm1, %v21977_v6, %v14520_v47  ;;  %v21978_v57 = vld [vmem:[#allocation71_spill] sm:$0xff]  ;;  %v20012_v6 = vld [vmem:[#allocation11] ss:$0 sm:$0xff] }
 0xfb3   : > { %v14483_v10 = vpop.permute.xlu0 %14482  ;;  %v9619_v43 = vpack.c.bf16 %v9364_v12, %v9363_v59  ;;  %v9333_v59 = vsel %vm1575_vm1, %v21978_v57, %v14519_v16 }
 0xfb4   : > { %v14485_v46 = vunpack.i.h.bf16 %v14483_v10  ;;  %v14484_v25 = vunpack.i.l.bf16 %v14483_v10  ;;  %v14530_v10 = vunpack.i.h.bf16 %v14528_v20 }
 0xfb5   : > { %14131 = vmatprep.mubr.bf16.mxu0 %v9619_v43  ;;  %v14529_v43 = vunpack.i.l.bf16 %v14528_v20 }
 0xfb6   : > { %v9604_v4 = vsel %vm9354_vm4, %v9588_v50, %v14485_v46  ;;  %v9603_v39 = vsel %vm9354_vm4, %v9587_v22, %v14484_v25  ;;  %v14538_v33 = vpop.permute.xlu1 %14537 }
 0xfb7   : > { %v9620_v28 = vpack.c.bf16 %v9604_v4, %v9603_v39  ;;  %v14493_v41 = vpop.permute.xlu0 %14492  ;;  %v14540_v58 = vunpack.i.h.bf16 %v14538_v33  ;;  %v14539_v56 = vunpack.i.l.bf16 %v14538_v33  ;;  %v21979_v39 = vld [vmem:[#allocation86_spill] sm:$0xff] }
 0xfb8   : > { %v14495_v45 = vunpack.i.h.bf16 %v14493_v41  ;;  %v14494_v21 = vunpack.i.l.bf16 %v14493_v41  ;;  %v21980_v41 = vld [vmem:[#allocation85_spill] sm:$0xff] }
 0xfb9   : > { %14132 = vmatmul.mubr.bf16.gmra.mrb[48].mxu0 %v9620_v28  ;;  %v9576_v28 = vsel %vm1575_vm1, %v21979_v39, %v14530_v10  ;;  %v9575_v51 = vsel %vm1575_vm1, %v21980_v41, %v14529_v43  ;;  %v15592_v43 = vld [vmem:[%s16501_s1] sm:$0xff] }
 0xfba   : > { %v9349_v15 = vsel %vm9337_vm3, %v9332_v63, %v14495_v45  ;;  %v9348_v34 = vsel %vm9337_vm3, %v9331_v61, %v14494_v21  ;;  %v14548_v26 = vpop.permute.xlu1 %14547  ;;  %v9592_v36 = vsel %vm9337_vm3, %v9576_v28, %v14540_v58 }
 0xfbb   : > { %v14503_v9 = vpop.permute.xlu0 %14502  ;;  %v14550_v61 = vunpack.i.h.bf16 %v14548_v26 }
 0xfbc   : > { %v14505_v44 = vunpack.i.h.bf16 %v14503_v9  ;;  %v14504_v3 = vunpack.i.l.bf16 %v14503_v9  ;;  %v9591_v9 = vsel %vm9337_vm3, %v9575_v51, %v14539_v56 }
 0xfbe   : > { %v9365_v24 = vsel %vm9354_vm4, %v9348_v34, %v14504_v3  ;;  %v9366_v54 = vsel %vm9354_vm4, %v9349_v15, %v14505_v44  ;;  %v14558_v13 = vpop.permute.xlu1 %14557  ;;  %v14549_v44 = vunpack.i.l.bf16 %v14548_v26 }
 0xfbf   : > { %v9621_v32 = vpack.c.bf16 %v9366_v54, %v9365_v24  ;;  %v14560_v1 = vunpack.i.h.bf16 %v14558_v13  ;;  %v14559_v2 = vunpack.i.l.bf16 %v14558_v13 }
 0xfc0   : > { %v9335_v37 = vsel %vm1575_vm1, %v21982_v0, %v14549_v44  ;;  %v15598_v44 = vld [vmem:[%s16501_s1 + $0x30] sm:$0xff] }
 0xfc1   : > { %14135 = vmatprep.mubr.bf16.mxu0 %v9621_v32  ;;  %v21981_v32 = vld [vmem:[#allocation74_spill] sm:$0xff] }
 0xfc2   : > { %v14568_v54 = vpop.permute.xlu1 %14567  ;;  %v9336_v18 = vsel %vm1575_vm1, %v21981_v32, %v14550_v61 }
 0xfc3   : > { %v14569_v49 = vunpack.i.l.bf16 %v14568_v54 }
 0xfe0   : > { %v14513_v48 = vpop.permute.xlu0 %14512 }
 0xfe1   : > { %v14515_v38 = vunpack.i.h.bf16 %v14513_v48  ;;  %v14514_v5 = vunpack.i.l.bf16 %v14513_v48  ;;  %v14570_v48 = vunpack.i.h.bf16 %v14568_v54 }
 0xfe3   : > { %v9606_v31 = vsel %vm9354_vm4, %v9590_v19, %v14515_v38  ;;  %v9605_v30 = vsel %vm9354_vm4, %v9589_v17, %v14514_v5  ;;  %v21983_v17 = vld [vmem:[#allocation92_spill] sm:$0xff] }
 0xfe4   : > { %v9622_v23 = vpack.c.bf16 %v9606_v31, %v9605_v30  ;;  %v14523_v35 = vpop.permute.xlu0 %14522  ;;  %v9578_v19 = vsel %vm1575_vm1, %v21983_v17, %v14560_v1  ;;  %v21984_v31 = vld [vmem:[#allocation91_spill] sm:$0xff] }
 0xfe5   : > { %v14525_v14 = vunpack.i.h.bf16 %v14523_v35  ;;  %v14524_v52 = vunpack.i.l.bf16 %v14523_v35  ;;  %v9577_v30 = vsel %vm1575_vm1, %v21984_v31, %v14559_v2  ;;  %v9594_v35 = vsel %vm9337_vm3, %v9578_v19, %v14570_v48 }
 0xfe6   : > { %14136 = vmatmul.mubr.bf16.gmra.mrb[52].mxu0 %v9622_v23  ;;  %v9593_v23 = vsel %vm9337_vm3, %v9577_v30, %v14569_v49  ;;  %v15602_v49 = vld [vmem:[%s16501_s1 + $0x50] sm:$0xff]  ;;  %v15604_v30 = vld [vmem:[%s16501_s1 + $0x60] sm:$0xff] }
 0xfe7   : > { %v9351_v46 = vsel %vm9337_vm3, %v9334_v53, %v14525_v14  ;;  %v9350_v25 = vsel %vm9337_vm3, %v9333_v59, %v14524_v52 }
 0xfe8   : > { %v14533_v12 = vpop.permute.xlu0 %14532 }
 0xfe9   : > { %v14535_v27 = vunpack.i.h.bf16 %v14533_v12  ;;  %v14534_v60 = vunpack.i.l.bf16 %v14533_v12 }
 0xfeb   : > { %v9367_v22 = vsel %vm9354_vm4, %v9350_v25, %v14534_v60  ;;  %v9368_v50 = vsel %vm9354_vm4, %v9351_v46, %v14535_v27  ;;  %v15593_v46 = vld [vmem:[%s16501_s1 + $0x8] sm:$0xff] }
 0xfec   : > { %v14543_v62 = vpop.permute.xlu0 %14542  ;;  %v9623_v4 = vpack.c.bf16 %v9368_v50, %v9367_v22  ;;  %v15594_v22 = vld [vmem:[%s16501_s1 + $0x18] sm:$0xff] }
 0xfed   : > { %v14545_v45 = vunpack.i.h.bf16 %v14543_v62  ;;  %v14544_v21 = vunpack.i.l.bf16 %v14543_v62  ;;  %v15595_v62 = vld [vmem:[%s16501_s1 + $0x10] sm:$0xff] }
 0xfee   : > { %14139 = vmatprep.mubr.bf16.mxu0 %v9623_v4 }
 0xfef   : > { %v9608_v63 = vsel %vm9354_vm4, %v9592_v36, %v14545_v45  ;;  %v9607_v29 = vsel %vm9354_vm4, %v9591_v9, %v14544_v21  ;;  %v15596_v21 = vld [vmem:[%s16501_s1 + $0x20] sm:$0xff] }
 0xff0   : > { %v9624_v3 = vpack.c.bf16 %v9608_v63, %v9607_v29  ;;  %v14553_v15 = vpop.permute.xlu0 %14552  ;;  %v15597_v29 = vld [vmem:[%s16501_s1 + $0x28] sm:$0xff] }
 0xff1   : > { %v14555_v34 = vunpack.i.h.bf16 %v14553_v15  ;;  %v14554_v24 = vunpack.i.l.bf16 %v14553_v15  ;;  %v15599_v15 = vld [vmem:[%s16501_s1 + $0x38] sm:$0xff] }
 0xff2   : > { %14140 = vmatmul.mubr.bf16.gmra.mrb[56].mxu0 %v9624_v3 }
 0xff3   : > { %v9353_v11 = vsel %vm9337_vm3, %v9336_v18, %v14555_v34  ;;  %v9352_v40 = vsel %vm9337_vm3, %v9335_v37, %v14554_v24 }
 0xff4   : > { %v14563_v20 = vpop.permute.xlu0 %14562 }
 0xff5   : > { %v14565_v7 = vunpack.i.h.bf16 %v14563_v20  ;;  %v14564_v42 = vunpack.i.l.bf16 %v14563_v20  ;;  %v15600_v20 = vld [vmem:[%s16501_s1 + $0x40] sm:$0xff] }
 0xff7   : > { %v9369_v55 = vsel %vm9354_vm4, %v9352_v40, %v14564_v42  ;;  %v9370_v33 = vsel %vm9354_vm4, %v9353_v11, %v14565_v7  ;;  %v15601_v42 = vld [vmem:[%s16501_s1 + $0x48] sm:$0xff]  ;;  %v15603_v40 = vld [vmem:[%s16501_s1 + $0x58] sm:$0xff] }
 0xff8   : > { %v14573_v38 = vpop.permute.xlu0 %14572  ;;  %v9625_v5 = vpack.c.bf16 %v9370_v33, %v9369_v55 }
 0xff9   : > { %v14575_v47 = vunpack.i.h.bf16 %v14573_v38  ;;  %v14574_v16 = vunpack.i.l.bf16 %v14573_v38 }
 0xffa   : > { %14143 = vmatprep.mubr.bf16.mxu0 %v9625_v5 }
 0xffb   : > { %v9610_v14 = vsel %vm9354_vm4, %v9594_v35, %v14575_v47  ;;  %v9609_v52 = vsel %vm9354_vm4, %v9593_v23, %v14574_v16  ;;  %v15605_v35 = vld [vmem:[%s16501_s1 + $0x68] sm:$0xff] }
 0xffc   : > { %v9626_v26 = vpack.c.bf16 %v9610_v14, %v9609_v52  ;;  %v15606_v52 = vld [vmem:[%s16501_s1 + $0x70] sm:$0xff] }
 0xffe   : > { %14144 = vmatmul.mubr.bf16.gmra.mrb[60].mxu0 %v9626_v26 }
 0xfff   : > { %10776 = vmatprep.mubr.bf16.mxu0 %v21872_v8 }
0x1041   : > { %v14117_v53 = vpop.f32.mrb[32].mxu0 }
0x1042   : > { %v9732_v57 = vpop.f32.mrb[33].mxu0  ;;  %v9741_v56 = vadd.f32 %v14117_v53, %v20012_v6  ;;  %v15607_v53 = vld [vmem:[%s16501_s1 + $0x78] sm:$0xff] }
0x1043   : > { %v9733_v59 = vadd.f32 %v20012_v6, %v9732_v57  ;;  %v14118_v12 = vpop.f32.mrb[34].mxu0 }
0x1044   : > { %v9735_v10 = vpop.f32.mrb[35].mxu0  ;;  %v9744_v60 = vadd.f32 %v14118_v12, %v20012_v6  ;;  %v20030_v4 = vadd.f32 %v15595_v62, %v9741_v56  ;;  %v15608_v56 = vld [vmem:[%s16501_s1 + $0x80] sm:$0xff] }
0x1045   : > { %v20016_v27 = vadd.f32 %v15592_v43, %v9733_v59  ;;  %v9736_v58 = vadd.f32 %v20012_v6, %v9735_v10 }
0x1046   : > { %v20026_v50 = vadd.f32 %v15594_v22, %v9744_v60  ;;  %21988 = vst [vmem:[#allocation129_spill] sm:$0xff] %v20030_v4 }
0x1047   : > { %21985 = vst [vmem:[#allocation128_spill] sm:$0xff] %v20016_v27  ;;  %v20022_v25 = vadd.f32 %v15593_v46, %v9736_v58  ;;  %9893 = vadd.xlane.f32.xlu1 %v20016_v27 }
0x1048   : > { %21987 = vst [vmem:[#allocation130_spill] sm:$0xff] %v20026_v50 }
0x1049   : > { %21986 = vst [vmem:[#allocation126_spill] sm:$0xff] %v20022_v25  ;;  %9895 = vadd.xlane.f32.xlu0 %v20022_v25 }
0x104b   : > { %9899 = vadd.xlane.f32.xlu1 %v20026_v50 }
0x104d   : > { %9897 = vadd.xlane.f32.xlu0 %v20030_v4 }
0x1052   : > { %v14121_v39 = vpop.f32.mrb[36].mxu0 }
0x1053   : > { %v9748_v28 = vpop.f32.mrb[37].mxu0  ;;  %v9757_v45 = vadd.f32 %v14121_v39, %v20012_v6  ;;  %v15609_v39 = vld [vmem:[%s16501_s1 + $0x88] sm:$0xff] }
0x1054   : > { %v9749_v41 = vadd.f32 %v20012_v6, %v9748_v28  ;;  %v14122_v51 = vpop.f32.mrb[38].mxu0 }
0x1055   : > { %v9751_v13 = vpop.f32.mrb[39].mxu0  ;;  %v9760_v63 = vadd.f32 %v14122_v51, %v20012_v6  ;;  %v20046_v3 = vadd.f32 %v15598_v44, %v9757_v45  ;;  %v14624_v44 = vld [vmem:[#allocation16 + $0x24] ss:$16 sps:$4 sm:$0xff]  }
0x1056   : > { %v20037_v9 = vadd.f32 %v15596_v21, %v9749_v41  ;;  %v9752_v36 = vadd.f32 %v20012_v6, %v9751_v13  ;;  %v15610_v41 = vld [vmem:[%s16501_s1 + $0x90] sm:$0xff]  ;;  %v15611_v13 = vld [vmem:[%s16501_s1 + $0x98] sm:$0xff] }
0x1057   : > { %21991 = vst [vmem:[#allocation50_spill] sm:$0xff] %v20046_v3  ;;  %v20050_v34 = vadd.f32 %v15599_v15, %v9760_v63  ;;  %v14616_v21 = vld [vmem:[#allocation16] ss:$16 sps:$4 sm:$0xff]   ;;  %v14619_v63 = vld [vmem:[#allocation16 + $0x8] ss:$16 sps:$4 sm:$0xff]  }
0x1058   : > { %21989 = vst [vmem:[#allocation131_spill] sm:$0xff] %v20037_v9  ;;  %v20042_v61 = vadd.f32 %v15597_v29, %v9752_v36  ;;  %9901 = vadd.xlane.f32.xlu0 %v20037_v9  ;;  %v14618_v36 = vld [vmem:[#allocation16 + $0x4] ss:$16 sps:$4 sm:$0xff]   ;;  %v14621_v29 = vld [vmem:[#allocation16 + $0xc] ss:$16 sps:$4 sm:$0xff]  }
0x1059   : > { %21992 = vst [vmem:[#allocation52_spill] sm:$0xff] %v20050_v34  ;;  %10551 = vmatprep.subr.bf16.mxu1 %v14618_v36  ;;  %v14627_v15 = vld [vmem:[#allocation16 + $0x2c] ss:$16 sps:$4 sm:$0xff]   ;;  %10744 = vmatprep.subr.bf16.mxu0 %v14621_v29 }
0x105a   : > { %21990 = vst [vmem:[#allocation132_spill] sm:$0xff] %v20042_v61  ;;  %9903 = vadd.xlane.f32.xlu1 %v20042_v61  ;;  %10552 = vmatpush1.bf16.msra.mxu1 %v14616_v21 }
0x105b   : > { %10745 = vmatpush1.bf16.msra.mxu0 %v14619_v63  ;;  %10553 = vmatprep.subr.bf16.mxu1 %v14624_v44  ;;  %v15614_v63 = vld [vmem:[%s16501_s1 + $0xb0] sm:$0xff] }
0x105c   : > { %9905 = vadd.xlane.f32.xlu0 %v20046_v3  ;;  %10746 = vmatprep.subr.bf16.mxu0 %v14627_v15 }
0x105e   : > { %9907 = vadd.xlane.f32.xlu1 %v20050_v34 }
0x1074   : > { %v14125_v24 = vpop.f32.mrb[40].mxu0 }
0x1075   : > { %v9764_v54 = vpop.f32.mrb[41].mxu0  ;;  %v9773_v37 = vadd.f32 %v14125_v24, %v20012_v6  ;;  %v14622_v24 = vld [vmem:[#allocation16 + $0x20] ss:$16 sps:$4 sm:$0xff]  }
0x1076   : > { %v9765_v32 = vadd.f32 %v20012_v6, %v9764_v54  ;;  %v14126_v18 = vpop.f32.mrb[42].mxu0  ;;  %v14625_v54 = vld [vmem:[#allocation16 + $0x28] ss:$16 sps:$4 sm:$0xff]   ;;  %10554 = vmatpush1.bf16.msra.mxu1 %v14622_v24  ;;  %v15615_v24 = vld [vmem:[%s16501_s1 + $0xb8] sm:$0xff] }
0x1077   : > { %v9767_v0 = vpop.f32.mrb[43].mxu0  ;;  %v9776_v7 = vadd.f32 %v14126_v18, %v20012_v6  ;;  %v20066_v11 = vadd.f32 %v15602_v49, %v9773_v37  ;;  %10747 = vmatpush1.bf16.msra.mxu0 %v14625_v54 }
0x1078   : > { %v20057_v1 = vadd.f32 %v15600_v20, %v9765_v32  ;;  %v9768_v2 = vadd.f32 %v20012_v6, %v9767_v0 }
0x1079   : > { %21995 = vst [vmem:[#allocation54_spill] sm:$0xff] %v20066_v11  ;;  %v20070_v55 = vadd.f32 %v15603_v40, %v9776_v7 }
0x107a   : > { %21993 = vst [vmem:[#allocation56_spill] sm:$0xff] %v20057_v1  ;;  %v20062_v48 = vadd.f32 %v15601_v42, %v9768_v2  ;;  %9909 = vadd.xlane.f32.xlu0 %v20057_v1 }
0x107b   : > { %21996 = vst [vmem:[#allocation99_spill] sm:$0xff] %v20070_v55 }
0x107c   : > { %21994 = vst [vmem:[#allocation58_spill] sm:$0xff] %v20062_v48  ;;  %9911 = vadd.xlane.f32.xlu1 %v20062_v48 }
0x107e   : > { %9913 = vadd.xlane.f32.xlu0 %v20066_v11 }
0x1080   : > { %9915 = vadd.xlane.f32.xlu1 %v20070_v55  ;;  %v14129_v33 = vpop.f32.mrb[44].mxu0 }
0x1081   : > { %v9780_v38 = vpop.f32.mrb[45].mxu0  ;;  %v9789_v31 = vadd.f32 %v14129_v33, %v20012_v6 }
0x1082   : > { %v9781_v5 = vadd.f32 %v20012_v6, %v9780_v38  ;;  %v14130_v17 = vpop.f32.mrb[46].mxu0 }
0x1083   : > { %v9783_v19 = vpop.f32.mrb[47].mxu0  ;;  %v9792_v23 = vadd.f32 %v14130_v17, %v20012_v6  ;;  %v20086_v26 = vadd.f32 %v15606_v52, %v9789_v31 }
0x1084   : > { %v20077_v47 = vadd.f32 %v15604_v30, %v9781_v5  ;;  %v9784_v16 = vadd.f32 %v20012_v6, %v9783_v19 }
0x1085   : > { %21999 = vst [vmem:[#allocation62_spill] sm:$0xff] %v20086_v26  ;;  %v20090_v57 = vadd.f32 %v15607_v53, %v9792_v23 }
0x1086   : > { %21997 = vst [vmem:[#allocation101_spill] sm:$0xff] %v20077_v47  ;;  %v20082_v14 = vadd.f32 %v15605_v35, %v9784_v16  ;;  %9917 = vadd.xlane.f32.xlu0 %v20077_v47 }
0x1087   : > { %22000 = vst [vmem:[#allocation89_spill] sm:$0xff] %v20090_v57 }
0x1088   : > { %21998 = vst [vmem:[#allocation60_spill] sm:$0xff] %v20082_v14  ;;  %9919 = vadd.xlane.f32.xlu1 %v20082_v14 }
0x108a   : > { %9921 = vadd.xlane.f32.xlu0 %v20086_v26 }
0x108c   : > { %v14133_v59 = vpop.f32.mrb[48].mxu0  ;;  %9923 = vadd.xlane.f32.xlu1 %v20090_v57 }
0x108d   : > { %v9796_v12 = vpop.f32.mrb[49].mxu0  ;;  %v9805_v58 = vadd.f32 %v14133_v59, %v20012_v6 }
0x108e   : > { %v9797_v10 = vadd.f32 %v20012_v6, %v9796_v12  ;;  %v14134_v43 = vpop.f32.mrb[50].mxu0 }
0x108f   : > { %v9799_v60 = vpop.f32.mrb[51].mxu0  ;;  %v9808_v62 = vadd.f32 %v14134_v43, %v20012_v6  ;;  %v20106_v51 = vadd.f32 %v15610_v41, %v9805_v58 }
0x1090   : > { %v20097_v46 = vadd.f32 %v15608_v56, %v9797_v10  ;;  %v9800_v22 = vadd.f32 %v20012_v6, %v9799_v60  ;;  %v15612_v60 = vld [vmem:[%s16501_s1 + $0xa0] sm:$0xff] }
0x1091   : > { %22003 = vst [vmem:[#allocation39_spill] sm:$0xff] %v20106_v51  ;;  %v20110_v45 = vadd.f32 %v15611_v13, %v9808_v62 }
0x1092   : > { %22001 = vst [vmem:[#allocation36_spill] sm:$0xff] %v20097_v46  ;;  %v20102_v28 = vadd.f32 %v15609_v39, %v9800_v22  ;;  %9925 = vadd.xlane.f32.xlu0 %v20097_v46  ;;  %v15613_v22 = vld [vmem:[%s16501_s1 + $0xa8] sm:$0xff] }
0x1093   : > { %22004 = vst [vmem:[#allocation107_spill] sm:$0xff] %v20110_v45 }
0x1094   : > { %22002 = vst [vmem:[#allocation90_spill] sm:$0xff] %v20102_v28  ;;  %9927 = vadd.xlane.f32.xlu1 %v20102_v28 }
0x1096   : > { %9929 = vadd.xlane.f32.xlu0 %v20106_v51 }
0x1098   : > { %9931 = vadd.xlane.f32.xlu1 %v20110_v45 }
0x10b9   : > { %v14137_v32 = vpop.f32.mrb[52].mxu0 }
0x10ba   : > { %v9812_v18 = vpop.f32.mrb[53].mxu0  ;;  %v9821_v41 = vadd.f32 %v14137_v32, %v20012_v6 }
0x10bb   : > { %v14138_v0 = vpop.f32.mrb[54].mxu0  ;;  %v9813_v23 = vadd.f32 %v20012_v6, %v9812_v18 }
0x10bc   : > { %v9815_v37 = vpop.f32.mrb[55].mxu0  ;;  %v9824_v21 = vadd.f32 %v14138_v0, %v20012_v6  ;;  %v20159_v29 = vadd.f32 %v15614_v63, %v9821_v41  ;;  %v14636_v41 = vld [vmem:[#allocation16 + $0x64] ss:$16 sps:$4 sm:$0xff]  }
0x10bd   : > { %v9816_v59 = vadd.f32 %v20012_v6, %v9815_v37  ;;  %v20139_v58 = vadd.f32 %v15612_v60, %v9813_v23  ;;  %v14633_v23 = vld [vmem:[#allocation16 + $0x4c] ss:$16 sps:$4 sm:$0xff]  }
0x10be   : > { %22007 = vst [vmem:[#allocation46_spill] sm:$0xff] %v20159_v29  ;;  %v20162_v54 = vadd.f32 %v15615_v24, %v9824_v21  ;;  %10748 = vmatprep.subr.bf16.mxu0 %v14633_v23  ;;  %v14637_v21 = vld [vmem:[#allocation16 + $0x68] ss:$16 sps:$4 sm:$0xff]   ;;  %v14648_v23 = vld [vmem:[#allocation16 + $0xa4] ss:$16 sps:$4 sm:$0xff]  }
0x10bf   : > { %22005 = vst [vmem:[#allocation106_spill] sm:$0xff] %v20139_v58  ;;  %v20145_v62 = vadd.f32 %v15613_v22, %v9816_v59  ;;  %v14631_v59 = vld [vmem:[#allocation16 + $0x48] ss:$16 sps:$4 sm:$0xff]  }
0x10c0   : > { %22008 = vst [vmem:[#allocation93_spill] sm:$0xff] %v20162_v54  ;;  %10749 = vmatpush1.bf16.msra.mxu0 %v14631_v59  ;;  %v14649_v59 = vld [vmem:[#allocation16 + $0xa8] ss:$16 sps:$4 sm:$0xff]  }
0x10c1   : > { %22006 = vst [vmem:[#allocation44_spill] sm:$0xff] %v20145_v62 }
0x10c5   : > { %v20114_v20 = vpop.f32.mrb[56].mxu0 }
0x10c6   : > { %v9828_v2 = vpop.f32.mrb[57].mxu0 }
0x10c7   : > { %v20116_v7 = vpop.f32.mrb[58].mxu0 }
0x10c8   : > { %v9831_v42 = vpop.f32.mrb[59].mxu0 }
0x10d1   : > { %v20118_v49 = vpop.f32.mrb[60].mxu0 }
0x10d2   : > { %v20120_v40 = vpop.f32.mrb[61].mxu0 }
0x10d3   : > { %v20122_v33 = vpop.f32.mrb[62].mxu0 }
0x10d4   : > { %v20124_v38 = vpop.f32.mrb[63].mxu0  ;;  %v9894_v5 = vpop.xlane.xlu1 %9893 }
0x10d5   : > { %v9957_v17 = vmul.f32 0.0078125, %v9894_v5  ;;  %v9829_v5 = vadd.f32 %v20012_v6, %v9828_v2 }
0x10d6   : > { %v9896_v19 = vpop.xlane.xlu0 %9895 }
0x10d7   : > { %v20127_v31 = vsub.f32 %v20016_v27, %v9957_v17  ;;  %v9958_v30 = vmul.f32 0.0078125, %v9896_v19 }
0x10d8   : > { %v9900_v16 = vpop.xlane.xlu1 %9899 }
0x10d9   : > { %v20131_v35 = vsub.f32 %v20022_v25, %v9958_v30  ;;  %v10021_v52 = vmul.f32 %v20127_v31, %v20127_v31  ;;  %v9960_v12 = vmul.f32 0.0078125, %v9900_v16  ;;  %v14630_v16 = vld [vmem:[#allocation16 + $0x44] ss:$16 sps:$4 sm:$0xff]  }
0x10da   : > { %v9898_v53 = vpop.xlane.xlu0 %9897  ;;  %10555 = vmatprep.subr.bf16.mxu1 %v14630_v16 }
0x10db   : > { %v9959_v10 = vmul.f32 0.0078125, %v9898_v53  ;;  %10053 = vadd.xlane.f32.xlu0 %v10021_v52  ;;  %v10022_v43 = vmul.f32 %v20131_v35, %v20131_v35  ;;  %v20148_v39 = vsub.f32 %v20026_v50, %v9960_v12  ;;  %v14628_v53 = vld [vmem:[#allocation16 + $0x40] ss:$16 sps:$4 sm:$0xff]   ;;  %v9832_v12 = vadd.f32 %v20012_v6, %v9831_v42 }
0x10dc   : > { %10556 = vmatpush1.bf16.msra.mxu1 %v14628_v53  ;;  %v14634_v42 = vld [vmem:[#allocation16 + $0x60] ss:$16 sps:$4 sm:$0xff]  }
0x10dd   : > { %v20142_v56 = vsub.f32 %v20030_v4, %v9959_v10  ;;  %10055 = vadd.xlane.f32.xlu1 %v10022_v43  ;;  %v10024_v36 = vmul.f32 %v20148_v39, %v20148_v39  ;;  %v15616_v43 = vld [vmem:[%s16501_s1 + $0xc0] sm:$0xff]  ;;  %10557 = vmatprep.subr.bf16.mxu1 %v14636_v41  ;;  %v14646_v53 = vld [vmem:[#allocation16 + $0xa0] ss:$16 sps:$4 sm:$0xff]  }
0x10de   : > { %v20179_v60 = vadd.f32 %v15616_v43, %v9829_v5  ;;  %v14643_v5 = vld [vmem:[#allocation16 + $0x88] ss:$16 sps:$4 sm:$0xff]   ;;  %v14652_v43 = vld [vmem:[#allocation16 + $0xc0] ss:$16 sps:$4 sm:$0xff]  }
0x10df   : > { %9933 = vadd.xlane.f32.xlu0 %v20139_v58  ;;  %v10023_v13 = vmul.f32 %v20142_v56, %v20142_v56  ;;  %v14655_v41 = vld [vmem:[#allocation16 + $0xc8] ss:$16 sps:$4 sm:$0xff]  }
0x10e0   : > { %22009 = vst [vmem:[#allocation35_spill] sm:$0xff] %v20179_v60  ;;  %10558 = vmatpush1.bf16.msra.mxu1 %v14634_v42  ;;  %v14663_v42 = vld [vmem:[#allocation16 + $0xec] ss:$16 sps:$4 sm:$0xff]  }
0x10e1   : > { %9935 = vadd.xlane.f32.xlu1 %v20145_v62 }
0x10e3   : > { %10057 = vadd.xlane.f32.xlu0 %v10023_v13  ;;  %v14639_v13 = vld [vmem:[#allocation16 + $0x6c] ss:$16 sps:$4 sm:$0xff]  }
0x10e4   : > { %10750 = vmatprep.subr.bf16.mxu0 %v14639_v13  ;;  %v14660_v13 = vld [vmem:[#allocation16 + $0xe4] ss:$16 sps:$4 sm:$0xff]  }
0x10e5   : > { %10059 = vadd.xlane.f32.xlu1 %v10024_v36  ;;  %v9902_v44 = vpop.xlane.xlu0 %9901  ;;  %v15617_v36 = vld [vmem:[%s16501_s1 + $0xc8] sm:$0xff]  ;;  %10751 = vmatpush1.bf16.msra.mxu0 %v14637_v21 }
0x10e6   : > { %v9961_v15 = vmul.f32 0.0078125, %v9902_v44  ;;  %v20185_v63 = vadd.f32 %v15617_v36, %v9832_v12  ;;  %v15619_v12 = vld [vmem:[%s16501_s1 + $0xd8] sm:$0xff]  ;;  %v14661_v36 = vld [vmem:[#allocation16 + $0xe8] ss:$16 sps:$4 sm:$0xff]  }
0x10e7   : > { %v9904_v32 = vpop.xlane.xlu1 %9903  ;;  %9937 = vadd.xlane.f32.xlu0 %v20159_v29  ;;  %v14658_v21 = vld [vmem:[#allocation16 + $0xe0] ss:$16 sps:$4 sm:$0xff]  }
0x10e8   : > { %v20166_v18 = vsub.f32 %v20037_v9, %v9961_v15  ;;  %v9962_v0 = vmul.f32 0.0078125, %v9904_v32  ;;  %22010 = vst [vmem:[#allocation105_spill] sm:$0xff] %v20185_v63  ;;  %v9837_v15 = vadd.f32 %v20114_v20, %v20012_v6  ;;  %v14642_v32 = vld [vmem:[#allocation16 + $0x84] ss:$16 sps:$4 sm:$0xff]  }
0x10e9   : > { %9939 = vadd.xlane.f32.xlu1 %v20162_v54  ;;  %v9906_v37 = vpop.xlane.xlu0 %9905  ;;  %10559 = vmatprep.subr.bf16.mxu1 %v14642_v32  ;;  %v15618_v20 = vld [vmem:[%s16501_s1 + $0xd0] sm:$0xff] }
0x10ea   : > { %v20171_v17 = vsub.f32 %v20042_v61, %v9962_v0  ;;  %v9963_v19 = vmul.f32 0.0078125, %v9906_v37  ;;  %v10025_v30 = vmul.f32 %v20166_v18, %v20166_v18  ;;  %v14645_v0 = vld [vmem:[#allocation16 + $0x8c] ss:$16 sps:$4 sm:$0xff]   ;;  %v14640_v37 = vld [vmem:[#allocation16 + $0x80] ss:$16 sps:$4 sm:$0xff]   ;;  %v20201_v16 = vadd.f32 %v15618_v20, %v9837_v15 }
0x10eb   : > { %v9908_v52 = vpop.xlane.xlu1 %9907  ;;  %10752 = vmatprep.subr.bf16.mxu0 %v14645_v0  ;;  %10560 = vmatpush1.bf16.msra.mxu1 %v14640_v37 }
0x10ec   : > { %v9964_v10 = vmul.f32 0.0078125, %v9908_v52  ;;  %10061 = vadd.xlane.f32.xlu0 %v10025_v30  ;;  %v10026_v2 = vmul.f32 %v20171_v17, %v20171_v17  ;;  %v20182_v22 = vsub.f32 %v20046_v3, %v9963_v19  ;;  %v9840_v19 = vadd.f32 %v20116_v7, %v20012_v6  ;;  %22011 = vst [vmem:[#allocation104_spill] sm:$0xff] %v20201_v16  ;;  %v14651_v52 = vld [vmem:[#allocation16 + $0xac] ss:$16 sps:$4 sm:$0xff]   ;;  %v14654_v7 = vld [vmem:[#allocation16 + $0xc4] ss:$16 sps:$4 sm:$0xff]  }
0x10ed   : > { %10753 = vmatpush1.bf16.msra.mxu0 %v14643_v5  ;;  %10561 = vmatprep.subr.bf16.mxu1 %v14648_v23 }
0x10ee   : > { %10063 = vadd.xlane.f32.xlu1 %v10026_v2  ;;  %v20188_v44 = vsub.f32 %v20050_v34, %v9964_v10  ;;  %v10027_v24 = vmul.f32 %v20182_v22, %v20182_v22  ;;  %v20204_v10 = vadd.f32 %v15619_v12, %v9840_v19  ;;  %10754 = vmatprep.subr.bf16.mxu0 %v14651_v52  ;;  %v14657_v2 = vld [vmem:[#allocation16 + $0xcc] ss:$16 sps:$4 sm:$0xff]  }
0x10ef   : > { %10562 = vmatpush1.bf16.msra.mxu1 %v14646_v53  ;;  %v9845_v19 = vadd.f32 %v20012_v6, %v20120_v40  ;;  %v9848_v53 = vadd.f32 %v20012_v6, %v20124_v38 }
0x10f0   : > { %9941 = vadd.xlane.f32.xlu0 %v20179_v60  ;;  %v10028_v30 = vmul.f32 %v20188_v44, %v20188_v44  ;;  %22012 = vst [vmem:[#allocation49_spill] sm:$0xff] %v20204_v10  ;;  %10563 = vmatprep.subr.bf16.mxu1 %v14654_v7  ;;  %v15620_v7 = vld [vmem:[%s16501_s1 + $0xe0] sm:$0xff] }
0x10f1   : > { %10755 = vmatpush1.bf16.msra.mxu0 %v14649_v59 }
0x10f2   : > { %9943 = vadd.xlane.f32.xlu1 %v20185_v63  ;;  %10756 = vmatprep.subr.bf16.mxu0 %v14657_v2  ;;  %v20223_v2 = vadd.f32 %v15620_v7, %v9845_v19  ;;  %v15622_v19 = vld [vmem:[%s16501_s1 + $0xf0] sm:$0xff] }
0x10f3   : > { %10564 = vmatpush1.bf16.msra.mxu1 %v14652_v43  ;;  %v15621_v43 = vld [vmem:[%s16501_s1 + $0xe8] sm:$0xff] }
0x10f4   : > { %10065 = vadd.xlane.f32.xlu0 %v10027_v24  ;;  %10565 = vmatprep.subr.bf16.mxu1 %v14660_v13  ;;  %22013 = vst [vmem:[#allocation123_spill] sm:$0xff] %v20223_v2 }
0x10f5   : > { %10757 = vmatpush1.bf16.msra.mxu0 %v14655_v41  ;;  %v20229_v41 = vadd.f32 %v15621_v43, %v9848_v53  ;;  %v15623_v53 = vld [vmem:[%s16501_s1 + $0xf8] sm:$0xff]  ;;  %s15966_s1 = sshll.u32 %s16080_s18, 4  ;;  %s15967_s1 = int_to_ptr.vmem [resolvable:$false] %s15966_s1 }
0x10f6   : > { %10067 = vadd.xlane.f32.xlu1 %v10028_v30  ;;  %10758 = vmatprep.subr.bf16.mxu0 %v14663_v42  ;;  %v9853_v42 = vadd.f32 %v20118_v49, %v20012_v6  ;;  %s15968_s28 = scalar_lea.vmem %s15967_s1, 8192  ;;  %p15969_p12 = scmp.lt.s32.totalorder %s21341_s19, %s15967_s1 }
0x10f7   : > { %10566 = vmatpush1.bf16.msra.mxu1 %v14658_v21  ;;  %22014 = vst [vmem:[#allocation42_spill] sm:$0xff] %v20229_v41  ;;  %p15970_p0 = scmp.lt.s32.totalorder %s15968_s28, %s15962_s27 }
0x10f8   : > { %9945 = vadd.xlane.f32.xlu0 %v20201_v16 }
0x10f9   : > { %10759 = vmatpush1.bf16.msra.mxu0 %v14661_v36  ;;  %p15971_p5 = por %p15970_p0, %p15969_p12 }
0x10fa   : > { %9947 = vadd.xlane.f32.xlu1 %v20204_v10 }
0x10fb   : > { %p15972_p9 = pnand %p15971_p5, %p15965_p11 }
0x1107   : > { %v9910_v15 = vpop.xlane.xlu0 %9909 }
0x1108   : > { %v9965_v24 = vmul.f32 0.0078125, %v9910_v15 }
0x1109   : > { %v9912_v32 = vpop.xlane.xlu1 %9911 }
0x110a   : > { %v20209_v0 = vsub.f32 %v20057_v1, %v9965_v24  ;;  %v9966_v37 = vmul.f32 0.0078125, %v9912_v32  ;;  %v9856_v24 = vadd.f32 %v20122_v33, %v20012_v6 }
0x110b   : > { %v9914_v5 = vpop.xlane.xlu0 %9913 }
0x110c   : > { %v20214_v30 = vsub.f32 %v20062_v48, %v9966_v37  ;;  %v9967_v20 = vmul.f32 0.0078125, %v9914_v5  ;;  %v10029_v23 = vmul.f32 %v20209_v0, %v20209_v0 }
0x110d   : > { %v9916_v52 = vpop.xlane.xlu1 %9915 }
0x110e   : > { %v9968_v59 = vmul.f32 0.0078125, %v9916_v52  ;;  %10069 = vadd.xlane.f32.xlu0 %v10029_v23  ;;  %v10030_v12 = vmul.f32 %v20214_v30, %v20214_v30  ;;  %v20226_v40 = vsub.f32 %v20066_v11, %v9967_v20  ;;  %v20245_v20 = vadd.f32 %v15622_v19, %v9853_v42 }
0x1110   : > { %10071 = vadd.xlane.f32.xlu1 %v10030_v12  ;;  %v20232_v13 = vsub.f32 %v20070_v55, %v9968_v59  ;;  %v10031_v36 = vmul.f32 %v20226_v40, %v20226_v40  ;;  %22015 = vst [vmem:[#allocation38_spill] sm:$0xff] %v20245_v20  ;;  %v20251_v59 = vadd.f32 %v15623_v53, %v9856_v24 }
0x1112   : > { %9949 = vadd.xlane.f32.xlu0 %v20223_v2  ;;  %v10032_v37 = vmul.f32 %v20232_v13, %v20232_v13  ;;  %22016 = vst [vmem:[#allocation96_spill] sm:$0xff] %v20251_v59 }
0x1113   : > { %v9918_v38 = vpop.xlane.xlu0 %9917 }
0x1114   : > { %v9969_v21 = vmul.f32 0.0078125, %v9918_v38  ;;  %9951 = vadd.xlane.f32.xlu1 %v20229_v41 }
0x1115   : > { %v9920_v15 = vpop.xlane.xlu1 %9919 }
0x1116   : > { %v9970_v32 = vmul.f32 0.0078125, %v9920_v15  ;;  %10073 = vadd.xlane.f32.xlu0 %v10031_v36  ;;  %v20248_v49 = vsub.f32 %v20077_v47, %v9969_v21 }
0x1117   : > { %v9922_v5 = vpop.xlane.xlu0 %9921 }
0x1118   : > { %v9971_v23 = vmul.f32 0.0078125, %v9922_v5  ;;  %10075 = vadd.xlane.f32.xlu1 %v10032_v37  ;;  %v20254_v6 = vsub.f32 %v20082_v14, %v9970_v32  ;;  %v10033_v7 = vmul.f32 %v20248_v49, %v20248_v49 }
0x1119   : > { %v9924_v52 = vpop.xlane.xlu1 %9923 }
0x111a   : > { %v9972_v33 = vmul.f32 0.0078125, %v9924_v52  ;;  %9953 = vadd.xlane.f32.xlu0 %v20245_v20  ;;  %v20258_v12 = vsub.f32 %v20086_v26, %v9971_v23  ;;  %v10034_v38 = vmul.f32 %v20254_v6, %v20254_v6 }
0x111c   : > { %9955 = vadd.xlane.f32.xlu1 %v20251_v59  ;;  %v20264_v43 = vsub.f32 %v20090_v57, %v9972_v33  ;;  %v10035_v36 = vmul.f32 %v20258_v12, %v20258_v12 }
0x111e   : > { %10077 = vadd.xlane.f32.xlu0 %v10033_v7  ;;  %v10036_v37 = vmul.f32 %v20264_v43, %v20264_v43 }
0x111f   : > { %v9926_v42 = vpop.xlane.xlu0 %9925 }
0x1120   : > { %v9973_v21 = vmul.f32 0.0078125, %v9926_v42  ;;  %10079 = vadd.xlane.f32.xlu1 %v10034_v38 }
0x1121   : > { %v9928_v15 = vpop.xlane.xlu1 %9927 }
0x1122   : > { %v20271_v24 = vsub.f32 %v20097_v46, %v9973_v21  ;;  %v9974_v32 = vmul.f32 0.0078125, %v9928_v15  ;;  %10081 = vadd.xlane.f32.xlu0 %v10035_v36 }
0x1123   : > { %v9930_v5 = vpop.xlane.xlu0 %9929 }
0x1124   : > { %v20276_v19 = vsub.f32 %v20102_v28, %v9974_v32  ;;  %v9975_v23 = vmul.f32 0.0078125, %v9930_v5  ;;  %10083 = vadd.xlane.f32.xlu1 %v10036_v37  ;;  %v10037_v52 = vmul.f32 %v20271_v24, %v20271_v24 }
0x1125   : > { %v9932_v53 = vpop.xlane.xlu1 %9931 }
0x1126   : > { %v20281_v33 = vsub.f32 %v20106_v51, %v9975_v23  ;;  %v9976_v7 = vmul.f32 0.0078125, %v9932_v53  ;;  %10085 = vadd.xlane.f32.xlu0 %v10037_v52  ;;  %v10038_v38 = vmul.f32 %v20276_v19, %v20276_v19 }
0x1128   : > { %v20286_v42 = vsub.f32 %v20110_v45, %v9976_v7  ;;  %10087 = vadd.xlane.f32.xlu1 %v10038_v38  ;;  %v10039_v21 = vmul.f32 %v20281_v33, %v20281_v33 }
0x112a   : > { %10089 = vadd.xlane.f32.xlu0 %v10039_v21  ;;  %v10040_v36 = vmul.f32 %v20286_v42, %v20286_v42 }
0x112c   : > { %10091 = vadd.xlane.f32.xlu1 %v10040_v36 }
0x1168   : > { %v10054_v15 = vpop.xlane.xlu0 %10053 }
0x1169   : > { %v10117_v32 = vmul.f32 0.0078125, %v10054_v15 }
0x116a   : > { %v10056_v37 = vpop.xlane.xlu1 %10055 }
0x116b   : > { %v10149_v5 = vadd.f32 1e-05, %v10117_v32  ;;  %v10118_v23 = vmul.f32 0.0078125, %v10056_v37 }
0x116c   : > { %v9934_v52 = vpop.xlane.xlu0 %9933 }
0x116d   : > { %15272 = vrsqrt.f32 %v10149_v5  ;;  %v10150_v53 = vadd.f32 1e-05, %v10118_v23  ;;  %v9977_v51 = vmul.f32 0.0078125, %v9934_v52 }
0x116e   : > { %v9936_v7 = vpop.xlane.xlu1 %9935 }
0x116f   : > { %15274 = vrsqrt.f32 %v10150_v53  ;;  %v20293_v38 = vsub.f32 %v20139_v58, %v9977_v51  ;;  %v9978_v45 = vmul.f32 0.0078125, %v9936_v7 }
0x1170   : > { %v10058_v21 = vpop.xlane.xlu0 %10057 }
0x1171   : > { %v20296_v28 = vsub.f32 %v20145_v62, %v9978_v45  ;;  %v10119_v36 = vmul.f32 0.0078125, %v10058_v21  ;;  %v10041_v15 = vmul.f32 %v20293_v38, %v20293_v38  ;;  %v20302_v45 = vld [vmem:[#allocation13] ss:$0 sm:$0xff] }
0x1172   : > { %v10060_v32 = vpop.xlane.xlu1 %10059 }
0x1173   : > { %v10151_v37 = vadd.f32 1e-05, %v10119_v36  ;;  %v10120_v46 = vmul.f32 0.0078125, %v10060_v32  ;;  %10093 = vadd.xlane.f32.xlu0 %v10041_v15  ;;  %v10042_v5 = vmul.f32 %v20296_v28, %v20296_v28 }
0x1174   : > { %v9938_v23 = vpop.xlane.xlu0 %9937 }
0x1175   : > { %15276 = vrsqrt.f32 %v10151_v37  ;;  %v10152_v51 = vadd.f32 1e-05, %v10120_v46  ;;  %v9979_v52 = vmul.f32 0.0078125, %v9938_v23  ;;  %10095 = vadd.xlane.f32.xlu1 %v10042_v5  ;;  %v20313_v37 = vld [vmem:[#allocation14] ss:$0 sm:$0xff] }
0x1176   : > { %v9940_v53 = vpop.xlane.xlu1 %9939 }
0x1177   : > { %v15273_v7 = vpop.eup %15272  ;;  %15278 = vrsqrt.f32 %v10152_v51  ;;  %v20305_v21 = vsub.f32 %v20159_v29, %v9979_v52  ;;  %v9980_v62 = vmul.f32 0.0078125, %v9940_v53 }
0x1178   : > { %v10213_v36 = vmul.f32 %v15273_v7, %v20127_v31 }
0x1179   : > { %v15275_v15 = vpop.eup %15274  ;;  %v20309_v32 = vsub.f32 %v20162_v54, %v9980_v62  ;;  %v10062_v58 = vpop.xlane.xlu0 %10061  ;;  %v10043_v46 = vmul.f32 %v20305_v21, %v20305_v21 }
0x117a   : > { %v10251_v5 = vmul.f32 %v20302_v45, %v10213_v36  ;;  %v10214_v23 = vmul.f32 %v15275_v15, %v20131_v35  ;;  %v10121_v51 = vmul.f32 0.0078125, %v10062_v58 }
0x117b   : > { %v10064_v52 = vpop.xlane.xlu1 %10063  ;;  %10097 = vadd.xlane.f32.xlu0 %v10043_v46  ;;  %v10044_v31 = vmul.f32 %v20309_v32, %v20309_v32 }
0x117c   : > { %v10252_v53 = vmul.f32 %v20302_v45, %v10214_v23  ;;  %v10153_v62 = vadd.f32 1e-05, %v10121_v51  ;;  %v10122_v7 = vmul.f32 0.0078125, %v10064_v52  ;;  %v10289_v54 = vadd.f32 %v20313_v37, %v10251_v5 }
0x117d   : > { %v9942_v29 = vpop.xlane.xlu0 %9941  ;;  %10099 = vadd.xlane.f32.xlu1 %v10044_v31 }
0x117e   : > { %v10290_v57 = vadd.f32 %v20313_v37, %v10252_v53  ;;  %15280 = vrsqrt.f32 %v10153_v62  ;;  %v10154_v36 = vadd.f32 1e-05, %v10122_v7  ;;  %v9981_v26 = vmul.f32 0.0078125, %v9942_v29 }
0x117f   : > { %v15277_v35 = vpop.eup %15276  ;;  %v9944_v58 = vpop.xlane.xlu1 %9943 }
0x1180   : > { %v10321_v15 = vpack.c.bf16 %v10290_v57, %v10289_v54  ;;  %v10215_v46 = vmul.f32 %v15277_v35, %v20142_v56  ;;  %15282 = vrsqrt.f32 %v10154_v36  ;;  %v20324_v14 = vsub.f32 %v20179_v60, %v9981_v26 }
0x1181   : > { %v15279_v23 = vpop.eup %15278  ;;  %v9982_v51 = vmul.f32 0.0078125, %v9944_v58  ;;  %v10066_v52 = vpop.xlane.xlu0 %10065 }
0x1182   : > { %v10253_v5 = vmul.f32 %v20302_v45, %v10215_v46  ;;  %v10216_v31 = vmul.f32 %v15279_v23, %v20148_v39  ;;  %v10123_v53 = vmul.f32 0.0078125, %v10066_v52  ;;  %10584 = vmatmul.mubr.bf16.vlgmr.msra.gmra.mrb[64].mxu1 %v10321_v15  ;;  %10777 = vmatmul.mubr.bf16.vlgmr.msra.gmra.mrb[64].mxu0 %v10321_v15  ;;  %v10045_v29 = vmul.f32 %v20324_v14, %v20324_v14 }
0x1183   : > { %v20331_v57 = vsub.f32 %v20185_v63, %v9982_v51  ;;  %v10068_v56 = vpop.xlane.xlu1 %10067  ;;  %10593 = vmatprep.mubr.bf16.mxu1 %v21872_v8  ;;  %10786 = vmatprep.mubr.bf16.mxu0 %v21872_v8 }
0x1184   : > { %v10254_v26 = vmul.f32 %v20302_v45, %v10216_v31  ;;  %v10155_v54 = vadd.f32 1e-05, %v10123_v53  ;;  %v10124_v62 = vmul.f32 0.0078125, %v10068_v56  ;;  %10101 = vadd.xlane.f32.xlu0 %v10045_v29  ;;  %v10291_v39 = vadd.f32 %v20313_v37, %v10253_v5 }
0x1185   : > { %v9946_v7 = vpop.xlane.xlu0 %9945  ;;  %v10046_v36 = vmul.f32 %v20331_v57, %v20331_v57 }
0x1186   : > { %v10292_v35 = vadd.f32 %v20313_v37, %v10254_v26  ;;  %15284 = vrsqrt.f32 %v10155_v54  ;;  %v10156_v58 = vadd.f32 1e-05, %v10124_v62  ;;  %v9983_v15 = vmul.f32 0.0078125, %v9946_v7 }
0x1187   : > { %10103 = vadd.xlane.f32.xlu1 %v10046_v36  ;;  %v9948_v46 = vpop.xlane.xlu1 %9947 }
0x1188   : > { %v15281_v23 = vpop.eup %15280  ;;  %v10322_v51 = vpack.c.bf16 %v10292_v35, %v10291_v39  ;;  %15286 = vrsqrt.f32 %v10156_v58  ;;  %v20341_v52 = vsub.f32 %v20201_v16, %v9983_v15  ;;  %v9984_v31 = vmul.f32 0.0078125, %v9948_v46 }
0x1189   : > { %v10217_v5 = vmul.f32 %v15281_v23, %v20166_v18 }
0x118a   : > { %v15283_v53 = vpop.eup %15282  ;;  %v20345_v29 = vsub.f32 %v20204_v10, %v9984_v31  ;;  %10594 = vmatmul.mubr.bf16.gmra.mrb[68].mxu1 %v10322_v51  ;;  %10787 = vmatmul.mubr.bf16.gmra.mrb[68].mxu0 %v10322_v51  ;;  %v10047_v56 = vmul.f32 %v20341_v52, %v20341_v52 }
0x118b   : > { %v10255_v26 = vmul.f32 %v20302_v45, %v10217_v5  ;;  %v10218_v54 = vmul.f32 %v15283_v53, %v20171_v17  ;;  %10603 = vmatprep.mubr.bf16.mxu1 %v21872_v8  ;;  %10796 = vmatprep.mubr.bf16.mxu0 %v21872_v8 }
0x118c   : > { %10105 = vadd.xlane.f32.xlu0 %v10047_v56  ;;  %v10048_v18 = vmul.f32 %v20345_v29, %v20345_v29 }
0x118d   : > { %v10256_v62 = vmul.f32 %v20302_v45, %v10218_v54  ;;  %v10293_v39 = vadd.f32 %v20313_v37, %v10255_v26 }
0x118e   : > { %10107 = vadd.xlane.f32.xlu1 %v10048_v18 }
0x118f   : > { %v10294_v7 = vadd.f32 %v20313_v37, %v10256_v62 }
0x1190   : > { %v15285_v36 = vpop.eup %15284 }
0x1191   : > { %v10323_v35 = vpack.c.bf16 %v10294_v7, %v10293_v39  ;;  %v10219_v58 = vmul.f32 %v15285_v36, %v20182_v22 }
0x1192   : > { %v15287_v17 = vpop.eup %15286 }
0x1193   : > { %v10257_v15 = vmul.f32 %v20302_v45, %v10219_v58  ;;  %v10220_v46 = vmul.f32 %v15287_v17, %v20188_v44  ;;  %10604 = vmatmul.mubr.bf16.gmra.mrb[72].mxu1 %v10323_v35  ;;  %10797 = vmatmul.mubr.bf16.gmra.mrb[72].mxu0 %v10323_v35 }
0x1194   : > { %10613 = vmatprep.mubr.bf16.mxu1 %v21872_v8  ;;  %10806 = vmatprep.mubr.bf16.mxu0 %v21872_v8 }
0x1195   : > { %v10258_v23 = vmul.f32 %v20302_v45, %v10220_v46  ;;  %v10295_v51 = vadd.f32 %v20313_v37, %v10257_v15 }
0x1197   : > { %v10296_v31 = vadd.f32 %v20313_v37, %v10258_v23 }
0x1199   : > { %v10324_v5 = vpack.c.bf16 %v10296_v31, %v10295_v51 }
0x119b   : > { %v10070_v53 = vpop.xlane.xlu0 %10069  ;;  %10614 = vmatmul.mubr.bf16.gmra.mrb[76].mxu1 %v10324_v5  ;;  %10807 = vmatmul.mubr.bf16.gmra.mrb[76].mxu0 %v10324_v5 }
0x119c   : > { %v10125_v22 = vmul.f32 0.0078125, %v10070_v53  ;;  %10623 = vmatprep.mubr.bf16.mxu1 %v21872_v8  ;;  %10816 = vmatprep.mubr.bf16.mxu0 %v21872_v8 }
0x119d   : > { %v10072_v56 = vpop.xlane.xlu1 %10071 }
0x119e   : > { %v10157_v44 = vadd.f32 1e-05, %v10125_v22  ;;  %v10126_v26 = vmul.f32 0.0078125, %v10072_v56 }
0x119f   : > { %v9950_v54 = vpop.xlane.xlu0 %9949 }
0x11a0   : > { %15288 = vrsqrt.f32 %v10157_v44  ;;  %v10158_v18 = vadd.f32 1e-05, %v10126_v26  ;;  %v9985_v62 = vmul.f32 0.0078125, %v9950_v54 }
0x11a1   : > { %v9952_v39 = vpop.xlane.xlu1 %9951 }
0x11a2   : > { %15290 = vrsqrt.f32 %v10158_v18  ;;  %v20369_v7 = vsub.f32 %v20223_v2, %v9985_v62  ;;  %v9986_v36 = vmul.f32 0.0078125, %v9952_v39 }
0x11a3   : > { %v10074_v35 = vpop.xlane.xlu0 %10073 }
0x11a4   : > { %v20372_v58 = vsub.f32 %v20229_v41, %v9986_v36  ;;  %v10127_v17 = vmul.f32 0.0078125, %v10074_v35  ;;  %v10049_v15 = vmul.f32 %v20369_v7, %v20369_v7 }
0x11a5   : > { %v10076_v46 = vpop.xlane.xlu1 %10075 }
0x11a6   : > { %v10159_v23 = vadd.f32 1e-05, %v10127_v17  ;;  %v10128_v51 = vmul.f32 0.0078125, %v10076_v46  ;;  %10109 = vadd.xlane.f32.xlu0 %v10049_v15  ;;  %v10050_v31 = vmul.f32 %v20372_v58, %v20372_v58 }
0x11a7   : > { %v9954_v5 = vpop.xlane.xlu0 %9953 }
0x11a8   : > { %15292 = vrsqrt.f32 %v10159_v23  ;;  %v10160_v53 = vadd.f32 1e-05, %v10128_v51  ;;  %v9987_v22 = vmul.f32 0.0078125, %v9954_v5  ;;  %10111 = vadd.xlane.f32.xlu1 %v10050_v31 }
0x11a9   : > { %v9956_v56 = vpop.xlane.xlu1 %9955 }
0x11aa   : > { %v15289_v44 = vpop.eup %15288  ;;  %15294 = vrsqrt.f32 %v10160_v53  ;;  %v20379_v26 = vsub.f32 %v20245_v20, %v9987_v22  ;;  %v9988_v54 = vmul.f32 0.0078125, %v9956_v56 }
0x11ab   : > { %v10221_v18 = vmul.f32 %v15289_v44, %v20209_v0  ;;  %v10078_v62 = vpop.xlane.xlu0 %10077 }
0x11ac   : > { %v15291_v39 = vpop.eup %15290  ;;  %v20383_v36 = vsub.f32 %v20251_v59, %v9988_v54  ;;  %v10129_v35 = vmul.f32 0.0078125, %v10078_v62  ;;  %v10051_v17 = vmul.f32 %v20379_v26, %v20379_v26 }
0x11ad   : > { %v10259_v15 = vmul.f32 %v20302_v45, %v10221_v18  ;;  %v10222_v46 = vmul.f32 %v15291_v39, %v20214_v30  ;;  %v10080_v23 = vpop.xlane.xlu1 %10079 }
0x11ae   : > { %v10161_v51 = vadd.f32 1e-05, %v10129_v35  ;;  %v10130_v31 = vmul.f32 0.0078125, %v10080_v23  ;;  %10113 = vadd.xlane.f32.xlu0 %v10051_v17  ;;  %v10052_v0 = vmul.f32 %v20383_v36, %v20383_v36 }
0x11af   : > { %v10260_v5 = vmul.f32 %v20302_v45, %v10222_v46  ;;  %v10082_v53 = vpop.xlane.xlu0 %10081  ;;  %v10297_v44 = vadd.f32 %v20313_v37, %v10259_v15 }
0x11b0   : > { %15296 = vrsqrt.f32 %v10161_v51  ;;  %v10162_v22 = vadd.f32 1e-05, %v10130_v31  ;;  %v10131_v56 = vmul.f32 0.0078125, %v10082_v53  ;;  %10115 = vadd.xlane.f32.xlu1 %v10052_v0 }
0x11b1   : > { %v10298_v54 = vadd.f32 %v20313_v37, %v10260_v5  ;;  %v10084_v18 = vpop.xlane.xlu1 %10083 }
0x11b2   : > { %v15293_v30 = vpop.eup %15292  ;;  %15298 = vrsqrt.f32 %v10162_v22  ;;  %v10163_v62 = vadd.f32 1e-05, %v10131_v56  ;;  %v10132_v39 = vmul.f32 0.0078125, %v10084_v18 }
0x11b3   : > { %v10325_v35 = vpack.c.bf16 %v10298_v54, %v10297_v44  ;;  %v10223_v17 = vmul.f32 %v15293_v30, %v20226_v40  ;;  %v10086_v23 = vpop.xlane.xlu0 %10085 }
0x11b4   : > { %v15295_v59 = vpop.eup %15294  ;;  %15300 = vrsqrt.f32 %v10163_v62  ;;  %v10164_v46 = vadd.f32 1e-05, %v10132_v39  ;;  %v10133_v51 = vmul.f32 0.0078125, %v10086_v23 }
0x11b5   : > { %v10261_v31 = vmul.f32 %v20302_v45, %v10223_v17  ;;  %v10224_v0 = vmul.f32 %v15295_v59, %v20232_v13  ;;  %10624 = vmatmul.mubr.bf16.gmra.mrb[80].mxu1 %v10325_v35  ;;  %10817 = vmatmul.mubr.bf16.gmra.mrb[80].mxu0 %v10325_v35  ;;  %v10088_v15 = vpop.xlane.xlu1 %10087 }
0x11b6   : > { %15302 = vrsqrt.f32 %v10164_v46  ;;  %v10134_v5 = vmul.f32 0.0078125, %v10088_v15  ;;  %10633 = vmatprep.mubr.bf16.mxu1 %v21872_v8  ;;  %10826 = vmatprep.mubr.bf16.mxu0 %v21872_v8  ;;  %v10165_v53 = vadd.f32 1e-05, %v10133_v51 }
0x11b7   : > { %v10262_v40 = vmul.f32 %v20302_v45, %v10224_v0  ;;  %v10299_v56 = vadd.f32 %v20313_v37, %v10261_v31  ;;  %v10090_v54 = vpop.xlane.xlu0 %10089 }
0x11b8   : > { %v10166_v22 = vadd.f32 1e-05, %v10134_v5  ;;  %v10135_v35 = vmul.f32 0.0078125, %v10090_v54 }
0x11b9   : > { %v10300_v44 = vadd.f32 %v20313_v37, %v10262_v40  ;;  %v10092_v18 = vpop.xlane.xlu1 %10091 }
0x11ba   : > { %v15297_v13 = vpop.eup %15296  ;;  %15304 = vrsqrt.f32 %v10166_v22  ;;  %v10136_v59 = vmul.f32 0.0078125, %v10092_v18  ;;  %v10167_v15 = vadd.f32 1e-05, %v10135_v35 }
0x11bb   : > { %v10326_v30 = vpack.c.bf16 %v10300_v44, %v10299_v56  ;;  %v10225_v62 = vmul.f32 %v15297_v13, %v20248_v49  ;;  %15306 = vrsqrt.f32 %v10165_v53 }
0x11bc   : > { %v15299_v39 = vpop.eup %15298  ;;  %v10168_v51 = vadd.f32 1e-05, %v10136_v59 }
0x11bd   : > { %v10263_v17 = vmul.f32 %v20302_v45, %v10225_v62  ;;  %v10226_v23 = vmul.f32 %v15299_v39, %v20254_v6  ;;  %10634 = vmatmul.mubr.bf16.gmra.mrb[84].mxu1 %v10326_v30  ;;  %10827 = vmatmul.mubr.bf16.gmra.mrb[84].mxu0 %v10326_v30 }
0x11be   : > { %v15301_v46 = vpop.eup %15300  ;;  %10643 = vmatprep.mubr.bf16.mxu1 %v21872_v8  ;;  %10836 = vmatprep.mubr.bf16.mxu0 %v21872_v8  ;;  %15308 = vrsqrt.f32 %v10168_v51 }
0x11bf   : > { %v10264_v31 = vmul.f32 %v20302_v45, %v10226_v23  ;;  %v10301_v49 = vadd.f32 %v20313_v37, %v10263_v17  ;;  %v10227_v40 = vmul.f32 %v15301_v46, %v20258_v12  ;;  %15310 = vrsqrt.f32 %v10167_v15  ;;  %v14664_v23 = vld [vmem:[#allocation19 + $0x40] sm:$0xff]  }
0x11c0   : > { %v15303_v0 = vpop.eup %15302  ;;  %v14666_v46 = vld [vmem:[#allocation19 + $0xc0] sm:$0xff]   ;;  %13059 = vmatprep.subr.bf16.mxu1 %v14664_v23  ;;  %v14685_v23 = vld [vmem:[#allocation19 + $0xe8] sm:$0xff]  }
0x11c1   : > { %v10302_v5 = vadd.f32 %v20313_v37, %v10264_v31  ;;  %v10228_v6 = vmul.f32 %v15303_v0, %v20264_v43  ;;  %v10265_v44 = vmul.f32 %v20302_v45, %v10227_v40  ;;  %v14665_v31 = vld [vmem:[#allocation19] sm:$0xff]   ;;  %13171 = vmatprep.subr.bf16.mxu0 %v14666_v46  ;;  %v14669_v40 = vld [vmem:[#allocation19 + $0xc8] sm:$0xff]  }
0x11c2   : > { %v14667_v0 = vld [vmem:[#allocation19 + $0x80] sm:$0xff]   ;;  %13060 = vmatpush3.bf16.msra.mxu1 %v14665_v31  ;;  %v14686_v46 = vld [vmem:[#allocation19 + $0x28] sm:$0xff]   ;;  %v14689_v31 = vld [vmem:[#allocation19 + $0xf0] sm:$0xff]  }
0x11c3   : > { %v10327_v53 = vpack.c.bf16 %v10302_v5, %v10301_v49  ;;  %v10266_v22 = vmul.f32 %v20302_v45, %v10228_v6  ;;  %v10303_v43 = vadd.f32 %v20313_v37, %v10265_v44  ;;  %13172 = vmatpush3.bf16.msra.mxu0 %v14667_v0  ;;  %v14668_v5 = vld [vmem:[#allocation19 + $0x48] sm:$0xff]   ;;  %v14673_v44 = vld [vmem:[#allocation19 + $0xd0] sm:$0xff]  }
0x11c4   : > { %v15305_v56 = vpop.eup %15304  ;;  %v14670_v6 = vld [vmem:[#allocation19 + $0x8] sm:$0xff]   ;;  %13061 = vmatprep.subr.bf16.mxu1 %v14668_v5  ;;  %13173 = vmatprep.subr.bf16.mxu0 %v14669_v40  ;;  %v14690_v0 = vld [vmem:[#allocation19 + $0x30] sm:$0xff]   ;;  %v14693_v5 = vld [vmem:[#allocation19 + $0xf8] sm:$0xff]  }
0x11c5   : > { %10644 = vmatmul.mubr.bf16.gmra.mrb[88].mxu1 %v10327_v53  ;;  %10837 = vmatmul.mubr.bf16.gmra.mrb[88].mxu0 %v10327_v53  ;;  %v15307_v54 = vpop.eup %15306  ;;  %v10304_v18 = vadd.f32 %v20313_v37, %v10266_v22  ;;  %v10230_v12 = vmul.f32 %v15305_v56, %v20276_v19  ;;  %v14671_v53 = vld [vmem:[#allocation19 + $0x88] sm:$0xff]   ;;  %v14672_v56 = vld [vmem:[#allocation19 + $0x50] sm:$0xff]   ;;  %v14694_v40 = vld [vmem:[#allocation19 + $0x38] sm:$0xff]  }
0x11c6   : > { %10653 = vmatprep.mubr.bf16.mxu1 %v21872_v8  ;;  %10846 = vmatprep.mubr.bf16.mxu0 %v21872_v8  ;;  %v10229_v13 = vmul.f32 %v15307_v54, %v20271_v24 }
0x11c7   : > { %v10328_v59 = vpack.c.bf16 %v10304_v18, %v10303_v43  ;;  %v10268_v30 = vmul.f32 %v20302_v45, %v10230_v12  ;;  %13062 = vmatpush3.bf16.msra.mxu1 %v14670_v6  ;;  %13174 = vmatpush3.bf16.msra.mxu0 %v14671_v53  ;;  %v14674_v18 = vld [vmem:[#allocation19 + $0x10] sm:$0xff]   ;;  %v14676_v43 = vld [vmem:[#allocation19 + $0x58] sm:$0xff]  }
0x11c8   : > { %v15309_v62 = vpop.eup %15308  ;;  %v10267_v39 = vmul.f32 %v20302_v45, %v10229_v13  ;;  %13063 = vmatprep.subr.bf16.mxu1 %v14672_v56  ;;  %13175 = vmatprep.subr.bf16.mxu0 %v14673_v44  ;;  %v14675_v12 = vld [vmem:[#allocation19 + $0x90] sm:$0xff]   ;;  %v14677_v13 = vld [vmem:[#allocation19 + $0xd8] sm:$0xff]  }
0x11c9   : > { %v15311_v35 = vpop.eup %15310  ;;  %v10306_v17 = vadd.f32 %v20313_v37, %v10268_v30  ;;  %v10232_v19 = vmul.f32 %v15309_v62, %v20286_v42  ;;  %v14679_v30 = vld [vmem:[#allocation19 + $0x98] sm:$0xff]   ;;  %v14680_v62 = vld [vmem:[#allocation19 + $0x60] sm:$0xff]  }
0x11ca   : > { %v10305_v24 = vadd.f32 %v20313_v37, %v10267_v39  ;;  %v10231_v51 = vmul.f32 %v15311_v35, %v20281_v33  ;;  %v14681_v39 = vld [vmem:[#allocation19 + $0xe0] sm:$0xff]   ;;  %v14695_v6 = vld [vmem:[#allocation19 + $0xb8] sm:$0xff]  }
0x11cb   : > { %v10270_v49 = vmul.f32 %v20302_v45, %v10232_v19  ;;  %13064 = vmatpush3.bf16.msra.mxu1 %v14674_v18  ;;  %13176 = vmatpush3.bf16.msra.mxu0 %v14675_v12  ;;  %v14682_v35 = vld [vmem:[#allocation19 + $0x20] sm:$0xff]   ;;  %v14684_v19 = vld [vmem:[#allocation19 + $0x68] sm:$0xff]  }
0x11cc   : > { %v10329_v15 = vpack.c.bf16 %v10306_v17, %v10305_v24  ;;  %v10269_v42 = vmul.f32 %v20302_v45, %v10231_v51  ;;  %13065 = vmatprep.subr.bf16.mxu1 %v14676_v43  ;;  %13177 = vmatprep.subr.bf16.mxu0 %v14677_v13  ;;  %v14683_v17 = vld [vmem:[#allocation19 + $0xa0] sm:$0xff]   ;;  %v14687_v24 = vld [vmem:[#allocation19 + $0xa8] sm:$0xff]   ;;  %v14688_v51 = vld [vmem:[#allocation19 + $0x70] sm:$0xff]  }
0x11cd   : > { %10654 = vmatmul.mubr.bf16.gmra.mrb[92].mxu1 %v10328_v59  ;;  %10847 = vmatmul.mubr.bf16.gmra.mrb[92].mxu0 %v10328_v59  ;;  %v10308_v33 = vadd.f32 %v20313_v37, %v10270_v49  ;;  %v14678_v59 = vld [vmem:[#allocation19 + $0x18] sm:$0xff]  }
0x11ce   : > { %10663 = vmatprep.mubr.bf16.mxu1 %v21872_v8  ;;  %10856 = vmatprep.mubr.bf16.mxu0 %v21872_v8  ;;  %v10307_v22 = vadd.f32 %v20313_v37, %v10269_v42  ;;  %v14692_v49 = vld [vmem:[#allocation19 + $0x78] sm:$0xff]  }
0x11cf   : > { %13066 = vmatpush3.bf16.msra.mxu1 %v14678_v59  ;;  %13178 = vmatpush3.bf16.msra.mxu0 %v14679_v30 }
0x11d0   : > { %v10330_v54 = vpack.c.bf16 %v10308_v33, %v10307_v22  ;;  %13067 = vmatprep.subr.bf16.mxu1 %v14680_v62  ;;  %13179 = vmatprep.subr.bf16.mxu0 %v14681_v39 }
0x11d3   : > { %13068 = vmatpush3.bf16.msra.mxu1 %v14682_v35  ;;  %13180 = vmatpush3.bf16.msra.mxu0 %v14683_v17 }
0x11d4   : > { %13069 = vmatprep.subr.bf16.mxu1 %v14684_v19  ;;  %13181 = vmatprep.subr.bf16.mxu0 %v14685_v23 }
0x11d5   : > { %10664 = vmatmul.mubr.bf16.gmra.mrb[96].mxu1 %v10329_v15  ;;  %10857 = vmatmul.mubr.bf16.gmra.mrb[96].mxu0 %v10329_v15  ;;  %v14691_v15 = vld [vmem:[#allocation19 + $0xb0] sm:$0xff]  }
0x11d6   : > { %10673 = vmatprep.mubr.bf16.mxu1 %v21872_v8  ;;  %10866 = vmatprep.mubr.bf16.mxu0 %v21872_v8 }
0x11d7   : > { %13070 = vmatpush3.bf16.msra.mxu1 %v14686_v46  ;;  %13182 = vmatpush3.bf16.msra.mxu0 %v14687_v24 }
0x11d8   : > { %13071 = vmatprep.subr.bf16.mxu1 %v14688_v51  ;;  %13183 = vmatprep.subr.bf16.mxu0 %v14689_v31 }
0x11db   : > { %13072 = vmatpush3.bf16.msra.mxu1 %v14690_v0  ;;  %13184 = vmatpush3.bf16.msra.mxu0 %v14691_v15 }
0x11dc   : > { %13073 = vmatprep.subr.bf16.mxu1 %v14692_v49  ;;  %13185 = vmatprep.subr.bf16.mxu0 %v14693_v5 }
0x11dd   : > { %10674 = vmatmul.mubr.bf16.gmra.mrb[100].mxu1 %v10330_v54  ;;  %10867 = vmatmul.mubr.bf16.gmra.mrb[100].mxu0 %v10330_v54 }
0x11de   : > { %10683 = vmatprep.mubr.bf16.mxu1 %v21872_v8  ;;  %10876 = vmatprep.mubr.bf16.mxu0 %v21872_v8 }
0x11df   : > { %13074 = vmatpush3.bf16.msra.mxu1 %v14694_v40  ;;  %13186 = vmatpush3.bf16.msra.mxu0 %v14695_v6 }
0x1200   : > { %v10094_v53 = vpop.xlane.xlu0 %10093 }
0x1201   : > { %v10137_v42 = vmul.f32 0.0078125, %v10094_v53 }
0x1202   : > { %v10096_v33 = vpop.xlane.xlu1 %10095 }
0x1203   : > { %v10169_v22 = vadd.f32 1e-05, %v10137_v42  ;;  %v10138_v56 = vmul.f32 0.0078125, %v10096_v33 }
0x1205   : > { %15312 = vrsqrt.f32 %v10169_v22  ;;  %v10170_v44 = vadd.f32 1e-05, %v10138_v56 }
0x1207   : > { %15314 = vrsqrt.f32 %v10170_v44 }
0x1208   : > { %v10098_v54 = vpop.xlane.xlu0 %10097 }
0x1209   : > { %v10139_v18 = vmul.f32 0.0078125, %v10098_v54 }
0x120a   : > { %v10100_v12 = vpop.xlane.xlu1 %10099 }
0x120b   : > { %v10171_v43 = vadd.f32 1e-05, %v10139_v18  ;;  %v10140_v13 = vmul.f32 0.0078125, %v10100_v12 }
0x120d   : > { %15316 = vrsqrt.f32 %v10171_v43  ;;  %v10172_v59 = vadd.f32 1e-05, %v10140_v13 }
0x120f   : > { %v15313_v30 = vpop.eup %15312  ;;  %15318 = vrsqrt.f32 %v10172_v59 }
0x1210   : > { %v10233_v62 = vmul.f32 %v15313_v30, %v20293_v38 }
0x1211   : > { %v15315_v39 = vpop.eup %15314  ;;  %v10102_v35 = vpop.xlane.xlu0 %10101 }
0x1212   : > { %v10271_v17 = vmul.f32 %v20302_v45, %v10233_v62  ;;  %v10234_v19 = vmul.f32 %v15315_v39, %v20296_v28  ;;  %v10141_v23 = vmul.f32 0.0078125, %v10102_v35 }
0x1214   : > { %v10272_v46 = vmul.f32 %v20302_v45, %v10234_v19  ;;  %v10173_v24 = vadd.f32 1e-05, %v10141_v23  ;;  %v10104_v51 = vpop.xlane.xlu1 %10103  ;;  %v10309_v0 = vadd.f32 %v20313_v37, %v10271_v17 }
0x1215   : > { %v10142_v31 = vmul.f32 0.0078125, %v10104_v51 }
0x1216   : > { %v10310_v15 = vadd.f32 %v20313_v37, %v10272_v46  ;;  %15320 = vrsqrt.f32 %v10173_v24 }
0x1217   : > { %v15317_v49 = vpop.eup %15316  ;;  %v10174_v5 = vadd.f32 1e-05, %v10142_v31 }
0x1218   : > { %v10331_v38 = vpack.c.bf16 %v10310_v15, %v10309_v0  ;;  %v10235_v40 = vmul.f32 %v15317_v49, %v20305_v21 }
0x1219   : > { %v15319_v6 = vpop.eup %15318  ;;  %15322 = vrsqrt.f32 %v10174_v5  ;;  %v10106_v53 = vpop.xlane.xlu0 %10105 }
0x121a   : > { %v10273_v28 = vmul.f32 %v20302_v45, %v10235_v40  ;;  %v10236_v42 = vmul.f32 %v15319_v6, %v20309_v32  ;;  %v10143_v33 = vmul.f32 0.0078125, %v10106_v53  ;;  %10684 = vmatmul.mubr.bf16.gmra.mrb[104].mxu1 %v10331_v38  ;;  %10877 = vmatmul.mubr.bf16.gmra.mrb[104].mxu0 %v10331_v38 }
0x121b   : > { %v10108_v22 = vpop.xlane.xlu1 %10107  ;;  %10693 = vmatprep.mubr.bf16.mxu1 %v21872_v8  ;;  %10886 = vmatprep.mubr.bf16.mxu0 %v21872_v8 }
0x121c   : > { %v10274_v56 = vmul.f32 %v20302_v45, %v10236_v42  ;;  %v10175_v44 = vadd.f32 1e-05, %v10143_v33  ;;  %v10144_v54 = vmul.f32 0.0078125, %v10108_v22  ;;  %v10311_v21 = vadd.f32 %v20313_v37, %v10273_v28 }
0x121e   : > { %v10312_v18 = vadd.f32 %v20313_v37, %v10274_v56  ;;  %15324 = vrsqrt.f32 %v10175_v44  ;;  %v10176_v12 = vadd.f32 1e-05, %v10144_v54 }
0x1220   : > { %v15321_v43 = vpop.eup %15320  ;;  %v10332_v32 = vpack.c.bf16 %v10312_v18, %v10311_v21  ;;  %15326 = vrsqrt.f32 %v10176_v12 }
0x1221   : > { %v10237_v13 = vmul.f32 %v15321_v43, %v20324_v14  ;;  %v10371_v43 = vlaneseq }
0x1222   : > { %10694 = vmatmul.mubr.bf16.gmra.mrb[108].mxu1 %v10332_v32  ;;  %10887 = vmatmul.mubr.bf16.gmra.mrb[108].mxu0 %v10332_v32 }
0x1223   : > { %v15323_v59 = vpop.eup %15322  ;;  %10703 = vmatprep.mubr.bf16.mxu1 %v21872_v8  ;;  %10896 = vmatprep.mubr.bf16.mxu0 %v21872_v8  ;;  %v10275_v30 = vmul.f32 %v20302_v45, %v10237_v13 }
0x1224   : > { %v10238_v62 = vmul.f32 %v15323_v59, %v20331_v57 }
0x1225   : > { %v10313_v17 = vadd.f32 %v20313_v37, %v10275_v30 }
0x1226   : > { %v10276_v39 = vmul.f32 %v20302_v45, %v10238_v62 }
0x1228   : > { %v15325_v35 = vpop.eup %15324  ;;  %v10314_v19 = vadd.f32 %v20313_v37, %v10276_v39  ;;  %v10372_v39 = vshrl.u32 %v10371_v43, 7 }
0x1229   : > { %v10239_v14 = vmul.f32 %v15325_v35, %v20341_v52 }
0x122a   : > { %v15327_v23 = vpop.eup %15326  ;;  %v10333_v46 = vpack.c.bf16 %v10314_v19, %v10313_v17  ;;  %v10373_v19 = vsub.s32 0, %v10372_v39 }
0x122b   : > { %v10277_v24 = vmul.f32 %v20302_v45, %v10239_v14  ;;  %v10240_v51 = vmul.f32 %v15327_v23, %v20345_v29  ;;  %v10381_v14 = vsub.s32 2, %v10372_v39  ;;  %v10369_v23 = vld [vmem:[#allocation17] sm:$0xf] }
0x122c   : > { %10704 = vmatmul.mubr.bf16.gmra.mrb[112].mxu1 %v10333_v46  ;;  %10897 = vmatmul.mubr.bf16.gmra.mrb[112].mxu0 %v10333_v46  ;;  %v10377_v46 = vsub.s32 1, %v10372_v39 }
0x122d   : > { %v10278_v31 = vmul.f32 %v20302_v45, %v10240_v51  ;;  %10713 = vmatprep.mubr.bf16.mxu1 %v21872_v8  ;;  %10906 = vmatprep.mubr.bf16.mxu0 %v21872_v8  ;;  %v10315_v57 = vadd.f32 %v20313_v37, %v10277_v24  ;;  %v10385_v24 = vsub.s32 3, %v10372_v39 }
0x122f   : > { %v10316_v0 = vadd.f32 %v20313_v37, %v10278_v31 }
0x1231   : > { %v10334_v15 = vpack.c.bf16 %v10316_v0, %v10315_v57  ;;  %v20482_v57 = vrot.slane %v10369_v23, %v10373_v19  ;;  %v20486_v0 = vrot.slane %v10369_v23, %v10377_v46 }
0x1233   : > { %v10110_v52 = vpop.xlane.xlu0 %10109 }
0x1234   : > { %v10145_v49 = vmul.f32 0.0078125, %v10110_v52  ;;  %10714 = vmatmul.mubr.bf16.gmra.mrb[116].mxu1 %v10334_v15  ;;  %10907 = vmatmul.mubr.bf16.gmra.mrb[116].mxu0 %v10334_v15  ;;  %v20488_v15 = vrot.slane %v10369_v23, %v10385_v24 }
0x1235   : > { %v10112_v5 = vpop.xlane.xlu1 %10111  ;;  %10723 = vmatprep.mubr.bf16.mxu1 %v21872_v8  ;;  %10916 = vmatprep.mubr.bf16.mxu0 %v21872_v8 }
0x1236   : > { %v10177_v38 = vadd.f32 1e-05, %v10145_v49  ;;  %v10146_v29 = vmul.f32 0.0078125, %v10112_v5 }
0x1238   : > { %15328 = vrsqrt.f32 %v10177_v38  ;;  %v10178_v40 = vadd.f32 1e-05, %v10146_v29 }
0x123a   : > { %15330 = vrsqrt.f32 %v10178_v40 }
0x123b   : > { %v10114_v6 = vpop.xlane.xlu0 %10113 }
0x123c   : > { %v10147_v53 = vmul.f32 0.0078125, %v10114_v6 }
0x123d   : > { %v10116_v28 = vpop.xlane.xlu1 %10115 }
0x123e   : > { %v10179_v42 = vadd.f32 1e-05, %v10147_v53  ;;  %v10148_v33 = vmul.f32 0.0078125, %v10116_v28 }
0x1240   : > { %15332 = vrsqrt.f32 %v10179_v42  ;;  %v10180_v22 = vadd.f32 1e-05, %v10148_v33 }
0x1242   : > { %v15329_v56 = vpop.eup %15328  ;;  %15334 = vrsqrt.f32 %v10180_v22 }
0x1243   : > { %v10241_v44 = vmul.f32 %v15329_v56, %v20369_v7 }
0x1244   : > { %v15331_v54 = vpop.eup %15330 }
0x1245   : > { %v10279_v21 = vmul.f32 %v20302_v45, %v10241_v44  ;;  %v10242_v18 = vmul.f32 %v15331_v54, %v20372_v58 }
0x1247   : > { %v10280_v12 = vmul.f32 %v20302_v45, %v10242_v18  ;;  %v10317_v32 = vadd.f32 %v20313_v37, %v10279_v21 }
0x1249   : > { %v10318_v13 = vadd.f32 %v20313_v37, %v10280_v12 }
0x124a   : > { %v15333_v59 = vpop.eup %15332 }
0x124b   : > { %v10335_v30 = vpack.c.bf16 %v10318_v13, %v10317_v32  ;;  %v10243_v62 = vmul.f32 %v15333_v59, %v20379_v26 }
0x124c   : > { %v15335_v35 = vpop.eup %15334 }
0x124d   : > { %v10281_v7 = vmul.f32 %v20302_v45, %v10243_v62  ;;  %v10244_v17 = vmul.f32 %v15335_v35, %v20383_v36  ;;  %10724 = vmatmul.mubr.bf16.gmra.mrb[120].mxu1 %v10335_v30  ;;  %10917 = vmatmul.mubr.bf16.gmra.mrb[120].mxu0 %v10335_v30  ;;  %v20484_v36 = vrot.slane %v10369_v23, %v10381_v14 }
0x124e   : > { %10733 = vmatprep.mubr.bf16.mxu1 %v21872_v8  ;;  %10926 = vmatprep.mubr.bf16.mxu0 %v21872_v8 }
0x124f   : > { %v10282_v58 = vmul.f32 %v20302_v45, %v10244_v17  ;;  %v10319_v26 = vadd.f32 %v20313_v37, %v10281_v7 }
0x1251   : > { %v10320_v51 = vadd.f32 %v20313_v37, %v10282_v58 }
0x1253   : > { %v10336_v31 = vpack.c.bf16 %v10320_v51, %v10319_v26 }
0x1255   : > { %10734 = vmatmul.mubr.bf16.gmra.mrb[124].mxu1 %v10336_v31  ;;  %10927 = vmatmul.mubr.bf16.gmra.mrb[124].mxu0 %v10336_v31  ;;  %v10585_v8 = vpop.f32.mrb[64].mxu1  ;;  %v10778_v45 = vpop.f32.mrb[64].mxu0 }
0x1256   : > { %v10586_v52 = vadd.f32 %v10585_v8, %v20482_v57  ;;  %v10779_v49 = vadd.f32 %v10778_v45, %v20484_v36  ;;  %v10587_v5 = vpop.f32.mrb[65].mxu1  ;;  %v10780_v38 = vpop.f32.mrb[65].mxu0 }
0x1257   : > { %v10588_v37 = vadd.f32 %v10587_v5, %v20486_v0  ;;  %v10781_v29 = vadd.f32 %v10780_v38, %v20488_v15  ;;  %v10589_v40 = vpop.f32.mrb[66].mxu1  ;;  %v10782_v6 = vpop.f32.mrb[66].mxu0 }
0x1258   : > { %v11065_v53 = vmul.f32 0.70710677, %v10586_v52  ;;  %v11067_v28 = vmul.f32 0.70710677, %v10779_v49  ;;  %v10590_v22 = vadd.f32 %v10589_v40, %v20482_v57  ;;  %v10783_v56 = vadd.f32 %v10782_v6, %v20484_v36  ;;  %v10591_v44 = vpop.f32.mrb[67].mxu1  ;;  %v10784_v54 = vpop.f32.mrb[67].mxu0 }
0x1259   : > { %v11066_v42 = vmul.f32 0.70710677, %v10588_v37  ;;  %v11068_v33 = vmul.f32 0.70710677, %v10781_v29  ;;  %v10592_v21 = vadd.f32 %v10591_v44, %v20486_v0  ;;  %v10785_v12 = vadd.f32 %v10784_v54, %v20488_v15 }
0x125a   : > { %15336 = verf.f32 %v11065_v53  ;;  %v11069_v18 = vmul.f32 0.70710677, %v10590_v22  ;;  %v11071_v43 = vmul.f32 0.70710677, %v10783_v56  ;;  %v10937_v24 = vmul.f32 0.5, %v10586_v52 }
0x125b   : > { %15338 = verf.f32 %v11067_v28  ;;  %v11070_v32 = vmul.f32 0.70710677, %v10592_v21  ;;  %v11072_v58 = vmul.f32 0.70710677, %v10785_v12  ;;  %v10939_v31 = vmul.f32 0.5, %v10779_v49 }
0x125c   : > { %15340 = verf.f32 %v11066_v42  ;;  %v20502_v5 = vmul.f32 0.5, %v10588_v37  ;;  %v20506_v53 = vmul.f32 0.5, %v10781_v29  ;;  %v10941_v28 = vmul.f32 0.5, %v10590_v22 }
0x125d   : > { %15342 = verf.f32 %v11068_v33  ;;  %v10595_v13 = vpop.f32.mrb[68].mxu1  ;;  %v10788_v30 = vpop.f32.mrb[68].mxu0  ;;  %v10943_v42 = vmul.f32 0.5, %v10783_v56  ;;  %v20508_v33 = vmul.f32 0.5, %v10592_v21 }
0x125e   : > { %15344 = verf.f32 %v11069_v18  ;;  %v10596_v59 = vadd.f32 %v10595_v13, %v20482_v57  ;;  %v10597_v62 = vpop.f32.mrb[69].mxu1  ;;  %v10789_v39 = vadd.f32 %v10788_v30, %v20484_v36  ;;  %v10790_v7 = vpop.f32.mrb[69].mxu0  ;;  %v20512_v30 = vmul.f32 0.5, %v10785_v12 }
0x125f   : > { %15346 = verf.f32 %v11071_v43  ;;  %v10598_v35 = vadd.f32 %v10597_v62, %v20486_v0  ;;  %v10599_v17 = vpop.f32.mrb[70].mxu1  ;;  %v10791_v14 = vadd.f32 %v10790_v7, %v20488_v15  ;;  %v10792_v23 = vpop.f32.mrb[70].mxu0 }
0x1260   : > { %v11073_v19 = vmul.f32 0.70710677, %v10596_v59  ;;  %v10601_v46 = vpop.f32.mrb[71].mxu1  ;;  %15348 = verf.f32 %v11070_v32  ;;  %v11075_v26 = vmul.f32 0.70710677, %v10789_v39  ;;  %v10794_v51 = vpop.f32.mrb[71].mxu0  ;;  %v10600_v38 = vadd.f32 %v10599_v17, %v20482_v57 }
0x1261   : > { %v11074_v8 = vmul.f32 0.70710677, %v10598_v35  ;;  %v11076_v45 = vmul.f32 0.70710677, %v10791_v14  ;;  %v10793_v40 = vadd.f32 %v10792_v23, %v20484_v36  ;;  %v10602_v44 = vadd.f32 %v10601_v46, %v20486_v0 }
0x1262   : > { %15350 = verf.f32 %v11073_v19  ;;  %v11077_v49 = vmul.f32 0.70710677, %v10600_v38  ;;  %v10795_v43 = vadd.f32 %v10794_v51, %v20488_v15  ;;  %v20514_v22 = vmul.f32 0.5, %v10596_v59 }
0x1263   : > { %15352 = verf.f32 %v11075_v26  ;;  %v11079_v18 = vmul.f32 0.70710677, %v10793_v40  ;;  %v20516_v7 = vmul.f32 0.5, %v10789_v39  ;;  %v20518_v17 = vmul.f32 0.5, %v10598_v35 }
0x1264   : > { %v15337_v6 = vpop.eup %15336  ;;  %15354 = verf.f32 %v11072_v58  ;;  %v20520_v58 = vmul.f32 0.5, %v10791_v14  ;;  %v10949_v51 = vmul.f32 0.5, %v10600_v38  ;;  %v11078_v12 = vmul.f32 0.70710677, %v10602_v44 }
0x1265   : > { %v15339_v52 = vpop.eup %15338  ;;  %15356 = verf.f32 %v11074_v8  ;;  %v11321_v54 = vadd.f32 1.0, %v15337_v6  ;;  %v10951_v10 = vmul.f32 0.5, %v10793_v40  ;;  %v20547_v16 = vmul.f32 0.5, %v10795_v43 }
0x1266   : > { %v15341_v37 = vpop.eup %15340  ;;  %15358 = verf.f32 %v11076_v45  ;;  %v10605_v32 = vpop.f32.mrb[72].mxu1  ;;  %v11323_v29 = vadd.f32 1.0, %v15339_v52  ;;  %v11080_v52 = vmul.f32 0.70710677, %v10795_v43 }
0x1267   : > { %v15343_v13 = vpop.eup %15342  ;;  %15360 = verf.f32 %v11077_v49  ;;  %v10798_v56 = vpop.f32.mrb[72].mxu0  ;;  %v20524_v45 = vmul.f32 %v11321_v54, %v10937_v24  ;;  %v20527_v39 = vadd.f32 %v10605_v32, %v20482_v57 }
0x1268   : > { %v10607_v21 = vpop.f32.mrb[73].mxu1  ;;  %v15345_v62 = vpop.eup %15344  ;;  %15362 = verf.f32 %v11079_v18  ;;  %v20529_v49 = vmul.f32 %v11323_v29, %v10939_v31  ;;  %v11322_v18 = vadd.f32 1.0, %v15341_v37  ;;  %v10799_v38 = vadd.f32 %v10798_v56, %v20484_v36 }
0x1269   : > { %v10800_v19 = vpop.f32.mrb[73].mxu0  ;;  %v10609_v23 = vpop.f32.mrb[74].mxu1  ;;  %v11325_v26 = vadd.f32 1.0, %v15345_v62  ;;  %v11324_v41 = vadd.f32 1.0, %v15343_v13  ;;  %v11081_v24 = vmul.f32 0.70710677, %v20527_v39  ;;  %v10608_v54 = vadd.f32 %v10607_v21, %v20486_v0 }
0x126a   : > { %v15347_v46 = vpop.eup %15346  ;;  %v10802_v8 = vpop.f32.mrb[74].mxu0  ;;  %v20540_v31 = vmul.f32 0.5, %v10602_v44  ;;  %15364 = verf.f32 %v11078_v12  ;;  %v20545_v21 = vmul.f32 %v11322_v18, %v20502_v5  ;;  %v11083_v40 = vmul.f32 0.70710677, %v10799_v38 }
0x126b   : > { %v20522_v59 = vpop.f32.mrb[75].mxu1  ;;  %v11327_v6 = vadd.f32 1.0, %v15347_v46  ;;  %v10804_v35 = vpop.f32.mrb[75].mxu0  ;;  %v20531_v20 = vmul.f32 %v11325_v26, %v10941_v28  ;;  %15366 = verf.f32 %v11080_v52  ;;  %v11452_v63 = vmul.f32 %v11324_v41, %v20506_v53 }
0x126c   : > { %v15349_v14 = vpop.eup %15348  ;;  %15368 = verf.f32 %v11081_v24  ;;  %v10801_v52 = vadd.f32 %v10800_v19, %v20488_v15  ;;  %v10610_v43 = vadd.f32 %v10609_v23, %v20482_v57  ;;  %v10803_v18 = vadd.f32 %v10802_v8, %v20484_v36 }
0x126d   : > { %v15351_v62 = vpop.eup %15350  ;;  %v20534_v2 = vmul.f32 %v11327_v6, %v10943_v42  ;;  %v11326_v29 = vadd.f32 1.0, %v15349_v14  ;;  %v11082_v14 = vmul.f32 0.70710677, %v10608_v54  ;;  %15370 = verf.f32 %v11083_v40 }
0x126e   : > { %v15353_v46 = vpop.eup %15352  ;;  %v11329_v13 = vadd.f32 1.0, %v15351_v62  ;;  %v10615_v42 = vpop.f32.mrb[76].mxu1  ;;  %v11084_v40 = vmul.f32 0.70710677, %v10801_v52  ;;  %v11085_v23 = vmul.f32 0.70710677, %v10610_v43 }
0x126f   : > { %v15355_v28 = vpop.eup %15354  ;;  %v10808_v56 = vpop.f32.mrb[76].mxu0  ;;  %v11331_v6 = vadd.f32 1.0, %v15353_v46  ;;  %v11454_v41 = vmul.f32 %v11326_v29, %v20508_v33  ;;  %15372 = verf.f32 %v11082_v14  ;;  %v11087_v1 = vmul.f32 0.70710677, %v10803_v18 }
0x1270   : > { %v15357_v26 = vpop.eup %15356  ;;  %v10617_v44 = vpop.f32.mrb[77].mxu1  ;;  %v11328_v5 = vadd.f32 1.0, %v15355_v28  ;;  %v20563_v53 = vmul.f32 %v11329_v13, %v20514_v22  ;;  %15374 = verf.f32 %v11084_v40  ;;  %v10612_v33 = vadd.f32 %v20522_v59, %v20486_v0 }
0x1271   : > { %v20549_v32 = vpop.f32.mrb[77].mxu0  ;;  %v15359_v12 = vpop.eup %15358  ;;  %v11330_v19 = vadd.f32 1.0, %v15357_v26  ;;  %v20566_v11 = vmul.f32 %v11331_v6, %v20516_v7  ;;  %v10805_v22 = vadd.f32 %v10804_v35, %v20488_v15  ;;  %v10953_v7 = vmul.f32 0.5, %v20527_v39 }
0x1272   : > { %v10619_v62 = vpop.f32.mrb[78].mxu1  ;;  %v20553_v37 = vpop.f32.mrb[78].mxu0  ;;  %v11332_v48 = vadd.f32 1.0, %v15359_v12  ;;  %15376 = verf.f32 %v11085_v23  ;;  %v11086_v13 = vmul.f32 0.70710677, %v10612_v33  ;;  %v20584_v35 = vmul.f32 0.5, %v10608_v54 }
0x1273   : > { %v15361_v60 = vpop.eup %15360  ;;  %v20557_v46 = vpop.f32.mrb[79].mxu1  ;;  %15378 = verf.f32 %v11087_v1  ;;  %v20582_v59 = vmul.f32 %v11330_v19, %v20518_v17  ;;  %v20587_v6 = vadd.f32 %v10615_v42, %v20482_v57  ;;  %v20593_v12 = vadd.f32 %v10808_v56, %v20484_v36 }
0x1274   : > { %v20559_v47 = vpop.f32.mrb[79].mxu0  ;;  %v15363_v55 = vpop.eup %15362  ;;  %v11333_v24 = vadd.f32 1.0, %v15361_v60  ;;  %v11456_v60 = vmul.f32 %v11328_v5, %v20512_v30  ;;  %v11088_v30 = vmul.f32 0.70710677, %v10805_v22  ;;  %v20590_v39 = vmul.f32 %v11332_v48, %v20520_v58 }
0x1275   : > { %v11335_v28 = vadd.f32 1.0, %v15363_v55  ;;  %15380 = verf.f32 %v11086_v13  ;;  %v11578_v1 = vpack.c.bf16 %v11454_v41, %v20545_v21  ;;  %v11089_v17 = vmul.f32 0.70710677, %v20587_v6 }
0x1276   : > { %v20568_v8 = vmul.f32 %v11333_v24, %v10949_v51  ;;  %v15365_v51 = vpop.eup %15364  ;;  %15382 = verf.f32 %v11088_v30  ;;  %v11580_v54 = vpack.c.bf16 %v11456_v60, %v11452_v63  ;;  %v10956_v24 = vmul.f32 0.5, %v10801_v52 }
0x1277   : > { %v20570_v34 = vmul.f32 %v11335_v28, %v10951_v10  ;;  %v10955_v10 = vmul.f32 0.5, %v10799_v38  ;;  %v15367_v26 = vpop.eup %15366  ;;  %v11334_v14 = vadd.f32 1.0, %v15365_v51  ;;  %v11091_v42 = vmul.f32 0.70710677, %v20593_v12  ;;  %11936 = vmatprep.mubr.bf16.mxu1 %v11578_v1 }
0x1278   : > { %v11581_v55 = vpack.c.bf16 %v20568_v8, %v20563_v53  ;;  %v15369_v38 = vpop.eup %15368  ;;  %v11336_v19 = vadd.f32 1.0, %v15367_v26  ;;  %v20599_v48 = vadd.f32 %v10617_v44, %v20486_v0  ;;  %v10957_v58 = vmul.f32 0.5, %v10610_v43  ;;  %12097 = vmatprep.mubr.bf16.mxu0 %v11580_v54 }
0x1279   : > { %v11583_v29 = vpack.c.bf16 %v20570_v34, %v20566_v11  ;;  %v15371_v5 = vpop.eup %15370  ;;  %15384 = verf.f32 %v11089_v17  ;;  %v20603_v56 = vadd.f32 %v20549_v32, %v20488_v15  ;;  %v22017_v21 = vpack.c.bf16 %v20531_v20, %v20524_v45 }
0x127a   : > { %v20609_v63 = vadd.f32 %v10619_v62, %v20482_v57  ;;  %v11337_v52 = vadd.f32 1.0, %v15369_v38  ;;  %v10959_v41 = vmul.f32 0.5, %v10803_v18  ;;  %15386 = verf.f32 %v11091_v42  ;;  %v15373_v28 = vpop.eup %15372 }
0x127b   : > { %11937 = vmatmul.mubr.bf16.vlgmr.msra.gmra.mrb[128].mxu1 %v22017_v21  ;;  %v11090_v44 = vmul.f32 0.70710677, %v20599_v48  ;;  %v22018_v43 = vpack.c.bf16 %v20534_v2, %v20529_v49  ;;  %v11462_v32 = vmul.f32 %v11334_v14, %v20540_v31  ;;  %v11339_v40 = vadd.f32 1.0, %v15371_v5  ;;  %v15375_v45 = vpop.eup %15374 }
0x127c   : > { %v10958_v23 = vmul.f32 0.5, %v10612_v33  ;;  %v11092_v20 = vmul.f32 0.70710677, %v20603_v56  ;;  %v11464_v62 = vmul.f32 %v11336_v19, %v20547_v16  ;;  %v11093_v18 = vmul.f32 0.70710677, %v20609_v63  ;;  %v15377_v51 = vpop.eup %15376 }
0x127d   : > { %12098 = vmatmul.mubr.bf16.vlgmr.msra.gmra.mrb[128].mxu0 %v22018_v43  ;;  %15388 = verf.f32 %v11090_v44  ;;  %v20621_v60 = vadd.f32 %v20553_v37, %v20484_v36  ;;  %v10960_v2 = vmul.f32 0.5, %v10805_v22  ;;  %v20625_v49 = vadd.f32 %v20557_v46, %v20486_v0  ;;  %v15379_v33 = vpop.eup %15378 }
0x127e   : > { %15390 = verf.f32 %v11092_v20  ;;  %v20629_v31 = vadd.f32 %v20559_v47, %v20488_v15  ;;  %v20631_v16 = vmul.f32 %v11337_v52, %v10953_v7  ;;  %v11341_v13 = vadd.f32 1.0, %v15377_v51 }
0x127f   : > { %15392 = verf.f32 %v11093_v18  ;;  %v11095_v26 = vmul.f32 0.70710677, %v20621_v60  ;;  %v20634_v37 = vmul.f32 %v11339_v40, %v10955_v10  ;;  %v11338_v30 = vadd.f32 1.0, %v15373_v28  ;;  %v15381_v38 = vpop.eup %15380 }
0x1280   : > { %v11343_v22 = vadd.f32 1.0, %v15379_v33  ;;  %v11094_v1 = vmul.f32 0.70710677, %v20625_v49  ;;  %v11340_v46 = vadd.f32 1.0, %v15375_v45  ;;  %v20637_v14 = vmul.f32 %v11341_v13, %v10957_v58  ;;  %v15383_v17 = vpop.eup %15382 }
0x1281   : > { %15394 = verf.f32 %v11095_v26  ;;  %v11096_v47 = vmul.f32 0.70710677, %v20629_v31  ;;  %v11342_v54 = vadd.f32 1.0, %v15381_v38  ;;  %v11582_v5 = vpack.c.bf16 %v11462_v32, %v20582_v59 }
0x1282   : > { %v20640_v7 = vmul.f32 %v11343_v22, %v10959_v41  ;;  %15396 = verf.f32 %v11094_v1  ;;  %v11585_v10 = vpack.c.bf16 %v20637_v14, %v20631_v16  ;;  %v11344_v19 = vadd.f32 1.0, %v15383_v17 }
0x1283   : > { %15398 = verf.f32 %v11096_v47  ;;  %v11584_v42 = vpack.c.bf16 %v11464_v62, %v20590_v39  ;;  %v15385_v21 = vpop.eup %15384  ;;  %v11466_v58 = vmul.f32 %v11338_v30, %v20584_v35  ;;  %v11470_v44 = vmul.f32 %v11342_v54, %v10958_v23  ;;  %11944 = vmatprep.mubr.bf16.mxu1 %v11582_v5 }
0x1284   : > { %v11587_v52 = vpack.c.bf16 %v20640_v7, %v20634_v37  ;;  %v15387_v41 = vpop.eup %15386  ;;  %v11468_v43 = vmul.f32 %v11340_v46, %v10956_v24  ;;  %v11472_v28 = vmul.f32 %v11344_v19, %v10960_v2  ;;  %v10961_v59 = vmul.f32 0.5, %v20587_v6  ;;  %11945 = vmatmul.mubr.bf16.gmra.mrb[132].mxu1 %v11581_v55 }
0x1285   : > { %v10963_v32 = vmul.f32 0.5, %v20593_v12  ;;  %12105 = vmatprep.mubr.bf16.mxu0 %v11584_v42  ;;  %v11345_v35 = vadd.f32 1.0, %v15385_v21  ;;  %v11586_v23 = vpack.c.bf16 %v11470_v44, %v11466_v58  ;;  %v11347_v62 = vadd.f32 1.0, %v15387_v41 }
0x1286   : > { %12106 = vmatmul.mubr.bf16.gmra.mrb[132].mxu0 %v11583_v29  ;;  %v10962_v53 = vmul.f32 0.5, %v20599_v48  ;;  %v11588_v8 = vpack.c.bf16 %v11472_v28, %v11468_v43  ;;  %v10964_v51 = vmul.f32 0.5, %v20603_v56  ;;  %v10965_v48 = vmul.f32 0.5, %v20609_v63 }
0x1287   : > { %v15389_v45 = vpop.eup %15388  ;;  %11952 = vmatprep.mubr.bf16.mxu1 %v11586_v23  ;;  %v10967_v30 = vmul.f32 0.5, %v20621_v60  ;;  %v10966_v22 = vmul.f32 0.5, %v20625_v49  ;;  %v11473_v38 = vmul.f32 %v11345_v35, %v10961_v59  ;;  %v10968_v14 = vmul.f32 0.5, %v20629_v31 }
0x1288   : > { %v10625_v39 = vpop.f32.mrb[80].mxu1  ;;  %v10818_v40 = vpop.f32.mrb[80].mxu0  ;;  %v11346_v29 = vadd.f32 1.0, %v15389_v45  ;;  %12113 = vmatprep.mubr.bf16.mxu0 %v11588_v8  ;;  %v11475_v17 = vmul.f32 %v11347_v62, %v10963_v32 }
0x1289   : > { %v20658_v24 = vadd.f32 %v10625_v39, %v20482_v57  ;;  %v20661_v6 = vadd.f32 %v10818_v40, %v20484_v36  ;;  %v10627_v12 = vpop.f32.mrb[81].mxu1  ;;  %v10820_v20 = vpop.f32.mrb[81].mxu0 }
0x128a   : > { %v20665_v55 = vadd.f32 %v10627_v12, %v20486_v0  ;;  %v10629_v18 = vpop.f32.mrb[82].mxu1  ;;  %v10822_v34 = vpop.f32.mrb[82].mxu0  ;;  %v20670_v33 = vadd.f32 %v10820_v20, %v20488_v15  ;;  %v11474_v54 = vmul.f32 %v11346_v29, %v10962_v53 }
0x128b   : > { %v15391_v11 = vpop.eup %15390  ;;  %v11097_v2 = vmul.f32 0.70710677, %v20658_v24  ;;  %v10631_v16 = vpop.f32.mrb[83].mxu1  ;;  %v11099_v1 = vmul.f32 0.70710677, %v20661_v6  ;;  %v10630_v49 = vadd.f32 %v10629_v18, %v20482_v57  ;;  %v10823_v44 = vadd.f32 %v10822_v34, %v20484_v36 }
0x128c   : > { %v10824_v13 = vpop.f32.mrb[83].mxu0  ;;  %v15393_v26 = vpop.eup %15392  ;;  %v11348_v56 = vadd.f32 1.0, %v15391_v11  ;;  %v11098_v5 = vmul.f32 0.70710677, %v20665_v55  ;;  %v11100_v60 = vmul.f32 0.70710677, %v20670_v33  ;;  %11953 = vmatmul.mubr.bf16.gmra.mrb[136].mxu1 %v11585_v10  ;;  %v10632_v31 = vadd.f32 %v10631_v16, %v20486_v0 }
0x128d   : > { %v11349_v46 = vadd.f32 1.0, %v15393_v26  ;;  %v15395_v47 = vpop.eup %15394  ;;  %15400 = verf.f32 %v11097_v2  ;;  %v11101_v10 = vmul.f32 0.70710677, %v10630_v49  ;;  %v11103_v12 = vmul.f32 0.70710677, %v10823_v44 }
0x128e   : > { %v15397_v19 = vpop.eup %15396  ;;  %v11351_v42 = vadd.f32 1.0, %v15395_v47  ;;  %15402 = verf.f32 %v11099_v1  ;;  %v11476_v28 = vmul.f32 %v11348_v56, %v10964_v51  ;;  %12114 = vmatmul.mubr.bf16.gmra.mrb[136].mxu0 %v11587_v52  ;;  %v11102_v53 = vmul.f32 0.70710677, %v10632_v31 }
0x128f   : > { %v11477_v63 = vmul.f32 %v11349_v46, %v10965_v48  ;;  %v15399_v21 = vpop.eup %15398  ;;  %v11350_v58 = vadd.f32 1.0, %v15397_v19  ;;  %15404 = verf.f32 %v11098_v5  ;;  %v10825_v11 = vadd.f32 %v10824_v13, %v20488_v15 }
0x1290   : > { %v10635_v41 = vpop.f32.mrb[84].mxu1  ;;  %v10828_v43 = vpop.f32.mrb[84].mxu0  ;;  %v11479_v32 = vmul.f32 %v11351_v42, %v10967_v30  ;;  %v11352_v39 = vadd.f32 1.0, %v15399_v21  ;;  %15406 = verf.f32 %v11100_v60  ;;  %v10969_v2 = vmul.f32 0.5, %v20658_v24 }
0x1291   : > { %v11589_v59 = vpack.c.bf16 %v11477_v63, %v11473_v38  ;;  %v10637_v40 = vpop.f32.mrb[85].mxu1  ;;  %v10830_v35 = vpop.f32.mrb[85].mxu0  ;;  %v11478_v23 = vmul.f32 %v11350_v58, %v10966_v22  ;;  %15408 = verf.f32 %v11101_v10  ;;  %v10636_v37 = vadd.f32 %v10635_v41, %v20482_v57 }
0x1292   : > { %v10639_v20 = vpop.f32.mrb[86].mxu1  ;;  %v11591_v45 = vpack.c.bf16 %v11479_v32, %v11475_v17  ;;  %v11480_v62 = vmul.f32 %v11352_v39, %v10968_v14  ;;  %v10832_v8 = vpop.f32.mrb[86].mxu0  ;;  %15410 = verf.f32 %v11103_v12  ;;  %v10829_v29 = vadd.f32 %v10828_v43, %v20484_v36 }
0x1293   : > { %v10641_v18 = vpop.f32.mrb[87].mxu1  ;;  %v11590_v34 = vpack.c.bf16 %v11478_v23, %v11474_v54  ;;  %v10834_v7 = vpop.f32.mrb[87].mxu0  ;;  %v10638_v51 = vadd.f32 %v10637_v40, %v20486_v0  ;;  %v11104_v16 = vmul.f32 0.70710677, %v10825_v11  ;;  %v10971_v26 = vmul.f32 0.5, %v20661_v6 }
0x1294   : > { %v11592_v52 = vpack.c.bf16 %v11480_v62, %v11476_v28  ;;  %15412 = verf.f32 %v11102_v53  ;;  %v11105_v48 = vmul.f32 0.70710677, %v10636_v37  ;;  %v11107_v30 = vmul.f32 0.70710677, %v10829_v29 }
0x1295   : > { %11960 = vmatprep.mubr.bf16.mxu1 %v11590_v34  ;;  %v20692_v22 = vmul.f32 0.5, %v20665_v55  ;;  %15414 = verf.f32 %v11104_v16  ;;  %v11106_v1 = vmul.f32 0.70710677, %v10638_v51  ;;  %v10831_v38 = vadd.f32 %v10830_v35, %v20488_v15 }
0x1296   : > { %12121 = vmatprep.mubr.bf16.mxu0 %v11592_v52  ;;  %11961 = vmatmul.mubr.bf16.gmra.mrb[140].mxu1 %v11589_v59  ;;  %v20696_v24 = vmul.f32 0.5, %v20670_v33  ;;  %15416 = verf.f32 %v11105_v48  ;;  %v10640_v6 = vadd.f32 %v10639_v20, %v20482_v57  ;;  %v20700_v14 = vadd.f32 %v10832_v8, %v20484_v36 }
0x1297   : > { %v15401_v13 = vpop.eup %15400  ;;  %12122 = vmatmul.mubr.bf16.gmra.mrb[140].mxu0 %v11591_v45  ;;  %v10973_v54 = vmul.f32 0.5, %v10630_v49  ;;  %v10975_v5 = vmul.f32 0.5, %v10823_v44  ;;  %v20706_v19 = vmul.f32 0.5, %v10632_v31  ;;  %15418 = verf.f32 %v11107_v30 }
0x1298   : > { %v10645_v56 = vpop.f32.mrb[88].mxu1  ;;  %v10838_v46 = vpop.f32.mrb[88].mxu0  ;;  %v20710_v33 = vmul.f32 0.5, %v10825_v11  ;;  %v20712_v60 = vmul.f32 0.5, %v10636_v37  ;;  %v11108_v21 = vmul.f32 0.70710677, %v10831_v38  ;;  %15420 = verf.f32 %v11106_v1 }
0x1299   : > { %v20702_v47 = vpop.f32.mrb[89].mxu1  ;;  %v20704_v55 = vpop.f32.mrb[89].mxu0  ;;  %v11353_v28 = vadd.f32 1.0, %v15401_v13  ;;  %v20718_v59 = vmul.f32 0.5, %v10829_v29  ;;  %v11109_v49 = vmul.f32 0.70710677, %v10640_v6  ;;  %v10642_v39 = vadd.f32 %v10641_v18, %v20486_v0 }
0x129a   : > { %v15403_v17 = vpop.eup %15402  ;;  %v10649_v63 = vpop.f32.mrb[90].mxu1  ;;  %15422 = verf.f32 %v11108_v21  ;;  %v11111_v32 = vmul.f32 0.70710677, %v20700_v14  ;;  %v10835_v35 = vadd.f32 %v10834_v7, %v20488_v15  ;;  %v10646_v23 = vadd.f32 %v10645_v56, %v20482_v57 }
0x129b   : > { %v20708_v42 = vpop.f32.mrb[90].mxu0  ;;  %v20714_v58 = vpop.f32.mrb[91].mxu1  ;;  %v11355_v31 = vadd.f32 1.0, %v15403_v17  ;;  %15424 = verf.f32 %v11109_v49  ;;  %v10839_v10 = vadd.f32 %v10838_v46, %v20484_v36  ;;  %v11110_v62 = vmul.f32 0.70710677, %v10642_v39 }
0x129c   : > { %v20716_v41 = vpop.f32.mrb[91].mxu0  ;;  %v15405_v43 = vpop.eup %15404  ;;  %15426 = verf.f32 %v11111_v32  ;;  %v20725_v53 = vmul.f32 %v11353_v28, %v10969_v2  ;;  %v20727_v34 = vmul.f32 0.5, %v10638_v51  ;;  %v11112_v11 = vmul.f32 0.70710677, %v10835_v35 }
0x129d   : > { %v15407_v44 = vpop.eup %15406  ;;  %v11354_v20 = vadd.f32 1.0, %v15405_v43  ;;  %v20731_v52 = vmul.f32 %v11355_v31, %v10971_v26  ;;  %v20735_v29 = vmul.f32 0.5, %v10831_v38  ;;  %v11113_v16 = vmul.f32 0.70710677, %v10646_v23 }
0x129e   : > { %v15409_v40 = vpop.eup %15408  ;;  %v11356_v13 = vadd.f32 1.0, %v15407_v44  ;;  %15428 = verf.f32 %v11110_v62  ;;  %v11115_v51 = vmul.f32 0.70710677, %v10839_v10  ;;  %v10648_v44 = vadd.f32 %v20702_v47, %v20486_v0 }
0x129f   : > { %v15411_v12 = vpop.eup %15410  ;;  %v11357_v45 = vadd.f32 1.0, %v15409_v40  ;;  %v20748_v17 = vmul.f32 %v11354_v20, %v20692_v22  ;;  %15430 = verf.f32 %v11112_v11  ;;  %v10650_v32 = vadd.f32 %v10649_v63, %v20482_v57 }
0x12a0   : > { %v11359_v8 = vadd.f32 1.0, %v15411_v12  ;;  %v20729_v18 = vpop.f32.mrb[92].mxu1  ;;  %v15413_v37 = vpop.eup %15412  ;;  %15432 = verf.f32 %v11113_v16  ;;  %v10983_v12 = vmul.f32 0.5, %v20700_v14  ;;  %v20766_v20 = vmul.f32 0.5, %v10642_v39 }
0x12a1   : > { %v20733_v7 = vmul.f32 %v11357_v45, %v10973_v54  ;;  %v20737_v48 = vpop.f32.mrb[92].mxu0  ;;  %v20739_v30 = vpop.f32.mrb[93].mxu1  ;;  %v10981_v54 = vmul.f32 0.5, %v10640_v6  ;;  %v11358_v49 = vadd.f32 1.0, %v15413_v37  ;;  %15434 = verf.f32 %v11115_v51 }
0x12a2   : > { %v15415_v2 = vpop.eup %15414  ;;  %v20741_v1 = vmul.f32 %v11359_v8, %v10975_v5  ;;  %v20743_v56 = vpop.f32.mrb[93].mxu0  ;;  %v10841_v6 = vadd.f32 %v20704_v55, %v20488_v15  ;;  %v20768_v45 = vmul.f32 0.5, %v10835_v35  ;;  %v20770_v62 = vmul.f32 0.5, %v10646_v23 }
0x12a3   : > { %v20745_v46 = vpop.f32.mrb[94].mxu1  ;;  %v15417_v26 = vpop.eup %15416  ;;  %v11360_v47 = vadd.f32 1.0, %v15415_v2  ;;  %v20772_v37 = vmul.f32 0.5, %v10839_v10  ;;  %v11114_v16 = vmul.f32 0.70710677, %v10648_v44  ;;  %v20775_v55 = vmul.f32 %v11356_v13, %v20696_v24 }
0x12a4   : > { %v20752_v21 = vpop.f32.mrb[94].mxu0  ;;  %v20754_v43 = vpop.f32.mrb[95].mxu1  ;;  %v11361_v31 = vadd.f32 1.0, %v15417_v26  ;;  %v20778_v63 = vmul.f32 %v11358_v49, %v20706_v19  ;;  %v11116_v14 = vmul.f32 0.70710677, %v10841_v6  ;;  %v10652_v24 = vadd.f32 %v20714_v58, %v20486_v0 }
0x12a5   : > { %v15419_v5 = vpop.eup %15418  ;;  %v20760_v22 = vpop.f32.mrb[95].mxu0  ;;  %v11117_v39 = vmul.f32 0.70710677, %v10650_v32  ;;  %v10845_v38 = vadd.f32 %v20716_v41, %v20488_v15  ;;  %v11488_v50 = vmul.f32 %v11360_v47, %v20710_v33  ;;  %v20819_v4 = vmul.f32 0.5, %v10841_v6 }
0x12a6   : > { %v15421_v40 = vpop.eup %15420  ;;  %v11363_v11 = vadd.f32 1.0, %v15419_v5  ;;  %v20785_v2 = vmul.f32 %v11361_v31, %v20712_v60  ;;  %v10843_v5 = vadd.f32 %v20708_v42, %v20484_v36  ;;  %v11118_v41 = vmul.f32 0.70710677, %v10652_v24 }
0x12a7   : > { %v15423_v8 = vpop.eup %15422  ;;  %v11362_v49 = vadd.f32 1.0, %v15421_v40  ;;  %15436 = verf.f32 %v11117_v39  ;;  %v10658_v6 = vadd.f32 %v20739_v30, %v20486_v0 }
0x12a8   : > { %v15425_v51 = vpop.eup %15424  ;;  %v20780_v26 = vpop.f32.mrb[96].mxu1  ;;  %v11364_v31 = vadd.f32 1.0, %v15423_v8  ;;  %15438 = verf.f32 %v11114_v16  ;;  %v11119_v42 = vmul.f32 0.70710677, %v10843_v5  ;;  %v20808_v40 = vmul.f32 %v11363_v11, %v20718_v59 }
0x12a9   : > { %v20782_v35 = vpop.f32.mrb[96].mxu0  ;;  %v15427_v23 = vpop.eup %15426  ;;  %v11365_v10 = vadd.f32 1.0, %v15425_v51  ;;  %15440 = verf.f32 %v11116_v14  ;;  %v20815_v8 = vmul.f32 0.5, %v10648_v44  ;;  %v10989_v59 = vmul.f32 0.5, %v10650_v32 }
0x12aa   : > { %v20791_v13 = vpop.f32.mrb[97].mxu1  ;;  %v20793_v19 = vpop.f32.mrb[97].mxu0  ;;  %v11367_v28 = vadd.f32 1.0, %v15427_v23  ;;  %15442 = verf.f32 %v11119_v42  ;;  %v20822_v11 = vmul.f32 %v11362_v49, %v20727_v34  ;;  %v20825_v33 = vmul.f32 %v11364_v31, %v20735_v29 }
0x12ab   : > { %v20797_v3 = vpop.f32.mrb[98].mxu1  ;;  %v20799_v60 = vpop.f32.mrb[98].mxu0  ;;  %v20801_v51 = vmul.f32 %v11365_v10, %v10981_v54  ;;  %15444 = verf.f32 %v11118_v41  ;;  %v10656_v44 = vadd.f32 %v20729_v18, %v20482_v57  ;;  %v10849_v14 = vadd.f32 %v20737_v48, %v20484_v36 }
0x12ac   : > { %v20803_v58 = vpop.f32.mrb[99].mxu1  ;;  %v20805_v61 = vpop.f32.mrb[99].mxu0  ;;  %v20810_v39 = vmul.f32 %v11367_v28, %v10983_v12  ;;  %v11120_v28 = vmul.f32 0.70710677, %v10845_v38  ;;  %v10851_v32 = vadd.f32 %v20743_v56, %v20488_v15  ;;  %v11594_v18 = vpack.c.bf16 %v20778_v63, %v20748_v17 }
0x12ad   : > { %v15429_v9 = vpop.eup %15428  ;;  %v11121_v31 = vmul.f32 0.70710677, %v10656_v44  ;;  %v11123_v30 = vmul.f32 0.70710677, %v10849_v14  ;;  %v11122_v10 = vmul.f32 0.70710677, %v10658_v6  ;;  %v11596_v63 = vpack.c.bf16 %v11488_v50, %v20775_v55 }
0x12ae   : > { %v15431_v23 = vpop.eup %15430  ;;  %v11366_v47 = vadd.f32 1.0, %v15429_v9  ;;  %15446 = verf.f32 %v11120_v28  ;;  %v10991_v54 = vmul.f32 0.5, %v10843_v5  ;;  %v20845_v56 = vmul.f32 0.5, %v10652_v24  ;;  %11968 = vmatprep.mubr.bf16.mxu1 %v11594_v18 }
0x12af   : > { %v15433_v16 = vpop.eup %15432  ;;  %v11368_v29 = vadd.f32 1.0, %v15431_v23  ;;  %15448 = verf.f32 %v11121_v31  ;;  %v11124_v25 = vmul.f32 0.70710677, %v10851_v32  ;;  %v20851_v17 = vmul.f32 0.5, %v10845_v38  ;;  %12129 = vmatprep.mubr.bf16.mxu0 %v11596_v63 }
0x12b0   : > { %v15435_v12 = vpop.eup %15434  ;;  %v20835_v42 = vpop.f32.mrb[100].mxu1  ;;  %v11369_v49 = vadd.f32 1.0, %v15433_v16  ;;  %15450 = verf.f32 %v11123_v30  ;;  %v10660_v28 = vadd.f32 %v20745_v46, %v20482_v57  ;;  %v22019_v5 = vpack.c.bf16 %v20733_v7, %v20725_v53 }
0x12b1   : > { %v20837_v34 = vpop.f32.mrb[100].mxu0  ;;  %v20841_v9 = vpop.f32.mrb[101].mxu1  ;;  %v11371_v48 = vadd.f32 1.0, %v15435_v12  ;;  %v11494_v18 = vmul.f32 %v11366_v47, %v20766_v20  ;;  %v20865_v38 = vmul.f32 %v11368_v29, %v20768_v45  ;;  %v10853_v50 = vadd.f32 %v20752_v21, %v20484_v36 }
0x12b2   : > { %v20843_v41 = vpop.f32.mrb[101].mxu0  ;;  %v20847_v23 = vpop.f32.mrb[102].mxu1  ;;  %11969 = vmatmul.mubr.bf16.gmra.mrb[144].mxu1 %v22019_v5  ;;  %v20870_v46 = vmul.f32 %v11369_v49, %v20770_v62  ;;  %15452 = verf.f32 %v11122_v10  ;;  %v11125_v7 = vmul.f32 0.70710677, %v10660_v28  ;;  %v10662_v21 = vadd.f32 %v20754_v43, %v20486_v0 }
0x12b3   : > { %v20849_v16 = vpop.f32.mrb[102].mxu0  ;;  %v15437_v27 = vpop.eup %15436  ;;  %v20873_v53 = vmul.f32 %v11371_v48, %v20772_v37  ;;  %15454 = verf.f32 %v11124_v25  ;;  %v11127_v20 = vmul.f32 0.70710677, %v10853_v50  ;;  %v10855_v62 = vadd.f32 %v20760_v22, %v20488_v15 }
0x12b4   : > { %v20859_v24 = vpop.f32.mrb[103].mxu1  ;;  %v20861_v12 = vpop.f32.mrb[103].mxu0  ;;  %v11373_v30 = vadd.f32 1.0, %v15437_v27  ;;  %v22021_v27 = vpack.c.bf16 %v20741_v1, %v20731_v52  ;;  %15456 = verf.f32 %v11125_v7  ;;  %v10666_v37 = vadd.f32 %v20780_v26, %v20482_v57 }
0x12b5   : > { %22020 = vst [vmem:[#allocation97_spill] sm:$0xff] %v20861_v12  ;;  %v15439_v31 = vpop.eup %15438  ;;  %v10995_v47 = vmul.f32 0.5, %v10849_v14  ;;  %15458 = verf.f32 %v11127_v20  ;;  %v11126_v43 = vmul.f32 0.70710677, %v10662_v21  ;;  %v20890_v49 = vmul.f32 0.5, %v10658_v6 }
0x12b6   : > { %v15441_v55 = vpop.eup %15440  ;;  %v20875_v12 = vmul.f32 %v11373_v30, %v10989_v59  ;;  %12130 = vmatmul.mubr.bf16.gmra.mrb[144].mxu0 %v22021_v27  ;;  %v10993_v59 = vmul.f32 0.5, %v10656_v44  ;;  %v11370_v52 = vadd.f32 1.0, %v15439_v31  ;;  %v20892_v48 = vmul.f32 0.5, %v10851_v32 }
0x12b7   : > { %v15443_v5 = vpop.eup %15442  ;;  %v11372_v1 = vadd.f32 1.0, %v15441_v55  ;;  %v11128_v22 = vmul.f32 0.70710677, %v10855_v62  ;;  %v11129_v63 = vmul.f32 0.70710677, %v10666_v37  ;;  %15460 = verf.f32 %v11126_v43 }
0x12b8   : > { %v11375_v45 = vadd.f32 1.0, %v15443_v5  ;;  %v15445_v10 = vpop.eup %15444  ;;  %v11601_v25 = vpack.c.bf16 %v20875_v12, %v20870_v46  ;;  %v10859_v44 = vadd.f32 %v20782_v35, %v20484_v36  ;;  %v10861_v6 = vadd.f32 %v20793_v19, %v20488_v15 }
0x12b9   : > { %v15447_v30 = vpop.eup %15446  ;;  %v11374_v7 = vadd.f32 1.0, %v15445_v10  ;;  %15462 = verf.f32 %v11128_v22  ;;  %v11598_v32 = vpack.c.bf16 %v11494_v18, %v20822_v11  ;;  %v20904_v55 = vmul.f32 %v11370_v52, %v20815_v8 }
0x12ba   : > { %v20888_v29 = vmul.f32 %v11375_v45, %v10991_v54  ;;  %v15449_v14 = vpop.eup %15448  ;;  %v10668_v54 = vadd.f32 %v20791_v13, %v20486_v0  ;;  %v20907_v5 = vmul.f32 %v11372_v1, %v20819_v4  ;;  %15464 = verf.f32 %v11129_v63 }
0x12bb   : > { %v15451_v31 = vpop.eup %15450  ;;  %v11131_v20 = vmul.f32 0.70710677, %v10859_v44  ;;  %v11377_v35 = vadd.f32 1.0, %v15449_v14  ;;  %v10997_v27 = vmul.f32 0.5, %v10660_v28  ;;  %v10999_v45 = vmul.f32 0.5, %v10853_v50  ;;  %11976 = vmatprep.mubr.bf16.mxu1 %v11598_v32 }
0x12bc   : > { %v11603_v26 = vpack.c.bf16 %v20888_v29, %v20873_v53  ;;  %v11130_v10 = vmul.f32 0.70710677, %v10668_v54  ;;  %v15453_v13 = vpop.eup %15452  ;;  %v11376_v43 = vadd.f32 1.0, %v15447_v30  ;;  %v11379_v22 = vadd.f32 1.0, %v15451_v31 }
0x12bd   : > { %v10998_v19 = vmul.f32 0.5, %v10662_v21  ;;  %15466 = verf.f32 %v11131_v20  ;;  %v22022_v11 = vpack.c.bf16 %v20801_v51, %v20785_v2  ;;  %v15455_v8 = vpop.eup %15454  ;;  %v20913_v4 = vmul.f32 %v11374_v7, %v20845_v56 }
0x12be   : > { %v11000_v18 = vmul.f32 0.5, %v10855_v62  ;;  %v11132_v52 = vmul.f32 0.70710677, %v10861_v6  ;;  %v11600_v28 = vpack.c.bf16 %v20865_v38, %v20825_v33  ;;  %v15457_v50 = vpop.eup %15456  ;;  %v11001_v1 = vmul.f32 0.5, %v10666_v37 }
0x12bf   : > { %11977 = vmatmul.mubr.bf16.gmra.mrb[148].mxu1 %v22022_v11  ;;  %15468 = verf.f32 %v11130_v10  ;;  %v10670_v21 = vadd.f32 %v20797_v3, %v20482_v57  ;;  %v10863_v63 = vadd.f32 %v20799_v60, %v20484_v36  ;;  %v15459_v2 = vpop.eup %15458  ;;  %v20921_v51 = vmul.f32 %v11377_v35, %v10993_v59 }
0x12c0   : > { %v11381_v30 = vadd.f32 1.0, %v15457_v50  ;;  %12137 = vmatprep.mubr.bf16.mxu0 %v11600_v28  ;;  %v10672_v56 = vadd.f32 %v20803_v58, %v20486_v0  ;;  %v10865_v33 = vadd.f32 %v20805_v61, %v20488_v15  ;;  %v20927_v38 = vmul.f32 %v11379_v22, %v10995_v47 }
0x12c1   : > { %v11378_v62 = vadd.f32 1.0, %v15453_v13  ;;  %v11383_v37 = vadd.f32 1.0, %v15459_v2  ;;  %v11133_v7 = vmul.f32 0.70710677, %v10670_v21  ;;  %v22023_v3 = vpack.c.bf16 %v20810_v39, %v20808_v40  ;;  %v15461_v32 = vpop.eup %15460 }
0x12c2   : > { %v20932_v60 = vmul.f32 %v11381_v30, %v10997_v27  ;;  %15470 = verf.f32 %v11132_v52  ;;  %v11135_v59 = vmul.f32 0.70710677, %v10863_v63  ;;  %v11134_v14 = vmul.f32 0.70710677, %v10672_v56 }
0x12c3   : > { %12138 = vmatmul.mubr.bf16.gmra.mrb[148].mxu0 %v22023_v3  ;;  %v11380_v31 = vadd.f32 1.0, %v15455_v8  ;;  %v20934_v58 = vmul.f32 %v11383_v37, %v10999_v45  ;;  %15472 = verf.f32 %v11133_v7  ;;  %v11136_v61 = vmul.f32 0.70710677, %v10865_v33  ;;  %v15463_v47 = vpop.eup %15462 }
0x12c4   : > { %v11605_v20 = vpack.c.bf16 %v20932_v60, %v20921_v51  ;;  %v11382_v35 = vadd.f32 1.0, %v15461_v32  ;;  %15474 = verf.f32 %v11135_v59  ;;  %v20940_v40 = vadd.f32 %v20835_v42, %v20482_v57  ;;  %v15465_v39 = vpop.eup %15464 }
0x12c5   : > { %v11504_v27 = vmul.f32 %v11376_v43, %v20851_v17  ;;  %v11607_v10 = vpack.c.bf16 %v20934_v58, %v20927_v38  ;;  %15476 = verf.f32 %v11134_v14  ;;  %v20947_v45 = vadd.f32 %v20837_v34, %v20484_v36 }
0x12c6   : > { %v11003_v13 = vmul.f32 0.5, %v10859_v44  ;;  %v11002_v22 = vmul.f32 0.5, %v10668_v54  ;;  %v11004_v11 = vmul.f32 0.5, %v10861_v6  ;;  %15478 = verf.f32 %v11136_v61 }
0x12c7   : > { %v15467_v8 = vpop.eup %15466  ;;  %v11506_v52 = vmul.f32 %v11378_v62, %v20890_v49  ;;  %v20951_v42 = vmul.f32 %v11380_v31, %v20892_v48  ;;  %v11384_v28 = vadd.f32 1.0, %v15463_v47  ;;  %v11385_v17 = vadd.f32 1.0, %v15465_v39 }
0x12c8   : > { %v11510_v43 = vmul.f32 %v11382_v35, %v10998_v19  ;;  %v11137_v50 = vmul.f32 0.70710677, %v20940_v40  ;;  %v20956_v2 = vadd.f32 %v20841_v9, %v20486_v0  ;;  %v20960_v34 = vadd.f32 %v20843_v41, %v20488_v15 }
0x12c9   : > { %v15469_v44 = vpop.eup %15468  ;;  %v11387_v54 = vadd.f32 1.0, %v15467_v8  ;;  %v11139_v49 = vmul.f32 0.70710677, %v20947_v45  ;;  %v11602_v48 = vpack.c.bf16 %v20913_v4, %v20904_v55  ;;  %v11604_v6 = vpack.c.bf16 %v11504_v27, %v20907_v5 }
0x12ca   : > { %v11005_v19 = vmul.f32 0.5, %v10670_v21  ;;  %v11007_v30 = vmul.f32 0.5, %v10863_v63  ;;  %v11006_v62 = vmul.f32 0.5, %v10672_v56  ;;  %v11008_v37 = vmul.f32 0.5, %v10865_v33  ;;  %v22024_v56 = vld [vmem:[#allocation97_spill] sm:$0xff] }
0x12cb   : > { %v11512_v7 = vmul.f32 %v11384_v28, %v11000_v18  ;;  %v20966_v9 = vmul.f32 %v11385_v17, %v11001_v1  ;;  %v11138_v3 = vmul.f32 0.70710677, %v20956_v2  ;;  %v11140_v41 = vmul.f32 0.70710677, %v20960_v34  ;;  %11984 = vmatprep.mubr.bf16.mxu1 %v11602_v48  ;;  %12145 = vmatprep.mubr.bf16.mxu0 %v11604_v6 }
0x12cc   : > { %v15471_v59 = vpop.eup %15470  ;;  %v11386_v14 = vadd.f32 1.0, %v15469_v44  ;;  %15480 = verf.f32 %v11137_v50  ;;  %v10680_v55 = vadd.f32 %v20847_v23, %v20482_v57  ;;  %v10873_v5 = vadd.f32 %v20849_v16, %v20484_v36  ;;  %11985 = vmatmul.mubr.bf16.gmra.mrb[152].mxu1 %v11601_v25  ;;  %12146 = vmatmul.mubr.bf16.gmra.mrb[152].mxu0 %v11603_v26 }
0x12cd   : > { %v15473_v4 = vpop.eup %15472  ;;  %v20980_v18 = vmul.f32 %v11387_v54, %v11003_v13  ;;  %15482 = verf.f32 %v11139_v49  ;;  %v10682_v1 = vadd.f32 %v20859_v24, %v20486_v0  ;;  %v11606_v21 = vpack.c.bf16 %v11510_v43, %v11506_v52 }
0x12ce   : > { %v15475_v23 = vpop.eup %15474  ;;  %v11389_v63 = vadd.f32 1.0, %v15473_v4  ;;  %15484 = verf.f32 %v11138_v3  ;;  %v11141_v16 = vmul.f32 0.70710677, %v10680_v55  ;;  %v10875_v12 = vadd.f32 %v22024_v56, %v20488_v15 }
0x12cf   : > { %v15477_v46 = vpop.eup %15476  ;;  %v11388_v25 = vadd.f32 1.0, %v15471_v59  ;;  %v11391_v33 = vadd.f32 1.0, %v15475_v23  ;;  %15486 = verf.f32 %v11140_v41  ;;  %v11143_v53 = vmul.f32 0.70710677, %v10873_v5  ;;  %11992 = vmatprep.mubr.bf16.mxu1 %v11606_v21 }
0x12d0   : > { %v15479_v29 = vpop.eup %15478  ;;  %v11517_v26 = vmul.f32 %v11389_v63, %v11005_v19  ;;  %v11390_v32 = vadd.f32 1.0, %v15477_v46  ;;  %15488 = verf.f32 %v11141_v16  ;;  %v11142_v31 = vmul.f32 0.70710677, %v10682_v1 }
0x12d1   : > { %v11514_v24 = vmul.f32 %v11386_v14, %v11002_v22  ;;  %v11519_v61 = vmul.f32 %v11391_v33, %v11007_v30  ;;  %v11392_v47 = vadd.f32 1.0, %v15479_v29  ;;  %15490 = verf.f32 %v11143_v53 }
0x12d2   : > { %v11609_v35 = vpack.c.bf16 %v11517_v26, %v20966_v9  ;;  %v11518_v39 = vmul.f32 %v11390_v32, %v11006_v62  ;;  %15492 = verf.f32 %v11142_v31  ;;  %v11144_v27 = vmul.f32 0.70710677, %v10875_v12 }
0x12d3   : > { %v11516_v13 = vmul.f32 %v11388_v25, %v11004_v11  ;;  %v11611_v8 = vpack.c.bf16 %v11519_v61, %v20980_v18  ;;  %v11520_v52 = vmul.f32 %v11392_v47, %v11008_v37  ;;  %v11608_v28 = vpack.c.bf16 %v11512_v7, %v20951_v42 }
0x12d4   : > { %15494 = verf.f32 %v11144_v27  ;;  %11993 = vmatmul.mubr.bf16.gmra.mrb[156].mxu1 %v11605_v20  ;;  %v11610_v22 = vpack.c.bf16 %v11518_v39, %v11514_v24  ;;  %v11009_v49 = vmul.f32 0.5, %v20940_v40  ;;  %v11011_v60 = vmul.f32 0.5, %v20947_v45 }
0x12d5   : > { %12153 = vmatprep.mubr.bf16.mxu0 %v11608_v28  ;;  %v11612_v17 = vpack.c.bf16 %v11520_v52, %v11516_v13  ;;  %v11013_v6 = vmul.f32 0.5, %v10680_v55  ;;  %v11010_v38 = vmul.f32 0.5, %v20956_v2  ;;  %v11015_v58 = vmul.f32 0.5, %v10873_v5 }
0x12d6   : > { %v15481_v43 = vpop.eup %15480  ;;  %12154 = vmatmul.mubr.bf16.gmra.mrb[156].mxu0 %v11607_v10  ;;  %12000 = vmatprep.mubr.bf16.mxu1 %v11610_v22  ;;  %v11014_v62 = vmul.f32 0.5, %v10682_v1  ;;  %v11012_v59 = vmul.f32 0.5, %v20960_v34  ;;  %v11016_v45 = vmul.f32 0.5, %v10875_v12 }
0x12d7   : > { %v15483_v11 = vpop.eup %15482  ;;  %12161 = vmatprep.mubr.bf16.mxu0 %v11612_v17  ;;  %v11393_v54 = vadd.f32 1.0, %v15481_v43 }
0x12d8   : > { %v15485_v50 = vpop.eup %15484  ;;  %v11395_v48 = vadd.f32 1.0, %v15483_v11 }
0x12d9   : > { %v15487_v44 = vpop.eup %15486  ;;  %v11394_v20 = vadd.f32 1.0, %v15485_v50  ;;  %v11521_v37 = vmul.f32 %v11393_v54, %v11009_v49 }
0x12da   : > { %v15489_v42 = vpop.eup %15488  ;;  %v11396_v7 = vadd.f32 1.0, %v15487_v44  ;;  %v11523_v40 = vmul.f32 %v11395_v48, %v11011_v60 }
0x12db   : > { %v15491_v51 = vpop.eup %15490  ;;  %v11397_v19 = vadd.f32 1.0, %v15489_v42  ;;  %v11522_v55 = vmul.f32 %v11394_v20, %v11010_v38 }
0x12dc   : > { %v15493_v30 = vpop.eup %15492  ;;  %v11399_v10 = vadd.f32 1.0, %v15491_v51  ;;  %12001 = vmatmul.mubr.bf16.gmra.mrb[160].mxu1 %v11609_v35  ;;  %v11524_v5 = vmul.f32 %v11396_v7, %v11012_v59 }
0x12dd   : > { %v11525_v9 = vmul.f32 %v11397_v19, %v11013_v6  ;;  %v11398_v3 = vadd.f32 1.0, %v15493_v30 }
0x12de   : > { %v15495_v41 = vpop.eup %15494  ;;  %v11527_v14 = vmul.f32 %v11399_v10, %v11015_v58  ;;  %12162 = vmatmul.mubr.bf16.gmra.mrb[160].mxu0 %v11611_v8 }
0x12df   : > { %v11613_v4 = vpack.c.bf16 %v11525_v9, %v11521_v37  ;;  %v11526_v18 = vmul.f32 %v11398_v3, %v11014_v62  ;;  %v11400_v21 = vadd.f32 1.0, %v15495_v41 }
0x12e0   : > { %v11615_v2 = vpack.c.bf16 %v11527_v14, %v11523_v40 }
0x12e1   : > { %v11528_v23 = vmul.f32 %v11400_v21, %v11016_v45  ;;  %v11614_v1 = vpack.c.bf16 %v11526_v18, %v11522_v55 }
0x12e3   : > { %12008 = vmatprep.mubr.bf16.mxu1 %v11614_v1  ;;  %v11616_v63 = vpack.c.bf16 %v11528_v23, %v11524_v5 }
0x12e4   : > { %12009 = vmatmul.mubr.bf16.gmra.mrb[164].mxu1 %v11613_v4 }
0x12e5   : > { %12169 = vmatprep.mubr.bf16.mxu0 %v11616_v63 }
0x12e6   : > { %12170 = vmatmul.mubr.bf16.gmra.mrb[164].mxu0 %v11615_v2 }
0x12ed   : > { %v10685_v16 = vpop.f32.mrb[104].mxu1  ;;  %v10878_v56 = vpop.f32.mrb[104].mxu0 }
0x12ee   : > { %v10686_v34 = vadd.f32 %v10685_v16, %v20482_v57  ;;  %v10879_v12 = vadd.f32 %v10878_v56, %v20484_v36  ;;  %v10687_v46 = vpop.f32.mrb[105].mxu1  ;;  %v10880_v25 = vpop.f32.mrb[105].mxu0 }
0x12ef   : > { %v10688_v33 = vadd.f32 %v10687_v46, %v20486_v0  ;;  %v10881_v53 = vadd.f32 %v10880_v25, %v20488_v15  ;;  %v10689_v29 = vpop.f32.mrb[106].mxu1  ;;  %v10882_v26 = vpop.f32.mrb[106].mxu0 }
0x12f0   : > { %v11145_v32 = vmul.f32 0.70710677, %v10686_v34  ;;  %v11147_v31 = vmul.f32 0.70710677, %v10879_v12  ;;  %v10690_v47 = vadd.f32 %v10689_v29, %v20482_v57  ;;  %v10883_v35 = vadd.f32 %v10882_v26, %v20484_v36  ;;  %v10691_v39 = vpop.f32.mrb[107].mxu1  ;;  %v10884_v27 = vpop.f32.mrb[107].mxu0 }
0x12f1   : > { %v11146_v24 = vmul.f32 0.70710677, %v10688_v33  ;;  %v11148_v61 = vmul.f32 0.70710677, %v10881_v53  ;;  %v10692_v13 = vadd.f32 %v10691_v39, %v20486_v0  ;;  %v10885_v52 = vadd.f32 %v10884_v27, %v20488_v15 }
0x12f2   : > { %15496 = verf.f32 %v11145_v32  ;;  %v11149_v8 = vmul.f32 0.70710677, %v10690_v47  ;;  %v11151_v28 = vmul.f32 0.70710677, %v10883_v35  ;;  %v11017_v19 = vmul.f32 0.5, %v10686_v34 }
0x12f3   : > { %15498 = verf.f32 %v11147_v31  ;;  %v11150_v22 = vmul.f32 0.70710677, %v10692_v13  ;;  %v11152_v48 = vmul.f32 0.70710677, %v10885_v52  ;;  %v11019_v58 = vmul.f32 0.5, %v10879_v12 }
0x12f4   : > { %15500 = verf.f32 %v11146_v24  ;;  %v21011_v37 = vmul.f32 0.5, %v10688_v33  ;;  %v21015_v41 = vmul.f32 0.5, %v10881_v53  ;;  %v11021_v40 = vmul.f32 0.5, %v10690_v47 }
0x12f5   : > { %15502 = verf.f32 %v11148_v61  ;;  %v10695_v17 = vpop.f32.mrb[108].mxu1  ;;  %v10888_v11 = vpop.f32.mrb[108].mxu0  ;;  %v11023_v59 = vmul.f32 0.5, %v10883_v35  ;;  %v21017_v45 = vmul.f32 0.5, %v10692_v13  ;;  %v21021_v63 = vmul.f32 0.5, %v10885_v52 }
0x12f6   : > { %15504 = verf.f32 %v11149_v8  ;;  %v10696_v43 = vadd.f32 %v10695_v17, %v20482_v57  ;;  %v10697_v50 = vpop.f32.mrb[109].mxu1  ;;  %v10889_v44 = vadd.f32 %v10888_v11, %v20484_v36  ;;  %v10890_v42 = vpop.f32.mrb[109].mxu0 }
0x12f7   : > { %15506 = verf.f32 %v11151_v28  ;;  %v10698_v54 = vadd.f32 %v10697_v50, %v20486_v0  ;;  %v10699_v49 = vpop.f32.mrb[110].mxu1  ;;  %v10891_v60 = vadd.f32 %v10890_v42, %v20488_v15  ;;  %v10892_v20 = vpop.f32.mrb[110].mxu0 }
0x12f8   : > { %v11153_v51 = vmul.f32 0.70710677, %v10696_v43  ;;  %v10701_v6 = vpop.f32.mrb[111].mxu1  ;;  %15508 = verf.f32 %v11150_v22  ;;  %v11155_v30 = vmul.f32 0.70710677, %v10889_v44  ;;  %v10894_v38 = vpop.f32.mrb[111].mxu0  ;;  %v10700_v7 = vadd.f32 %v10699_v49, %v20482_v57 }
0x12f9   : > { %v11154_v10 = vmul.f32 0.70710677, %v10698_v54  ;;  %v11156_v62 = vmul.f32 0.70710677, %v10891_v60  ;;  %v10893_v9 = vadd.f32 %v10892_v20, %v20484_v36  ;;  %v10702_v4 = vadd.f32 %v10701_v6, %v20486_v0 }
0x12fa   : > { %15510 = verf.f32 %v11153_v51  ;;  %v11157_v55 = vmul.f32 0.70710677, %v10700_v7  ;;  %v10895_v5 = vadd.f32 %v10894_v38, %v20488_v15  ;;  %v21023_v16 = vmul.f32 0.5, %v10696_v43 }
0x12fb   : > { %15512 = verf.f32 %v11155_v30  ;;  %v11159_v2 = vmul.f32 0.70710677, %v10893_v9  ;;  %v21025_v46 = vmul.f32 0.5, %v10889_v44  ;;  %v21027_v25 = vmul.f32 0.5, %v10698_v54 }
0x12fc   : > { %v15497_v3 = vpop.eup %15496  ;;  %15514 = verf.f32 %v11152_v48  ;;  %v21029_v33 = vmul.f32 0.5, %v10891_v60  ;;  %v21031_v31 = vmul.f32 0.5, %v10700_v7  ;;  %v11158_v24 = vmul.f32 0.70710677, %v10702_v4 }
0x12fd   : > { %v15499_v14 = vpop.eup %15498  ;;  %15516 = verf.f32 %v11154_v10  ;;  %v11401_v21 = vadd.f32 1.0, %v15497_v3  ;;  %v11160_v27 = vmul.f32 0.70710677, %v10895_v5  ;;  %v11031_v60 = vmul.f32 0.5, %v10893_v9 }
0x12fe   : > { %v15501_v18 = vpop.eup %15500  ;;  %15518 = verf.f32 %v11156_v62  ;;  %v11403_v1 = vadd.f32 1.0, %v15499_v14  ;;  %v21049_v20 = vmul.f32 0.5, %v10702_v4  ;;  %v21056_v7 = vmul.f32 0.5, %v10895_v5 }
0x12ff   : > { %v15503_v23 = vpop.eup %15502  ;;  %15520 = verf.f32 %v11157_v55  ;;  %v10705_v56 = vpop.f32.mrb[112].mxu1  ;;  %v21033_v35 = vmul.f32 %v11401_v21, %v11017_v19  ;;  %v11402_v17 = vadd.f32 1.0, %v15501_v18 }
0x1300   : > { %v10898_v34 = vpop.f32.mrb[112].mxu0  ;;  %v15505_v12 = vpop.eup %15504  ;;  %15522 = verf.f32 %v11159_v2  ;;  %v21036_v13 = vadd.f32 %v10705_v56, %v20482_v57  ;;  %v21038_v22 = vmul.f32 %v11403_v1, %v11019_v58  ;;  %v11404_v44 = vadd.f32 1.0, %v15503_v23 }
0x1301   : > { %v10707_v53 = vpop.f32.mrb[113].mxu1  ;;  %v10900_v29 = vpop.f32.mrb[113].mxu0  ;;  %v11405_v32 = vadd.f32 1.0, %v15505_v12  ;;  %v10899_v11 = vadd.f32 %v10898_v34, %v20484_v36  ;;  %15524 = verf.f32 %v11158_v24  ;;  %v21054_v10 = vmul.f32 %v11402_v17, %v21011_v37 }
0x1302   : > { %v15507_v26 = vpop.eup %15506  ;;  %v10709_v61 = vpop.f32.mrb[114].mxu1  ;;  %v11161_v42 = vmul.f32 0.70710677, %v21036_v13  ;;  %v10708_v49 = vadd.f32 %v10707_v53, %v20486_v0  ;;  %15526 = verf.f32 %v11160_v27  ;;  %v21059_v14 = vmul.f32 %v11404_v44, %v21015_v41 }
0x1303   : > { %v10902_v47 = vpop.f32.mrb[114].mxu0  ;;  %v11407_v39 = vadd.f32 1.0, %v15507_v26  ;;  %v10711_v8 = vpop.f32.mrb[115].mxu1  ;;  %v21040_v43 = vmul.f32 %v11405_v32, %v11021_v40  ;;  %v11163_v3 = vmul.f32 0.70710677, %v10899_v11  ;;  %v10901_v4 = vadd.f32 %v10900_v29, %v20488_v15 }
0x1304   : > { %v10904_v52 = vpop.f32.mrb[115].mxu0  ;;  %v15509_v28 = vpop.eup %15508  ;;  %15528 = verf.f32 %v11161_v42  ;;  %v11162_v55 = vmul.f32 0.70710677, %v10708_v49  ;;  %v10710_v37 = vadd.f32 %v10709_v61, %v20482_v57  ;;  %v10903_v5 = vadd.f32 %v10902_v47, %v20484_v36 }
0x1305   : > { %v15511_v50 = vpop.eup %15510  ;;  %v21043_v54 = vmul.f32 %v11407_v39, %v11023_v59  ;;  %v11617_v51 = vpack.c.bf16 %v21040_v43, %v21033_v35  ;;  %v11406_v30 = vadd.f32 1.0, %v15509_v28  ;;  %15530 = verf.f32 %v11163_v3 }
0x1306   : > { %v15513_v48 = vpop.eup %15512  ;;  %v11409_v38 = vadd.f32 1.0, %v15511_v50  ;;  %v11164_v47 = vmul.f32 0.70710677, %v10901_v4  ;;  %v11165_v39 = vmul.f32 0.70710677, %v10710_v37  ;;  %15532 = verf.f32 %v11162_v55 }
0x1307   : > { %v15515_v6 = vpop.eup %15514  ;;  %v11619_v19 = vpack.c.bf16 %v21043_v54, %v21038_v22  ;;  %v11411_v62 = vadd.f32 1.0, %v15513_v48  ;;  %v10715_v40 = vpop.f32.mrb[116].mxu1  ;;  %v11534_v41 = vmul.f32 %v11406_v30, %v21017_v45  ;;  %v11167_v45 = vmul.f32 0.70710677, %v10903_v5 }
0x1308   : > { %v15517_v58 = vpop.eup %15516  ;;  %v10908_v9 = vpop.f32.mrb[116].mxu0  ;;  %v11408_v23 = vadd.f32 1.0, %v15515_v6  ;;  %v21068_v12 = vmul.f32 %v11409_v38, %v21023_v16  ;;  %15534 = verf.f32 %v11164_v47  ;;  %v10712_v17 = vadd.f32 %v10711_v8, %v20486_v0 }
0x1309   : > { %v15519_v59 = vpop.eup %15518  ;;  %v10717_v18 = vpop.f32.mrb[117].mxu1  ;;  %v11410_v53 = vadd.f32 1.0, %v15517_v58  ;;  %v21075_v24 = vmul.f32 %v11411_v62, %v21025_v46  ;;  %v10905_v50 = vadd.f32 %v10904_v52, %v20488_v15  ;;  %v11033_v42 = vmul.f32 0.5, %v21036_v13 }
0x130a   : > { %v10910_v21 = vpop.f32.mrb[117].mxu0  ;;  %v15521_v2 = vpop.eup %15520  ;;  %v11412_v27 = vadd.f32 1.0, %v15519_v59  ;;  %v11536_v44 = vmul.f32 %v11408_v23, %v21021_v63  ;;  %15536 = verf.f32 %v11165_v39  ;;  %v11035_v6 = vmul.f32 0.5, %v10899_v11 }
0x130b   : > { %v10719_v1 = vpop.f32.mrb[118].mxu1  ;;  %v21064_v56 = vpop.f32.mrb[118].mxu0  ;;  %v11413_v29 = vadd.f32 1.0, %v15521_v2  ;;  %15538 = verf.f32 %v11167_v45  ;;  %v21091_v8 = vmul.f32 %v11410_v53, %v21027_v25  ;;  %v21093_v52 = vmul.f32 0.5, %v10708_v49 }
0x130c   : > { %v15523_v34 = vpop.eup %15522  ;;  %v21070_v26 = vpop.f32.mrb[119].mxu1  ;;  %v11168_v63 = vmul.f32 0.70710677, %v10905_v50  ;;  %v21096_v38 = vadd.f32 %v10715_v40, %v20482_v57  ;;  %v21099_v13 = vmul.f32 %v11412_v27, %v21029_v33  ;;  %v21102_v58 = vadd.f32 %v10908_v9, %v20484_v36 }
0x130d   : > { %v21072_v32 = vpop.f32.mrb[119].mxu0  ;;  %v11415_v61 = vadd.f32 1.0, %v15523_v34  ;;  %v21078_v28 = vmul.f32 %v11413_v29, %v21031_v31  ;;  %v15525_v48 = vpop.eup %15524  ;;  %v11618_v11 = vpack.c.bf16 %v11534_v41, %v21054_v10  ;;  %v11620_v49 = vpack.c.bf16 %v11536_v44, %v21059_v14 }
0x130e   : > { %v15527_v30 = vpop.eup %15526  ;;  %v11414_v3 = vadd.f32 1.0, %v15525_v48  ;;  %v11169_v25 = vmul.f32 0.70710677, %v21096_v38  ;;  %v11036_v40 = vmul.f32 0.5, %v10901_v4  ;;  %v11171_v2 = vmul.f32 0.70710677, %v21102_v58 }
0x130f   : > { %v21080_v16 = vmul.f32 %v11415_v61, %v11031_v60  ;;  %v11621_v46 = vpack.c.bf16 %v21078_v28, %v21068_v12  ;;  %v11166_v60 = vmul.f32 0.70710677, %v10712_v17  ;;  %v15529_v62 = vpop.eup %15528  ;;  %v11416_v55 = vadd.f32 1.0, %v15527_v30  ;;  %12016 = vmatprep.mubr.bf16.mxu1 %v11618_v11  ;;  %12177 = vmatprep.mubr.bf16.mxu0 %v11620_v49 }
0x1310   : > { %v15531_v59 = vpop.eup %15530  ;;  %v21109_v33 = vadd.f32 %v10717_v18, %v20486_v0  ;;  %v11037_v9 = vmul.f32 0.5, %v10710_v37  ;;  %v21112_v10 = vadd.f32 %v10910_v21, %v20488_v15  ;;  %12017 = vmatmul.mubr.bf16.gmra.mrb[168].mxu1 %v11617_v51  ;;  %v21118_v14 = vadd.f32 %v10719_v1, %v20482_v57  ;;  %12178 = vmatmul.mubr.bf16.gmra.mrb[168].mxu0 %v11619_v19 }
0x1311   : > { %v11623_v31 = vpack.c.bf16 %v21080_v16, %v21075_v24  ;;  %15540 = verf.f32 %v11166_v60  ;;  %v11417_v4 = vadd.f32 1.0, %v15529_v62  ;;  %v11039_v23 = vmul.f32 0.5, %v10903_v5  ;;  %v15533_v18 = vpop.eup %15532 }
0x1312   : > { %15542 = verf.f32 %v11168_v63  ;;  %v11170_v34 = vmul.f32 0.70710677, %v21109_v33  ;;  %v11542_v21 = vmul.f32 %v11414_v3, %v21049_v20  ;;  %v11419_v37 = vadd.f32 1.0, %v15531_v59  ;;  %v15535_v43 = vpop.eup %15534 }
0x1313   : > { %15544 = verf.f32 %v11169_v25  ;;  %v11038_v41 = vmul.f32 0.5, %v10712_v17  ;;  %v11172_v35 = vmul.f32 0.70710677, %v21112_v10  ;;  %v11544_v51 = vmul.f32 %v11416_v55, %v21056_v7 }
0x1314   : > { %15546 = verf.f32 %v11171_v2  ;;  %v11173_v5 = vmul.f32 0.70710677, %v21118_v14  ;;  %v21130_v1 = vadd.f32 %v21064_v56, %v20484_v36  ;;  %v15537_v53 = vpop.eup %15536  ;;  %v11040_v22 = vmul.f32 0.5, %v10905_v50 }
0x1315   : > { %15548 = verf.f32 %v11170_v34  ;;  %v21134_v54 = vadd.f32 %v21070_v26, %v20486_v0  ;;  %v21138_v20 = vadd.f32 %v21072_v32, %v20488_v15  ;;  %v15539_v19 = vpop.eup %15538  ;;  %v21140_v7 = vmul.f32 %v11417_v4, %v11033_v42 }
0x1316   : > { %15550 = verf.f32 %v11172_v35  ;;  %v11421_v29 = vadd.f32 1.0, %v15537_v53  ;;  %v11175_v61 = vmul.f32 0.70710677, %v21130_v1  ;;  %v21143_v56 = vmul.f32 %v11419_v37, %v11035_v6 }
0x1317   : > { %15552 = verf.f32 %v11173_v5  ;;  %v11418_v47 = vadd.f32 1.0, %v15533_v18  ;;  %v11423_v39 = vadd.f32 1.0, %v15539_v19  ;;  %v11174_v27 = vmul.f32 0.70710677, %v21134_v54 }
0x1318   : > { %v11420_v26 = vadd.f32 1.0, %v15535_v43  ;;  %v21146_v17 = vmul.f32 %v11421_v29, %v11037_v9  ;;  %15554 = verf.f32 %v11175_v61  ;;  %v11176_v32 = vmul.f32 0.70710677, %v21138_v20 }
0x1319   : > { %v21149_v44 = vmul.f32 %v11423_v39, %v11039_v23  ;;  %15556 = verf.f32 %v11174_v27  ;;  %v11622_v48 = vpack.c.bf16 %v11542_v21, %v21091_v8  ;;  %v11624_v30 = vpack.c.bf16 %v11544_v51, %v21099_v13 }
0x131a   : > { %v11625_v6 = vpack.c.bf16 %v21146_v17, %v21140_v7  ;;  %15558 = verf.f32 %v11176_v32  ;;  %v11546_v11 = vmul.f32 %v11418_v47, %v21093_v52  ;;  %v11548_v49 = vmul.f32 %v11420_v26, %v11036_v40 }
0x131b   : > { %v15541_v45 = vpop.eup %15540  ;;  %v11627_v62 = vpack.c.bf16 %v21149_v44, %v21143_v56  ;;  %12024 = vmatprep.mubr.bf16.mxu1 %v11622_v48  ;;  %v11041_v8 = vmul.f32 0.5, %v21096_v38  ;;  %v11043_v55 = vmul.f32 0.5, %v21102_v58  ;;  %12185 = vmatprep.mubr.bf16.mxu0 %v11624_v30  ;;  %v11042_v12 = vmul.f32 0.5, %v21109_v33 }
0x131c   : > { %v15543_v50 = vpop.eup %15542  ;;  %v11422_v42 = vadd.f32 1.0, %v15541_v45  ;;  %12025 = vmatmul.mubr.bf16.gmra.mrb[172].mxu1 %v11621_v46  ;;  %12186 = vmatmul.mubr.bf16.gmra.mrb[172].mxu0 %v11623_v31  ;;  %v11044_v21 = vmul.f32 0.5, %v21112_v10  ;;  %v11045_v5 = vmul.f32 0.5, %v21118_v14  ;;  %v11047_v53 = vmul.f32 0.5, %v21130_v1 }
0x131d   : > { %v11424_v60 = vadd.f32 1.0, %v15543_v50  ;;  %v15545_v63 = vpop.eup %15544  ;;  %v11048_v10 = vmul.f32 0.5, %v21138_v20 }
0x131e   : > { %v11550_v3 = vmul.f32 %v11422_v42, %v11038_v41  ;;  %v15547_v25 = vpop.eup %15546  ;;  %v11425_v52 = vadd.f32 1.0, %v15545_v63 }
0x131f   : > { %v11552_v59 = vmul.f32 %v11424_v60, %v11040_v22  ;;  %v15549_v23 = vpop.eup %15548  ;;  %v11427_v34 = vadd.f32 1.0, %v15547_v25  ;;  %v11046_v22 = vmul.f32 0.5, %v21134_v54 }
0x1320   : > { %v10725_v13 = vpop.f32.mrb[120].mxu1  ;;  %v10918_v2 = vpop.f32.mrb[120].mxu0  ;;  %v11626_v9 = vpack.c.bf16 %v11550_v3, %v11546_v11  ;;  %v11426_v31 = vadd.f32 1.0, %v15549_v23  ;;  %v11553_v19 = vmul.f32 %v11425_v52, %v11041_v8 }
0x1321   : > { %v21167_v40 = vadd.f32 %v10725_v13, %v20482_v57  ;;  %v21170_v38 = vadd.f32 %v10918_v2, %v20484_v36  ;;  %v10727_v58 = vpop.f32.mrb[121].mxu1  ;;  %v10920_v4 = vpop.f32.mrb[121].mxu0  ;;  %v11628_v28 = vpack.c.bf16 %v11552_v59, %v11548_v49  ;;  %v11555_v47 = vmul.f32 %v11427_v34, %v11043_v55 }
0x1322   : > { %v21174_v46 = vadd.f32 %v10727_v58, %v20486_v0  ;;  %v10729_v18 = vpop.f32.mrb[122].mxu1  ;;  %v10922_v24 = vpop.f32.mrb[122].mxu0  ;;  %12032 = vmatprep.mubr.bf16.mxu1 %v11626_v9  ;;  %v21179_v41 = vadd.f32 %v10920_v4, %v20488_v15  ;;  %v11554_v39 = vmul.f32 %v11426_v31, %v11042_v12 }
0x1323   : > { %v15551_v16 = vpop.eup %15550  ;;  %v11177_v37 = vmul.f32 0.70710677, %v21167_v40  ;;  %v10731_v35 = vpop.f32.mrb[123].mxu1  ;;  %12193 = vmatprep.mubr.bf16.mxu0 %v11628_v28  ;;  %v11179_v29 = vmul.f32 0.70710677, %v21170_v38  ;;  %v10730_v54 = vadd.f32 %v10729_v18, %v20482_v57  ;;  %v21190_v20 = vadd.f32 %v10922_v24, %v20484_v36 }
0x1324   : > { %v10924_v43 = vpop.f32.mrb[123].mxu0  ;;  %v15553_v51 = vpop.eup %15552  ;;  %v11428_v33 = vadd.f32 1.0, %v15551_v16  ;;  %v11178_v27 = vmul.f32 0.70710677, %v21174_v46  ;;  %v11180_v1 = vmul.f32 0.70710677, %v21179_v41  ;;  %12033 = vmatmul.mubr.bf16.gmra.mrb[176].mxu1 %v11625_v6  ;;  %v21193_v42 = vadd.f32 %v10731_v35, %v20486_v0  ;;  %12194 = vmatmul.mubr.bf16.gmra.mrb[176].mxu0 %v11627_v62 }
0x1325   : > { %v11429_v7 = vadd.f32 1.0, %v15553_v51  ;;  %v15555_v61 = vpop.eup %15554  ;;  %15560 = verf.f32 %v11177_v37  ;;  %v11181_v6 = vmul.f32 0.70710677, %v10730_v54  ;;  %v11183_v59 = vmul.f32 0.70710677, %v21190_v20 }
0x1326   : > { %v15557_v45 = vpop.eup %15556  ;;  %v11431_v14 = vadd.f32 1.0, %v15555_v61  ;;  %v11556_v32 = vmul.f32 %v11428_v33, %v11044_v21  ;;  %15562 = verf.f32 %v11179_v29  ;;  %v11182_v2 = vmul.f32 0.70710677, %v21193_v42 }
0x1327   : > { %v11557_v26 = vmul.f32 %v11429_v7, %v11045_v5  ;;  %v15559_v17 = vpop.eup %15558  ;;  %v11430_v50 = vadd.f32 1.0, %v15557_v45  ;;  %15564 = verf.f32 %v11178_v27  ;;  %v10925_v56 = vadd.f32 %v10924_v43, %v20488_v15 }
0x1328   : > { %v10735_v48 = vpop.f32.mrb[124].mxu1  ;;  %v10928_v60 = vpop.f32.mrb[124].mxu0  ;;  %v11559_v63 = vmul.f32 %v11431_v14, %v11047_v53  ;;  %v11432_v11 = vadd.f32 1.0, %v15559_v17  ;;  %15566 = verf.f32 %v11180_v1  ;;  %v11049_v35 = vmul.f32 0.5, %v21167_v40 }
0x1329   : > { %v11629_v30 = vpack.c.bf16 %v11557_v26, %v11553_v19  ;;  %v10737_v3 = vpop.f32.mrb[125].mxu1  ;;  %v10930_v25 = vpop.f32.mrb[125].mxu0  ;;  %v11558_v49 = vmul.f32 %v11430_v50, %v11046_v22  ;;  %15568 = verf.f32 %v11181_v6  ;;  %v21202_v44 = vadd.f32 %v10735_v48, %v20482_v57 }
0x132a   : > { %v10739_v8 = vpop.f32.mrb[126].mxu1  ;;  %v11631_v55 = vpack.c.bf16 %v11559_v63, %v11555_v47  ;;  %v11560_v13 = vmul.f32 %v11432_v11, %v11048_v10  ;;  %v10932_v52 = vpop.f32.mrb[126].mxu0  ;;  %15570 = verf.f32 %v11183_v59  ;;  %v21205_v23 = vadd.f32 %v10928_v60, %v20484_v36 }
0x132b   : > { %v10741_v9 = vpop.f32.mrb[127].mxu1  ;;  %v11630_v58 = vpack.c.bf16 %v11558_v49, %v11554_v39  ;;  %v10934_v62 = vpop.f32.mrb[127].mxu0  ;;  %v21208_v34 = vadd.f32 %v10737_v3, %v20486_v0  ;;  %15572 = verf.f32 %v11182_v2  ;;  %v11184_v12 = vmul.f32 0.70710677, %v10925_v56 }
0x132c   : > { %v11632_v4 = vpack.c.bf16 %v11560_v13, %v11556_v32  ;;  %v11185_v28 = vmul.f32 0.70710677, %v21202_v44  ;;  %v11187_v18 = vmul.f32 0.70710677, %v21205_v23  ;;  %v21214_v31 = vadd.f32 %v10930_v25, %v20488_v15 }
0x132d   : > { %12040 = vmatprep.mubr.bf16.mxu1 %v11630_v58  ;;  %15574 = verf.f32 %v11184_v12  ;;  %v11186_v16 = vmul.f32 0.70710677, %v21208_v34  ;;  %v10740_v21 = vadd.f32 %v10739_v8, %v20482_v57  ;;  %v21218_v37 = vadd.f32 %v10932_v52, %v20484_v36 }
0x132e   : > { %12201 = vmatprep.mubr.bf16.mxu0 %v11632_v4  ;;  %12041 = vmatmul.mubr.bf16.gmra.mrb[180].mxu1 %v11629_v30  ;;  %15576 = verf.f32 %v11185_v28  ;;  %v11051_v51 = vmul.f32 0.5, %v21170_v38  ;;  %v11050_v33 = vmul.f32 0.5, %v21174_v46  ;;  %v11188_v5 = vmul.f32 0.70710677, %v21214_v31 }
0x132f   : > { %v15561_v24 = vpop.eup %15560  ;;  %12202 = vmatmul.mubr.bf16.gmra.mrb[180].mxu0 %v11631_v55  ;;  %15578 = verf.f32 %v11187_v18  ;;  %v11052_v19 = vmul.f32 0.5, %v21179_v41  ;;  %v11189_v57 = vmul.f32 0.70710677, %v10740_v21  ;;  %v11053_v36 = vmul.f32 0.5, %v10730_v54 }
0x1330   : > { %v15563_v43 = vpop.eup %15562  ;;  %v11433_v22 = vadd.f32 1.0, %v15561_v24  ;;  %15580 = verf.f32 %v11186_v16  ;;  %v11191_v40 = vmul.f32 0.70710677, %v21218_v37  ;;  %v10742_v10 = vadd.f32 %v10741_v9, %v20486_v0 }
0x1331   : > { %v15565_v53 = vpop.eup %15564  ;;  %15582 = verf.f32 %v11188_v5  ;;  %v11435_v38 = vadd.f32 1.0, %v15563_v43  ;;  %v11055_v46 = vmul.f32 0.5, %v21190_v20  ;;  %v10935_v61 = vadd.f32 %v10934_v62, %v20488_v15 }
0x1332   : > { %v15567_v7 = vpop.eup %15566  ;;  %15584 = verf.f32 %v11189_v57  ;;  %v11434_v39 = vadd.f32 1.0, %v15565_v53  ;;  %v11190_v41 = vmul.f32 0.70710677, %v10742_v10  ;;  %v11561_v26 = vmul.f32 %v11433_v22, %v11049_v35 }
0x1333   : > { %v15569_v29 = vpop.eup %15568  ;;  %15586 = verf.f32 %v11191_v40  ;;  %v11054_v1 = vmul.f32 0.5, %v21193_v42  ;;  %v11192_v54 = vmul.f32 0.70710677, %v10935_v61  ;;  %v11436_v17 = vadd.f32 1.0, %v15567_v7 }
0x1334   : > { %v15571_v47 = vpop.eup %15570  ;;  %v11437_v27 = vadd.f32 1.0, %v15569_v29  ;;  %15588 = verf.f32 %v11190_v41  ;;  %v11563_v20 = vmul.f32 %v11435_v38, %v11051_v51  ;;  %v11056_v60 = vmul.f32 0.5, %v10925_v56 }
0x1335   : > { %v15573_v45 = vpop.eup %15572  ;;  %v11439_v14 = vadd.f32 1.0, %v15571_v47  ;;  %15590 = verf.f32 %v11192_v54  ;;  %v11562_v15 = vmul.f32 %v11434_v39, %v11050_v33  ;;  %v11564_v6 = vmul.f32 %v11436_v17, %v11052_v19 }
0x1336   : > { %v11565_v0 = vmul.f32 %v11437_v27, %v11053_v36  ;;  %v11438_v32 = vadd.f32 1.0, %v15573_v45  ;;  %v11057_v56 = vmul.f32 0.5, %v21202_v44  ;;  %v11061_v62 = vmul.f32 0.5, %v10740_v21 }
0x1337   : > { %v15575_v50 = vpop.eup %15574  ;;  %v11567_v48 = vmul.f32 %v11439_v14, %v11055_v46  ;;  %v11059_v12 = vmul.f32 0.5, %v21205_v23  ;;  %v11063_v18 = vmul.f32 0.5, %v21218_v37  ;;  %v11058_v43 = vmul.f32 0.5, %v21208_v34 }
0x1338   : > { %v11633_v30 = vpack.c.bf16 %v11565_v0, %v11561_v26  ;;  %v11566_v63 = vmul.f32 %v11438_v32, %v11054_v1  ;;  %v11440_v11 = vadd.f32 1.0, %v15575_v50  ;;  %v15577_v3 = vpop.eup %15576  ;;  %v11062_v44 = vmul.f32 0.5, %v10742_v10  ;;  %v21235_v10 = vld [vmem:[#allocation20] ss:$0 sm:$0xff] }
0x1339   : > { %v11635_v25 = vpack.c.bf16 %v11567_v48, %v11563_v20  ;;  %v15579_v49 = vpop.eup %15578  ;;  %v11441_v13 = vadd.f32 1.0, %v15577_v3  ;;  %v11060_v19 = vmul.f32 0.5, %v21214_v31  ;;  %v11064_v23 = vmul.f32 0.5, %v10935_v61  ;;  %v22025_v20 = vld [vmem:[#allocation128_spill] sm:$0xff] }
0x133a   : > { %v11568_v59 = vmul.f32 %v11440_v11, %v11056_v60  ;;  %v11634_v42 = vpack.c.bf16 %v11566_v63, %v11562_v15  ;;  %v15581_v8 = vpop.eup %15580  ;;  %v11443_v9 = vadd.f32 1.0, %v15579_v49  ;;  %v22026_v15 = vld [vmem:[#allocation126_spill] sm:$0xff] }
0x133b   : > { %v15583_v55 = vpop.eup %15582  ;;  %v11442_v28 = vadd.f32 1.0, %v15581_v8  ;;  %v11569_v35 = vmul.f32 %v11441_v13, %v11057_v56  ;;  %v22027_v56 = vld [vmem:[#allocation129_spill] sm:$0xff] }
0x133c   : > { %12048 = vmatprep.mubr.bf16.mxu1 %v11634_v42  ;;  %v11636_v2 = vpack.c.bf16 %v11568_v59, %v11564_v6  ;;  %v15585_v52 = vpop.eup %15584  ;;  %v11444_v51 = vadd.f32 1.0, %v15583_v55  ;;  %v11571_v53 = vmul.f32 %v11443_v9, %v11059_v12 }
0x133d   : > { %12049 = vmatmul.mubr.bf16.gmra.mrb[184].mxu1 %v11633_v30  ;;  %v15587_v58 = vpop.eup %15586  ;;  %v11445_v4 = vadd.f32 1.0, %v15585_v52  ;;  %v11570_v36 = vmul.f32 %v11442_v28, %v11058_v43 }
0x133e   : > { %12209 = vmatprep.mubr.bf16.mxu0 %v11636_v2  ;;  %v11447_v24 = vadd.f32 1.0, %v15587_v58  ;;  %v15589_v16 = vpop.eup %15588  ;;  %v11572_v29 = vmul.f32 %v11444_v51, %v11060_v19 }
0x133f   : > { %12210 = vmatmul.mubr.bf16.gmra.mrb[184].mxu0 %v11635_v25  ;;  %v11573_v33 = vmul.f32 %v11445_v4, %v11061_v62  ;;  %v15591_v5 = vpop.eup %15590  ;;  %v11446_v21 = vadd.f32 1.0, %v15589_v16 }
0x1340   : > { %v11575_v22 = vmul.f32 %v11447_v24, %v11063_v18  ;;  %v11448_v7 = vadd.f32 1.0, %v15591_v5  ;;  %v22028_v24 = vld [vmem:[#allocation130_spill] sm:$0xff] }
0x1341   : > { %v11637_v57 = vpack.c.bf16 %v11573_v33, %v11569_v35  ;;  %v11574_v40 = vmul.f32 %v11446_v21, %v11062_v44 }
0x1342   : > { %v11639_v37 = vpack.c.bf16 %v11575_v22, %v11571_v53  ;;  %v11576_v38 = vmul.f32 %v11448_v7, %v11064_v23  ;;  %v22029_v7 = vld [vmem:[#allocation131_spill] sm:$0xff] }
0x1343   : > { %v11638_v46 = vpack.c.bf16 %v11574_v40, %v11570_v36 }
0x1344   : > { %v11640_v47 = vpack.c.bf16 %v11576_v38, %v11572_v29 }
0x1345   : > { %12056 = vmatprep.mubr.bf16.mxu1 %v11638_v46  ;;  %v22030_v46 = vld [vmem:[#allocation132_spill] sm:$0xff] }
0x1346   : > { %12217 = vmatprep.mubr.bf16.mxu0 %v11640_v47  ;;  %12057 = vmatmul.mubr.bf16.gmra.mrb[188].mxu1 %v11637_v57 }
0x1347   : > { %12218 = vmatmul.mubr.bf16.gmra.mrb[188].mxu0 %v11639_v37 }
0x134e   : > { %v13075_v34 = vpop.f32.mrb[128].mxu1 }
0x134f   : > { %v13076_v31 = vpop.f32.mrb[129].mxu1 }
0x1350   : > { %v13187_v39 = vpop.f32.mrb[128].mxu0  ;;  %v13077_v27 = vadd.f32 %v13076_v31, %v13075_v34  ;;  %v13078_v41 = vpop.f32.mrb[130].mxu1 }
0x1351   : > { %v13188_v61 = vpop.f32.mrb[129].mxu0  ;;  %v13079_v14 = vpop.f32.mrb[131].mxu1 }
0x1352   : > { %v13189_v45 = vadd.f32 %v13188_v61, %v13187_v39  ;;  %v13190_v26 = vpop.f32.mrb[130].mxu0  ;;  %v11939_v1 = vadd.f32 %v13077_v27, %v21235_v10  ;;  %v13080_v54 = vadd.f32 %v13079_v14, %v13078_v41 }
0x1353   : > { %v13191_v17 = vpop.f32.mrb[131].mxu0 }
0x1354   : > { %v13192_v0 = vadd.f32 %v13191_v17, %v13190_v26  ;;  %v12100_v32 = vadd.f32 %v13189_v45, %v11939_v1  ;;  %v11942_v50 = vadd.f32 %v13080_v54, %v21235_v10 }
0x1356   : > { %v12226_v48 = vadd.f32 %v12100_v32, %v22025_v20  ;;  %v12103_v60 = vadd.f32 %v13192_v0, %v11942_v50  ;;  %v22031_v0 = vld [vmem:[#allocation50_spill] sm:$0xff]  ;;  %v22032_v20 = vld [vmem:[#allocation52_spill] sm:$0xff] }
0x1357   : > { %v13081_v63 = vpop.f32.mrb[132].mxu1 }
0x1358   : > { %12258 = vst [vmem:[%s21242_s29] sm:$0xff] %v12226_v48  ;;  %v12227_v30 = vadd.f32 %v12103_v60, %v22026_v15  ;;  %v13082_v3 = vpop.f32.mrb[133].mxu1 }
0x1359   : > { %v13193_v11 = vpop.f32.mrb[132].mxu0  ;;  %v13083_v25 = vadd.f32 %v13082_v3, %v13081_v63  ;;  %v13084_v6 = vpop.f32.mrb[134].mxu1 }
0x135a   : > { %12259 = vst [vmem:[%s21242_s29 + $0x8] sm:$0xff] %v12227_v30  ;;  %v13194_v49 = vpop.f32.mrb[133].mxu0  ;;  %v13085_v8 = vpop.f32.mrb[135].mxu1 }
0x135b   : > { %v13195_v59 = vadd.f32 %v13194_v49, %v13193_v11  ;;  %v13196_v42 = vpop.f32.mrb[134].mxu0  ;;  %v11947_v55 = vadd.f32 %v13083_v25, %v21235_v10  ;;  %v13086_v13 = vadd.f32 %v13085_v8, %v13084_v6 }
0x135c   : > { %v13197_v2 = vpop.f32.mrb[135].mxu0 }
0x135d   : > { %v13198_v52 = vadd.f32 %v13197_v2, %v13196_v42  ;;  %v12108_v9 = vadd.f32 %v13195_v59, %v11947_v55  ;;  %v11950_v58 = vadd.f32 %v13086_v13, %v21235_v10 }
0x135f   : > { %v12228_v62 = vadd.f32 %v12108_v9, %v22027_v56  ;;  %v12111_v4 = vadd.f32 %v13198_v52, %v11950_v58  ;;  %v13087_v12 = vpop.f32.mrb[136].mxu1  ;;  %v22033_v52 = vld [vmem:[#allocation56_spill] sm:$0xff]  ;;  %v22034_v56 = vld [vmem:[#allocation58_spill] sm:$0xff] }
0x1360   : > { %v13088_v18 = vpop.f32.mrb[137].mxu1 }
0x1361   : > { %v13199_v28 = vpop.f32.mrb[136].mxu0  ;;  %12260 = vst [vmem:[%s21242_s29 + $0x10] sm:$0xff] %v12228_v62  ;;  %v12229_v16 = vadd.f32 %v12111_v4, %v22028_v24  ;;  %v13089_v35 = vadd.f32 %v13088_v18, %v13087_v12  ;;  %v13090_v51 = vpop.f32.mrb[138].mxu1 }
0x1362   : > { %v13200_v43 = vpop.f32.mrb[137].mxu0  ;;  %v13091_v53 = vpop.f32.mrb[139].mxu1 }
0x1363   : > { %v13201_v33 = vadd.f32 %v13200_v43, %v13199_v28  ;;  %v13202_v5 = vpop.f32.mrb[138].mxu0  ;;  %12261 = vst [vmem:[%s21242_s29 + $0x18] sm:$0xff] %v12229_v16  ;;  %v11955_v22 = vadd.f32 %v13089_v35, %v21235_v10  ;;  %v13092_v44 = vadd.f32 %v13091_v53, %v13090_v51 }
0x1364   : > { %v13203_v21 = vpop.f32.mrb[139].mxu0 }
0x1365   : > { %v13204_v19 = vadd.f32 %v13203_v21, %v13202_v5  ;;  %v12116_v57 = vadd.f32 %v13201_v33, %v11955_v22  ;;  %v11958_v23 = vadd.f32 %v13092_v44, %v21235_v10 }
0x1367   : > { %v12230_v36 = vadd.f32 %v12116_v57, %v22029_v7  ;;  %v12119_v37 = vadd.f32 %v13204_v19, %v11958_v23  ;;  %v22035_v19 = vld [vmem:[#allocation54_spill] sm:$0xff]  ;;  %v22036_v7 = vld [vmem:[#allocation99_spill] sm:$0xff] }
0x1369   : > { %v13093_v40 = vpop.f32.mrb[140].mxu1  ;;  %12262 = vst [vmem:[%s21242_s29 + $0x20] sm:$0xff] %v12230_v36  ;;  %v12231_v47 = vadd.f32 %v12119_v37, %v22030_v46 }
0x136a   : > { %v13205_v29 = vpop.f32.mrb[140].mxu0  ;;  %v13094_v38 = vpop.f32.mrb[141].mxu1 }
0x136b   : > { %v13095_v34 = vadd.f32 %v13094_v38, %v13093_v40  ;;  %v13206_v39 = vpop.f32.mrb[141].mxu0  ;;  %v13096_v31 = vpop.f32.mrb[142].mxu1  ;;  %12263 = vst [vmem:[%s21242_s29 + $0x28] sm:$0xff] %v12231_v47 }
0x136c   : > { %v13207_v27 = vadd.f32 %v13206_v39, %v13205_v29  ;;  %v13208_v61 = vpop.f32.mrb[142].mxu0  ;;  %v13097_v41 = vpop.f32.mrb[143].mxu1 }
0x136d   : > { %v11963_v45 = vadd.f32 %v13095_v34, %v21235_v10  ;;  %v13098_v26 = vadd.f32 %v13097_v41, %v13096_v31  ;;  %v13209_v14 = vpop.f32.mrb[143].mxu0 }
0x136e   : > { %v13210_v1 = vadd.f32 %v13209_v14, %v13208_v61 }
0x136f   : > { %v12124_v54 = vadd.f32 %v13207_v27, %v11963_v45  ;;  %v11966_v17 = vadd.f32 %v13098_v26, %v21235_v10 }
0x1371   : > { %v12232_v32 = vadd.f32 %v12124_v54, %v22031_v0  ;;  %v12127_v50 = vadd.f32 %v13210_v1, %v11966_v17  ;;  %v22037_v1 = vld [vmem:[#allocation101_spill] sm:$0xff] }
0x1373   : > { %12264 = vst [vmem:[%s21242_s29 + $0x30] sm:$0xff] %v12232_v32  ;;  %v12233_v48 = vadd.f32 %v12127_v50, %v22032_v20  ;;  %v22038_v50 = vld [vmem:[#allocation60_spill] sm:$0xff] }
0x1375   : > { %12265 = vst [vmem:[%s21242_s29 + $0x38] sm:$0xff] %v12233_v48 }
0x1385   : > { %v13099_v60 = vpop.f32.mrb[144].mxu1 }
0x1386   : > { %v13100_v15 = vpop.f32.mrb[145].mxu1 }
0x1387   : > { %v13101_v30 = vadd.f32 %v13100_v15, %v13099_v60  ;;  %v13102_v63 = vpop.f32.mrb[146].mxu1 }
0x1388   : > { %v13103_v3 = vpop.f32.mrb[147].mxu1 }
0x1389   : > { %v13211_v11 = vpop.f32.mrb[144].mxu0  ;;  %v11971_v25 = vadd.f32 %v13101_v30, %v21235_v10  ;;  %v13104_v6 = vadd.f32 %v13103_v3, %v13102_v63 }
0x138a   : > { %v13212_v49 = vpop.f32.mrb[145].mxu0 }
0x138b   : > { %v13213_v59 = vadd.f32 %v13212_v49, %v13211_v11  ;;  %v13214_v42 = vpop.f32.mrb[146].mxu0  ;;  %v11974_v8 = vadd.f32 %v13104_v6, %v21235_v10 }
0x138c   : > { %v13215_v55 = vpop.f32.mrb[147].mxu0 }
0x138d   : > { %v12132_v13 = vadd.f32 %v13213_v59, %v11971_v25  ;;  %v13216_v2 = vadd.f32 %v13215_v55, %v13214_v42  ;;  %v22039_v55 = vld [vmem:[#allocation62_spill] sm:$0xff] }
0x138f   : > { %v12234_v9 = vadd.f32 %v12132_v13, %v22033_v52  ;;  %v12135_v58 = vadd.f32 %v13216_v2, %v11974_v8 }
0x1391   : > { %12266 = vst [vmem:[%s21242_s29 + $0x40] sm:$0xff] %v12234_v9  ;;  %v12235_v62 = vadd.f32 %v12135_v58, %v22034_v56  ;;  %v22040_v58 = vld [vmem:[#allocation89_spill] sm:$0xff] }
0x1392   : > { %v13105_v4 = vpop.f32.mrb[148].mxu1 }
0x1393   : > { %12267 = vst [vmem:[%s21242_s29 + $0x48] sm:$0xff] %v12235_v62  ;;  %v13106_v12 = vpop.f32.mrb[149].mxu1 }
0x1394   : > { %v13107_v28 = vadd.f32 %v13106_v12, %v13105_v4  ;;  %v13108_v18 = vpop.f32.mrb[150].mxu1 }
0x1395   : > { %v13109_v24 = vpop.f32.mrb[151].mxu1 }
0x1396   : > { %v13217_v16 = vpop.f32.mrb[148].mxu0  ;;  %v11979_v35 = vadd.f32 %v13107_v28, %v21235_v10  ;;  %v13110_v43 = vadd.f32 %v13109_v24, %v13108_v18 }
0x1397   : > { %v13218_v51 = vpop.f32.mrb[149].mxu0 }
0x1398   : > { %v13219_v33 = vadd.f32 %v13218_v51, %v13217_v16  ;;  %v13220_v5 = vpop.f32.mrb[150].mxu0  ;;  %v11982_v53 = vadd.f32 %v13110_v43, %v21235_v10 }
0x1399   : > { %v13221_v22 = vpop.f32.mrb[151].mxu0 }
0x139a   : > { %v12140_v44 = vadd.f32 %v13219_v33, %v11979_v35  ;;  %v13222_v21 = vadd.f32 %v13221_v22, %v13220_v5  ;;  %v22041_v22 = vld [vmem:[#allocation36_spill] sm:$0xff] }
0x139c   : > { %v12236_v57 = vadd.f32 %v12140_v44, %v22035_v19  ;;  %v12143_v23 = vadd.f32 %v13222_v21, %v11982_v53 }
0x139e   : > { %12268 = vst [vmem:[%s21242_s29 + $0x50] sm:$0xff] %v12236_v57  ;;  %v12237_v36 = vadd.f32 %v12143_v23, %v22036_v7  ;;  %v22042_v23 = vld [vmem:[#allocation90_spill] sm:$0xff] }
0x139f   : > { %v13111_v37 = vpop.f32.mrb[152].mxu1  ;;  %v13223_v40 = vpop.f32.mrb[152].mxu0 }
0x13a0   : > { %12269 = vst [vmem:[%s21242_s29 + $0x58] sm:$0xff] %v12237_v36  ;;  %v13112_v29 = vpop.f32.mrb[153].mxu1  ;;  %v13224_v38 = vpop.f32.mrb[153].mxu0 }
0x13a1   : > { %v13113_v46 = vadd.f32 %v13112_v29, %v13111_v37  ;;  %v13225_v47 = vadd.f32 %v13224_v38, %v13223_v40  ;;  %v13114_v34 = vpop.f32.mrb[154].mxu1  ;;  %v13226_v39 = vpop.f32.mrb[154].mxu0 }
0x13a2   : > { %v13115_v31 = vpop.f32.mrb[155].mxu1  ;;  %v13227_v27 = vpop.f32.mrb[155].mxu0 }
0x13a3   : > { %v11987_v61 = vadd.f32 %v13113_v46, %v21235_v10  ;;  %v13116_v41 = vadd.f32 %v13115_v31, %v13114_v34  ;;  %v13228_v45 = vadd.f32 %v13227_v27, %v13226_v39 }
0x13a5   : > { %v12148_v26 = vadd.f32 %v13225_v47, %v11987_v61  ;;  %v11990_v14 = vadd.f32 %v13116_v41, %v21235_v10 }
0x13a7   : > { %v12238_v54 = vadd.f32 %v12148_v26, %v22037_v1  ;;  %v12151_v17 = vadd.f32 %v13228_v45, %v11990_v14  ;;  %v13117_v0 = vpop.f32.mrb[156].mxu1  ;;  %v22043_v45 = vld [vmem:[#allocation39_spill] sm:$0xff] }
0x13a8   : > { %v13118_v32 = vpop.f32.mrb[157].mxu1  ;;  %v22044_v1 = vld [vmem:[#allocation107_spill] sm:$0xff] }
0x13a9   : > { %12270 = vst [vmem:[%s21242_s29 + $0x60] sm:$0xff] %v12238_v54  ;;  %v12239_v20 = vadd.f32 %v12151_v17, %v22038_v50  ;;  %v13229_v48 = vpop.f32.mrb[156].mxu0  ;;  %v13119_v60 = vadd.f32 %v13118_v32, %v13117_v0  ;;  %v13120_v15 = vpop.f32.mrb[158].mxu1 }
0x13aa   : > { %v13230_v30 = vpop.f32.mrb[157].mxu0  ;;  %v13121_v63 = vpop.f32.mrb[159].mxu1 }
0x13ab   : > { %12271 = vst [vmem:[%s21242_s29 + $0x68] sm:$0xff] %v12239_v20  ;;  %v11995_v11 = vadd.f32 %v13119_v60, %v21235_v10  ;;  %v13231_v3 = vadd.f32 %v13230_v30, %v13229_v48  ;;  %v13232_v25 = vpop.f32.mrb[158].mxu0  ;;  %v13122_v49 = vadd.f32 %v13121_v63, %v13120_v15 }
0x13ac   : > { %v13233_v6 = vpop.f32.mrb[159].mxu0 }
0x13ad   : > { %v12156_v59 = vadd.f32 %v13231_v3, %v11995_v11  ;;  %v11998_v42 = vadd.f32 %v13122_v49, %v21235_v10  ;;  %v13234_v8 = vadd.f32 %v13233_v6, %v13232_v25 }
0x13af   : > { %v12240_v13 = vadd.f32 %v12156_v59, %v22039_v55  ;;  %v12159_v2 = vadd.f32 %v13234_v8, %v11998_v42  ;;  %v13123_v52 = vpop.f32.mrb[160].mxu1  ;;  %v22045_v59 = vld [vmem:[#allocation106_spill] sm:$0xff]  ;;  %v22046_v55 = vld [vmem:[#allocation44_spill] sm:$0xff] }
0x13b0   : > { %v13124_v9 = vpop.f32.mrb[161].mxu1 }
0x13b1   : > { %12272 = vst [vmem:[%s21242_s29 + $0x70] sm:$0xff] %v12240_v13  ;;  %v12241_v56 = vadd.f32 %v12159_v2, %v22040_v58  ;;  %v13235_v62 = vpop.f32.mrb[160].mxu0  ;;  %v13125_v4 = vadd.f32 %v13124_v9, %v13123_v52  ;;  %v13126_v12 = vpop.f32.mrb[162].mxu1 }
0x13b2   : > { %v13236_v28 = vpop.f32.mrb[161].mxu0  ;;  %v13127_v18 = vpop.f32.mrb[163].mxu1 }
0x13b3   : > { %12273 = vst [vmem:[%s21242_s29 + $0x78] sm:$0xff] %v12241_v56  ;;  %v12003_v24 = vadd.f32 %v13125_v4, %v21235_v10  ;;  %v13237_v16 = vadd.f32 %v13236_v28, %v13235_v62  ;;  %v13238_v35 = vpop.f32.mrb[162].mxu0  ;;  %v13128_v43 = vadd.f32 %v13127_v18, %v13126_v12 }
0x13b4   : > { %v13239_v51 = vpop.f32.mrb[163].mxu0 }
0x13b5   : > { %v12164_v33 = vadd.f32 %v13237_v16, %v12003_v24  ;;  %v12006_v5 = vadd.f32 %v13128_v43, %v21235_v10  ;;  %v13240_v53 = vadd.f32 %v13239_v51, %v13238_v35 }
0x13b7   : > { %v12242_v44 = vadd.f32 %v12164_v33, %v22041_v22  ;;  %v12167_v21 = vadd.f32 %v13240_v53, %v12006_v5  ;;  %v13129_v19 = vpop.f32.mrb[164].mxu1  ;;  %v22047_v33 = vld [vmem:[#allocation46_spill] sm:$0xff] }
0x13b8   : > { %v13130_v57 = vpop.f32.mrb[165].mxu1 }
0x13b9   : > { %12274 = vst [vmem:[%s21242_s29 + $0x80] sm:$0xff] %v12242_v44  ;;  %v12243_v7 = vadd.f32 %v12167_v21, %v22042_v23  ;;  %v13241_v36 = vpop.f32.mrb[164].mxu0  ;;  %v13131_v37 = vadd.f32 %v13130_v57, %v13129_v19  ;;  %v13132_v40 = vpop.f32.mrb[166].mxu1  ;;  %v22048_v19 = vld [vmem:[#allocation93_spill] sm:$0xff] }
0x13ba   : > { %v13242_v29 = vpop.f32.mrb[165].mxu0  ;;  %v13133_v38 = vpop.f32.mrb[167].mxu1 }
0x13bb   : > { %12275 = vst [vmem:[%s21242_s29 + $0x88] sm:$0xff] %v12243_v7  ;;  %v12011_v46 = vadd.f32 %v13131_v37, %v21235_v10  ;;  %v13243_v47 = vadd.f32 %v13242_v29, %v13241_v36  ;;  %v13244_v34 = vpop.f32.mrb[166].mxu0  ;;  %v13134_v39 = vadd.f32 %v13133_v38, %v13132_v40 }
0x13bc   : > { %v13245_v31 = vpop.f32.mrb[167].mxu0 }
0x13bd   : > { %v12172_v27 = vadd.f32 %v13243_v47, %v12011_v46  ;;  %v12014_v61 = vadd.f32 %v13134_v39, %v21235_v10  ;;  %v13246_v41 = vadd.f32 %v13245_v31, %v13244_v34 }
0x13bf   : > { %v12244_v26 = vadd.f32 %v12172_v27, %v22043_v45  ;;  %v12175_v14 = vadd.f32 %v13246_v41, %v12014_v61  ;;  %v22049_v27 = vld [vmem:[#allocation35_spill] sm:$0xff] }
0x13c1   : > { %12276 = vst [vmem:[%s21242_s29 + $0x90] sm:$0xff] %v12244_v26  ;;  %v12245_v54 = vadd.f32 %v12175_v14, %v22044_v1  ;;  %v22050_v1 = vld [vmem:[#allocation105_spill] sm:$0xff] }
0x13c3   : > { %12277 = vst [vmem:[%s21242_s29 + $0x98] sm:$0xff] %v12245_v54 }
0x13e3   : > { %v13135_v17 = vpop.f32.mrb[168].mxu1  ;;  %v13247_v0 = vpop.f32.mrb[168].mxu0 }
0x13e4   : > { %v13136_v32 = vpop.f32.mrb[169].mxu1  ;;  %v13248_v20 = vpop.f32.mrb[169].mxu0 }
0x13e5   : > { %v13137_v50 = vadd.f32 %v13136_v32, %v13135_v17  ;;  %v13138_v48 = vpop.f32.mrb[170].mxu1  ;;  %v13249_v60 = vadd.f32 %v13248_v20, %v13247_v0  ;;  %v13250_v15 = vpop.f32.mrb[170].mxu0 }
0x13e6   : > { %v13139_v30 = vpop.f32.mrb[171].mxu1  ;;  %v13251_v3 = vpop.f32.mrb[171].mxu0 }
0x13e7   : > { %v12019_v63 = vadd.f32 %v13137_v50, %v21235_v10  ;;  %v13140_v11 = vadd.f32 %v13139_v30, %v13138_v48  ;;  %v13252_v25 = vadd.f32 %v13251_v3, %v13250_v15 }
0x13e9   : > { %v12180_v49 = vadd.f32 %v13249_v60, %v12019_v63  ;;  %v12022_v6 = vadd.f32 %v13140_v11, %v21235_v10 }
0x13eb   : > { %v12246_v42 = vadd.f32 %v12180_v49, %v22045_v59  ;;  %v12183_v8 = vadd.f32 %v13252_v25, %v12022_v6  ;;  %v22051_v25 = vld [vmem:[#allocation104_spill] sm:$0xff]  ;;  %v22052_v59 = vld [vmem:[#allocation49_spill] sm:$0xff] }
0x13ed   : > { %12278 = vst [vmem:[%s21242_s29 + $0xa0] sm:$0xff] %v12246_v42  ;;  %v12247_v13 = vadd.f32 %v12183_v8, %v22046_v55 }
0x13ef   : > { %v13141_v2 = vpop.f32.mrb[172].mxu1  ;;  %12279 = vst [vmem:[%s21242_s29 + $0xa8] sm:$0xff] %v12247_v13  ;;  %v13253_v52 = vpop.f32.mrb[172].mxu0 }
0x13f0   : > { %v13142_v9 = vpop.f32.mrb[173].mxu1  ;;  %v13254_v56 = vpop.f32.mrb[173].mxu0 }
0x13f1   : > { %v13143_v58 = vadd.f32 %v13142_v9, %v13141_v2  ;;  %v13144_v62 = vpop.f32.mrb[174].mxu1  ;;  %v13255_v4 = vadd.f32 %v13254_v56, %v13253_v52  ;;  %v13256_v12 = vpop.f32.mrb[174].mxu0 }
0x13f2   : > { %v13145_v28 = vpop.f32.mrb[175].mxu1  ;;  %v13257_v16 = vpop.f32.mrb[175].mxu0 }
0x13f3   : > { %v12027_v18 = vadd.f32 %v13143_v58, %v21235_v10  ;;  %v13146_v24 = vadd.f32 %v13145_v28, %v13144_v62  ;;  %v13258_v35 = vadd.f32 %v13257_v16, %v13256_v12 }
0x13f5   : > { %v12188_v43 = vadd.f32 %v13255_v4, %v12027_v18  ;;  %v12030_v51 = vadd.f32 %v13146_v24, %v21235_v10 }
0x13f7   : > { %v12248_v5 = vadd.f32 %v12188_v43, %v22047_v33  ;;  %v12191_v53 = vadd.f32 %v13258_v35, %v12030_v51  ;;  %v13147_v22 = vpop.f32.mrb[176].mxu1  ;;  %v13259_v44 = vpop.f32.mrb[176].mxu0  ;;  %v22053_v35 = vld [vmem:[#allocation123_spill] sm:$0xff]  ;;  %v22054_v33 = vld [vmem:[#allocation42_spill] sm:$0xff] }
0x13f8   : > { %v13148_v21 = vpop.f32.mrb[177].mxu1  ;;  %v13260_v7 = vpop.f32.mrb[177].mxu0 }
0x13f9   : > { %12280 = vst [vmem:[%s21242_s29 + $0xb0] sm:$0xff] %v12248_v5  ;;  %v12249_v57 = vadd.f32 %v12191_v53, %v22048_v19  ;;  %v13149_v23 = vadd.f32 %v13148_v21, %v13147_v22  ;;  %v13150_v36 = vpop.f32.mrb[178].mxu1  ;;  %v13261_v37 = vadd.f32 %v13260_v7, %v13259_v44  ;;  %v13262_v40 = vpop.f32.mrb[178].mxu0 }
0x13fa   : > { %v13151_v29 = vpop.f32.mrb[179].mxu1  ;;  %v13263_v47 = vpop.f32.mrb[179].mxu0 }
0x13fb   : > { %12281 = vst [vmem:[%s21242_s29 + $0xb8] sm:$0xff] %v12249_v57  ;;  %v12035_v38 = vadd.f32 %v13149_v23, %v21235_v10  ;;  %v13152_v46 = vadd.f32 %v13151_v29, %v13150_v36  ;;  %v13264_v34 = vadd.f32 %v13263_v47, %v13262_v40 }
0x13fd   : > { %v12196_v39 = vadd.f32 %v13261_v37, %v12035_v38  ;;  %v12038_v31 = vadd.f32 %v13152_v46, %v21235_v10 }
0x13ff   : > { %v12250_v61 = vadd.f32 %v12196_v39, %v22049_v27  ;;  %v12199_v41 = vadd.f32 %v13264_v34, %v12038_v31  ;;  %v22055_v34 = vld [vmem:[#allocation38_spill] sm:$0xff]  ;;  %v22057_v27 = vld [vmem:[#allocation96_spill] sm:$0xff] }
0x1401   : > { %v13153_v45 = vpop.f32.mrb[180].mxu1  ;;  %12282 = vst [vmem:[%s21242_s29 + $0xc0] sm:$0xff] %v12250_v61  ;;  %v12251_v54 = vadd.f32 %v12199_v41, %v22050_v1 }
0x1402   : > { %v13265_v26 = vpop.f32.mrb[180].mxu0  ;;  %v13154_v14 = vpop.f32.mrb[181].mxu1 }
0x1403   : > { %v13155_v17 = vadd.f32 %v13154_v14, %v13153_v45  ;;  %v13266_v0 = vpop.f32.mrb[181].mxu0  ;;  %v13156_v32 = vpop.f32.mrb[182].mxu1  ;;  %12283 = vst [vmem:[%s21242_s29 + $0xc8] sm:$0xff] %v12251_v54 }
0x1404   : > { %v13267_v50 = vadd.f32 %v13266_v0, %v13265_v26  ;;  %v13268_v20 = vpop.f32.mrb[182].mxu0  ;;  %v13157_v48 = vpop.f32.mrb[183].mxu1 }
0x1405   : > { %v12043_v60 = vadd.f32 %v13155_v17, %v21235_v10  ;;  %v13158_v15 = vadd.f32 %v13157_v48, %v13156_v32  ;;  %v13269_v30 = vpop.f32.mrb[183].mxu0 }
0x1406   : > { %v13270_v63 = vadd.f32 %v13269_v30, %v13268_v20 }
0x1407   : > { %v12204_v11 = vadd.f32 %v13267_v50, %v12043_v60  ;;  %v12046_v3 = vadd.f32 %v13158_v15, %v21235_v10 }
0x1409   : > { %v12252_v49 = vadd.f32 %v12204_v11, %v22051_v25  ;;  %v12207_v6 = vadd.f32 %v13270_v63, %v12046_v3 }
0x140b   : > { %12284 = vst [vmem:[%s21242_s29 + $0xd0] sm:$0xff] %v12252_v49  ;;  %v12253_v42 = vadd.f32 %v12207_v6, %v22052_v59 }
0x140d   : > { %12285 = vst [vmem:[%s21242_s29 + $0xd8] sm:$0xff] %v12253_v42 }
0x1410   : > { %v13159_v8 = vpop.f32.mrb[184].mxu1 }
0x1411   : > { %v13160_v55 = vpop.f32.mrb[185].mxu1 }
0x1412   : > { %v13271_v13 = vpop.f32.mrb[184].mxu0  ;;  %v13161_v2 = vadd.f32 %v13160_v55, %v13159_v8  ;;  %v13162_v52 = vpop.f32.mrb[186].mxu1 }
0x1413   : > { %v13272_v9 = vpop.f32.mrb[185].mxu0  ;;  %v13163_v58 = vpop.f32.mrb[187].mxu1 }
0x1414   : > { %v12051_v56 = vadd.f32 %v13161_v2, %v21235_v10  ;;  %v13273_v62 = vadd.f32 %v13272_v9, %v13271_v13  ;;  %v13274_v4 = vpop.f32.mrb[186].mxu0  ;;  %v13164_v12 = vadd.f32 %v13163_v58, %v13162_v52 }
0x1415   : > { %v13275_v28 = vpop.f32.mrb[187].mxu0 }
0x1416   : > { %v12212_v18 = vadd.f32 %v13273_v62, %v12051_v56  ;;  %v12054_v24 = vadd.f32 %v13164_v12, %v21235_v10  ;;  %v13276_v16 = vadd.f32 %v13275_v28, %v13274_v4 }
0x1418   : > { %v12254_v43 = vadd.f32 %v12212_v18, %v22053_v35  ;;  %v12215_v51 = vadd.f32 %v13276_v16, %v12054_v24 }
0x1419   : > { %v13165_v53 = vpop.f32.mrb[188].mxu1 }
0x141a   : > { %12286 = vst [vmem:[%s21242_s29 + $0xe0] sm:$0xff] %v12254_v43  ;;  %v12255_v5 = vadd.f32 %v12215_v51, %v22054_v33  ;;  %v13277_v22 = vpop.f32.mrb[188].mxu0  ;;  %v13166_v44 = vpop.f32.mrb[189].mxu1 }
0x141b   : > { %v13167_v21 = vadd.f32 %v13166_v44, %v13165_v53  ;;  %v13278_v19 = vpop.f32.mrb[189].mxu0  ;;  %v13168_v57 = vpop.f32.mrb[190].mxu1 }
0x141c   : > { %12287 = vst [vmem:[%s21242_s29 + $0xe8] sm:$0xff] %v12255_v5  ;;  %v13279_v23 = vadd.f32 %v13278_v19, %v13277_v22  ;;  %v13280_v7 = vpop.f32.mrb[190].mxu0  ;;  %v13169_v36 = vpop.f32.mrb[191].mxu1 }
0x141d   : > { %v12059_v37 = vadd.f32 %v13167_v21, %v21235_v10  ;;  %v13170_v40 = vadd.f32 %v13169_v36, %v13168_v57  ;;  %v13281_v29 = vpop.f32.mrb[191].mxu0 }
0x141e   : > { %v13282_v38 = vadd.f32 %v13281_v29, %v13280_v7 }
0x141f   : > { %v12220_v46 = vadd.f32 %v13279_v23, %v12059_v37  ;;  %v12062_v47 = vadd.f32 %v13170_v40, %v21235_v10 }
0x1421   : > { %v12256_v39 = vadd.f32 %v12220_v46, %v22055_v34  ;;  %v12223_v31 = vadd.f32 %v13282_v38, %v12062_v47 }
0x1423   : > { %12288 = vst [vmem:[%s21242_s29 + $0xf0] sm:$0xff] %v12256_v39  ;;  %v12257_v61 = vadd.f32 %v12223_v31, %v22057_v27 }
0x1425   : > { %12289 = vst [vmem:[%s21242_s29 + $0xf8] sm:$0xff] %v12257_v61 }
0x1426   : > { %15975 = shalt.err (!%p15972_p9)
}
0x1427   : > { %s15976_s15 = scalar_lea.hbm %s21339_s14, 4096  ;;  %s15980_s12 = scalar_lea.hbm %s22056_s16, 8192 }
0x1428   : > { %p15977_p7 = scmp.ne.s32.totalorder %s21339_s14, %s15976_s15  ;;  %p15981_p13 = scmp.lt.u32.totalorder %s21339_s14, %s22056_s16 }
0x1429   : > { %p15982_p1 = scmp.lt.u32.totalorder %s15980_s12, %s15976_s15  ;;  %p15984_p2 = scmp.lt.u32.totalorder %s15976_s15, %s21339_s14 }
0x142a   : > { %p15978_p10 = pnand %p15977_p7, %p22058_p8 }
0x142b   : > { %p15983_p3 = por %p15982_p1, %p15981_p13 }
0x142c   : > { %p15979_p4 = pneg %p15978_p10 }
0x142d   : > { %p15985_p6 = por %p15984_p2, %p15983_p3 }
0x142f   : > { %p15986_p11 = pnand %p15985_p6, %p15979_p4 }
0x1431   : > { %15989 = shalt.err (!%p15986_p11)
}
0x1432   : > { %s16081_s27 = smov 128   ;;  %s16082_s18 = smov 8  }
0x1433   : > { %14209 = dma.vmem_to_hbm [thread:$0]  (%p22058_p8), %s21341_s19, 4096, %s21339_s14, %s12291_s30, %s16081_s27, %s16081_s27, %s16082_s18  }
0x1434 PF: > { %s12320_s1 = sand.u32 1, %s16040_s21   ;;  %p22059_p12 = scmp.ne.s32.totalorder %s21591_s2, 0 }
0x1435   : > { %p22060_p0 = scmp.ge.s32.totalorder %s16052_s24, 2  ;;  %s12321_s28 = scalar_lea.sflag [#allocation4], %s12320_s1 }
0x1437   : > { %p14250_p5 = pnand %p22060_p0, %p22059_p12 }
0x1439   : > { %16035 = dma.done.wait (!%p14250_p5), %s12321_s28, 4096  }
0x143a   : > { %16037 = vsyncadd (!%p14250_p5), %s12321_s28, 4294963200  ;;  %p31_p9 = scmp.ge.s32.totalorder %s16422_s13, 4   ;;  %s22061_s21 = smov %s16044_s22 }
0x143b   : > { %s22062_s22 = smov %s16048_s23  ;;  %s22063_s23 = smov %s16434_s20 }
0x143c   : > { %s22064_s24 = smov %s16422_s13  ;;  %33 = sbr.rel (!%p31_p9) target bundleno = 17 (0x11), region = 157 }
0x1443   :  { %12326 = vsyncpa [#allocation3], 1 }
0x1444   :  { %12328 = vsyncpa [#allocation3 + $0x1], 1 }
0x1445   :  { %12329 = vsyncpa [#allocation6], 1 }
0x1446   :  { %12330 = vsyncpa [#allocation9], 1 }
0x1447   :  { %12331 = vsyncpa [#allocation12], 1 }
0x1448   :  { %12332 = vsyncpa [#allocation15], 1 }
0x1449   :  { %12333 = vsyncpa [#allocation18], 1 }
0x144a   :  { %12334 = vsyncpa [#allocation21], 1 }
0x144b   :  { %12335 = vsyncpa [#allocation4], 1 }
0x144c   :  { %12337 = vsyncpa [#allocation4 + $0x1], 1 }

</bundles_post_ra>
